<compile_context>
chip_gen: v7x
topology: tpu7x:2x2x1
jax: 0.10.0
libtpu: 0.0.40
codegen_flags: <defaults>
</compile_context>

<pallas_src>
import math
from functools import partial

import numpy as np
import jax
import jax.numpy as jnp
from jax.experimental import pallas as pl
from jax.experimental.pallas import tpu as pltpu


def _round_up(v, m):
    return (v + m - 1) // m * m


# --------------------------------------------------------------------------- #
# Generic tiled matmul + affine (folded BN) + optional residual + optional ReLU.
# Output block (i, j) is constant across the k axis => it is the accumulator.
# --------------------------------------------------------------------------- #
def _mm_kernel(relu, has_res, a_ref, b_ref, s_ref, c_ref, *rest):
    if has_res:
        r_ref, o_ref = rest
    else:
        (o_ref,) = rest

    k = pl.program_id(2)

    @pl.when(k == 0)
    def _():
        o_ref[...] = jnp.zeros_like(o_ref)

    o_ref[...] += jnp.dot(a_ref[...], b_ref[...],
                          preferred_element_type=jnp.float32)

    @pl.when(k == pl.num_programs(2) - 1)
    def _():
        y = o_ref[...] * s_ref[...] + c_ref[...]
        if has_res:
            y = y + r_ref[...]
        if relu:
            y = jnp.maximum(y, 0.0)
        o_ref[...] = y


def _tiled_matmul(a, b, scale, bias, *, residual=None, relu=False, cast_bf16=True):
    """Computes act((a @ b) * scale + bias + residual).

    a: (M, K) f32, b: (K, N) f32, scale/bias: (1, N) f32, residual: (M, N) f32 or None.
    Returns (M, N) f32.
    """
    M, K = a.shape
    K2, N = b.shape
    assert K == K2

    # Tile sizes: lane dims padded to x128 (lane-dense stores), sublane to x16 (bf16).
    TN = min(_round_up(N, 128), 512)
    Np = _round_up(N, TN)
    TK = min(_round_up(K, 128), 512)
    Kp = _round_up(K, TK)
    TM = min(_round_up(M, 16), 256)
    Mp = _round_up(M, TM)

    op_dt = jnp.bfloat16 if cast_bf16 else jnp.float32
    ap = jnp.pad(a, ((0, Mp - M), (0, Kp - K))).astype(op_dt)
    bp = jnp.pad(b, ((0, Kp - K), (0, Np - N))).astype(op_dt)
    sp = jnp.pad(scale, ((0, 0), (0, Np - N))).astype(jnp.float32)
    cp = jnp.pad(bias, ((0, 0), (0, Np - N))).astype(jnp.float32)

    has_res = residual is not None
    in_specs = [
        pl.BlockSpec((TM, TK), lambda i, j, k: (i, k)),
        pl.BlockSpec((TK, TN), lambda i, j, k: (k, j)),
        pl.BlockSpec((1, TN), lambda i, j, k: (0, j)),
        pl.BlockSpec((1, TN), lambda i, j, k: (0, j)),
    ]
    args = [ap, bp, sp, cp]
    if has_res:
        rp = jnp.pad(residual, ((0, Mp - M), (0, Np - N))).astype(jnp.float32)
        in_specs.append(pl.BlockSpec((TM, TN), lambda i, j, k: (i, j)))
        args.append(rp)

    out = pl.pallas_call(
        partial(_mm_kernel, relu, has_res),
        out_shape=jax.ShapeDtypeStruct((Mp, Np), jnp.float32),
        grid=(Mp // TM, Np // TN, Kp // TK),
        in_specs=in_specs,
        out_specs=pl.BlockSpec((TM, TN), lambda i, j, k: (i, j)),
        compiler_params=pltpu.CompilerParams(
            dimension_semantics=("parallel", "parallel", "arbitrary")),
    )(*args)

    return out[:M, :N]


# --------------------------------------------------------------------------- #
# Conv2d + folded-BN affine + optional residual + optional ReLU as one matmul.
# --------------------------------------------------------------------------- #
def conv_bn_act(x, w, scale, bias, *, stride=1, dilation=1, padding=0,
                relu=True, residual=None):
    """x: (N,H,W,Cin) f32, w: (k,k,Cin,Cout) f32, scale/bias: (1,Cout).
    Returns act(conv(x,w)*scale + bias + residual), shape (N,Hout,Wout,Cout)."""
    N, H, W, Cin = x.shape
    k = w.shape[0]
    Cout = w.shape[-1]
    Hout = (H + 2 * padding - dilation * (k - 1) - 1) // stride + 1
    Wout = (W + 2 * padding - dilation * (k - 1) - 1) // stride + 1
    M = N * Hout * Wout

    if k == 1 and stride == 1 and padding == 0:
        patches = x.reshape(M, Cin)                       # 1x1 conv fast path
    else:
        xp = jnp.pad(x, ((0, 0), (padding, padding), (padding, padding), (0, 0)))
        cols = []
        for kh in range(k):
            for kw in range(k):
                sl = xp[:, kh * dilation: kh * dilation + stride * (Hout - 1) + 1: stride,
                           kw * dilation: kw * dilation + stride * (Wout - 1) + 1: stride, :]
                cols.append(sl.reshape(M, Cin))
        patches = jnp.concatenate(cols, axis=1)           # (M, k*k*Cin)

    Wm = w.reshape(k * k * Cin, Cout)                     # (kh, kw, cin) order matches
    res = residual.reshape(M, Cout) if residual is not None else None

    out = _tiled_matmul(patches, Wm, scale, bias,
                        residual=res, relu=relu, cast_bf16=True)
    return out.reshape(N, Hout, Wout, Cout)


# --------------------------------------------------------------------------- #
# Grouped bilinear ConvTranspose2d(16, stride=8, pad=4): separable => two batched
# lane-dense matmuls (row pass, then col pass), each a tiled Pallas matmul.
# --------------------------------------------------------------------------- #
def _bilinear_up_matrix(hin, kernel=16, stride=8, pad=4):
    hout = (hin - 1) * stride - 2 * pad + kernel
    f = math.ceil(kernel / 2)
    c = (2 * f - 1 - f % 2) / (2.0 * f)
    w1d = np.array([1.0 - abs(i / f - c) for i in range(kernel)], np.float64)
    U = np.zeros((hout, hin), np.float64)
    for ih in range(hin):
        for kk in range(kernel):
            oh = ih * stride - pad + kk
            if 0 <= oh < hout:
                U[oh, ih] += w1d[kk]
    return jnp.asarray(U, jnp.float32), hout


def bilinear_upsample_x8(x_nchw):
    N, C, H, W = x_nchw.shape
    Uh, Hout = _bilinear_up_matrix(H)
    Uw, Wout = _bilinear_up_matrix(W)
    B = N * C
    x = x_nchw.reshape(B, H, W)

    # Row pass:  (Hout, H) @ (H, B*W)  ->  (Hout, B*W)
    xr = jnp.transpose(x, (1, 0, 2)).reshape(H, B * W)
    ones1 = jnp.ones((1, B * W), jnp.float32)
    zer1 = jnp.zeros((1, B * W), jnp.float32)
    t = _tiled_matmul(Uh, xr, ones1, zer1, relu=False, cast_bf16=False)

    # Col pass:  (B*Hout, W) @ (W, Wout)  ->  (B*Hout, Wout)
    tr = t.reshape(Hout, B, W).transpose(1, 0, 2).reshape(B * Hout, W)
    ones2 = jnp.ones((1, Wout), jnp.float32)
    zer2 = jnp.zeros((1, Wout), jnp.float32)
    y = _tiled_matmul(tr, Uw.T, ones2, zer2, relu=False, cast_bf16=False)

    return y.reshape(N, C, Hout, Wout)


# --------------------------------------------------------------------------- #
# Deterministic parameter construction (DRN-D-22: layers [1,1,2,2,2,2,1,1])
# --------------------------------------------------------------------------- #
_CHANNELS = (16, 32, 64, 128, 256, 512, 512, 512)


def _conv_init(key, cin, cout, k):
    fan_in = cin * k * k
    return jax.random.normal(key, (k, k, cin, cout), jnp.float32) * np.sqrt(2.0 / fan_in)


def _bn_fold(cout, eps=1e-5):
    # eval-mode BN with gamma=1, beta=0, running_mean=0, running_var=1
    scale = jnp.full((1, cout), 1.0 / np.sqrt(1.0 + eps), jnp.float32)
    bias = jnp.zeros((1, cout), jnp.float32)
    return scale, bias


def build_drnseg_params(classes, key):
    ki = iter(jax.random.split(key, 64))
    ch = _CHANNELS

    def conv_bn_params(cin, cout, k):
        s, b = _bn_fold(cout)
        return {'w': _conv_init(next(ki), cin, cout, k), 's': s, 'b': b}

    def block_params(cin, cout, downsample):
        bp = {'w1': _conv_init(next(ki), cin, cout, 3),
              'w2': _conv_init(next(ki), cout, cout, 3)}
        bp['s1'], bp['b1'] = _bn_fold(cout)
        bp['s2'], bp['b2'] = _bn_fold(cout)
        if downsample:
            bp['wd'] = _conv_init(next(ki), cin, cout, 1)
            bp['sd'], bp['bd'] = _bn_fold(cout)
        return bp

    p = {}
    p['layer0'] = conv_bn_params(3, ch[0], 7)
    p['layer1'] = conv_bn_params(ch[0], ch[0], 3)
    p['layer2'] = conv_bn_params(ch[0], ch[1], 3)
    p['layer3'] = [block_params(ch[1], ch[2], True), block_params(ch[2], ch[2], False)]
    p['layer4'] = [block_params(ch[2], ch[3], True), block_params(ch[3], ch[3], False)]
    p['layer5'] = [block_params(ch[3], ch[4], True), block_params(ch[4], ch[4], False)]
    p['layer6'] = [block_params(ch[4], ch[5], True), block_params(ch[5], ch[5], False)]
    p['layer7'] = conv_bn_params(ch[5], ch[6], 3)
    p['layer8'] = conv_bn_params(ch[6], ch[7], 3)
    p['seg_w'] = _conv_init(next(ki), ch[7], classes, 1)
    bnd = 1.0 / np.sqrt(ch[7])
    p['seg_b'] = jax.random.uniform(next(ki), (1, classes), jnp.float32, -bnd, bnd)
    return p


# --------------------------------------------------------------------------- #
# Forward pass
# --------------------------------------------------------------------------- #
def _basic_block(x, bp, stride, dilation):
    out = conv_bn_act(x, bp['w1'], bp['s1'], bp['b1'],
                      stride=stride, dilation=dilation, padding=dilation, relu=True)
    if 'wd' in bp:
        res = conv_bn_act(x, bp['wd'], bp['sd'], bp['bd'],
                          stride=stride, dilation=1, padding=0, relu=False)
    else:
        res = x
    # conv2 + BN + residual add + ReLU, all fused inside the Pallas matmul epilogue
    return conv_bn_act(out, bp['w2'], bp['s2'], bp['b2'],
                       stride=1, dilation=dilation, padding=dilation, relu=True,
                       residual=res)


def drnseg_forward(params, x_nchw):
    x = jnp.transpose(x_nchw, (0, 2, 3, 1)).astype(jnp.float32)   # NCHW -> NHWC
    l0 = params['layer0']
    x = conv_bn_act(x, l0['w'], l0['s'], l0['b'], stride=1, dilation=1, padding=3)
    l1 = params['layer1']
    x = conv_bn_act(x, l1['w'], l1['s'], l1['b'], stride=1, dilation=1, padding=1)
    l2 = params['layer2']
    x = conv_bn_act(x, l2['w'], l2['s'], l2['b'], stride=2, dilation=1, padding=1)

    x = _basic_block(x, params['layer3'][0], stride=2, dilation=1)
    x = _basic_block(x, params['layer3'][1], stride=1, dilation=1)
    x = _basic_block(x, params['layer4'][0], stride=2, dilation=1)
    x = _basic_block(x, params['layer4'][1], stride=1, dilation=1)
    x = _basic_block(x, params['layer5'][0], stride=1, dilation=2)
    x = _basic_block(x, params['layer5'][1], stride=1, dilation=2)
    x = _basic_block(x, params['layer6'][0], stride=1, dilation=4)
    x = _basic_block(x, params['layer6'][1], stride=1, dilation=4)

    l7 = params['layer7']
    x = conv_bn_act(x, l7['w'], l7['s'], l7['b'], stride=1, dilation=2, padding=2)
    l8 = params['layer8']
    x = conv_bn_act(x, l8['w'], l8['s'], l8['b'], stride=1, dilation=1, padding=1)

    # seg: 1x1 conv with bias, no BN, no ReLU
    classes = params['seg_w'].shape[-1]
    ones = jnp.ones((1, classes), jnp.float32)
    x = conv_bn_act(x, params['seg_w'], ones, params['seg_b'],
                    stride=1, dilation=1, padding=0, relu=False)

    # up: fixed bilinear grouped ConvTranspose2d, x8
    x = jnp.transpose(x, (0, 3, 1, 2))                  # NHWC -> NCHW
    return bilinear_upsample_x8(x)


if __name__ == "__main__":
    key = jax.random.PRNGKey(0)
    kx, kp = jax.random.split(key)
    classes = 8
    x = jax.random.normal(kx, (2, 3, 16, 16), jnp.float32)   # NCHW, like PyTorch input
    params = build_drnseg_params(classes, kp)

    fwd = jax.jit(drnseg_forward)
    y = jax.block_until_ready(fwd(params, x))

    assert y.shape == (2, classes, 16, 16), y.shape
    assert bool(jnp.all(jnp.isfinite(y)))
    print("KERNEL_OK")
</pallas_src>

<mosaic_0001>
module attributes {stable_mosaic.version = 11 : i64} {
  func.func @_mm_kernel(%arg0: i32, %arg1: i32, %arg2: i32, %arg3: memref<256x256xbf16, #tpu.memory_space<vmem>>, %arg4: memref<256x128xbf16, #tpu.memory_space<vmem>>, %arg5: memref<1x128xf32, #tpu.memory_space<vmem>>, %arg6: memref<1x128xf32, #tpu.memory_space<vmem>>, %arg7: memref<256x128xf32, #tpu.memory_space<vmem>>) attributes {dimension_semantics = [#tpu.dimension_semantics<parallel>, #tpu.dimension_semantics<parallel>, #tpu.dimension_semantics<arbitrary>], iteration_bounds = array<i64: 2, 1, 1>, scalar_prefetch = 0 : i64, scratch_operands = 0 : i64, tpu.core_type = #tpu.core_type<tc>, window_params = [{transform_indices = @transform_0, window_bounds = array<i64: 256, 256>}, {transform_indices = @transform_1, window_bounds = array<i64: 256, 128>}, {transform_indices = @transform_2, window_bounds = array<i64: 1, 128>}, {transform_indices = @transform_3, window_bounds = array<i64: 1, 128>}, {transform_indices = @transform_4, window_bounds = array<i64: 256, 128>}]} {
    %c0_i32 = arith.constant 0 : i32
    %0 = arith.cmpi eq, %arg2, %c0_i32 : i32
    %1 = arith.extui %0 : i1 to i32
    %c0_i32_0 = arith.constant 0 : i32
    %2 = arith.cmpi ne, %1, %c0_i32_0 : i32
    scf.if %2 {
      %cst_10 = arith.constant 0.000000e+00 : f32
      %12 = vector.broadcast %cst_10 : f32 to vector<256x128xf32>
      %c0_11 = arith.constant 0 : index
      %c0_12 = arith.constant 0 : index
      %13 = vector.load %arg7[%c0_11, %c0_12] : memref<256x128xf32, #tpu.memory_space<vmem>>, vector<256x128xf32>
      tpu.vector_store %arg7[%c0_11, %c0_12], %12 {strides = array<i32>} : memref<256x128xf32, #tpu.memory_space<vmem>>, vector<256x128xf32>,
    } else {
    }
    %c0 = arith.constant 0 : index
    %c0_1 = arith.constant 0 : index
    %3 = vector.load %arg7[%c0, %c0_1] : memref<256x128xf32, #tpu.memory_space<vmem>>, vector<256x128xf32>
    %c0_2 = arith.constant 0 : index
    %c0_3 = arith.constant 0 : index
    %4 = vector.load %arg3[%c0_2, %c0_3] : memref<256x256xbf16, #tpu.memory_space<vmem>>, vector<256x256xbf16>
    %c0_4 = arith.constant 0 : index
    %c0_5 = arith.constant 0 : index
    %5 = vector.load %arg4[%c0_4, %c0_5] : memref<256x128xbf16, #tpu.memory_space<vmem>>, vector<256x128xbf16>
    %cst = arith.constant dense<0.000000e+00> : vector<256x128xf32>
    %6 = tpu.matmul %4, %5, %cst {dimension_numbers = #tpu.dot_dimension_numbers<[1], [0], [0], [1], [0, 0, 1, 1], [], []>} : vector<256x256xbf16>, vector<256x128xbf16>, vector<256x128xf32> -> vector<256x128xf32>
    %7 = arith.addf %3, %6 : vector<256x128xf32>
    %c0_6 = arith.constant 0 : index
    %c0_7 = arith.constant 0 : index
    %8 = vector.load %arg7[%c0_6, %c0_7] : memref<256x128xf32, #tpu.memory_space<vmem>>, vector<256x128xf32>
    tpu.vector_store %arg7[%c0_6, %c0_7], %7 {strides = array<i32>} : memref<256x128xf32, #tpu.memory_space<vmem>>, vector<256x128xf32>,
    %c0_i32_8 = arith.constant 0 : i32
    %9 = arith.cmpi eq, %arg2, %c0_i32_8 : i32
    %10 = arith.extui %9 : i1 to i32
    %c0_i32_9 = arith.constant 0 : i32
    %11 = arith.cmpi ne, %10, %c0_i32_9 : i32
    scf.if %11 {
      %c0_10 = arith.constant 0 : index
      %c0_11 = arith.constant 0 : index
      %12 = vector.load %arg7[%c0_10, %c0_11] : memref<256x128xf32, #tpu.memory_space<vmem>>, vector<256x128xf32>
      %c0_12 = arith.constant 0 : index
      %c0_13 = arith.constant 0 : index
      %13 = vector.load %arg5[%c0_12, %c0_13] : memref<1x128xf32, #tpu.memory_space<vmem>>, vector<1x128xf32>
      %14 = vector.broadcast %13 : vector<1x128xf32> to vector<256x128xf32>
      %15 = arith.mulf %12, %14 : vector<256x128xf32>
      %c0_14 = arith.constant 0 : index
      %c0_15 = arith.constant 0 : index
      %16 = vector.load %arg6[%c0_14, %c0_15] : memref<1x128xf32, #tpu.memory_space<vmem>>, vector<1x128xf32>
      %17 = vector.broadcast %16 : vector<1x128xf32> to vector<256x128xf32>
      %18 = arith.addf %15, %17 : vector<256x128xf32>
      %cst_16 = arith.constant 0.000000e+00 : f32
      %19 = vector.broadcast %cst_16 : f32 to vector<256x128xf32>
      %20 = arith.maximumf %18, %19 : vector<256x128xf32>
      %c0_17 = arith.constant 0 : index
      %c0_18 = arith.constant 0 : index
      %21 = vector.load %arg7[%c0_17, %c0_18] : memref<256x128xf32, #tpu.memory_space<vmem>>, vector<256x128xf32>
      tpu.vector_store %arg7[%c0_17, %c0_18], %20 {strides = array<i32>} : memref<256x128xf32, #tpu.memory_space<vmem>>, vector<256x128xf32>,
    } else {
    }
    return
  }
  func.func @transform_0(%arg0: i32, %arg1: i32, %arg2: i32) -> (i32, i32) {
    %c0_i32 = arith.constant 0 : i32
    return %arg0, %arg2 : i32, i32
  }
  func.func @transform_1(%arg0: i32, %arg1: i32, %arg2: i32) -> (i32, i32) {
    %c0_i32 = arith.constant 0 : i32
    return %arg2, %arg1 : i32, i32
  }
  func.func @transform_2(%arg0: i32, %arg1: i32, %arg2: i32) -> (i32, i32) {
    %c0_i32 = arith.constant 0 : i32
    %c0_i32_0 = arith.constant 0 : i32
    return %c0_i32, %arg1 : i32, i32
  }
  func.func @transform_3(%arg0: i32, %arg1: i32, %arg2: i32) -> (i32, i32) {
    %c0_i32 = arith.constant 0 : i32
    %c0_i32_0 = arith.constant 0 : i32
    return %c0_i32, %arg1 : i32, i32
  }
  func.func @transform_4(%arg0: i32, %arg1: i32, %arg2: i32) -> (i32, i32) {
    %c0_i32 = arith.constant 0 : i32
    return %arg0, %arg1 : i32, i32
  }
}

module attributes {stable_mosaic.version = 11 : i64} {
  func.func @_mm_kernel(%arg0: i32, %arg1: i32, %arg2: i32, %arg3: memref<128x256xbf16, #tpu.memory_space<vmem>>, %arg4: memref<256x128xbf16, #tpu.memory_space<vmem>>, %arg5: memref<1x128xf32, #tpu.memory_space<vmem>>, %arg6: memref<1x128xf32, #tpu.memory_space<vmem>>, %arg7: memref<128x128xf32, #tpu.memory_space<vmem>>) attributes {dimension_semantics = [#tpu.dimension_semantics<parallel>, #tpu.dimension_semantics<parallel>, #tpu.dimension_semantics<arbitrary>], iteration_bounds = array<i64: 1, 1, 1>, scalar_prefetch = 0 : i64, scratch_operands = 0 : i64, tpu.core_type = #tpu.core_type<tc>, window_params = [{transform_indices = @transform_0, window_bounds = array<i64: 128, 256>}, {transform_indices = @transform_1, window_bounds = array<i64: 256, 128>}, {transform_indices = @transform_2, window_bounds = array<i64: 1, 128>}, {transform_indices = @transform_3, window_bounds = array<i64: 1, 128>}, {transform_indices = @transform_4, window_bounds = array<i64: 128, 128>}]} {
    %c0_i32 = arith.constant 0 : i32
    %0 = arith.cmpi eq, %arg2, %c0_i32 : i32
    %1 = arith.extui %0 : i1 to i32
    %c0_i32_0 = arith.constant 0 : i32
    %2 = arith.cmpi ne, %1, %c0_i32_0 : i32
    scf.if %2 {
      %cst_10 = arith.constant 0.000000e+00 : f32
      %12 = vector.broadcast %cst_10 : f32 to vector<128x128xf32>
      %c0_11 = arith.constant 0 : index
      %c0_12 = arith.constant 0 : index
      %13 = vector.load %arg7[%c0_11, %c0_12] : memref<128x128xf32, #tpu.memory_space<vmem>>, vector<128x128xf32>
      tpu.vector_store %arg7[%c0_11, %c0_12], %12 {strides = array<i32>} : memref<128x128xf32, #tpu.memory_space<vmem>>, vector<128x128xf32>,
    } else {
    }
    %c0 = arith.constant 0 : index
    %c0_1 = arith.constant 0 : index
    %3 = vector.load %arg7[%c0, %c0_1] : memref<128x128xf32, #tpu.memory_space<vmem>>, vector<128x128xf32>
    %c0_2 = arith.constant 0 : index
    %c0_3 = arith.constant 0 : index
    %4 = vector.load %arg3[%c0_2, %c0_3] : memref<128x256xbf16, #tpu.memory_space<vmem>>, vector<128x256xbf16>
    %c0_4 = arith.constant 0 : index
    %c0_5 = arith.constant 0 : index
    %5 = vector.load %arg4[%c0_4, %c0_5] : memref<256x128xbf16, #tpu.memory_space<vmem>>, vector<256x128xbf16>
    %cst = arith.constant dense<0.000000e+00> : vector<128x128xf32>
    %6 = tpu.matmul %4, %5, %cst {dimension_numbers = #tpu.dot_dimension_numbers<[1], [0], [0], [1], [0, 0, 1, 1], [], []>} : vector<128x256xbf16>, vector<256x128xbf16>, vector<128x128xf32> -> vector<128x128xf32>
    %7 = arith.addf %3, %6 : vector<128x128xf32>
    %c0_6 = arith.constant 0 : index
    %c0_7 = arith.constant 0 : index
    %8 = vector.load %arg7[%c0_6, %c0_7] : memref<128x128xf32, #tpu.memory_space<vmem>>, vector<128x128xf32>
    tpu.vector_store %arg7[%c0_6, %c0_7], %7 {strides = array<i32>} : memref<128x128xf32, #tpu.memory_space<vmem>>, vector<128x128xf32>,
    %c0_i32_8 = arith.constant 0 : i32
    %9 = arith.cmpi eq, %arg2, %c0_i32_8 : i32
    %10 = arith.extui %9 : i1 to i32
    %c0_i32_9 = arith.constant 0 : i32
    %11 = arith.cmpi ne, %10, %c0_i32_9 : i32
    scf.if %11 {
      %c0_10 = arith.constant 0 : index
      %c0_11 = arith.constant 0 : index
      %12 = vector.load %arg7[%c0_10, %c0_11] : memref<128x128xf32, #tpu.memory_space<vmem>>, vector<128x128xf32>
      %c0_12 = arith.constant 0 : index
      %c0_13 = arith.constant 0 : index
      %13 = vector.load %arg5[%c0_12, %c0_13] : memref<1x128xf32, #tpu.memory_space<vmem>>, vector<1x128xf32>
      %14 = vector.broadcast %13 : vector<1x128xf32> to vector<128x128xf32>
      %15 = arith.mulf %12, %14 : vector<128x128xf32>
      %c0_14 = arith.constant 0 : index
      %c0_15 = arith.constant 0 : index
      %16 = vector.load %arg6[%c0_14, %c0_15] : memref<1x128xf32, #tpu.memory_space<vmem>>, vector<1x128xf32>
      %17 = vector.broadcast %16 : vector<1x128xf32> to vector<128x128xf32>
      %18 = arith.addf %15, %17 : vector<128x128xf32>
      %cst_16 = arith.constant 0.000000e+00 : f32
      %19 = vector.broadcast %cst_16 : f32 to vector<128x128xf32>
      %20 = arith.maximumf %18, %19 : vector<128x128xf32>
      %c0_17 = arith.constant 0 : index
      %c0_18 = arith.constant 0 : index
      %21 = vector.load %arg7[%c0_17, %c0_18] : memref<128x128xf32, #tpu.memory_space<vmem>>, vector<128x128xf32>
      tpu.vector_store %arg7[%c0_17, %c0_18], %20 {strides = array<i32>} : memref<128x128xf32, #tpu.memory_space<vmem>>, vector<128x128xf32>,
    } else {
    }
    return
  }
  func.func @transform_0(%arg0: i32, %arg1: i32, %arg2: i32) -> (i32, i32) {
    %c0_i32 = arith.constant 0 : i32
    return %arg0, %arg2 : i32, i32
  }
  func.func @transform_1(%arg0: i32, %arg1: i32, %arg2: i32) -> (i32, i32) {
    %c0_i32 = arith.constant 0 : i32
    return %arg2, %arg1 : i32, i32
  }
  func.func @transform_2(%arg0: i32, %arg1: i32, %arg2: i32) -> (i32, i32) {
    %c0_i32 = arith.constant 0 : i32
    %c0_i32_0 = arith.constant 0 : i32
    return %c0_i32, %arg1 : i32, i32
  }
  func.func @transform_3(%arg0: i32, %arg1: i32, %arg2: i32) -> (i32, i32) {
    %c0_i32 = arith.constant 0 : i32
    %c0_i32_0 = arith.constant 0 : i32
    return %c0_i32, %arg1 : i32, i32
  }
  func.func @transform_4(%arg0: i32, %arg1: i32, %arg2: i32) -> (i32, i32) {
    %c0_i32 = arith.constant 0 : i32
    return %arg0, %arg1 : i32, i32
  }
}

module attributes {stable_mosaic.version = 11 : i64} {
  func.func @_mm_kernel(%arg0: i32, %arg1: i32, %arg2: i32, %arg3: memref<32x384xbf16, #tpu.memory_space<vmem>>, %arg4: memref<384x128xbf16, #tpu.memory_space<vmem>>, %arg5: memref<1x128xf32, #tpu.memory_space<vmem>>, %arg6: memref<1x128xf32, #tpu.memory_space<vmem>>, %arg7: memref<32x128xf32, #tpu.memory_space<vmem>>) attributes {dimension_semantics = [#tpu.dimension_semantics<parallel>, #tpu.dimension_semantics<parallel>, #tpu.dimension_semantics<arbitrary>], iteration_bounds = array<i64: 1, 1, 1>, scalar_prefetch = 0 : i64, scratch_operands = 0 : i64, tpu.core_type = #tpu.core_type<tc>, window_params = [{transform_indices = @transform_0, window_bounds = array<i64: 32, 384>}, {transform_indices = @transform_1, window_bounds = array<i64: 384, 128>}, {transform_indices = @transform_2, window_bounds = array<i64: 1, 128>}, {transform_indices = @transform_3, window_bounds = array<i64: 1, 128>}, {transform_indices = @transform_4, window_bounds = array<i64: 32, 128>}]} {
    %c0_i32 = arith.constant 0 : i32
    %0 = arith.cmpi eq, %arg2, %c0_i32 : i32
    %1 = arith.extui %0 : i1 to i32
    %c0_i32_0 = arith.constant 0 : i32
    %2 = arith.cmpi ne, %1, %c0_i32_0 : i32
    scf.if %2 {
      %cst_10 = arith.constant 0.000000e+00 : f32
      %12 = vector.broadcast %cst_10 : f32 to vector<32x128xf32>
      %c0_11 = arith.constant 0 : index
      %c0_12 = arith.constant 0 : index
      %13 = vector.load %arg7[%c0_11, %c0_12] : memref<32x128xf32, #tpu.memory_space<vmem>>, vector<32x128xf32>
      tpu.vector_store %arg7[%c0_11, %c0_12], %12 {strides = array<i32>} : memref<32x128xf32, #tpu.memory_space<vmem>>, vector<32x128xf32>,
    } else {
    }
    %c0 = arith.constant 0 : index
    %c0_1 = arith.constant 0 : index
    %3 = vector.load %arg7[%c0, %c0_1] : memref<32x128xf32, #tpu.memory_space<vmem>>, vector<32x128xf32>
    %c0_2 = arith.constant 0 : index
    %c0_3 = arith.constant 0 : index
    %4 = vector.load %arg3[%c0_2, %c0_3] : memref<32x384xbf16, #tpu.memory_space<vmem>>, vector<32x384xbf16>
    %c0_4 = arith.constant 0 : index
    %c0_5 = arith.constant 0 : index
    %5 = vector.load %arg4[%c0_4, %c0_5] : memref<384x128xbf16, #tpu.memory_space<vmem>>, vector<384x128xbf16>
    %cst = arith.constant dense<0.000000e+00> : vector<32x128xf32>
    %6 = tpu.matmul %4, %5, %cst {dimension_numbers = #tpu.dot_dimension_numbers<[1], [0], [0], [1], [0, 0, 1, 1], [], []>} : vector<32x384xbf16>, vector<384x128xbf16>, vector<32x128xf32> -> vector<32x128xf32>
    %7 = arith.addf %3, %6 : vector<32x128xf32>
    %c0_6 = arith.constant 0 : index
    %c0_7 = arith.constant 0 : index
    %8 = vector.load %arg7[%c0_6, %c0_7] : memref<32x128xf32, #tpu.memory_space<vmem>>, vector<32x128xf32>
    tpu.vector_store %arg7[%c0_6, %c0_7], %7 {strides = array<i32>} : memref<32x128xf32, #tpu.memory_space<vmem>>, vector<32x128xf32>,
    %c0_i32_8 = arith.constant 0 : i32
    %9 = arith.cmpi eq, %arg2, %c0_i32_8 : i32
    %10 = arith.extui %9 : i1 to i32
    %c0_i32_9 = arith.constant 0 : i32
    %11 = arith.cmpi ne, %10, %c0_i32_9 : i32
    scf.if %11 {
      %c0_10 = arith.constant 0 : index
      %c0_11 = arith.constant 0 : index
      %12 = vector.load %arg7[%c0_10, %c0_11] : memref<32x128xf32, #tpu.memory_space<vmem>>, vector<32x128xf32>
      %c0_12 = arith.constant 0 : index
      %c0_13 = arith.constant 0 : index
      %13 = vector.load %arg5[%c0_12, %c0_13] : memref<1x128xf32, #tpu.memory_space<vmem>>, vector<1x128xf32>
      %14 = vector.broadcast %13 : vector<1x128xf32> to vector<32x128xf32>
      %15 = arith.mulf %12, %14 : vector<32x128xf32>
      %c0_14 = arith.constant 0 : index
      %c0_15 = arith.constant 0 : index
      %16 = vector.load %arg6[%c0_14, %c0_15] : memref<1x128xf32, #tpu.memory_space<vmem>>, vector<1x128xf32>
      %17 = vector.broadcast %16 : vector<1x128xf32> to vector<32x128xf32>
      %18 = arith.addf %15, %17 : vector<32x128xf32>
      %cst_16 = arith.constant 0.000000e+00 : f32
      %19 = vector.broadcast %cst_16 : f32 to vector<32x128xf32>
      %20 = arith.maximumf %18, %19 : vector<32x128xf32>
      %c0_17 = arith.constant 0 : index
      %c0_18 = arith.constant 0 : index
      %21 = vector.load %arg7[%c0_17, %c0_18] : memref<32x128xf32, #tpu.memory_space<vmem>>, vector<32x128xf32>
      tpu.vector_store %arg7[%c0_17, %c0_18], %20 {strides = array<i32>} : memref<32x128xf32, #tpu.memory_space<vmem>>, vector<32x128xf32>,
    } else {
    }
    return
  }
  func.func @transform_0(%arg0: i32, %arg1: i32, %arg2: i32) -> (i32, i32) {
    %c0_i32 = arith.constant 0 : i32
    return %arg0, %arg2 : i32, i32
  }
  func.func @transform_1(%arg0: i32, %arg1: i32, %arg2: i32) -> (i32, i32) {
    %c0_i32 = arith.constant 0 : i32
    return %arg2, %arg1 : i32, i32
  }
  func.func @transform_2(%arg0: i32, %arg1: i32, %arg2: i32) -> (i32, i32) {
    %c0_i32 = arith.constant 0 : i32
    %c0_i32_0 = arith.constant 0 : i32
    return %c0_i32, %arg1 : i32, i32
  }
  func.func @transform_3(%arg0: i32, %arg1: i32, %arg2: i32) -> (i32, i32) {
    %c0_i32 = arith.constant 0 : i32
    %c0_i32_0 = arith.constant 0 : i32
    return %c0_i32, %arg1 : i32, i32
  }
  func.func @transform_4(%arg0: i32, %arg1: i32, %arg2: i32) -> (i32, i32) {
    %c0_i32 = arith.constant 0 : i32
    return %arg0, %arg1 : i32, i32
  }
}

module attributes {stable_mosaic.version = 11 : i64} {
  func.func @_mm_kernel(%arg0: i32, %arg1: i32, %arg2: i32, %arg3: memref<32x512xbf16, #tpu.memory_space<vmem>>, %arg4: memref<512x128xbf16, #tpu.memory_space<vmem>>, %arg5: memref<1x128xf32, #tpu.memory_space<vmem>>, %arg6: memref<1x128xf32, #tpu.memory_space<vmem>>, %arg7: memref<32x128xf32, #tpu.memory_space<vmem>>) attributes {dimension_semantics = [#tpu.dimension_semantics<parallel>, #tpu.dimension_semantics<parallel>, #tpu.dimension_semantics<arbitrary>], iteration_bounds = array<i64: 1, 1, 2>, scalar_prefetch = 0 : i64, scratch_operands = 0 : i64, tpu.core_type = #tpu.core_type<tc>, window_params = [{transform_indices = @transform_0, window_bounds = array<i64: 32, 512>}, {transform_indices = @transform_1, window_bounds = array<i64: 512, 128>}, {transform_indices = @transform_2, window_bounds = array<i64: 1, 128>}, {transform_indices = @transform_3, window_bounds = array<i64: 1, 128>}, {transform_indices = @transform_4, window_bounds = array<i64: 32, 128>}]} {
    %c0_i32 = arith.constant 0 : i32
    %0 = arith.cmpi eq, %arg2, %c0_i32 : i32
    %1 = arith.extui %0 : i1 to i32
    %c0_i32_0 = arith.constant 0 : i32
    %2 = arith.cmpi ne, %1, %c0_i32_0 : i32
    scf.if %2 {
      %cst_9 = arith.constant 0.000000e+00 : f32
      %12 = vector.broadcast %cst_9 : f32 to vector<32x128xf32>
      %c0_10 = arith.constant 0 : index
      %c0_11 = arith.constant 0 : index
      %13 = vector.load %arg7[%c0_10, %c0_11] : memref<32x128xf32, #tpu.memory_space<vmem>>, vector<32x128xf32>
      tpu.vector_store %arg7[%c0_10, %c0_11], %12 {strides = array<i32>} : memref<32x128xf32, #tpu.memory_space<vmem>>, vector<32x128xf32>,
    } else {
    }
    %c0 = arith.constant 0 : index
    %c0_1 = arith.constant 0 : index
    %3 = vector.load %arg7[%c0, %c0_1] : memref<32x128xf32, #tpu.memory_space<vmem>>, vector<32x128xf32>
    %c0_2 = arith.constant 0 : index
    %c0_3 = arith.constant 0 : index
    %4 = vector.load %arg3[%c0_2, %c0_3] : memref<32x512xbf16, #tpu.memory_space<vmem>>, vector<32x512xbf16>
    %c0_4 = arith.constant 0 : index
    %c0_5 = arith.constant 0 : index
    %5 = vector.load %arg4[%c0_4, %c0_5] : memref<512x128xbf16, #tpu.memory_space<vmem>>, vector<512x128xbf16>
    %cst = arith.constant dense<0.000000e+00> : vector<32x128xf32>
    %6 = tpu.matmul %4, %5, %cst {dimension_numbers = #tpu.dot_dimension_numbers<[1], [0], [0], [1], [0, 0, 1, 1], [], []>} : vector<32x512xbf16>, vector<512x128xbf16>, vector<32x128xf32> -> vector<32x128xf32>
    %7 = arith.addf %3, %6 : vector<32x128xf32>
    %c0_6 = arith.constant 0 : index
    %c0_7 = arith.constant 0 : index
    %8 = vector.load %arg7[%c0_6, %c0_7] : memref<32x128xf32, #tpu.memory_space<vmem>>, vector<32x128xf32>
    tpu.vector_store %arg7[%c0_6, %c0_7], %7 {strides = array<i32>} : memref<32x128xf32, #tpu.memory_space<vmem>>, vector<32x128xf32>,
    %c1_i32 = arith.constant 1 : i32
    %9 = arith.cmpi eq, %arg2, %c1_i32 : i32
    %10 = arith.extui %9 : i1 to i32
    %c0_i32_8 = arith.constant 0 : i32
    %11 = arith.cmpi ne, %10, %c0_i32_8 : i32
    scf.if %11 {
      %c0_9 = arith.constant 0 : index
      %c0_10 = arith.constant 0 : index
      %12 = vector.load %arg7[%c0_9, %c0_10] : memref<32x128xf32, #tpu.memory_space<vmem>>, vector<32x128xf32>
      %c0_11 = arith.constant 0 : index
      %c0_12 = arith.constant 0 : index
      %13 = vector.load %arg5[%c0_11, %c0_12] : memref<1x128xf32, #tpu.memory_space<vmem>>, vector<1x128xf32>
      %14 = vector.broadcast %13 : vector<1x128xf32> to vector<32x128xf32>
      %15 = arith.mulf %12, %14 : vector<32x128xf32>
      %c0_13 = arith.constant 0 : index
      %c0_14 = arith.constant 0 : index
      %16 = vector.load %arg6[%c0_13, %c0_14] : memref<1x128xf32, #tpu.memory_space<vmem>>, vector<1x128xf32>
      %17 = vector.broadcast %16 : vector<1x128xf32> to vector<32x128xf32>
      %18 = arith.addf %15, %17 : vector<32x128xf32>
      %cst_15 = arith.constant 0.000000e+00 : f32
      %19 = vector.broadcast %cst_15 : f32 to vector<32x128xf32>
      %20 = arith.maximumf %18, %19 : vector<32x128xf32>
      %c0_16 = arith.constant 0 : index
      %c0_17 = arith.constant 0 : index
      %21 = vector.load %arg7[%c0_16, %c0_17] : memref<32x128xf32, #tpu.memory_space<vmem>>, vector<32x128xf32>
      tpu.vector_store %arg7[%c0_16, %c0_17], %20 {strides = array<i32>} : memref<32x128xf32, #tpu.memory_space<vmem>>, vector<32x128xf32>,
    } else {
    }
    return
  }
  func.func @transform_0(%arg0: i32, %arg1: i32, %arg2: i32) -> (i32, i32) {
    %c0_i32 = arith.constant 0 : i32
    return %arg0, %arg2 : i32, i32
  }
  func.func @transform_1(%arg0: i32, %arg1: i32, %arg2: i32) -> (i32, i32) {
    %c0_i32 = arith.constant 0 : i32
    return %arg2, %arg1 : i32, i32
  }
  func.func @transform_2(%arg0: i32, %arg1: i32, %arg2: i32) -> (i32, i32) {
    %c0_i32 = arith.constant 0 : i32
    %c0_i32_0 = arith.constant 0 : i32
    return %c0_i32, %arg1 : i32, i32
  }
  func.func @transform_3(%arg0: i32, %arg1: i32, %arg2: i32) -> (i32, i32) {
    %c0_i32 = arith.constant 0 : i32
    %c0_i32_0 = arith.constant 0 : i32
    return %c0_i32, %arg1 : i32, i32
  }
  func.func @transform_4(%arg0: i32, %arg1: i32, %arg2: i32) -> (i32, i32) {
    %c0_i32 = arith.constant 0 : i32
    return %arg0, %arg1 : i32, i32
  }
}

module attributes {stable_mosaic.version = 11 : i64} {
  func.func @_mm_kernel(%arg0: i32, %arg1: i32, %arg2: i32, %arg3: memref<32x512xbf16, #tpu.memory_space<vmem>>, %arg4: memref<512x128xbf16, #tpu.memory_space<vmem>>, %arg5: memref<1x128xf32, #tpu.memory_space<vmem>>, %arg6: memref<1x128xf32, #tpu.memory_space<vmem>>, %arg7: memref<32x128xf32, #tpu.memory_space<vmem>>, %arg8: memref<32x128xf32, #tpu.memory_space<vmem>>) attributes {dimension_semantics = [#tpu.dimension_semantics<parallel>, #tpu.dimension_semantics<parallel>, #tpu.dimension_semantics<arbitrary>], iteration_bounds = array<i64: 1, 1, 2>, scalar_prefetch = 0 : i64, scratch_operands = 0 : i64, tpu.core_type = #tpu.core_type<tc>, window_params = [{transform_indices = @transform_0, window_bounds = array<i64: 32, 512>}, {transform_indices = @transform_1, window_bounds = array<i64: 512, 128>}, {transform_indices = @transform_2, window_bounds = array<i64: 1, 128>}, {transform_indices = @transform_3, window_bounds = array<i64: 1, 128>}, {transform_indices = @transform_4, window_bounds = array<i64: 32, 128>}, {transform_indices = @transform_5, window_bounds = array<i64: 32, 128>}]} {
    %c0_i32 = arith.constant 0 : i32
    %0 = arith.cmpi eq, %arg2, %c0_i32 : i32
    %1 = arith.extui %0 : i1 to i32
    %c0_i32_0 = arith.constant 0 : i32
    %2 = arith.cmpi ne, %1, %c0_i32_0 : i32
    scf.if %2 {
      %cst_9 = arith.constant 0.000000e+00 : f32
      %12 = vector.broadcast %cst_9 : f32 to vector<32x128xf32>
      %c0_10 = arith.constant 0 : index
      %c0_11 = arith.constant 0 : index
      %13 = vector.load %arg8[%c0_10, %c0_11] : memref<32x128xf32, #tpu.memory_space<vmem>>, vector<32x128xf32>
      tpu.vector_store %arg8[%c0_10, %c0_11], %12 {strides = array<i32>} : memref<32x128xf32, #tpu.memory_space<vmem>>, vector<32x128xf32>,
    } else {
    }
    %c0 = arith.constant 0 : index
    %c0_1 = arith.constant 0 : index
    %3 = vector.load %arg8[%c0, %c0_1] : memref<32x128xf32, #tpu.memory_space<vmem>>, vector<32x128xf32>
    %c0_2 = arith.constant 0 : index
    %c0_3 = arith.constant 0 : index
    %4 = vector.load %arg3[%c0_2, %c0_3] : memref<32x512xbf16, #tpu.memory_space<vmem>>, vector<32x512xbf16>
    %c0_4 = arith.constant 0 : index
    %c0_5 = arith.constant 0 : index
    %5 = vector.load %arg4[%c0_4, %c0_5] : memref<512x128xbf16, #tpu.memory_space<vmem>>, vector<512x128xbf16>
    %cst = arith.constant dense<0.000000e+00> : vector<32x128xf32>
    %6 = tpu.matmul %4, %5, %cst {dimension_numbers = #tpu.dot_dimension_numbers<[1], [0], [0], [1], [0, 0, 1, 1], [], []>} : vector<32x512xbf16>, vector<512x128xbf16>, vector<32x128xf32> -> vector<32x128xf32>
    %7 = arith.addf %3, %6 : vector<32x128xf32>
    %c0_6 = arith.constant 0 : index
    %c0_7 = arith.constant 0 : index
    %8 = vector.load %arg8[%c0_6, %c0_7] : memref<32x128xf32, #tpu.memory_space<vmem>>, vector<32x128xf32>
    tpu.vector_store %arg8[%c0_6, %c0_7], %7 {strides = array<i32>} : memref<32x128xf32, #tpu.memory_space<vmem>>, vector<32x128xf32>,
    %c1_i32 = arith.constant 1 : i32
    %9 = arith.cmpi eq, %arg2, %c1_i32 : i32
    %10 = arith.extui %9 : i1 to i32
    %c0_i32_8 = arith.constant 0 : i32
    %11 = arith.cmpi ne, %10, %c0_i32_8 : i32
    scf.if %11 {
      %c0_9 = arith.constant 0 : index
      %c0_10 = arith.constant 0 : index
      %12 = vector.load %arg8[%c0_9, %c0_10] : memref<32x128xf32, #tpu.memory_space<vmem>>, vector<32x128xf32>
      %c0_11 = arith.constant 0 : index
      %c0_12 = arith.constant 0 : index
      %13 = vector.load %arg5[%c0_11, %c0_12] : memref<1x128xf32, #tpu.memory_space<vmem>>, vector<1x128xf32>
      %14 = vector.broadcast %13 : vector<1x128xf32> to vector<32x128xf32>
      %15 = arith.mulf %12, %14 : vector<32x128xf32>
      %c0_13 = arith.constant 0 : index
      %c0_14 = arith.constant 0 : index
      %16 = vector.load %arg6[%c0_13, %c0_14] : memref<1x128xf32, #tpu.memory_space<vmem>>, vector<1x128xf32>
      %17 = vector.broadcast %16 : vector<1x128xf32> to vector<32x128xf32>
      %18 = arith.addf %15, %17 : vector<32x128xf32>
      %c0_15 = arith.constant 0 : index
      %c0_16 = arith.constant 0 : index
      %19 = vector.load %arg7[%c0_15, %c0_16] : memref<32x128xf32, #tpu.memory_space<vmem>>, vector<32x128xf32>
      %20 = arith.addf %18, %19 : vector<32x128xf32>
      %cst_17 = arith.constant 0.000000e+00 : f32
      %21 = vector.broadcast %cst_17 : f32 to vector<32x128xf32>
      %22 = arith.maximumf %20, %21 : vector<32x128xf32>
      %c0_18 = arith.constant 0 : index
      %c0_19 = arith.constant 0 : index
      %23 = vector.load %arg8[%c0_18, %c0_19] : memref<32x128xf32, #tpu.memory_space<vmem>>, vector<32x128xf32>
      tpu.vector_store %arg8[%c0_18, %c0_19], %22 {strides = array<i32>} : memref<32x128xf32, #tpu.memory_space<vmem>>, vector<32x128xf32>,
    } else {
    }
    return
  }
  func.func @transform_0(%arg0: i32, %arg1: i32, %arg2: i32) -> (i32, i32) {
    %c0_i32 = arith.constant 0 : i32
    return %arg0, %arg2 : i32, i32
  }
  func.func @transform_1(%arg0: i32, %arg1: i32, %arg2: i32) -> (i32, i32) {
    %c0_i32 = arith.constant 0 : i32
    return %arg2, %arg1 : i32, i32
  }
  func.func @transform_2(%arg0: i32, %arg1: i32, %arg2: i32) -> (i32, i32) {
    %c0_i32 = arith.constant 0 : i32
    %c0_i32_0 = arith.constant 0 : i32
    return %c0_i32, %arg1 : i32, i32
  }
  func.func @transform_3(%arg0: i32, %arg1: i32, %arg2: i32) -> (i32, i32) {
    %c0_i32 = arith.constant 0 : i32
    %c0_i32_0 = arith.constant 0 : i32
    return %c0_i32, %arg1 : i32, i32
  }
  func.func @transform_4(%arg0: i32, %arg1: i32, %arg2: i32) -> (i32, i32) {
    %c0_i32 = arith.constant 0 : i32
    return %arg0, %arg1 : i32, i32
  }
  func.func @transform_5(%arg0: i32, %arg1: i32, %arg2: i32) -> (i32, i32) {
    %c0_i32 = arith.constant 0 : i32
    return %arg0, %arg1 : i32, i32
  }
}

module attributes {stable_mosaic.version = 11 : i64} {
  func.func @_mm_kernel(%arg0: i32, %arg1: i32, %arg2: i32, %arg3: memref<32x128xbf16, #tpu.memory_space<vmem>>, %arg4: memref<128x128xbf16, #tpu.memory_space<vmem>>, %arg5: memref<1x128xf32, #tpu.memory_space<vmem>>, %arg6: memref<1x128xf32, #tpu.memory_space<vmem>>, %arg7: memref<32x128xf32, #tpu.memory_space<vmem>>) attributes {dimension_semantics = [#tpu.dimension_semantics<parallel>, #tpu.dimension_semantics<parallel>, #tpu.dimension_semantics<arbitrary>], iteration_bounds = array<i64: 1, 1, 1>, scalar_prefetch = 0 : i64, scratch_operands = 0 : i64, tpu.core_type = #tpu.core_type<tc>, window_params = [{transform_indices = @transform_0, window_bounds = array<i64: 32, 128>}, {transform_indices = @transform_1, window_bounds = array<i64: 128, 128>}, {transform_indices = @transform_2, window_bounds = array<i64: 1, 128>}, {transform_indices = @transform_3, window_bounds = array<i64: 1, 128>}, {transform_indices = @transform_4, window_bounds = array<i64: 32, 128>}]} {
    %c0_i32 = arith.constant 0 : i32
    %0 = arith.cmpi eq, %arg2, %c0_i32 : i32
    %1 = arith.extui %0 : i1 to i32
    %c0_i32_0 = arith.constant 0 : i32
    %2 = arith.cmpi ne, %1, %c0_i32_0 : i32
    scf.if %2 {
      %cst_10 = arith.constant 0.000000e+00 : f32
      %12 = vector.broadcast %cst_10 : f32 to vector<32x128xf32>
      %c0_11 = arith.constant 0 : index
      %c0_12 = arith.constant 0 : index
      %13 = vector.load %arg7[%c0_11, %c0_12] : memref<32x128xf32, #tpu.memory_space<vmem>>, vector<32x128xf32>
      tpu.vector_store %arg7[%c0_11, %c0_12], %12 {strides = array<i32>} : memref<32x128xf32, #tpu.memory_space<vmem>>, vector<32x128xf32>,
    } else {
    }
    %c0 = arith.constant 0 : index
    %c0_1 = arith.constant 0 : index
    %3 = vector.load %arg7[%c0, %c0_1] : memref<32x128xf32, #tpu.memory_space<vmem>>, vector<32x128xf32>
    %c0_2 = arith.constant 0 : index
    %c0_3 = arith.constant 0 : index
    %4 = vector.load %arg3[%c0_2, %c0_3] : memref<32x128xbf16, #tpu.memory_space<vmem>>, vector<32x128xbf16>
    %c0_4 = arith.constant 0 : index
    %c0_5 = arith.constant 0 : index
    %5 = vector.load %arg4[%c0_4, %c0_5] : memref<128x128xbf16, #tpu.memory_space<vmem>>, vector<128x128xbf16>
    %cst = arith.constant dense<0.000000e+00> : vector<32x128xf32>
    %6 = tpu.matmul %4, %5, %cst {dimension_numbers = #tpu.dot_dimension_numbers<[1], [0], [0], [1], [0, 0, 1, 1], [], []>} : vector<32x128xbf16>, vector<128x128xbf16>, vector<32x128xf32> -> vector<32x128xf32>
    %7 = arith.addf %3, %6 : vector<32x128xf32>
    %c0_6 = arith.constant 0 : index
    %c0_7 = arith.constant 0 : index
    %8 = vector.load %arg7[%c0_6, %c0_7] : memref<32x128xf32, #tpu.memory_space<vmem>>, vector<32x128xf32>
    tpu.vector_store %arg7[%c0_6, %c0_7], %7 {strides = array<i32>} : memref<32x128xf32, #tpu.memory_space<vmem>>, vector<32x128xf32>,
    %c0_i32_8 = arith.constant 0 : i32
    %9 = arith.cmpi eq, %arg2, %c0_i32_8 : i32
    %10 = arith.extui %9 : i1 to i32
    %c0_i32_9 = arith.constant 0 : i32
    %11 = arith.cmpi ne, %10, %c0_i32_9 : i32
    scf.if %11 {
      %c0_10 = arith.constant 0 : index
      %c0_11 = arith.constant 0 : index
      %12 = vector.load %arg7[%c0_10, %c0_11] : memref<32x128xf32, #tpu.memory_space<vmem>>, vector<32x128xf32>
      %c0_12 = arith.constant 0 : index
      %c0_13 = arith.constant 0 : index
      %13 = vector.load %arg5[%c0_12, %c0_13] : memref<1x128xf32, #tpu.memory_space<vmem>>, vector<1x128xf32>
      %14 = vector.broadcast %13 : vector<1x128xf32> to vector<32x128xf32>
      %15 = arith.mulf %12, %14 : vector<32x128xf32>
      %c0_14 = arith.constant 0 : index
      %c0_15 = arith.constant 0 : index
      %16 = vector.load %arg6[%c0_14, %c0_15] : memref<1x128xf32, #tpu.memory_space<vmem>>, vector<1x128xf32>
      %17 = vector.broadcast %16 : vector<1x128xf32> to vector<32x128xf32>
      %18 = arith.addf %15, %17 : vector<32x128xf32>
      %c0_16 = arith.constant 0 : index
      %c0_17 = arith.constant 0 : index
      %19 = vector.load %arg7[%c0_16, %c0_17] : memref<32x128xf32, #tpu.memory_space<vmem>>, vector<32x128xf32>
      tpu.vector_store %arg7[%c0_16, %c0_17], %18 {strides = array<i32>} : memref<32x128xf32, #tpu.memory_space<vmem>>, vector<32x128xf32>,
    } else {
    }
    return
  }
  func.func @transform_0(%arg0: i32, %arg1: i32, %arg2: i32) -> (i32, i32) {
    %c0_i32 = arith.constant 0 : i32
    return %arg0, %arg2 : i32, i32
  }
  func.func @transform_1(%arg0: i32, %arg1: i32, %arg2: i32) -> (i32, i32) {
    %c0_i32 = arith.constant 0 : i32
    return %arg2, %arg1 : i32, i32
  }
  func.func @transform_2(%arg0: i32, %arg1: i32, %arg2: i32) -> (i32, i32) {
    %c0_i32 = arith.constant 0 : i32
    %c0_i32_0 = arith.constant 0 : i32
    return %c0_i32, %arg1 : i32, i32
  }
  func.func @transform_3(%arg0: i32, %arg1: i32, %arg2: i32) -> (i32, i32) {
    %c0_i32 = arith.constant 0 : i32
    %c0_i32_0 = arith.constant 0 : i32
    return %c0_i32, %arg1 : i32, i32
  }
  func.func @transform_4(%arg0: i32, %arg1: i32, %arg2: i32) -> (i32, i32) {
    %c0_i32 = arith.constant 0 : i32
    return %arg0, %arg1 : i32, i32
  }
}

module attributes {stable_mosaic.version = 11 : i64} {
  func.func @_mm_kernel(%arg0: i32, %arg1: i32, %arg2: i32, %arg3: memref<16x512xbf16, #tpu.memory_space<vmem>>, %arg4: memref<512x128xbf16, #tpu.memory_space<vmem>>, %arg5: memref<1x128xf32, #tpu.memory_space<vmem>>, %arg6: memref<1x128xf32, #tpu.memory_space<vmem>>, %arg7: memref<16x128xf32, #tpu.memory_space<vmem>>) attributes {dimension_semantics = [#tpu.dimension_semantics<parallel>, #tpu.dimension_semantics<parallel>, #tpu.dimension_semantics<arbitrary>], iteration_bounds = array<i64: 1, 1, 2>, scalar_prefetch = 0 : i64, scratch_operands = 0 : i64, tpu.core_type = #tpu.core_type<tc>, window_params = [{transform_indices = @transform_0, window_bounds = array<i64: 16, 512>}, {transform_indices = @transform_1, window_bounds = array<i64: 512, 128>}, {transform_indices = @transform_2, window_bounds = array<i64: 1, 128>}, {transform_indices = @transform_3, window_bounds = array<i64: 1, 128>}, {transform_indices = @transform_4, window_bounds = array<i64: 16, 128>}]} {
    %c0_i32 = arith.constant 0 : i32
    %0 = arith.cmpi eq, %arg2, %c0_i32 : i32
    %1 = arith.extui %0 : i1 to i32
    %c0_i32_0 = arith.constant 0 : i32
    %2 = arith.cmpi ne, %1, %c0_i32_0 : i32
    scf.if %2 {
      %cst_9 = arith.constant 0.000000e+00 : f32
      %12 = vector.broadcast %cst_9 : f32 to vector<16x128xf32>
      %c0_10 = arith.constant 0 : index
      %c0_11 = arith.constant 0 : index
      %13 = vector.load %arg7[%c0_10, %c0_11] : memref<16x128xf32, #tpu.memory_space<vmem>>, vector<16x128xf32>
      tpu.vector_store %arg7[%c0_10, %c0_11], %12 {strides = array<i32>} : memref<16x128xf32, #tpu.memory_space<vmem>>, vector<16x128xf32>,
    } else {
    }
    %c0 = arith.constant 0 : index
    %c0_1 = arith.constant 0 : index
    %3 = vector.load %arg7[%c0, %c0_1] : memref<16x128xf32, #tpu.memory_space<vmem>>, vector<16x128xf32>
    %c0_2 = arith.constant 0 : index
    %c0_3 = arith.constant 0 : index
    %4 = vector.load %arg3[%c0_2, %c0_3] : memref<16x512xbf16, #tpu.memory_space<vmem>>, vector<16x512xbf16>
    %c0_4 = arith.constant 0 : index
    %c0_5 = arith.constant 0 : index
    %5 = vector.load %arg4[%c0_4, %c0_5] : memref<512x128xbf16, #tpu.memory_space<vmem>>, vector<512x128xbf16>
    %cst = arith.constant dense<0.000000e+00> : vector<16x128xf32>
    %6 = tpu.matmul %4, %5, %cst {dimension_numbers = #tpu.dot_dimension_numbers<[1], [0], [0], [1], [0, 0, 1, 1], [], []>} : vector<16x512xbf16>, vector<512x128xbf16>, vector<16x128xf32> -> vector<16x128xf32>
    %7 = arith.addf %3, %6 : vector<16x128xf32>
    %c0_6 = arith.constant 0 : index
    %c0_7 = arith.constant 0 : index
    %8 = vector.load %arg7[%c0_6, %c0_7] : memref<16x128xf32, #tpu.memory_space<vmem>>, vector<16x128xf32>
    tpu.vector_store %arg7[%c0_6, %c0_7], %7 {strides = array<i32>} : memref<16x128xf32, #tpu.memory_space<vmem>>, vector<16x128xf32>,
    %c1_i32 = arith.constant 1 : i32
    %9 = arith.cmpi eq, %arg2, %c1_i32 : i32
    %10 = arith.extui %9 : i1 to i32
    %c0_i32_8 = arith.constant 0 : i32
    %11 = arith.cmpi ne, %10, %c0_i32_8 : i32
    scf.if %11 {
      %c0_9 = arith.constant 0 : index
      %c0_10 = arith.constant 0 : index
      %12 = vector.load %arg7[%c0_9, %c0_10] : memref<16x128xf32, #tpu.memory_space<vmem>>, vector<16x128xf32>
      %c0_11 = arith.constant 0 : index
      %c0_12 = arith.constant 0 : index
      %13 = vector.load %arg5[%c0_11, %c0_12] : memref<1x128xf32, #tpu.memory_space<vmem>>, vector<1x128xf32>
      %14 = vector.broadcast %13 : vector<1x128xf32> to vector<16x128xf32>
      %15 = arith.mulf %12, %14 : vector<16x128xf32>
      %c0_13 = arith.constant 0 : index
      %c0_14 = arith.constant 0 : index
      %16 = vector.load %arg6[%c0_13, %c0_14] : memref<1x128xf32, #tpu.memory_space<vmem>>, vector<1x128xf32>
      %17 = vector.broadcast %16 : vector<1x128xf32> to vector<16x128xf32>
      %18 = arith.addf %15, %17 : vector<16x128xf32>
      %cst_15 = arith.constant 0.000000e+00 : f32
      %19 = vector.broadcast %cst_15 : f32 to vector<16x128xf32>
      %20 = arith.maximumf %18, %19 : vector<16x128xf32>
      %c0_16 = arith.constant 0 : index
      %c0_17 = arith.constant 0 : index
      %21 = vector.load %arg7[%c0_16, %c0_17] : memref<16x128xf32, #tpu.memory_space<vmem>>, vector<16x128xf32>
      tpu.vector_store %arg7[%c0_16, %c0_17], %20 {strides = array<i32>} : memref<16x128xf32, #tpu.memory_space<vmem>>, vector<16x128xf32>,
    } else {
    }
    return
  }
  func.func @transform_0(%arg0: i32, %arg1: i32, %arg2: i32) -> (i32, i32) {
    %c0_i32 = arith.constant 0 : i32
    return %arg0, %arg2 : i32, i32
  }
  func.func @transform_1(%arg0: i32, %arg1: i32, %arg2: i32) -> (i32, i32) {
    %c0_i32 = arith.constant 0 : i32
    return %arg2, %arg1 : i32, i32
  }
  func.func @transform_2(%arg0: i32, %arg1: i32, %arg2: i32) -> (i32, i32) {
    %c0_i32 = arith.constant 0 : i32
    %c0_i32_0 = arith.constant 0 : i32
    return %c0_i32, %arg1 : i32, i32
  }
  func.func @transform_3(%arg0: i32, %arg1: i32, %arg2: i32) -> (i32, i32) {
    %c0_i32 = arith.constant 0 : i32
    %c0_i32_0 = arith.constant 0 : i32
    return %c0_i32, %arg1 : i32, i32
  }
  func.func @transform_4(%arg0: i32, %arg1: i32, %arg2: i32) -> (i32, i32) {
    %c0_i32 = arith.constant 0 : i32
    return %arg0, %arg1 : i32, i32
  }
}

module attributes {stable_mosaic.version = 11 : i64} {
  func.func @_mm_kernel(%arg0: i32, %arg1: i32, %arg2: i32, %arg3: memref<16x128xbf16, #tpu.memory_space<vmem>>, %arg4: memref<128x128xbf16, #tpu.memory_space<vmem>>, %arg5: memref<1x128xf32, #tpu.memory_space<vmem>>, %arg6: memref<1x128xf32, #tpu.memory_space<vmem>>, %arg7: memref<16x128xf32, #tpu.memory_space<vmem>>) attributes {dimension_semantics = [#tpu.dimension_semantics<parallel>, #tpu.dimension_semantics<parallel>, #tpu.dimension_semantics<arbitrary>], iteration_bounds = array<i64: 1, 1, 1>, scalar_prefetch = 0 : i64, scratch_operands = 0 : i64, tpu.core_type = #tpu.core_type<tc>, window_params = [{transform_indices = @transform_0, window_bounds = array<i64: 16, 128>}, {transform_indices = @transform_1, window_bounds = array<i64: 128, 128>}, {transform_indices = @transform_2, window_bounds = array<i64: 1, 128>}, {transform_indices = @transform_3, window_bounds = array<i64: 1, 128>}, {transform_indices = @transform_4, window_bounds = array<i64: 16, 128>}]} {
    %c0_i32 = arith.constant 0 : i32
    %0 = arith.cmpi eq, %arg2, %c0_i32 : i32
    %1 = arith.extui %0 : i1 to i32
    %c0_i32_0 = arith.constant 0 : i32
    %2 = arith.cmpi ne, %1, %c0_i32_0 : i32
    scf.if %2 {
      %cst_10 = arith.constant 0.000000e+00 : f32
      %12 = vector.broadcast %cst_10 : f32 to vector<16x128xf32>
      %c0_11 = arith.constant 0 : index
      %c0_12 = arith.constant 0 : index
      %13 = vector.load %arg7[%c0_11, %c0_12] : memref<16x128xf32, #tpu.memory_space<vmem>>, vector<16x128xf32>
      tpu.vector_store %arg7[%c0_11, %c0_12], %12 {strides = array<i32>} : memref<16x128xf32, #tpu.memory_space<vmem>>, vector<16x128xf32>,
    } else {
    }
    %c0 = arith.constant 0 : index
    %c0_1 = arith.constant 0 : index
    %3 = vector.load %arg7[%c0, %c0_1] : memref<16x128xf32, #tpu.memory_space<vmem>>, vector<16x128xf32>
    %c0_2 = arith.constant 0 : index
    %c0_3 = arith.constant 0 : index
    %4 = vector.load %arg3[%c0_2, %c0_3] : memref<16x128xbf16, #tpu.memory_space<vmem>>, vector<16x128xbf16>
    %c0_4 = arith.constant 0 : index
    %c0_5 = arith.constant 0 : index
    %5 = vector.load %arg4[%c0_4, %c0_5] : memref<128x128xbf16, #tpu.memory_space<vmem>>, vector<128x128xbf16>
    %cst = arith.constant dense<0.000000e+00> : vector<16x128xf32>
    %6 = tpu.matmul %4, %5, %cst {dimension_numbers = #tpu.dot_dimension_numbers<[1], [0], [0], [1], [0, 0, 1, 1], [], []>} : vector<16x128xbf16>, vector<128x128xbf16>, vector<16x128xf32> -> vector<16x128xf32>
    %7 = arith.addf %3, %6 : vector<16x128xf32>
    %c0_6 = arith.constant 0 : index
    %c0_7 = arith.constant 0 : index
    %8 = vector.load %arg7[%c0_6, %c0_7] : memref<16x128xf32, #tpu.memory_space<vmem>>, vector<16x128xf32>
    tpu.vector_store %arg7[%c0_6, %c0_7], %7 {strides = array<i32>} : memref<16x128xf32, #tpu.memory_space<vmem>>, vector<16x128xf32>,
    %c0_i32_8 = arith.constant 0 : i32
    %9 = arith.cmpi eq, %arg2, %c0_i32_8 : i32
    %10 = arith.extui %9 : i1 to i32
    %c0_i32_9 = arith.constant 0 : i32
    %11 = arith.cmpi ne, %10, %c0_i32_9 : i32
    scf.if %11 {
      %c0_10 = arith.constant 0 : index
      %c0_11 = arith.constant 0 : index
      %12 = vector.load %arg7[%c0_10, %c0_11] : memref<16x128xf32, #tpu.memory_space<vmem>>, vector<16x128xf32>
      %c0_12 = arith.constant 0 : index
      %c0_13 = arith.constant 0 : index
      %13 = vector.load %arg5[%c0_12, %c0_13] : memref<1x128xf32, #tpu.memory_space<vmem>>, vector<1x128xf32>
      %14 = vector.broadcast %13 : vector<1x128xf32> to vector<16x128xf32>
      %15 = arith.mulf %12, %14 : vector<16x128xf32>
      %c0_14 = arith.constant 0 : index
      %c0_15 = arith.constant 0 : index
      %16 = vector.load %arg6[%c0_14, %c0_15] : memref<1x128xf32, #tpu.memory_space<vmem>>, vector<1x128xf32>
      %17 = vector.broadcast %16 : vector<1x128xf32> to vector<16x128xf32>
      %18 = arith.addf %15, %17 : vector<16x128xf32>
      %c0_16 = arith.constant 0 : index
      %c0_17 = arith.constant 0 : index
      %19 = vector.load %arg7[%c0_16, %c0_17] : memref<16x128xf32, #tpu.memory_space<vmem>>, vector<16x128xf32>
      tpu.vector_store %arg7[%c0_16, %c0_17], %18 {strides = array<i32>} : memref<16x128xf32, #tpu.memory_space<vmem>>, vector<16x128xf32>,
    } else {
    }
    return
  }
  func.func @transform_0(%arg0: i32, %arg1: i32, %arg2: i32) -> (i32, i32) {
    %c0_i32 = arith.constant 0 : i32
    return %arg0, %arg2 : i32, i32
  }
  func.func @transform_1(%arg0: i32, %arg1: i32, %arg2: i32) -> (i32, i32) {
    %c0_i32 = arith.constant 0 : i32
    return %arg2, %arg1 : i32, i32
  }
  func.func @transform_2(%arg0: i32, %arg1: i32, %arg2: i32) -> (i32, i32) {
    %c0_i32 = arith.constant 0 : i32
    %c0_i32_0 = arith.constant 0 : i32
    return %c0_i32, %arg1 : i32, i32
  }
  func.func @transform_3(%arg0: i32, %arg1: i32, %arg2: i32) -> (i32, i32) {
    %c0_i32 = arith.constant 0 : i32
    %c0_i32_0 = arith.constant 0 : i32
    return %c0_i32, %arg1 : i32, i32
  }
  func.func @transform_4(%arg0: i32, %arg1: i32, %arg2: i32) -> (i32, i32) {
    %c0_i32 = arith.constant 0 : i32
    return %arg0, %arg1 : i32, i32
  }
}

module attributes {stable_mosaic.version = 11 : i64} {
  func.func @_mm_kernel(%arg0: i32, %arg1: i32, %arg2: i32, %arg3: memref<16x512xbf16, #tpu.memory_space<vmem>>, %arg4: memref<512x128xbf16, #tpu.memory_space<vmem>>, %arg5: memref<1x128xf32, #tpu.memory_space<vmem>>, %arg6: memref<1x128xf32, #tpu.memory_space<vmem>>, %arg7: memref<16x128xf32, #tpu.memory_space<vmem>>) attributes {dimension_semantics = [#tpu.dimension_semantics<parallel>, #tpu.dimension_semantics<parallel>, #tpu.dimension_semantics<arbitrary>], iteration_bounds = array<i64: 1, 1, 3>, scalar_prefetch = 0 : i64, scratch_operands = 0 : i64, tpu.core_type = #tpu.core_type<tc>, window_params = [{transform_indices = @transform_0, window_bounds = array<i64: 16, 512>}, {transform_indices = @transform_1, window_bounds = array<i64: 512, 128>}, {transform_indices = @transform_2, window_bounds = array<i64: 1, 128>}, {transform_indices = @transform_3, window_bounds = array<i64: 1, 128>}, {transform_indices = @transform_4, window_bounds = array<i64: 16, 128>}]} {
    %c0_i32 = arith.constant 0 : i32
    %0 = arith.cmpi eq, %arg2, %c0_i32 : i32
    %1 = arith.extui %0 : i1 to i32
    %c0_i32_0 = arith.constant 0 : i32
    %2 = arith.cmpi ne, %1, %c0_i32_0 : i32
    scf.if %2 {
      %cst_9 = arith.constant 0.000000e+00 : f32
      %12 = vector.broadcast %cst_9 : f32 to vector<16x128xf32>
      %c0_10 = arith.constant 0 : index
      %c0_11 = arith.constant 0 : index
      %13 = vector.load %arg7[%c0_10, %c0_11] : memref<16x128xf32, #tpu.memory_space<vmem>>, vector<16x128xf32>
      tpu.vector_store %arg7[%c0_10, %c0_11], %12 {strides = array<i32>} : memref<16x128xf32, #tpu.memory_space<vmem>>, vector<16x128xf32>,
    } else {
    }
    %c0 = arith.constant 0 : index
    %c0_1 = arith.constant 0 : index
    %3 = vector.load %arg7[%c0, %c0_1] : memref<16x128xf32, #tpu.memory_space<vmem>>, vector<16x128xf32>
    %c0_2 = arith.constant 0 : index
    %c0_3 = arith.constant 0 : index
    %4 = vector.load %arg3[%c0_2, %c0_3] : memref<16x512xbf16, #tpu.memory_space<vmem>>, vector<16x512xbf16>
    %c0_4 = arith.constant 0 : index
    %c0_5 = arith.constant 0 : index
    %5 = vector.load %arg4[%c0_4, %c0_5] : memref<512x128xbf16, #tpu.memory_space<vmem>>, vector<512x128xbf16>
    %cst = arith.constant dense<0.000000e+00> : vector<16x128xf32>
    %6 = tpu.matmul %4, %5, %cst {dimension_numbers = #tpu.dot_dimension_numbers<[1], [0], [0], [1], [0, 0, 1, 1], [], []>} : vector<16x512xbf16>, vector<512x128xbf16>, vector<16x128xf32> -> vector<16x128xf32>
    %7 = arith.addf %3, %6 : vector<16x128xf32>
    %c0_6 = arith.constant 0 : index
    %c0_7 = arith.constant 0 : index
    %8 = vector.load %arg7[%c0_6, %c0_7] : memref<16x128xf32, #tpu.memory_space<vmem>>, vector<16x128xf32>
    tpu.vector_store %arg7[%c0_6, %c0_7], %7 {strides = array<i32>} : memref<16x128xf32, #tpu.memory_space<vmem>>, vector<16x128xf32>,
    %c2_i32 = arith.constant 2 : i32
    %9 = arith.cmpi eq, %arg2, %c2_i32 : i32
    %10 = arith.extui %9 : i1 to i32
    %c0_i32_8 = arith.constant 0 : i32
    %11 = arith.cmpi ne, %10, %c0_i32_8 : i32
    scf.if %11 {
      %c0_9 = arith.constant 0 : index
      %c0_10 = arith.constant 0 : index
      %12 = vector.load %arg7[%c0_9, %c0_10] : memref<16x128xf32, #tpu.memory_space<vmem>>, vector<16x128xf32>
      %c0_11 = arith.constant 0 : index
      %c0_12 = arith.constant 0 : index
      %13 = vector.load %arg5[%c0_11, %c0_12] : memref<1x128xf32, #tpu.memory_space<vmem>>, vector<1x128xf32>
      %14 = vector.broadcast %13 : vector<1x128xf32> to vector<16x128xf32>
      %15 = arith.mulf %12, %14 : vector<16x128xf32>
      %c0_13 = arith.constant 0 : index
      %c0_14 = arith.constant 0 : index
      %16 = vector.load %arg6[%c0_13, %c0_14] : memref<1x128xf32, #tpu.memory_space<vmem>>, vector<1x128xf32>
      %17 = vector.broadcast %16 : vector<1x128xf32> to vector<16x128xf32>
      %18 = arith.addf %15, %17 : vector<16x128xf32>
      %cst_15 = arith.constant 0.000000e+00 : f32
      %19 = vector.broadcast %cst_15 : f32 to vector<16x128xf32>
      %20 = arith.maximumf %18, %19 : vector<16x128xf32>
      %c0_16 = arith.constant 0 : index
      %c0_17 = arith.constant 0 : index
      %21 = vector.load %arg7[%c0_16, %c0_17] : memref<16x128xf32, #tpu.memory_space<vmem>>, vector<16x128xf32>
      tpu.vector_store %arg7[%c0_16, %c0_17], %20 {strides = array<i32>} : memref<16x128xf32, #tpu.memory_space<vmem>>, vector<16x128xf32>,
    } else {
    }
    return
  }
  func.func @transform_0(%arg0: i32, %arg1: i32, %arg2: i32) -> (i32, i32) {
    %c0_i32 = arith.constant 0 : i32
    return %arg0, %arg2 : i32, i32
  }
  func.func @transform_1(%arg0: i32, %arg1: i32, %arg2: i32) -> (i32, i32) {
    %c0_i32 = arith.constant 0 : i32
    return %arg2, %arg1 : i32, i32
  }
  func.func @transform_2(%arg0: i32, %arg1: i32, %arg2: i32) -> (i32, i32) {
    %c0_i32 = arith.constant 0 : i32
    %c0_i32_0 = arith.constant 0 : i32
    return %c0_i32, %arg1 : i32, i32
  }
  func.func @transform_3(%arg0: i32, %arg1: i32, %arg2: i32) -> (i32, i32) {
    %c0_i32 = arith.constant 0 : i32
    %c0_i32_0 = arith.constant 0 : i32
    return %c0_i32, %arg1 : i32, i32
  }
  func.func @transform_4(%arg0: i32, %arg1: i32, %arg2: i32) -> (i32, i32) {
    %c0_i32 = arith.constant 0 : i32
    return %arg0, %arg1 : i32, i32
  }
}

module attributes {stable_mosaic.version = 11 : i64} {
  func.func @_mm_kernel(%arg0: i32, %arg1: i32, %arg2: i32, %arg3: memref<16x512xbf16, #tpu.memory_space<vmem>>, %arg4: memref<512x128xbf16, #tpu.memory_space<vmem>>, %arg5: memref<1x128xf32, #tpu.memory_space<vmem>>, %arg6: memref<1x128xf32, #tpu.memory_space<vmem>>, %arg7: memref<16x128xf32, #tpu.memory_space<vmem>>, %arg8: memref<16x128xf32, #tpu.memory_space<vmem>>) attributes {dimension_semantics = [#tpu.dimension_semantics<parallel>, #tpu.dimension_semantics<parallel>, #tpu.dimension_semantics<arbitrary>], iteration_bounds = array<i64: 1, 1, 3>, scalar_prefetch = 0 : i64, scratch_operands = 0 : i64, tpu.core_type = #tpu.core_type<tc>, window_params = [{transform_indices = @transform_0, window_bounds = array<i64: 16, 512>}, {transform_indices = @transform_1, window_bounds = array<i64: 512, 128>}, {transform_indices = @transform_2, window_bounds = array<i64: 1, 128>}, {transform_indices = @transform_3, window_bounds = array<i64: 1, 128>}, {transform_indices = @transform_4, window_bounds = array<i64: 16, 128>}, {transform_indices = @transform_5, window_bounds = array<i64: 16, 128>}]} {
    %c0_i32 = arith.constant 0 : i32
    %0 = arith.cmpi eq, %arg2, %c0_i32 : i32
    %1 = arith.extui %0 : i1 to i32
    %c0_i32_0 = arith.constant 0 : i32
    %2 = arith.cmpi ne, %1, %c0_i32_0 : i32
    scf.if %2 {
      %cst_9 = arith.constant 0.000000e+00 : f32
      %12 = vector.broadcast %cst_9 : f32 to vector<16x128xf32>
      %c0_10 = arith.constant 0 : index
      %c0_11 = arith.constant 0 : index
      %13 = vector.load %arg8[%c0_10, %c0_11] : memref<16x128xf32, #tpu.memory_space<vmem>>, vector<16x128xf32>
      tpu.vector_store %arg8[%c0_10, %c0_11], %12 {strides = array<i32>} : memref<16x128xf32, #tpu.memory_space<vmem>>, vector<16x128xf32>,
    } else {
    }
    %c0 = arith.constant 0 : index
    %c0_1 = arith.constant 0 : index
    %3 = vector.load %arg8[%c0, %c0_1] : memref<16x128xf32, #tpu.memory_space<vmem>>, vector<16x128xf32>
    %c0_2 = arith.constant 0 : index
    %c0_3 = arith.constant 0 : index
    %4 = vector.load %arg3[%c0_2, %c0_3] : memref<16x512xbf16, #tpu.memory_space<vmem>>, vector<16x512xbf16>
    %c0_4 = arith.constant 0 : index
    %c0_5 = arith.constant 0 : index
    %5 = vector.load %arg4[%c0_4, %c0_5] : memref<512x128xbf16, #tpu.memory_space<vmem>>, vector<512x128xbf16>
    %cst = arith.constant dense<0.000000e+00> : vector<16x128xf32>
    %6 = tpu.matmul %4, %5, %cst {dimension_numbers = #tpu.dot_dimension_numbers<[1], [0], [0], [1], [0, 0, 1, 1], [], []>} : vector<16x512xbf16>, vector<512x128xbf16>, vector<16x128xf32> -> vector<16x128xf32>
    %7 = arith.addf %3, %6 : vector<16x128xf32>
    %c0_6 = arith.constant 0 : index
    %c0_7 = arith.constant 0 : index
    %8 = vector.load %arg8[%c0_6, %c0_7] : memref<16x128xf32, #tpu.memory_space<vmem>>, vector<16x128xf32>
    tpu.vector_store %arg8[%c0_6, %c0_7], %7 {strides = array<i32>} : memref<16x128xf32, #tpu.memory_space<vmem>>, vector<16x128xf32>,
    %c2_i32 = arith.constant 2 : i32
    %9 = arith.cmpi eq, %arg2, %c2_i32 : i32
    %10 = arith.extui %9 : i1 to i32
    %c0_i32_8 = arith.constant 0 : i32
    %11 = arith.cmpi ne, %10, %c0_i32_8 : i32
    scf.if %11 {
      %c0_9 = arith.constant 0 : index
      %c0_10 = arith.constant 0 : index
      %12 = vector.load %arg8[%c0_9, %c0_10] : memref<16x128xf32, #tpu.memory_space<vmem>>, vector<16x128xf32>
      %c0_11 = arith.constant 0 : index
      %c0_12 = arith.constant 0 : index
      %13 = vector.load %arg5[%c0_11, %c0_12] : memref<1x128xf32, #tpu.memory_space<vmem>>, vector<1x128xf32>
      %14 = vector.broadcast %13 : vector<1x128xf32> to vector<16x128xf32>
      %15 = arith.mulf %12, %14 : vector<16x128xf32>
      %c0_13 = arith.constant 0 : index
      %c0_14 = arith.constant 0 : index
      %16 = vector.load %arg6[%c0_13, %c0_14] : memref<1x128xf32, #tpu.memory_space<vmem>>, vector<1x128xf32>
      %17 = vector.broadcast %16 : vector<1x128xf32> to vector<16x128xf32>
      %18 = arith.addf %15, %17 : vector<16x128xf32>
      %c0_15 = arith.constant 0 : index
      %c0_16 = arith.constant 0 : index
      %19 = vector.load %arg7[%c0_15, %c0_16] : memref<16x128xf32, #tpu.memory_space<vmem>>, vector<16x128xf32>
      %20 = arith.addf %18, %19 : vector<16x128xf32>
      %cst_17 = arith.constant 0.000000e+00 : f32
      %21 = vector.broadcast %cst_17 : f32 to vector<16x128xf32>
      %22 = arith.maximumf %20, %21 : vector<16x128xf32>
      %c0_18 = arith.constant 0 : index
      %c0_19 = arith.constant 0 : index
      %23 = vector.load %arg8[%c0_18, %c0_19] : memref<16x128xf32, #tpu.memory_space<vmem>>, vector<16x128xf32>
      tpu.vector_store %arg8[%c0_18, %c0_19], %22 {strides = array<i32>} : memref<16x128xf32, #tpu.memory_space<vmem>>, vector<16x128xf32>,
    } else {
    }
    return
  }
  func.func @transform_0(%arg0: i32, %arg1: i32, %arg2: i32) -> (i32, i32) {
    %c0_i32 = arith.constant 0 : i32
    return %arg0, %arg2 : i32, i32
  }
  func.func @transform_1(%arg0: i32, %arg1: i32, %arg2: i32) -> (i32, i32) {
    %c0_i32 = arith.constant 0 : i32
    return %arg2, %arg1 : i32, i32
  }
  func.func @transform_2(%arg0: i32, %arg1: i32, %arg2: i32) -> (i32, i32) {
    %c0_i32 = arith.constant 0 : i32
    %c0_i32_0 = arith.constant 0 : i32
    return %c0_i32, %arg1 : i32, i32
  }
  func.func @transform_3(%arg0: i32, %arg1: i32, %arg2: i32) -> (i32, i32) {
    %c0_i32 = arith.constant 0 : i32
    %c0_i32_0 = arith.constant 0 : i32
    return %c0_i32, %arg1 : i32, i32
  }
  func.func @transform_4(%arg0: i32, %arg1: i32, %arg2: i32) -> (i32, i32) {
    %c0_i32 = arith.constant 0 : i32
    return %arg0, %arg1 : i32, i32
  }
  func.func @transform_5(%arg0: i32, %arg1: i32, %arg2: i32) -> (i32, i32) {
    %c0_i32 = arith.constant 0 : i32
    return %arg0, %arg1 : i32, i32
  }
}

module attributes {stable_mosaic.version = 11 : i64} {
  func.func @_mm_kernel(%arg0: i32, %arg1: i32, %arg2: i32, %arg3: memref<16x512xbf16, #tpu.memory_space<vmem>>, %arg4: memref<512x256xbf16, #tpu.memory_space<vmem>>, %arg5: memref<1x256xf32, #tpu.memory_space<vmem>>, %arg6: memref<1x256xf32, #tpu.memory_space<vmem>>, %arg7: memref<16x256xf32, #tpu.memory_space<vmem>>) attributes {dimension_semantics = [#tpu.dimension_semantics<parallel>, #tpu.dimension_semantics<parallel>, #tpu.dimension_semantics<arbitrary>], iteration_bounds = array<i64: 1, 1, 3>, scalar_prefetch = 0 : i64, scratch_operands = 0 : i64, tpu.core_type = #tpu.core_type<tc>, window_params = [{transform_indices = @transform_0, window_bounds = array<i64: 16, 512>}, {transform_indices = @transform_1, window_bounds = array<i64: 512, 256>}, {transform_indices = @transform_2, window_bounds = array<i64: 1, 256>}, {transform_indices = @transform_3, window_bounds = array<i64: 1, 256>}, {transform_indices = @transform_4, window_bounds = array<i64: 16, 256>}]} {
    %c0_i32 = arith.constant 0 : i32
    %0 = arith.cmpi eq, %arg2, %c0_i32 : i32
    %1 = arith.extui %0 : i1 to i32
    %c0_i32_0 = arith.constant 0 : i32
    %2 = arith.cmpi ne, %1, %c0_i32_0 : i32
    scf.if %2 {
      %cst_9 = arith.constant 0.000000e+00 : f32
      %12 = vector.broadcast %cst_9 : f32 to vector<16x256xf32>
      %c0_10 = arith.constant 0 : index
      %c0_11 = arith.constant 0 : index
      %13 = vector.load %arg7[%c0_10, %c0_11] : memref<16x256xf32, #tpu.memory_space<vmem>>, vector<16x256xf32>
      tpu.vector_store %arg7[%c0_10, %c0_11], %12 {strides = array<i32>} : memref<16x256xf32, #tpu.memory_space<vmem>>, vector<16x256xf32>,
    } else {
    }
    %c0 = arith.constant 0 : index
    %c0_1 = arith.constant 0 : index
    %3 = vector.load %arg7[%c0, %c0_1] : memref<16x256xf32, #tpu.memory_space<vmem>>, vector<16x256xf32>
    %c0_2 = arith.constant 0 : index
    %c0_3 = arith.constant 0 : index
    %4 = vector.load %arg3[%c0_2, %c0_3] : memref<16x512xbf16, #tpu.memory_space<vmem>>, vector<16x512xbf16>
    %c0_4 = arith.constant 0 : index
    %c0_5 = arith.constant 0 : index
    %5 = vector.load %arg4[%c0_4, %c0_5] : memref<512x256xbf16, #tpu.memory_space<vmem>>, vector<512x256xbf16>
    %cst = arith.constant dense<0.000000e+00> : vector<16x256xf32>
    %6 = tpu.matmul %4, %5, %cst {dimension_numbers = #tpu.dot_dimension_numbers<[1], [0], [0], [1], [0, 0, 1, 1], [], []>} : vector<16x512xbf16>, vector<512x256xbf16>, vector<16x256xf32> -> vector<16x256xf32>
    %7 = arith.addf %3, %6 : vector<16x256xf32>
    %c0_6 = arith.constant 0 : index
    %c0_7 = arith.constant 0 : index
    %8 = vector.load %arg7[%c0_6, %c0_7] : memref<16x256xf32, #tpu.memory_space<vmem>>, vector<16x256xf32>
    tpu.vector_store %arg7[%c0_6, %c0_7], %7 {strides = array<i32>} : memref<16x256xf32, #tpu.memory_space<vmem>>, vector<16x256xf32>,
    %c2_i32 = arith.constant 2 : i32
    %9 = arith.cmpi eq, %arg2, %c2_i32 : i32
    %10 = arith.extui %9 : i1 to i32
    %c0_i32_8 = arith.constant 0 : i32
    %11 = arith.cmpi ne, %10, %c0_i32_8 : i32
    scf.if %11 {
      %c0_9 = arith.constant 0 : index
      %c0_10 = arith.constant 0 : index
      %12 = vector.load %arg7[%c0_9, %c0_10] : memref<16x256xf32, #tpu.memory_space<vmem>>, vector<16x256xf32>
      %c0_11 = arith.constant 0 : index
      %c0_12 = arith.constant 0 : index
      %13 = vector.load %arg5[%c0_11, %c0_12] : memref<1x256xf32, #tpu.memory_space<vmem>>, vector<1x256xf32>
      %14 = vector.broadcast %13 : vector<1x256xf32> to vector<16x256xf32>
      %15 = arith.mulf %12, %14 : vector<16x256xf32>
      %c0_13 = arith.constant 0 : index
      %c0_14 = arith.constant 0 : index
      %16 = vector.load %arg6[%c0_13, %c0_14] : memref<1x256xf32, #tpu.memory_space<vmem>>, vector<1x256xf32>
      %17 = vector.broadcast %16 : vector<1x256xf32> to vector<16x256xf32>
      %18 = arith.addf %15, %17 : vector<16x256xf32>
      %cst_15 = arith.constant 0.000000e+00 : f32
      %19 = vector.broadcast %cst_15 : f32 to vector<16x256xf32>
      %20 = arith.maximumf %18, %19 : vector<16x256xf32>
      %c0_16 = arith.constant 0 : index
      %c0_17 = arith.constant 0 : index
      %21 = vector.load %arg7[%c0_16, %c0_17] : memref<16x256xf32, #tpu.memory_space<vmem>>, vector<16x256xf32>
      tpu.vector_store %arg7[%c0_16, %c0_17], %20 {strides = array<i32>} : memref<16x256xf32, #tpu.memory_space<vmem>>, vector<16x256xf32>,
    } else {
    }
    return
  }
  func.func @transform_0(%arg0: i32, %arg1: i32, %arg2: i32) -> (i32, i32) {
    %c0_i32 = arith.constant 0 : i32
    return %arg0, %arg2 : i32, i32
  }
  func.func @transform_1(%arg0: i32, %arg1: i32, %arg2: i32) -> (i32, i32) {
    %c0_i32 = arith.constant 0 : i32
    return %arg2, %arg1 : i32, i32
  }
  func.func @transform_2(%arg0: i32, %arg1: i32, %arg2: i32) -> (i32, i32) {
    %c0_i32 = arith.constant 0 : i32
    %c0_i32_0 = arith.constant 0 : i32
    return %c0_i32, %arg1 : i32, i32
  }
  func.func @transform_3(%arg0: i32, %arg1: i32, %arg2: i32) -> (i32, i32) {
    %c0_i32 = arith.constant 0 : i32
    %c0_i32_0 = arith.constant 0 : i32
    return %c0_i32, %arg1 : i32, i32
  }
  func.func @transform_4(%arg0: i32, %arg1: i32, %arg2: i32) -> (i32, i32) {
    %c0_i32 = arith.constant 0 : i32
    return %arg0, %arg1 : i32, i32
  }
}

module attributes {stable_mosaic.version = 11 : i64} {
  func.func @_mm_kernel(%arg0: i32, %arg1: i32, %arg2: i32, %arg3: memref<16x128xbf16, #tpu.memory_space<vmem>>, %arg4: memref<128x256xbf16, #tpu.memory_space<vmem>>, %arg5: memref<1x256xf32, #tpu.memory_space<vmem>>, %arg6: memref<1x256xf32, #tpu.memory_space<vmem>>, %arg7: memref<16x256xf32, #tpu.memory_space<vmem>>) attributes {dimension_semantics = [#tpu.dimension_semantics<parallel>, #tpu.dimension_semantics<parallel>, #tpu.dimension_semantics<arbitrary>], iteration_bounds = array<i64: 1, 1, 1>, scalar_prefetch = 0 : i64, scratch_operands = 0 : i64, tpu.core_type = #tpu.core_type<tc>, window_params = [{transform_indices = @transform_0, window_bounds = array<i64: 16, 128>}, {transform_indices = @transform_1, window_bounds = array<i64: 128, 256>}, {transform_indices = @transform_2, window_bounds = array<i64: 1, 256>}, {transform_indices = @transform_3, window_bounds = array<i64: 1, 256>}, {transform_indices = @transform_4, window_bounds = array<i64: 16, 256>}]} {
    %c0_i32 = arith.constant 0 : i32
    %0 = arith.cmpi eq, %arg2, %c0_i32 : i32
    %1 = arith.extui %0 : i1 to i32
    %c0_i32_0 = arith.constant 0 : i32
    %2 = arith.cmpi ne, %1, %c0_i32_0 : i32
    scf.if %2 {
      %cst_10 = arith.constant 0.000000e+00 : f32
      %12 = vector.broadcast %cst_10 : f32 to vector<16x256xf32>
      %c0_11 = arith.constant 0 : index
      %c0_12 = arith.constant 0 : index
      %13 = vector.load %arg7[%c0_11, %c0_12] : memref<16x256xf32, #tpu.memory_space<vmem>>, vector<16x256xf32>
      tpu.vector_store %arg7[%c0_11, %c0_12], %12 {strides = array<i32>} : memref<16x256xf32, #tpu.memory_space<vmem>>, vector<16x256xf32>,
    } else {
    }
    %c0 = arith.constant 0 : index
    %c0_1 = arith.constant 0 : index
    %3 = vector.load %arg7[%c0, %c0_1] : memref<16x256xf32, #tpu.memory_space<vmem>>, vector<16x256xf32>
    %c0_2 = arith.constant 0 : index
    %c0_3 = arith.constant 0 : index
    %4 = vector.load %arg3[%c0_2, %c0_3] : memref<16x128xbf16, #tpu.memory_space<vmem>>, vector<16x128xbf16>
    %c0_4 = arith.constant 0 : index
    %c0_5 = arith.constant 0 : index
    %5 = vector.load %arg4[%c0_4, %c0_5] : memref<128x256xbf16, #tpu.memory_space<vmem>>, vector<128x256xbf16>
    %cst = arith.constant dense<0.000000e+00> : vector<16x256xf32>
    %6 = tpu.matmul %4, %5, %cst {dimension_numbers = #tpu.dot_dimension_numbers<[1], [0], [0], [1], [0, 0, 1, 1], [], []>} : vector<16x128xbf16>, vector<128x256xbf16>, vector<16x256xf32> -> vector<16x256xf32>
    %7 = arith.addf %3, %6 : vector<16x256xf32>
    %c0_6 = arith.constant 0 : index
    %c0_7 = arith.constant 0 : index
    %8 = vector.load %arg7[%c0_6, %c0_7] : memref<16x256xf32, #tpu.memory_space<vmem>>, vector<16x256xf32>
    tpu.vector_store %arg7[%c0_6, %c0_7], %7 {strides = array<i32>} : memref<16x256xf32, #tpu.memory_space<vmem>>, vector<16x256xf32>,
    %c0_i32_8 = arith.constant 0 : i32
    %9 = arith.cmpi eq, %arg2, %c0_i32_8 : i32
    %10 = arith.extui %9 : i1 to i32
    %c0_i32_9 = arith.constant 0 : i32
    %11 = arith.cmpi ne, %10, %c0_i32_9 : i32
    scf.if %11 {
      %c0_10 = arith.constant 0 : index
      %c0_11 = arith.constant 0 : index
      %12 = vector.load %arg7[%c0_10, %c0_11] : memref<16x256xf32, #tpu.memory_space<vmem>>, vector<16x256xf32>
      %c0_12 = arith.constant 0 : index
      %c0_13 = arith.constant 0 : index
      %13 = vector.load %arg5[%c0_12, %c0_13] : memref<1x256xf32, #tpu.memory_space<vmem>>, vector<1x256xf32>
      %14 = vector.broadcast %13 : vector<1x256xf32> to vector<16x256xf32>
      %15 = arith.mulf %12, %14 : vector<16x256xf32>
      %c0_14 = arith.constant 0 : index
      %c0_15 = arith.constant 0 : index
      %16 = vector.load %arg6[%c0_14, %c0_15] : memref<1x256xf32, #tpu.memory_space<vmem>>, vector<1x256xf32>
      %17 = vector.broadcast %16 : vector<1x256xf32> to vector<16x256xf32>
      %18 = arith.addf %15, %17 : vector<16x256xf32>
      %c0_16 = arith.constant 0 : index
      %c0_17 = arith.constant 0 : index
      %19 = vector.load %arg7[%c0_16, %c0_17] : memref<16x256xf32, #tpu.memory_space<vmem>>, vector<16x256xf32>
      tpu.vector_store %arg7[%c0_16, %c0_17], %18 {strides = array<i32>} : memref<16x256xf32, #tpu.memory_space<vmem>>, vector<16x256xf32>,
    } else {
    }
    return
  }
  func.func @transform_0(%arg0: i32, %arg1: i32, %arg2: i32) -> (i32, i32) {
    %c0_i32 = arith.constant 0 : i32
    return %arg0, %arg2 : i32, i32
  }
  func.func @transform_1(%arg0: i32, %arg1: i32, %arg2: i32) -> (i32, i32) {
    %c0_i32 = arith.constant 0 : i32
    return %arg2, %arg1 : i32, i32
  }
  func.func @transform_2(%arg0: i32, %arg1: i32, %arg2: i32) -> (i32, i32) {
    %c0_i32 = arith.constant 0 : i32
    %c0_i32_0 = arith.constant 0 : i32
    return %c0_i32, %arg1 : i32, i32
  }
  func.func @transform_3(%arg0: i32, %arg1: i32, %arg2: i32) -> (i32, i32) {
    %c0_i32 = arith.constant 0 : i32
    %c0_i32_0 = arith.constant 0 : i32
    return %c0_i32, %arg1 : i32, i32
  }
  func.func @transform_4(%arg0: i32, %arg1: i32, %arg2: i32) -> (i32, i32) {
    %c0_i32 = arith.constant 0 : i32
    return %arg0, %arg1 : i32, i32
  }
}

module attributes {stable_mosaic.version = 11 : i64} {
  func.func @_mm_kernel(%arg0: i32, %arg1: i32, %arg2: i32, %arg3: memref<16x512xbf16, #tpu.memory_space<vmem>>, %arg4: memref<512x256xbf16, #tpu.memory_space<vmem>>, %arg5: memref<1x256xf32, #tpu.memory_space<vmem>>, %arg6: memref<1x256xf32, #tpu.memory_space<vmem>>, %arg7: memref<16x256xf32, #tpu.memory_space<vmem>>) attributes {dimension_semantics = [#tpu.dimension_semantics<parallel>, #tpu.dimension_semantics<parallel>, #tpu.dimension_semantics<arbitrary>], iteration_bounds = array<i64: 1, 1, 5>, scalar_prefetch = 0 : i64, scratch_operands = 0 : i64, tpu.core_type = #tpu.core_type<tc>, window_params = [{transform_indices = @transform_0, window_bounds = array<i64: 16, 512>}, {transform_indices = @transform_1, window_bounds = array<i64: 512, 256>}, {transform_indices = @transform_2, window_bounds = array<i64: 1, 256>}, {transform_indices = @transform_3, window_bounds = array<i64: 1, 256>}, {transform_indices = @transform_4, window_bounds = array<i64: 16, 256>}]} {
    %c0_i32 = arith.constant 0 : i32
    %0 = arith.cmpi eq, %arg2, %c0_i32 : i32
    %1 = arith.extui %0 : i1 to i32
    %c0_i32_0 = arith.constant 0 : i32
    %2 = arith.cmpi ne, %1, %c0_i32_0 : i32
    scf.if %2 {
      %cst_9 = arith.constant 0.000000e+00 : f32
      %12 = vector.broadcast %cst_9 : f32 to vector<16x256xf32>
      %c0_10 = arith.constant 0 : index
      %c0_11 = arith.constant 0 : index
      %13 = vector.load %arg7[%c0_10, %c0_11] : memref<16x256xf32, #tpu.memory_space<vmem>>, vector<16x256xf32>
      tpu.vector_store %arg7[%c0_10, %c0_11], %12 {strides = array<i32>} : memref<16x256xf32, #tpu.memory_space<vmem>>, vector<16x256xf32>,
    } else {
    }
    %c0 = arith.constant 0 : index
    %c0_1 = arith.constant 0 : index
    %3 = vector.load %arg7[%c0, %c0_1] : memref<16x256xf32, #tpu.memory_space<vmem>>, vector<16x256xf32>
    %c0_2 = arith.constant 0 : index
    %c0_3 = arith.constant 0 : index
    %4 = vector.load %arg3[%c0_2, %c0_3] : memref<16x512xbf16, #tpu.memory_space<vmem>>, vector<16x512xbf16>
    %c0_4 = arith.constant 0 : index
    %c0_5 = arith.constant 0 : index
    %5 = vector.load %arg4[%c0_4, %c0_5] : memref<512x256xbf16, #tpu.memory_space<vmem>>, vector<512x256xbf16>
    %cst = arith.constant dense<0.000000e+00> : vector<16x256xf32>
    %6 = tpu.matmul %4, %5, %cst {dimension_numbers = #tpu.dot_dimension_numbers<[1], [0], [0], [1], [0, 0, 1, 1], [], []>} : vector<16x512xbf16>, vector<512x256xbf16>, vector<16x256xf32> -> vector<16x256xf32>
    %7 = arith.addf %3, %6 : vector<16x256xf32>
    %c0_6 = arith.constant 0 : index
    %c0_7 = arith.constant 0 : index
    %8 = vector.load %arg7[%c0_6, %c0_7] : memref<16x256xf32, #tpu.memory_space<vmem>>, vector<16x256xf32>
    tpu.vector_store %arg7[%c0_6, %c0_7], %7 {strides = array<i32>} : memref<16x256xf32, #tpu.memory_space<vmem>>, vector<16x256xf32>,
    %c4_i32 = arith.constant 4 : i32
    %9 = arith.cmpi eq, %arg2, %c4_i32 : i32
    %10 = arith.extui %9 : i1 to i32
    %c0_i32_8 = arith.constant 0 : i32
    %11 = arith.cmpi ne, %10, %c0_i32_8 : i32
    scf.if %11 {
      %c0_9 = arith.constant 0 : index
      %c0_10 = arith.constant 0 : index
      %12 = vector.load %arg7[%c0_9, %c0_10] : memref<16x256xf32, #tpu.memory_space<vmem>>, vector<16x256xf32>
      %c0_11 = arith.constant 0 : index
      %c0_12 = arith.constant 0 : index
      %13 = vector.load %arg5[%c0_11, %c0_12] : memref<1x256xf32, #tpu.memory_space<vmem>>, vector<1x256xf32>
      %14 = vector.broadcast %13 : vector<1x256xf32> to vector<16x256xf32>
      %15 = arith.mulf %12, %14 : vector<16x256xf32>
      %c0_13 = arith.constant 0 : index
      %c0_14 = arith.constant 0 : index
      %16 = vector.load %arg6[%c0_13, %c0_14] : memref<1x256xf32, #tpu.memory_space<vmem>>, vector<1x256xf32>
      %17 = vector.broadcast %16 : vector<1x256xf32> to vector<16x256xf32>
      %18 = arith.addf %15, %17 : vector<16x256xf32>
      %cst_15 = arith.constant 0.000000e+00 : f32
      %19 = vector.broadcast %cst_15 : f32 to vector<16x256xf32>
      %20 = arith.maximumf %18, %19 : vector<16x256xf32>
      %c0_16 = arith.constant 0 : index
      %c0_17 = arith.constant 0 : index
      %21 = vector.load %arg7[%c0_16, %c0_17] : memref<16x256xf32, #tpu.memory_space<vmem>>, vector<16x256xf32>
      tpu.vector_store %arg7[%c0_16, %c0_17], %20 {strides = array<i32>} : memref<16x256xf32, #tpu.memory_space<vmem>>, vector<16x256xf32>,
    } else {
    }
    return
  }
  func.func @transform_0(%arg0: i32, %arg1: i32, %arg2: i32) -> (i32, i32) {
    %c0_i32 = arith.constant 0 : i32
    return %arg0, %arg2 : i32, i32
  }
  func.func @transform_1(%arg0: i32, %arg1: i32, %arg2: i32) -> (i32, i32) {
    %c0_i32 = arith.constant 0 : i32
    return %arg2, %arg1 : i32, i32
  }
  func.func @transform_2(%arg0: i32, %arg1: i32, %arg2: i32) -> (i32, i32) {
    %c0_i32 = arith.constant 0 : i32
    %c0_i32_0 = arith.constant 0 : i32
    return %c0_i32, %arg1 : i32, i32
  }
  func.func @transform_3(%arg0: i32, %arg1: i32, %arg2: i32) -> (i32, i32) {
    %c0_i32 = arith.constant 0 : i32
    %c0_i32_0 = arith.constant 0 : i32
    return %c0_i32, %arg1 : i32, i32
  }
  func.func @transform_4(%arg0: i32, %arg1: i32, %arg2: i32) -> (i32, i32) {
    %c0_i32 = arith.constant 0 : i32
    return %arg0, %arg1 : i32, i32
  }
}

module attributes {stable_mosaic.version = 11 : i64} {
  func.func @_mm_kernel(%arg0: i32, %arg1: i32, %arg2: i32, %arg3: memref<16x512xbf16, #tpu.memory_space<vmem>>, %arg4: memref<512x256xbf16, #tpu.memory_space<vmem>>, %arg5: memref<1x256xf32, #tpu.memory_space<vmem>>, %arg6: memref<1x256xf32, #tpu.memory_space<vmem>>, %arg7: memref<16x256xf32, #tpu.memory_space<vmem>>, %arg8: memref<16x256xf32, #tpu.memory_space<vmem>>) attributes {dimension_semantics = [#tpu.dimension_semantics<parallel>, #tpu.dimension_semantics<parallel>, #tpu.dimension_semantics<arbitrary>], iteration_bounds = array<i64: 1, 1, 5>, scalar_prefetch = 0 : i64, scratch_operands = 0 : i64, tpu.core_type = #tpu.core_type<tc>, window_params = [{transform_indices = @transform_0, window_bounds = array<i64: 16, 512>}, {transform_indices = @transform_1, window_bounds = array<i64: 512, 256>}, {transform_indices = @transform_2, window_bounds = array<i64: 1, 256>}, {transform_indices = @transform_3, window_bounds = array<i64: 1, 256>}, {transform_indices = @transform_4, window_bounds = array<i64: 16, 256>}, {transform_indices = @transform_5, window_bounds = array<i64: 16, 256>}]} {
    %c0_i32 = arith.constant 0 : i32
    %0 = arith.cmpi eq, %arg2, %c0_i32 : i32
    %1 = arith.extui %0 : i1 to i32
    %c0_i32_0 = arith.constant 0 : i32
    %2 = arith.cmpi ne, %1, %c0_i32_0 : i32
    scf.if %2 {
      %cst_9 = arith.constant 0.000000e+00 : f32
      %12 = vector.broadcast %cst_9 : f32 to vector<16x256xf32>
      %c0_10 = arith.constant 0 : index
      %c0_11 = arith.constant 0 : index
      %13 = vector.load %arg8[%c0_10, %c0_11] : memref<16x256xf32, #tpu.memory_space<vmem>>, vector<16x256xf32>
      tpu.vector_store %arg8[%c0_10, %c0_11], %12 {strides = array<i32>} : memref<16x256xf32, #tpu.memory_space<vmem>>, vector<16x256xf32>,
    } else {
    }
    %c0 = arith.constant 0 : index
    %c0_1 = arith.constant 0 : index
    %3 = vector.load %arg8[%c0, %c0_1] : memref<16x256xf32, #tpu.memory_space<vmem>>, vector<16x256xf32>
    %c0_2 = arith.constant 0 : index
    %c0_3 = arith.constant 0 : index
    %4 = vector.load %arg3[%c0_2, %c0_3] : memref<16x512xbf16, #tpu.memory_space<vmem>>, vector<16x512xbf16>
    %c0_4 = arith.constant 0 : index
    %c0_5 = arith.constant 0 : index
    %5 = vector.load %arg4[%c0_4, %c0_5] : memref<512x256xbf16, #tpu.memory_space<vmem>>, vector<512x256xbf16>
    %cst = arith.constant dense<0.000000e+00> : vector<16x256xf32>
    %6 = tpu.matmul %4, %5, %cst {dimension_numbers = #tpu.dot_dimension_numbers<[1], [0], [0], [1], [0, 0, 1, 1], [], []>} : vector<16x512xbf16>, vector<512x256xbf16>, vector<16x256xf32> -> vector<16x256xf32>
    %7 = arith.addf %3, %6 : vector<16x256xf32>
    %c0_6 = arith.constant 0 : index
    %c0_7 = arith.constant 0 : index
    %8 = vector.load %arg8[%c0_6, %c0_7] : memref<16x256xf32, #tpu.memory_space<vmem>>, vector<16x256xf32>
    tpu.vector_store %arg8[%c0_6, %c0_7], %7 {strides = array<i32>} : memref<16x256xf32, #tpu.memory_space<vmem>>, vector<16x256xf32>,
    %c4_i32 = arith.constant 4 : i32
    %9 = arith.cmpi eq, %arg2, %c4_i32 : i32
    %10 = arith.extui %9 : i1 to i32
    %c0_i32_8 = arith.constant 0 : i32
    %11 = arith.cmpi ne, %10, %c0_i32_8 : i32
    scf.if %11 {
      %c0_9 = arith.constant 0 : index
      %c0_10 = arith.constant 0 : index
      %12 = vector.load %arg8[%c0_9, %c0_10] : memref<16x256xf32, #tpu.memory_space<vmem>>, vector<16x256xf32>
      %c0_11 = arith.constant 0 : index
      %c0_12 = arith.constant 0 : index
      %13 = vector.load %arg5[%c0_11, %c0_12] : memref<1x256xf32, #tpu.memory_space<vmem>>, vector<1x256xf32>
      %14 = vector.broadcast %13 : vector<1x256xf32> to vector<16x256xf32>
      %15 = arith.mulf %12, %14 : vector<16x256xf32>
      %c0_13 = arith.constant 0 : index
      %c0_14 = arith.constant 0 : index
      %16 = vector.load %arg6[%c0_13, %c0_14] : memref<1x256xf32, #tpu.memory_space<vmem>>, vector<1x256xf32>
      %17 = vector.broadcast %16 : vector<1x256xf32> to vector<16x256xf32>
      %18 = arith.addf %15, %17 : vector<16x256xf32>
      %c0_15 = arith.constant 0 : index
      %c0_16 = arith.constant 0 : index
      %19 = vector.load %arg7[%c0_15, %c0_16] : memref<16x256xf32, #tpu.memory_space<vmem>>, vector<16x256xf32>
      %20 = arith.addf %18, %19 : vector<16x256xf32>
      %cst_17 = arith.constant 0.000000e+00 : f32
      %21 = vector.broadcast %cst_17 : f32 to vector<16x256xf32>
      %22 = arith.maximumf %20, %21 : vector<16x256xf32>
      %c0_18 = arith.constant 0 : index
      %c0_19 = arith.constant 0 : index
      %23 = vector.load %arg8[%c0_18, %c0_19] : memref<16x256xf32, #tpu.memory_space<vmem>>, vector<16x256xf32>
      tpu.vector_store %arg8[%c0_18, %c0_19], %22 {strides = array<i32>} : memref<16x256xf32, #tpu.memory_space<vmem>>, vector<16x256xf32>,
    } else {
    }
    return
  }
  func.func @transform_0(%arg0: i32, %arg1: i32, %arg2: i32) -> (i32, i32) {
    %c0_i32 = arith.constant 0 : i32
    return %arg0, %arg2 : i32, i32
  }
  func.func @transform_1(%arg0: i32, %arg1: i32, %arg2: i32) -> (i32, i32) {
    %c0_i32 = arith.constant 0 : i32
    return %arg2, %arg1 : i32, i32
  }
  func.func @transform_2(%arg0: i32, %arg1: i32, %arg2: i32) -> (i32, i32) {
    %c0_i32 = arith.constant 0 : i32
    %c0_i32_0 = arith.constant 0 : i32
    return %c0_i32, %arg1 : i32, i32
  }
  func.func @transform_3(%arg0: i32, %arg1: i32, %arg2: i32) -> (i32, i32) {
    %c0_i32 = arith.constant 0 : i32
    %c0_i32_0 = arith.constant 0 : i32
    return %c0_i32, %arg1 : i32, i32
  }
  func.func @transform_4(%arg0: i32, %arg1: i32, %arg2: i32) -> (i32, i32) {
    %c0_i32 = arith.constant 0 : i32
    return %arg0, %arg1 : i32, i32
  }
  func.func @transform_5(%arg0: i32, %arg1: i32, %arg2: i32) -> (i32, i32) {
    %c0_i32 = arith.constant 0 : i32
    return %arg0, %arg1 : i32, i32
  }
}

module attributes {stable_mosaic.version = 11 : i64} {
  func.func @_mm_kernel(%arg0: i32, %arg1: i32, %arg2: i32, %arg3: memref<16x512xbf16, #tpu.memory_space<vmem>>, %arg4: memref<512x512xbf16, #tpu.memory_space<vmem>>, %arg5: memref<1x512xf32, #tpu.memory_space<vmem>>, %arg6: memref<1x512xf32, #tpu.memory_space<vmem>>, %arg7: memref<16x512xf32, #tpu.memory_space<vmem>>) attributes {dimension_semantics = [#tpu.dimension_semantics<parallel>, #tpu.dimension_semantics<parallel>, #tpu.dimension_semantics<arbitrary>], iteration_bounds = array<i64: 1, 1, 5>, scalar_prefetch = 0 : i64, scratch_operands = 0 : i64, tpu.core_type = #tpu.core_type<tc>, window_params = [{transform_indices = @transform_0, window_bounds = array<i64: 16, 512>}, {transform_indices = @transform_1, window_bounds = array<i64: 512, 512>}, {transform_indices = @transform_2, window_bounds = array<i64: 1, 512>}, {transform_indices = @transform_3, window_bounds = array<i64: 1, 512>}, {transform_indices = @transform_4, window_bounds = array<i64: 16, 512>}]} {
    %c0_i32 = arith.constant 0 : i32
    %0 = arith.cmpi eq, %arg2, %c0_i32 : i32
    %1 = arith.extui %0 : i1 to i32
    %c0_i32_0 = arith.constant 0 : i32
    %2 = arith.cmpi ne, %1, %c0_i32_0 : i32
    scf.if %2 {
      %cst_9 = arith.constant 0.000000e+00 : f32
      %12 = vector.broadcast %cst_9 : f32 to vector<16x512xf32>
      %c0_10 = arith.constant 0 : index
      %c0_11 = arith.constant 0 : index
      %13 = vector.load %arg7[%c0_10, %c0_11] : memref<16x512xf32, #tpu.memory_space<vmem>>, vector<16x512xf32>
      tpu.vector_store %arg7[%c0_10, %c0_11], %12 {strides = array<i32>} : memref<16x512xf32, #tpu.memory_space<vmem>>, vector<16x512xf32>,
    } else {
    }
    %c0 = arith.constant 0 : index
    %c0_1 = arith.constant 0 : index
    %3 = vector.load %arg7[%c0, %c0_1] : memref<16x512xf32, #tpu.memory_space<vmem>>, vector<16x512xf32>
    %c0_2 = arith.constant 0 : index
    %c0_3 = arith.constant 0 : index
    %4 = vector.load %arg3[%c0_2, %c0_3] : memref<16x512xbf16, #tpu.memory_space<vmem>>, vector<16x512xbf16>
    %c0_4 = arith.constant 0 : index
    %c0_5 = arith.constant 0 : index
    %5 = vector.load %arg4[%c0_4, %c0_5] : memref<512x512xbf16, #tpu.memory_space<vmem>>, vector<512x512xbf16>
    %cst = arith.constant dense<0.000000e+00> : vector<16x512xf32>
    %6 = tpu.matmul %4, %5, %cst {dimension_numbers = #tpu.dot_dimension_numbers<[1], [0], [0], [1], [0, 0, 1, 1], [], []>} : vector<16x512xbf16>, vector<512x512xbf16>, vector<16x512xf32> -> vector<16x512xf32>
    %7 = arith.addf %3, %6 : vector<16x512xf32>
    %c0_6 = arith.constant 0 : index
    %c0_7 = arith.constant 0 : index
    %8 = vector.load %arg7[%c0_6, %c0_7] : memref<16x512xf32, #tpu.memory_space<vmem>>, vector<16x512xf32>
    tpu.vector_store %arg7[%c0_6, %c0_7], %7 {strides = array<i32>} : memref<16x512xf32, #tpu.memory_space<vmem>>, vector<16x512xf32>,
    %c4_i32 = arith.constant 4 : i32
    %9 = arith.cmpi eq, %arg2, %c4_i32 : i32
    %10 = arith.extui %9 : i1 to i32
    %c0_i32_8 = arith.constant 0 : i32
    %11 = arith.cmpi ne, %10, %c0_i32_8 : i32
    scf.if %11 {
      %c0_9 = arith.constant 0 : index
      %c0_10 = arith.constant 0 : index
      %12 = vector.load %arg7[%c0_9, %c0_10] : memref<16x512xf32, #tpu.memory_space<vmem>>, vector<16x512xf32>
      %c0_11 = arith.constant 0 : index
      %c0_12 = arith.constant 0 : index
      %13 = vector.load %arg5[%c0_11, %c0_12] : memref<1x512xf32, #tpu.memory_space<vmem>>, vector<1x512xf32>
      %14 = vector.broadcast %13 : vector<1x512xf32> to vector<16x512xf32>
      %15 = arith.mulf %12, %14 : vector<16x512xf32>
      %c0_13 = arith.constant 0 : index
      %c0_14 = arith.constant 0 : index
      %16 = vector.load %arg6[%c0_13, %c0_14] : memref<1x512xf32, #tpu.memory_space<vmem>>, vector<1x512xf32>
      %17 = vector.broadcast %16 : vector<1x512xf32> to vector<16x512xf32>
      %18 = arith.addf %15, %17 : vector<16x512xf32>
      %cst_15 = arith.constant 0.000000e+00 : f32
      %19 = vector.broadcast %cst_15 : f32 to vector<16x512xf32>
      %20 = arith.maximumf %18, %19 : vector<16x512xf32>
      %c0_16 = arith.constant 0 : index
      %c0_17 = arith.constant 0 : index
      %21 = vector.load %arg7[%c0_16, %c0_17] : memref<16x512xf32, #tpu.memory_space<vmem>>, vector<16x512xf32>
      tpu.vector_store %arg7[%c0_16, %c0_17], %20 {strides = array<i32>} : memref<16x512xf32, #tpu.memory_space<vmem>>, vector<16x512xf32>,
    } else {
    }
    return
  }
  func.func @transform_0(%arg0: i32, %arg1: i32, %arg2: i32) -> (i32, i32) {
    %c0_i32 = arith.constant 0 : i32
    return %arg0, %arg2 : i32, i32
  }
  func.func @transform_1(%arg0: i32, %arg1: i32, %arg2: i32) -> (i32, i32) {
    %c0_i32 = arith.constant 0 : i32
    return %arg2, %arg1 : i32, i32
  }
  func.func @transform_2(%arg0: i32, %arg1: i32, %arg2: i32) -> (i32, i32) {
    %c0_i32 = arith.constant 0 : i32
    %c0_i32_0 = arith.constant 0 : i32
    return %c0_i32, %arg1 : i32, i32
  }
  func.func @transform_3(%arg0: i32, %arg1: i32, %arg2: i32) -> (i32, i32) {
    %c0_i32 = arith.constant 0 : i32
    %c0_i32_0 = arith.constant 0 : i32
    return %c0_i32, %arg1 : i32, i32
  }
  func.func @transform_4(%arg0: i32, %arg1: i32, %arg2: i32) -> (i32, i32) {
    %c0_i32 = arith.constant 0 : i32
    return %arg0, %arg1 : i32, i32
  }
}

module attributes {stable_mosaic.version = 11 : i64} {
  func.func @_mm_kernel(%arg0: i32, %arg1: i32, %arg2: i32, %arg3: memref<16x256xbf16, #tpu.memory_space<vmem>>, %arg4: memref<256x512xbf16, #tpu.memory_space<vmem>>, %arg5: memref<1x512xf32, #tpu.memory_space<vmem>>, %arg6: memref<1x512xf32, #tpu.memory_space<vmem>>, %arg7: memref<16x512xf32, #tpu.memory_space<vmem>>) attributes {dimension_semantics = [#tpu.dimension_semantics<parallel>, #tpu.dimension_semantics<parallel>, #tpu.dimension_semantics<arbitrary>], iteration_bounds = array<i64: 1, 1, 1>, scalar_prefetch = 0 : i64, scratch_operands = 0 : i64, tpu.core_type = #tpu.core_type<tc>, window_params = [{transform_indices = @transform_0, window_bounds = array<i64: 16, 256>}, {transform_indices = @transform_1, window_bounds = array<i64: 256, 512>}, {transform_indices = @transform_2, window_bounds = array<i64: 1, 512>}, {transform_indices = @transform_3, window_bounds = array<i64: 1, 512>}, {transform_indices = @transform_4, window_bounds = array<i64: 16, 512>}]} {
    %c0_i32 = arith.constant 0 : i32
    %0 = arith.cmpi eq, %arg2, %c0_i32 : i32
    %1 = arith.extui %0 : i1 to i32
    %c0_i32_0 = arith.constant 0 : i32
    %2 = arith.cmpi ne, %1, %c0_i32_0 : i32
    scf.if %2 {
      %cst_10 = arith.constant 0.000000e+00 : f32
      %12 = vector.broadcast %cst_10 : f32 to vector<16x512xf32>
      %c0_11 = arith.constant 0 : index
      %c0_12 = arith.constant 0 : index
      %13 = vector.load %arg7[%c0_11, %c0_12] : memref<16x512xf32, #tpu.memory_space<vmem>>, vector<16x512xf32>
      tpu.vector_store %arg7[%c0_11, %c0_12], %12 {strides = array<i32>} : memref<16x512xf32, #tpu.memory_space<vmem>>, vector<16x512xf32>,
    } else {
    }
    %c0 = arith.constant 0 : index
    %c0_1 = arith.constant 0 : index
    %3 = vector.load %arg7[%c0, %c0_1] : memref<16x512xf32, #tpu.memory_space<vmem>>, vector<16x512xf32>
    %c0_2 = arith.constant 0 : index
    %c0_3 = arith.constant 0 : index
    %4 = vector.load %arg3[%c0_2, %c0_3] : memref<16x256xbf16, #tpu.memory_space<vmem>>, vector<16x256xbf16>
    %c0_4 = arith.constant 0 : index
    %c0_5 = arith.constant 0 : index
    %5 = vector.load %arg4[%c0_4, %c0_5] : memref<256x512xbf16, #tpu.memory_space<vmem>>, vector<256x512xbf16>
    %cst = arith.constant dense<0.000000e+00> : vector<16x512xf32>
    %6 = tpu.matmul %4, %5, %cst {dimension_numbers = #tpu.dot_dimension_numbers<[1], [0], [0], [1], [0, 0, 1, 1], [], []>} : vector<16x256xbf16>, vector<256x512xbf16>, vector<16x512xf32> -> vector<16x512xf32>
    %7 = arith.addf %3, %6 : vector<16x512xf32>
    %c0_6 = arith.constant 0 : index
    %c0_7 = arith.constant 0 : index
    %8 = vector.load %arg7[%c0_6, %c0_7] : memref<16x512xf32, #tpu.memory_space<vmem>>, vector<16x512xf32>
    tpu.vector_store %arg7[%c0_6, %c0_7], %7 {strides = array<i32>} : memref<16x512xf32, #tpu.memory_space<vmem>>, vector<16x512xf32>,
    %c0_i32_8 = arith.constant 0 : i32
    %9 = arith.cmpi eq, %arg2, %c0_i32_8 : i32
    %10 = arith.extui %9 : i1 to i32
    %c0_i32_9 = arith.constant 0 : i32
    %11 = arith.cmpi ne, %10, %c0_i32_9 : i32
    scf.if %11 {
      %c0_10 = arith.constant 0 : index
      %c0_11 = arith.constant 0 : index
      %12 = vector.load %arg7[%c0_10, %c0_11] : memref<16x512xf32, #tpu.memory_space<vmem>>, vector<16x512xf32>
      %c0_12 = arith.constant 0 : index
      %c0_13 = arith.constant 0 : index
      %13 = vector.load %arg5[%c0_12, %c0_13] : memref<1x512xf32, #tpu.memory_space<vmem>>, vector<1x512xf32>
      %14 = vector.broadcast %13 : vector<1x512xf32> to vector<16x512xf32>
      %15 = arith.mulf %12, %14 : vector<16x512xf32>
      %c0_14 = arith.constant 0 : index
      %c0_15 = arith.constant 0 : index
      %16 = vector.load %arg6[%c0_14, %c0_15] : memref<1x512xf32, #tpu.memory_space<vmem>>, vector<1x512xf32>
      %17 = vector.broadcast %16 : vector<1x512xf32> to vector<16x512xf32>
      %18 = arith.addf %15, %17 : vector<16x512xf32>
      %c0_16 = arith.constant 0 : index
      %c0_17 = arith.constant 0 : index
      %19 = vector.load %arg7[%c0_16, %c0_17] : memref<16x512xf32, #tpu.memory_space<vmem>>, vector<16x512xf32>
      tpu.vector_store %arg7[%c0_16, %c0_17], %18 {strides = array<i32>} : memref<16x512xf32, #tpu.memory_space<vmem>>, vector<16x512xf32>,
    } else {
    }
    return
  }
  func.func @transform_0(%arg0: i32, %arg1: i32, %arg2: i32) -> (i32, i32) {
    %c0_i32 = arith.constant 0 : i32
    return %arg0, %arg2 : i32, i32
  }
  func.func @transform_1(%arg0: i32, %arg1: i32, %arg2: i32) -> (i32, i32) {
    %c0_i32 = arith.constant 0 : i32
    return %arg2, %arg1 : i32, i32
  }
  func.func @transform_2(%arg0: i32, %arg1: i32, %arg2: i32) -> (i32, i32) {
    %c0_i32 = arith.constant 0 : i32
    %c0_i32_0 = arith.constant 0 : i32
    return %c0_i32, %arg1 : i32, i32
  }
  func.func @transform_3(%arg0: i32, %arg1: i32, %arg2: i32) -> (i32, i32) {
    %c0_i32 = arith.constant 0 : i32
    %c0_i32_0 = arith.constant 0 : i32
    return %c0_i32, %arg1 : i32, i32
  }
  func.func @transform_4(%arg0: i32, %arg1: i32, %arg2: i32) -> (i32, i32) {
    %c0_i32 = arith.constant 0 : i32
    return %arg0, %arg1 : i32, i32
  }
}

module attributes {stable_mosaic.version = 11 : i64} {
  func.func @_mm_kernel(%arg0: i32, %arg1: i32, %arg2: i32, %arg3: memref<16x512xbf16, #tpu.memory_space<vmem>>, %arg4: memref<512x512xbf16, #tpu.memory_space<vmem>>, %arg5: memref<1x512xf32, #tpu.memory_space<vmem>>, %arg6: memref<1x512xf32, #tpu.memory_space<vmem>>, %arg7: memref<16x512xf32, #tpu.memory_space<vmem>>) attributes {dimension_semantics = [#tpu.dimension_semantics<parallel>, #tpu.dimension_semantics<parallel>, #tpu.dimension_semantics<arbitrary>], iteration_bounds = array<i64: 1, 1, 9>, scalar_prefetch = 0 : i64, scratch_operands = 0 : i64, tpu.core_type = #tpu.core_type<tc>, window_params = [{transform_indices = @transform_0, window_bounds = array<i64: 16, 512>}, {transform_indices = @transform_1, window_bounds = array<i64: 512, 512>}, {transform_indices = @transform_2, window_bounds = array<i64: 1, 512>}, {transform_indices = @transform_3, window_bounds = array<i64: 1, 512>}, {transform_indices = @transform_4, window_bounds = array<i64: 16, 512>}]} {
    %c0_i32 = arith.constant 0 : i32
    %0 = arith.cmpi eq, %arg2, %c0_i32 : i32
    %1 = arith.extui %0 : i1 to i32
    %c0_i32_0 = arith.constant 0 : i32
    %2 = arith.cmpi ne, %1, %c0_i32_0 : i32
    scf.if %2 {
      %cst_9 = arith.constant 0.000000e+00 : f32
      %12 = vector.broadcast %cst_9 : f32 to vector<16x512xf32>
      %c0_10 = arith.constant 0 : index
      %c0_11 = arith.constant 0 : index
      %13 = vector.load %arg7[%c0_10, %c0_11] : memref<16x512xf32, #tpu.memory_space<vmem>>, vector<16x512xf32>
      tpu.vector_store %arg7[%c0_10, %c0_11], %12 {strides = array<i32>} : memref<16x512xf32, #tpu.memory_space<vmem>>, vector<16x512xf32>,
    } else {
    }
    %c0 = arith.constant 0 : index
    %c0_1 = arith.constant 0 : index
    %3 = vector.load %arg7[%c0, %c0_1] : memref<16x512xf32, #tpu.memory_space<vmem>>, vector<16x512xf32>
    %c0_2 = arith.constant 0 : index
    %c0_3 = arith.constant 0 : index
    %4 = vector.load %arg3[%c0_2, %c0_3] : memref<16x512xbf16, #tpu.memory_space<vmem>>, vector<16x512xbf16>
    %c0_4 = arith.constant 0 : index
    %c0_5 = arith.constant 0 : index
    %5 = vector.load %arg4[%c0_4, %c0_5] : memref<512x512xbf16, #tpu.memory_space<vmem>>, vector<512x512xbf16>
    %cst = arith.constant dense<0.000000e+00> : vector<16x512xf32>
    %6 = tpu.matmul %4, %5, %cst {dimension_numbers = #tpu.dot_dimension_numbers<[1], [0], [0], [1], [0, 0, 1, 1], [], []>} : vector<16x512xbf16>, vector<512x512xbf16>, vector<16x512xf32> -> vector<16x512xf32>
    %7 = arith.addf %3, %6 : vector<16x512xf32>
    %c0_6 = arith.constant 0 : index
    %c0_7 = arith.constant 0 : index
    %8 = vector.load %arg7[%c0_6, %c0_7] : memref<16x512xf32, #tpu.memory_space<vmem>>, vector<16x512xf32>
    tpu.vector_store %arg7[%c0_6, %c0_7], %7 {strides = array<i32>} : memref<16x512xf32, #tpu.memory_space<vmem>>, vector<16x512xf32>,
    %c8_i32 = arith.constant 8 : i32
    %9 = arith.cmpi eq, %arg2, %c8_i32 : i32
    %10 = arith.extui %9 : i1 to i32
    %c0_i32_8 = arith.constant 0 : i32
    %11 = arith.cmpi ne, %10, %c0_i32_8 : i32
    scf.if %11 {
      %c0_9 = arith.constant 0 : index
      %c0_10 = arith.constant 0 : index
      %12 = vector.load %arg7[%c0_9, %c0_10] : memref<16x512xf32, #tpu.memory_space<vmem>>, vector<16x512xf32>
      %c0_11 = arith.constant 0 : index
      %c0_12 = arith.constant 0 : index
      %13 = vector.load %arg5[%c0_11, %c0_12] : memref<1x512xf32, #tpu.memory_space<vmem>>, vector<1x512xf32>
      %14 = vector.broadcast %13 : vector<1x512xf32> to vector<16x512xf32>
      %15 = arith.mulf %12, %14 : vector<16x512xf32>
      %c0_13 = arith.constant 0 : index
      %c0_14 = arith.constant 0 : index
      %16 = vector.load %arg6[%c0_13, %c0_14] : memref<1x512xf32, #tpu.memory_space<vmem>>, vector<1x512xf32>
      %17 = vector.broadcast %16 : vector<1x512xf32> to vector<16x512xf32>
      %18 = arith.addf %15, %17 : vector<16x512xf32>
      %cst_15 = arith.constant 0.000000e+00 : f32
      %19 = vector.broadcast %cst_15 : f32 to vector<16x512xf32>
      %20 = arith.maximumf %18, %19 : vector<16x512xf32>
      %c0_16 = arith.constant 0 : index
      %c0_17 = arith.constant 0 : index
      %21 = vector.load %arg7[%c0_16, %c0_17] : memref<16x512xf32, #tpu.memory_space<vmem>>, vector<16x512xf32>
      tpu.vector_store %arg7[%c0_16, %c0_17], %20 {strides = array<i32>} : memref<16x512xf32, #tpu.memory_space<vmem>>, vector<16x512xf32>,
    } else {
    }
    return
  }
  func.func @transform_0(%arg0: i32, %arg1: i32, %arg2: i32) -> (i32, i32) {
    %c0_i32 = arith.constant 0 : i32
    return %arg0, %arg2 : i32, i32
  }
  func.func @transform_1(%arg0: i32, %arg1: i32, %arg2: i32) -> (i32, i32) {
    %c0_i32 = arith.constant 0 : i32
    return %arg2, %arg1 : i32, i32
  }
  func.func @transform_2(%arg0: i32, %arg1: i32, %arg2: i32) -> (i32, i32) {
    %c0_i32 = arith.constant 0 : i32
    %c0_i32_0 = arith.constant 0 : i32
    return %c0_i32, %arg1 : i32, i32
  }
  func.func @transform_3(%arg0: i32, %arg1: i32, %arg2: i32) -> (i32, i32) {
    %c0_i32 = arith.constant 0 : i32
    %c0_i32_0 = arith.constant 0 : i32
    return %c0_i32, %arg1 : i32, i32
  }
  func.func @transform_4(%arg0: i32, %arg1: i32, %arg2: i32) -> (i32, i32) {
    %c0_i32 = arith.constant 0 : i32
    return %arg0, %arg1 : i32, i32
  }
}

module attributes {stable_mosaic.version = 11 : i64} {
  func.func @_mm_kernel(%arg0: i32, %arg1: i32, %arg2: i32, %arg3: memref<16x512xbf16, #tpu.memory_space<vmem>>, %arg4: memref<512x512xbf16, #tpu.memory_space<vmem>>, %arg5: memref<1x512xf32, #tpu.memory_space<vmem>>, %arg6: memref<1x512xf32, #tpu.memory_space<vmem>>, %arg7: memref<16x512xf32, #tpu.memory_space<vmem>>, %arg8: memref<16x512xf32, #tpu.memory_space<vmem>>) attributes {dimension_semantics = [#tpu.dimension_semantics<parallel>, #tpu.dimension_semantics<parallel>, #tpu.dimension_semantics<arbitrary>], iteration_bounds = array<i64: 1, 1, 9>, scalar_prefetch = 0 : i64, scratch_operands = 0 : i64, tpu.core_type = #tpu.core_type<tc>, window_params = [{transform_indices = @transform_0, window_bounds = array<i64: 16, 512>}, {transform_indices = @transform_1, window_bounds = array<i64: 512, 512>}, {transform_indices = @transform_2, window_bounds = array<i64: 1, 512>}, {transform_indices = @transform_3, window_bounds = array<i64: 1, 512>}, {transform_indices = @transform_4, window_bounds = array<i64: 16, 512>}, {transform_indices = @transform_5, window_bounds = array<i64: 16, 512>}]} {
    %c0_i32 = arith.constant 0 : i32
    %0 = arith.cmpi eq, %arg2, %c0_i32 : i32
    %1 = arith.extui %0 : i1 to i32
    %c0_i32_0 = arith.constant 0 : i32
    %2 = arith.cmpi ne, %1, %c0_i32_0 : i32
    scf.if %2 {
      %cst_9 = arith.constant 0.000000e+00 : f32
      %12 = vector.broadcast %cst_9 : f32 to vector<16x512xf32>
      %c0_10 = arith.constant 0 : index
      %c0_11 = arith.constant 0 : index
      %13 = vector.load %arg8[%c0_10, %c0_11] : memref<16x512xf32, #tpu.memory_space<vmem>>, vector<16x512xf32>
      tpu.vector_store %arg8[%c0_10, %c0_11], %12 {strides = array<i32>} : memref<16x512xf32, #tpu.memory_space<vmem>>, vector<16x512xf32>,
    } else {
    }
    %c0 = arith.constant 0 : index
    %c0_1 = arith.constant 0 : index
    %3 = vector.load %arg8[%c0, %c0_1] : memref<16x512xf32, #tpu.memory_space<vmem>>, vector<16x512xf32>
    %c0_2 = arith.constant 0 : index
    %c0_3 = arith.constant 0 : index
    %4 = vector.load %arg3[%c0_2, %c0_3] : memref<16x512xbf16, #tpu.memory_space<vmem>>, vector<16x512xbf16>
    %c0_4 = arith.constant 0 : index
    %c0_5 = arith.constant 0 : index
    %5 = vector.load %arg4[%c0_4, %c0_5] : memref<512x512xbf16, #tpu.memory_space<vmem>>, vector<512x512xbf16>
    %cst = arith.constant dense<0.000000e+00> : vector<16x512xf32>
    %6 = tpu.matmul %4, %5, %cst {dimension_numbers = #tpu.dot_dimension_numbers<[1], [0], [0], [1], [0, 0, 1, 1], [], []>} : vector<16x512xbf16>, vector<512x512xbf16>, vector<16x512xf32> -> vector<16x512xf32>
    %7 = arith.addf %3, %6 : vector<16x512xf32>
    %c0_6 = arith.constant 0 : index
    %c0_7 = arith.constant 0 : index
    %8 = vector.load %arg8[%c0_6, %c0_7] : memref<16x512xf32, #tpu.memory_space<vmem>>, vector<16x512xf32>
    tpu.vector_store %arg8[%c0_6, %c0_7], %7 {strides = array<i32>} : memref<16x512xf32, #tpu.memory_space<vmem>>, vector<16x512xf32>,
    %c8_i32 = arith.constant 8 : i32
    %9 = arith.cmpi eq, %arg2, %c8_i32 : i32
    %10 = arith.extui %9 : i1 to i32
    %c0_i32_8 = arith.constant 0 : i32
    %11 = arith.cmpi ne, %10, %c0_i32_8 : i32
    scf.if %11 {
      %c0_9 = arith.constant 0 : index
      %c0_10 = arith.constant 0 : index
      %12 = vector.load %arg8[%c0_9, %c0_10] : memref<16x512xf32, #tpu.memory_space<vmem>>, vector<16x512xf32>
      %c0_11 = arith.constant 0 : index
      %c0_12 = arith.constant 0 : index
      %13 = vector.load %arg5[%c0_11, %c0_12] : memref<1x512xf32, #tpu.memory_space<vmem>>, vector<1x512xf32>
      %14 = vector.broadcast %13 : vector<1x512xf32> to vector<16x512xf32>
      %15 = arith.mulf %12, %14 : vector<16x512xf32>
      %c0_13 = arith.constant 0 : index
      %c0_14 = arith.constant 0 : index
      %16 = vector.load %arg6[%c0_13, %c0_14] : memref<1x512xf32, #tpu.memory_space<vmem>>, vector<1x512xf32>
      %17 = vector.broadcast %16 : vector<1x512xf32> to vector<16x512xf32>
      %18 = arith.addf %15, %17 : vector<16x512xf32>
      %c0_15 = arith.constant 0 : index
      %c0_16 = arith.constant 0 : index
      %19 = vector.load %arg7[%c0_15, %c0_16] : memref<16x512xf32, #tpu.memory_space<vmem>>, vector<16x512xf32>
      %20 = arith.addf %18, %19 : vector<16x512xf32>
      %cst_17 = arith.constant 0.000000e+00 : f32
      %21 = vector.broadcast %cst_17 : f32 to vector<16x512xf32>
      %22 = arith.maximumf %20, %21 : vector<16x512xf32>
      %c0_18 = arith.constant 0 : index
      %c0_19 = arith.constant 0 : index
      %23 = vector.load %arg8[%c0_18, %c0_19] : memref<16x512xf32, #tpu.memory_space<vmem>>, vector<16x512xf32>
      tpu.vector_store %arg8[%c0_18, %c0_19], %22 {strides = array<i32>} : memref<16x512xf32, #tpu.memory_space<vmem>>, vector<16x512xf32>,
    } else {
    }
    return
  }
  func.func @transform_0(%arg0: i32, %arg1: i32, %arg2: i32) -> (i32, i32) {
    %c0_i32 = arith.constant 0 : i32
    return %arg0, %arg2 : i32, i32
  }
  func.func @transform_1(%arg0: i32, %arg1: i32, %arg2: i32) -> (i32, i32) {
    %c0_i32 = arith.constant 0 : i32
    return %arg2, %arg1 : i32, i32
  }
  func.func @transform_2(%arg0: i32, %arg1: i32, %arg2: i32) -> (i32, i32) {
    %c0_i32 = arith.constant 0 : i32
    %c0_i32_0 = arith.constant 0 : i32
    return %c0_i32, %arg1 : i32, i32
  }
  func.func @transform_3(%arg0: i32, %arg1: i32, %arg2: i32) -> (i32, i32) {
    %c0_i32 = arith.constant 0 : i32
    %c0_i32_0 = arith.constant 0 : i32
    return %c0_i32, %arg1 : i32, i32
  }
  func.func @transform_4(%arg0: i32, %arg1: i32, %arg2: i32) -> (i32, i32) {
    %c0_i32 = arith.constant 0 : i32
    return %arg0, %arg1 : i32, i32
  }
  func.func @transform_5(%arg0: i32, %arg1: i32, %arg2: i32) -> (i32, i32) {
    %c0_i32 = arith.constant 0 : i32
    return %arg0, %arg1 : i32, i32
  }
}

module attributes {stable_mosaic.version = 11 : i64} {
  func.func @_mm_kernel(%arg0: i32, %arg1: i32, %arg2: i32, %arg3: memref<16x512xbf16, #tpu.memory_space<vmem>>, %arg4: memref<512x128xbf16, #tpu.memory_space<vmem>>, %arg5: memref<1x128xf32, #tpu.memory_space<vmem>>, %arg6: memref<1x128xf32, #tpu.memory_space<vmem>>, %arg7: memref<16x128xf32, #tpu.memory_space<vmem>>) attributes {dimension_semantics = [#tpu.dimension_semantics<parallel>, #tpu.dimension_semantics<parallel>, #tpu.dimension_semantics<arbitrary>], iteration_bounds = array<i64: 1, 1, 1>, scalar_prefetch = 0 : i64, scratch_operands = 0 : i64, tpu.core_type = #tpu.core_type<tc>, window_params = [{transform_indices = @transform_0, window_bounds = array<i64: 16, 512>}, {transform_indices = @transform_1, window_bounds = array<i64: 512, 128>}, {transform_indices = @transform_2, window_bounds = array<i64: 1, 128>}, {transform_indices = @transform_3, window_bounds = array<i64: 1, 128>}, {transform_indices = @transform_4, window_bounds = array<i64: 16, 128>}]} {
    %c0_i32 = arith.constant 0 : i32
    %0 = arith.cmpi eq, %arg2, %c0_i32 : i32
    %1 = arith.extui %0 : i1 to i32
    %c0_i32_0 = arith.constant 0 : i32
    %2 = arith.cmpi ne, %1, %c0_i32_0 : i32
    scf.if %2 {
      %cst_10 = arith.constant 0.000000e+00 : f32
      %12 = vector.broadcast %cst_10 : f32 to vector<16x128xf32>
      %c0_11 = arith.constant 0 : index
      %c0_12 = arith.constant 0 : index
      %13 = vector.load %arg7[%c0_11, %c0_12] : memref<16x128xf32, #tpu.memory_space<vmem>>, vector<16x128xf32>
      tpu.vector_store %arg7[%c0_11, %c0_12], %12 {strides = array<i32>} : memref<16x128xf32, #tpu.memory_space<vmem>>, vector<16x128xf32>,
    } else {
    }
    %c0 = arith.constant 0 : index
    %c0_1 = arith.constant 0 : index
    %3 = vector.load %arg7[%c0, %c0_1] : memref<16x128xf32, #tpu.memory_space<vmem>>, vector<16x128xf32>
    %c0_2 = arith.constant 0 : index
    %c0_3 = arith.constant 0 : index
    %4 = vector.load %arg3[%c0_2, %c0_3] : memref<16x512xbf16, #tpu.memory_space<vmem>>, vector<16x512xbf16>
    %c0_4 = arith.constant 0 : index
    %c0_5 = arith.constant 0 : index
    %5 = vector.load %arg4[%c0_4, %c0_5] : memref<512x128xbf16, #tpu.memory_space<vmem>>, vector<512x128xbf16>
    %cst = arith.constant dense<0.000000e+00> : vector<16x128xf32>
    %6 = tpu.matmul %4, %5, %cst {dimension_numbers = #tpu.dot_dimension_numbers<[1], [0], [0], [1], [0, 0, 1, 1], [], []>} : vector<16x512xbf16>, vector<512x128xbf16>, vector<16x128xf32> -> vector<16x128xf32>
    %7 = arith.addf %3, %6 : vector<16x128xf32>
    %c0_6 = arith.constant 0 : index
    %c0_7 = arith.constant 0 : index
    %8 = vector.load %arg7[%c0_6, %c0_7] : memref<16x128xf32, #tpu.memory_space<vmem>>, vector<16x128xf32>
    tpu.vector_store %arg7[%c0_6, %c0_7], %7 {strides = array<i32>} : memref<16x128xf32, #tpu.memory_space<vmem>>, vector<16x128xf32>,
    %c0_i32_8 = arith.constant 0 : i32
    %9 = arith.cmpi eq, %arg2, %c0_i32_8 : i32
    %10 = arith.extui %9 : i1 to i32
    %c0_i32_9 = arith.constant 0 : i32
    %11 = arith.cmpi ne, %10, %c0_i32_9 : i32
    scf.if %11 {
      %c0_10 = arith.constant 0 : index
      %c0_11 = arith.constant 0 : index
      %12 = vector.load %arg7[%c0_10, %c0_11] : memref<16x128xf32, #tpu.memory_space<vmem>>, vector<16x128xf32>
      %c0_12 = arith.constant 0 : index
      %c0_13 = arith.constant 0 : index
      %13 = vector.load %arg5[%c0_12, %c0_13] : memref<1x128xf32, #tpu.memory_space<vmem>>, vector<1x128xf32>
      %14 = vector.broadcast %13 : vector<1x128xf32> to vector<16x128xf32>
      %15 = arith.mulf %12, %14 : vector<16x128xf32>
      %c0_14 = arith.constant 0 : index
      %c0_15 = arith.constant 0 : index
      %16 = vector.load %arg6[%c0_14, %c0_15] : memref<1x128xf32, #tpu.memory_space<vmem>>, vector<1x128xf32>
      %17 = vector.broadcast %16 : vector<1x128xf32> to vector<16x128xf32>
      %18 = arith.addf %15, %17 : vector<16x128xf32>
      %c0_16 = arith.constant 0 : index
      %c0_17 = arith.constant 0 : index
      %19 = vector.load %arg7[%c0_16, %c0_17] : memref<16x128xf32, #tpu.memory_space<vmem>>, vector<16x128xf32>
      tpu.vector_store %arg7[%c0_16, %c0_17], %18 {strides = array<i32>} : memref<16x128xf32, #tpu.memory_space<vmem>>, vector<16x128xf32>,
    } else {
    }
    return
  }
  func.func @transform_0(%arg0: i32, %arg1: i32, %arg2: i32) -> (i32, i32) {
    %c0_i32 = arith.constant 0 : i32
    return %arg0, %arg2 : i32, i32
  }
  func.func @transform_1(%arg0: i32, %arg1: i32, %arg2: i32) -> (i32, i32) {
    %c0_i32 = arith.constant 0 : i32
    return %arg2, %arg1 : i32, i32
  }
  func.func @transform_2(%arg0: i32, %arg1: i32, %arg2: i32) -> (i32, i32) {
    %c0_i32 = arith.constant 0 : i32
    %c0_i32_0 = arith.constant 0 : i32
    return %c0_i32, %arg1 : i32, i32
  }
  func.func @transform_3(%arg0: i32, %arg1: i32, %arg2: i32) -> (i32, i32) {
    %c0_i32 = arith.constant 0 : i32
    %c0_i32_0 = arith.constant 0 : i32
    return %c0_i32, %arg1 : i32, i32
  }
  func.func @transform_4(%arg0: i32, %arg1: i32, %arg2: i32) -> (i32, i32) {
    %c0_i32 = arith.constant 0 : i32
    return %arg0, %arg1 : i32, i32
  }
}

module attributes {stable_mosaic.version = 11 : i64} {
  func.func @_mm_kernel(%arg0: i32, %arg1: i32, %arg2: i32, %arg3: memref<16x128xf32, #tpu.memory_space<vmem>>, %arg4: memref<128x128xf32, #tpu.memory_space<vmem>>, %arg5: memref<1x128xf32, #tpu.memory_space<vmem>>, %arg6: memref<1x128xf32, #tpu.memory_space<vmem>>, %arg7: memref<16x128xf32, #tpu.memory_space<vmem>>) attributes {dimension_semantics = [#tpu.dimension_semantics<parallel>, #tpu.dimension_semantics<parallel>, #tpu.dimension_semantics<arbitrary>], iteration_bounds = array<i64: 1, 1, 1>, scalar_prefetch = 0 : i64, scratch_operands = 0 : i64, tpu.core_type = #tpu.core_type<tc>, window_params = [{transform_indices = @transform_0, window_bounds = array<i64: 16, 128>}, {transform_indices = @transform_1, window_bounds = array<i64: 128, 128>}, {transform_indices = @transform_2, window_bounds = array<i64: 1, 128>}, {transform_indices = @transform_3, window_bounds = array<i64: 1, 128>}, {transform_indices = @transform_4, window_bounds = array<i64: 16, 128>}]} {
    %c0_i32 = arith.constant 0 : i32
    %0 = arith.cmpi eq, %arg2, %c0_i32 : i32
    %1 = arith.extui %0 : i1 to i32
    %c0_i32_0 = arith.constant 0 : i32
    %2 = arith.cmpi ne, %1, %c0_i32_0 : i32
    scf.if %2 {
      %cst_10 = arith.constant 0.000000e+00 : f32
      %12 = vector.broadcast %cst_10 : f32 to vector<16x128xf32>
      %c0_11 = arith.constant 0 : index
      %c0_12 = arith.constant 0 : index
      %13 = vector.load %arg7[%c0_11, %c0_12] : memref<16x128xf32, #tpu.memory_space<vmem>>, vector<16x128xf32>
      tpu.vector_store %arg7[%c0_11, %c0_12], %12 {strides = array<i32>} : memref<16x128xf32, #tpu.memory_space<vmem>>, vector<16x128xf32>,
    } else {
    }
    %c0 = arith.constant 0 : index
    %c0_1 = arith.constant 0 : index
    %3 = vector.load %arg7[%c0, %c0_1] : memref<16x128xf32, #tpu.memory_space<vmem>>, vector<16x128xf32>
    %c0_2 = arith.constant 0 : index
    %c0_3 = arith.constant 0 : index
    %4 = vector.load %arg3[%c0_2, %c0_3] : memref<16x128xf32, #tpu.memory_space<vmem>>, vector<16x128xf32>
    %c0_4 = arith.constant 0 : index
    %c0_5 = arith.constant 0 : index
    %5 = vector.load %arg4[%c0_4, %c0_5] : memref<128x128xf32, #tpu.memory_space<vmem>>, vector<128x128xf32>
    %cst = arith.constant dense<0.000000e+00> : vector<16x128xf32>
    %6 = tpu.matmul %4, %5, %cst {dimension_numbers = #tpu.dot_dimension_numbers<[1], [0], [0], [1], [0, 0, 1, 1], [], []>} : vector<16x128xf32>, vector<128x128xf32>, vector<16x128xf32> -> vector<16x128xf32>
    %7 = arith.addf %3, %6 : vector<16x128xf32>
    %c0_6 = arith.constant 0 : index
    %c0_7 = arith.constant 0 : index
    %8 = vector.load %arg7[%c0_6, %c0_7] : memref<16x128xf32, #tpu.memory_space<vmem>>, vector<16x128xf32>
    tpu.vector_store %arg7[%c0_6, %c0_7], %7 {strides = array<i32>} : memref<16x128xf32, #tpu.memory_space<vmem>>, vector<16x128xf32>,
    %c0_i32_8 = arith.constant 0 : i32
    %9 = arith.cmpi eq, %arg2, %c0_i32_8 : i32
    %10 = arith.extui %9 : i1 to i32
    %c0_i32_9 = arith.constant 0 : i32
    %11 = arith.cmpi ne, %10, %c0_i32_9 : i32
    scf.if %11 {
      %c0_10 = arith.constant 0 : index
      %c0_11 = arith.constant 0 : index
      %12 = vector.load %arg7[%c0_10, %c0_11] : memref<16x128xf32, #tpu.memory_space<vmem>>, vector<16x128xf32>
      %c0_12 = arith.constant 0 : index
      %c0_13 = arith.constant 0 : index
      %13 = vector.load %arg5[%c0_12, %c0_13] : memref<1x128xf32, #tpu.memory_space<vmem>>, vector<1x128xf32>
      %14 = vector.broadcast %13 : vector<1x128xf32> to vector<16x128xf32>
      %15 = arith.mulf %12, %14 : vector<16x128xf32>
      %c0_14 = arith.constant 0 : index
      %c0_15 = arith.constant 0 : index
      %16 = vector.load %arg6[%c0_14, %c0_15] : memref<1x128xf32, #tpu.memory_space<vmem>>, vector<1x128xf32>
      %17 = vector.broadcast %16 : vector<1x128xf32> to vector<16x128xf32>
      %18 = arith.addf %15, %17 : vector<16x128xf32>
      %c0_16 = arith.constant 0 : index
      %c0_17 = arith.constant 0 : index
      %19 = vector.load %arg7[%c0_16, %c0_17] : memref<16x128xf32, #tpu.memory_space<vmem>>, vector<16x128xf32>
      tpu.vector_store %arg7[%c0_16, %c0_17], %18 {strides = array<i32>} : memref<16x128xf32, #tpu.memory_space<vmem>>, vector<16x128xf32>,
    } else {
    }
    return
  }
  func.func @transform_0(%arg0: i32, %arg1: i32, %arg2: i32) -> (i32, i32) {
    %c0_i32 = arith.constant 0 : i32
    return %arg0, %arg2 : i32, i32
  }
  func.func @transform_1(%arg0: i32, %arg1: i32, %arg2: i32) -> (i32, i32) {
    %c0_i32 = arith.constant 0 : i32
    return %arg2, %arg1 : i32, i32
  }
  func.func @transform_2(%arg0: i32, %arg1: i32, %arg2: i32) -> (i32, i32) {
    %c0_i32 = arith.constant 0 : i32
    %c0_i32_0 = arith.constant 0 : i32
    return %c0_i32, %arg1 : i32, i32
  }
  func.func @transform_3(%arg0: i32, %arg1: i32, %arg2: i32) -> (i32, i32) {
    %c0_i32 = arith.constant 0 : i32
    %c0_i32_0 = arith.constant 0 : i32
    return %c0_i32, %arg1 : i32, i32
  }
  func.func @transform_4(%arg0: i32, %arg1: i32, %arg2: i32) -> (i32, i32) {
    %c0_i32 = arith.constant 0 : i32
    return %arg0, %arg1 : i32, i32
  }
}

module attributes {stable_mosaic.version = 11 : i64} {
  func.func @_mm_kernel(%arg0: i32, %arg1: i32, %arg2: i32, %arg3: memref<256x128xf32, #tpu.memory_space<vmem>>, %arg4: memref<128x128xf32, #tpu.memory_space<vmem>>, %arg5: memref<1x128xf32, #tpu.memory_space<vmem>>, %arg6: memref<1x128xf32, #tpu.memory_space<vmem>>, %arg7: memref<256x128xf32, #tpu.memory_space<vmem>>) attributes {dimension_semantics = [#tpu.dimension_semantics<parallel>, #tpu.dimension_semantics<parallel>, #tpu.dimension_semantics<arbitrary>], iteration_bounds = array<i64: 1, 1, 1>, scalar_prefetch = 0 : i64, scratch_operands = 0 : i64, tpu.core_type = #tpu.core_type<tc>, window_params = [{transform_indices = @transform_0, window_bounds = array<i64: 256, 128>}, {transform_indices = @transform_1, window_bounds = array<i64: 128, 128>}, {transform_indices = @transform_2, window_bounds = array<i64: 1, 128>}, {transform_indices = @transform_3, window_bounds = array<i64: 1, 128>}, {transform_indices = @transform_4, window_bounds = array<i64: 256, 128>}]} {
    %c0_i32 = arith.constant 0 : i32
    %0 = arith.cmpi eq, %arg2, %c0_i32 : i32
    %1 = arith.extui %0 : i1 to i32
    %c0_i32_0 = arith.constant 0 : i32
    %2 = arith.cmpi ne, %1, %c0_i32_0 : i32
    scf.if %2 {
      %cst_10 = arith.constant 0.000000e+00 : f32
      %12 = vector.broadcast %cst_10 : f32 to vector<256x128xf32>
      %c0_11 = arith.constant 0 : index
      %c0_12 = arith.constant 0 : index
      %13 = vector.load %arg7[%c0_11, %c0_12] : memref<256x128xf32, #tpu.memory_space<vmem>>, vector<256x128xf32>
      tpu.vector_store %arg7[%c0_11, %c0_12], %12 {strides = array<i32>} : memref<256x128xf32, #tpu.memory_space<vmem>>, vector<256x128xf32>,
    } else {
    }
    %c0 = arith.constant 0 : index
    %c0_1 = arith.constant 0 : index
    %3 = vector.load %arg7[%c0, %c0_1] : memref<256x128xf32, #tpu.memory_space<vmem>>, vector<256x128xf32>
    %c0_2 = arith.constant 0 : index
    %c0_3 = arith.constant 0 : index
    %4 = vector.load %arg3[%c0_2, %c0_3] : memref<256x128xf32, #tpu.memory_space<vmem>>, vector<256x128xf32>
    %c0_4 = arith.constant 0 : index
    %c0_5 = arith.constant 0 : index
    %5 = vector.load %arg4[%c0_4, %c0_5] : memref<128x128xf32, #tpu.memory_space<vmem>>, vector<128x128xf32>
    %cst = arith.constant dense<0.000000e+00> : vector<256x128xf32>
    %6 = tpu.matmul %4, %5, %cst {dimension_numbers = #tpu.dot_dimension_numbers<[1], [0], [0], [1], [0, 0, 1, 1], [], []>} : vector<256x128xf32>, vector<128x128xf32>, vector<256x128xf32> -> vector<256x128xf32>
    %7 = arith.addf %3, %6 : vector<256x128xf32>
    %c0_6 = arith.constant 0 : index
    %c0_7 = arith.constant 0 : index
    %8 = vector.load %arg7[%c0_6, %c0_7] : memref<256x128xf32, #tpu.memory_space<vmem>>, vector<256x128xf32>
    tpu.vector_store %arg7[%c0_6, %c0_7], %7 {strides = array<i32>} : memref<256x128xf32, #tpu.memory_space<vmem>>, vector<256x128xf32>,
    %c0_i32_8 = arith.constant 0 : i32
    %9 = arith.cmpi eq, %arg2, %c0_i32_8 : i32
    %10 = arith.extui %9 : i1 to i32
    %c0_i32_9 = arith.constant 0 : i32
    %11 = arith.cmpi ne, %10, %c0_i32_9 : i32
    scf.if %11 {
      %c0_10 = arith.constant 0 : index
      %c0_11 = arith.constant 0 : index
      %12 = vector.load %arg7[%c0_10, %c0_11] : memref<256x128xf32, #tpu.memory_space<vmem>>, vector<256x128xf32>
      %c0_12 = arith.constant 0 : index
      %c0_13 = arith.constant 0 : index
      %13 = vector.load %arg5[%c0_12, %c0_13] : memref<1x128xf32, #tpu.memory_space<vmem>>, vector<1x128xf32>
      %14 = vector.broadcast %13 : vector<1x128xf32> to vector<256x128xf32>
      %15 = arith.mulf %12, %14 : vector<256x128xf32>
      %c0_14 = arith.constant 0 : index
      %c0_15 = arith.constant 0 : index
      %16 = vector.load %arg6[%c0_14, %c0_15] : memref<1x128xf32, #tpu.memory_space<vmem>>, vector<1x128xf32>
      %17 = vector.broadcast %16 : vector<1x128xf32> to vector<256x128xf32>
      %18 = arith.addf %15, %17 : vector<256x128xf32>
      %c0_16 = arith.constant 0 : index
      %c0_17 = arith.constant 0 : index
      %19 = vector.load %arg7[%c0_16, %c0_17] : memref<256x128xf32, #tpu.memory_space<vmem>>, vector<256x128xf32>
      tpu.vector_store %arg7[%c0_16, %c0_17], %18 {strides = array<i32>} : memref<256x128xf32, #tpu.memory_space<vmem>>, vector<256x128xf32>,
    } else {
    }
    return
  }
  func.func @transform_0(%arg0: i32, %arg1: i32, %arg2: i32) -> (i32, i32) {
    %c0_i32 = arith.constant 0 : i32
    return %arg0, %arg2 : i32, i32
  }
  func.func @transform_1(%arg0: i32, %arg1: i32, %arg2: i32) -> (i32, i32) {
    %c0_i32 = arith.constant 0 : i32
    return %arg2, %arg1 : i32, i32
  }
  func.func @transform_2(%arg0: i32, %arg1: i32, %arg2: i32) -> (i32, i32) {
    %c0_i32 = arith.constant 0 : i32
    %c0_i32_0 = arith.constant 0 : i32
    return %c0_i32, %arg1 : i32, i32
  }
  func.func @transform_3(%arg0: i32, %arg1: i32, %arg2: i32) -> (i32, i32) {
    %c0_i32 = arith.constant 0 : i32
    %c0_i32_0 = arith.constant 0 : i32
    return %c0_i32, %arg1 : i32, i32
  }
  func.func @transform_4(%arg0: i32, %arg1: i32, %arg2: i32) -> (i32, i32) {
    %c0_i32 = arith.constant 0 : i32
    return %arg0, %arg1 : i32, i32
  }
}

</mosaic_0001>

<bundles_post_ra>
// kernel: drnseg_forward.30
= control target key start
LH: loop header
LB: loop body
LE: loop exit
PB: predicated region body
PF: predicated region fallthrough
CT: control target
= control target key end

     0   :  { %s874_s1 = inlined_call_operand.vmem [shape: bf16[256,128], index: 1, kind: input, shape index: {}]   ;;  %s875_s0 = inlined_call_operand.vmem [shape: bf16[128,256], index: 0, kind: input, shape index: {}]   ;;  %s876_s2 = inlined_call_operand.vmem [shape: f32[1,128], index: 2, kind: input, shape index: {}]   ;;  %s877_s3 = inlined_call_operand.vmem [shape: f32[1,128], index: 3, kind: input, shape index: {}]   ;;  %s878_s4 = inlined_call_operand.vmem [shape: f32[128,128], index: 4, kind: output, shape index: {}]  }
   0x1   :  { %v623_v0 = vld [vmem:[%s874_s1 + $0x40] sm:$0xff]   ;;  %v625_v2 = vld [vmem:[%s874_s1 + $0x48] sm:$0xff]   ;;  %v627_v4 = vld [vmem:[%s874_s1 + $0x50] sm:$0xff]  }
   0x2   :  { %v624_v1 = vld [vmem:[%s874_s1] sm:$0xff]   ;;  %542 = vmatprep.subr.bf16.mxu0 %v623_v0  ;;  %606 = vmatprep.subr.bf16.mxu1 %v623_v0  ;;  %v626_v3 = vld [vmem:[%s874_s1 + $0x8] sm:$0xff]   ;;  %v628_v5 = vld [vmem:[%s874_s1 + $0x10] sm:$0xff]  }
   0x3   :  { %543 = vmatpush3.bf16.msra.mxu0 %v624_v1  ;;  %614 = vmatpush3.bf16.msra.mxu1 %v624_v1  ;;  %v629_v6 = vld [vmem:[%s874_s1 + $0x58] sm:$0xff]   ;;  %v631_v8 = vld [vmem:[%s874_s1 + $0x60] sm:$0xff]   ;;  %v633_v10 = vld [vmem:[%s874_s1 + $0x68] sm:$0xff]  }
   0x4   :  { %544 = vmatprep.subr.bf16.mxu0 %v625_v2  ;;  %607 = vmatprep.subr.bf16.mxu1 %v625_v2  ;;  %v630_v7 = vld [vmem:[%s874_s1 + $0x18] sm:$0xff]   ;;  %v632_v9 = vld [vmem:[%s874_s1 + $0x20] sm:$0xff]   ;;  %v634_v13 = vld [vmem:[%s874_s1 + $0x28] sm:$0xff]  }
   0x5   :  { %v641_v11 = vld [vmem:[%s875_s0 + $0x4] ss:$8 sps:$4 sm:$0xff]   ;;  %v635_v14 = vld [vmem:[%s874_s1 + $0x70] sm:$0xff]   ;;  %v637_v16 = vld [vmem:[%s874_s1 + $0x78] sm:$0xff]  }
   0x6   :  { %v644_v12 = vld [vmem:[%s875_s0 + $0x44] ss:$8 sps:$4 sm:$0xff]   ;;  %310 = vmatprep.mubr.bf16.mxu0 %v641_v11  ;;  %v636_v15 = vld [vmem:[%s874_s1 + $0x30] sm:$0xff]   ;;  %v638_v17 = vld [vmem:[%s874_s1 + $0x38] sm:$0xff]  }
   0x7   :  { %545 = vmatpush3.bf16.msra.mxu0 %v626_v3  ;;  %615 = vmatpush3.bf16.msra.mxu1 %v626_v3  ;;  %v639_v18 = vld [vmem:[%s875_s0] ss:$8 sps:$4 sm:$0xff]   ;;  %v645_v20 = vld [vmem:[%s875_s0 + $0x14] ss:$8 sps:$4 sm:$0xff]   ;;  %v649_v22 = vld [vmem:[%s875_s0 + $0x10] ss:$8 sps:$4 sm:$0xff]  }
   0x8   :  { %546 = vmatprep.subr.bf16.mxu0 %v627_v4  ;;  %608 = vmatprep.subr.bf16.mxu1 %v627_v4  ;;  %v642_v19 = vld [vmem:[%s875_s0 + $0x40] ss:$8 sps:$4 sm:$0xff]   ;;  %v647_v21 = vld [vmem:[%s875_s0 + $0x54] ss:$8 sps:$4 sm:$0xff]   ;;  %v650_v23 = vld [vmem:[%s875_s0 + $0x50] ss:$8 sps:$4 sm:$0xff]  }
   0x9   :  { %342 = vmatprep.mubr.bf16.mxu1 %v644_v12  ;;  %v651_v24 = vld [vmem:[%s875_s0 + $0x24] ss:$8 sps:$4 sm:$0xff]   ;;  %v655_v26 = vld [vmem:[%s875_s0 + $0x20] ss:$8 sps:$4 sm:$0xff]   ;;  %v657_v28 = vld [vmem:[%s875_s0 + $0x34] ss:$8 sps:$4 sm:$0xff]  }
   0xa   :  { %v653_v25 = vld [vmem:[%s875_s0 + $0x64] ss:$8 sps:$4 sm:$0xff]   ;;  %v656_v27 = vld [vmem:[%s875_s0 + $0x60] ss:$8 sps:$4 sm:$0xff]   ;;  %v659_v29 = vld [vmem:[%s875_s0 + $0x74] ss:$8 sps:$4 sm:$0xff]  }
   0xb   :  { %547 = vmatpush3.bf16.msra.mxu0 %v628_v5  ;;  %616 = vmatpush3.bf16.msra.mxu1 %v628_v5  ;;  %v661_v30 = vld [vmem:[%s875_s0 + $0x30] ss:$8 sps:$4 sm:$0xff]   ;;  %v787_v40 = vld [vmem:[%s876_s2] ss:$0 sm:$0xff] }
   0xc   :  { %548 = vmatprep.subr.bf16.mxu0 %v629_v6  ;;  %609 = vmatprep.subr.bf16.mxu1 %v629_v6  ;;  %v662_v31 = vld [vmem:[%s875_s0 + $0x70] ss:$8 sps:$4 sm:$0xff]   ;;  %v792_v45 = vld [vmem:[%s877_s3] ss:$0 sm:$0xff] }
   0xf   :  { %549 = vmatpush3.bf16.msra.mxu0 %v630_v7  ;;  %617 = vmatpush3.bf16.msra.mxu1 %v630_v7 }
  0x10   :  { %550 = vmatprep.subr.bf16.mxu0 %v631_v8  ;;  %610 = vmatprep.subr.bf16.mxu1 %v631_v8 }
  0x13   :  { %551 = vmatpush3.bf16.msra.mxu0 %v632_v9  ;;  %618 = vmatpush3.bf16.msra.mxu1 %v632_v9 }
  0x14   :  { %552 = vmatprep.subr.bf16.mxu0 %v633_v10  ;;  %611 = vmatprep.subr.bf16.mxu1 %v633_v10 }
  0x17   :  { %553 = vmatpush3.bf16.msra.mxu0 %v634_v13  ;;  %619 = vmatpush3.bf16.msra.mxu1 %v634_v13 }
  0x18   :  { %554 = vmatprep.subr.bf16.mxu0 %v635_v14  ;;  %612 = vmatprep.subr.bf16.mxu1 %v635_v14 }
  0x1b   :  { %555 = vmatpush3.bf16.msra.mxu0 %v636_v15  ;;  %620 = vmatpush3.bf16.msra.mxu1 %v636_v15 }
  0x1c   :  { %556 = vmatprep.subr.bf16.mxu0 %v637_v16  ;;  %613 = vmatprep.subr.bf16.mxu1 %v637_v16 }
  0x1f   :  { %557 = vmatpush3.bf16.msra.mxu0 %v638_v17  ;;  %621 = vmatpush3.bf16.msra.mxu1 %v638_v17 }
  0x22   :  { %311 = vmatmul.mubr.bf16.vlgmr.msra.gmra.mrb[0].mxu0 %v639_v18  ;;  %343 = vmatmul.mubr.bf16.vlgmr.msra.gmra.mrb[0].mxu1 %v642_v19 }
  0x23   :  { %318 = vmatprep.mubr.bf16.mxu0 %v645_v20  ;;  %350 = vmatprep.mubr.bf16.mxu1 %v647_v21 }
  0x2a   :  { %319 = vmatmul.mubr.bf16.gmra.mrb[4].mxu0 %v649_v22  ;;  %351 = vmatmul.mubr.bf16.gmra.mrb[4].mxu1 %v650_v23 }
  0x2b   :  { %326 = vmatprep.mubr.bf16.mxu0 %v651_v24  ;;  %358 = vmatprep.mubr.bf16.mxu1 %v653_v25 }
  0x32   :  { %327 = vmatmul.mubr.bf16.gmra.mrb[8].mxu0 %v655_v26  ;;  %359 = vmatmul.mubr.bf16.gmra.mrb[8].mxu1 %v656_v27 }
  0x33   :  { %334 = vmatprep.mubr.bf16.mxu0 %v657_v28  ;;  %366 = vmatprep.mubr.bf16.mxu1 %v659_v29 }
  0x3a   :  { %335 = vmatmul.mubr.bf16.gmra.mrb[12].mxu0 %v661_v30  ;;  %367 = vmatmul.mubr.bf16.gmra.mrb[12].mxu1 %v662_v31 }
  0xf5   :  { %v558_v32 = vpop.f32.mrb[0].mxu0  ;;  %v582_v33 = vpop.f32.mrb[0].mxu1 }
  0xf6   :  { %v559_v34 = vpop.f32.mrb[1].mxu0  ;;  %v583_v35 = vpop.f32.mrb[1].mxu1 }
  0xf7   :  { %v560_v36 = vadd.f32 %v559_v34, %v558_v32  ;;  %v584_v37 = vadd.f32 %v583_v35, %v582_v33  ;;  %v561_v38 = vpop.f32.mrb[2].mxu0  ;;  %v585_v39 = vpop.f32.mrb[2].mxu1 }
  0xf8   :  { %v562_v41 = vpop.f32.mrb[3].mxu0  ;;  %v586_v42 = vpop.f32.mrb[3].mxu1 }
  0xf9   :  { %v563_v43 = vadd.f32 %v562_v41, %v561_v38  ;;  %v587_v44 = vadd.f32 %v586_v42, %v585_v39  ;;  %v433_v46 = vmul.f32 %v560_v36, %v787_v40  ;;  %v441_v47 = vmul.f32 %v584_v37, %v787_v40 }
  0xfb   :  { %v456_v48 = vadd.f32 %v792_v45, %v433_v46  ;;  %v464_v49 = vadd.f32 %v792_v45, %v441_v47  ;;  %v434_v50 = vmul.f32 %v563_v43, %v787_v40  ;;  %v442_v51 = vmul.f32 %v587_v44, %v787_v40 }
  0xfd   :  { %v564_v52 = vpop.f32.mrb[4].mxu0  ;;  %v588_v53 = vpop.f32.mrb[4].mxu1  ;;  %v472_v56 = vmax.f32 %v456_v48, 0.0  ;;  %v480_v57 = vmax.f32 %v464_v49, 0.0  ;;  %v457_v58 = vadd.f32 %v792_v45, %v434_v50  ;;  %v465_v59 = vadd.f32 %v792_v45, %v442_v51 }
  0xfe   :  { %v565_v54 = vpop.f32.mrb[5].mxu0  ;;  %v589_v55 = vpop.f32.mrb[5].mxu1 }
  0xff   :  { %v567_v60 = vpop.f32.mrb[6].mxu0  ;;  %v591_v61 = vpop.f32.mrb[6].mxu1  ;;  %v566_v62 = vadd.f32 %v565_v54, %v564_v52  ;;  %v590_v63 = vadd.f32 %v589_v55, %v588_v53  ;;  %488 = vst [vmem:[%s878_s4] sm:$0xff] %v472_v56  ;;  %496 = vst [vmem:[%s878_s4 + $0x40] sm:$0xff] %v480_v57  ;;  %v473_v2 = vmax.f32 %v457_v58, 0.0  ;;  %v481_v3 = vmax.f32 %v465_v59, 0.0 }
 0x100   :  { %v568_v0 = vpop.f32.mrb[7].mxu0  ;;  %v592_v1 = vpop.f32.mrb[7].mxu1 }
 0x101   :  { %v569_v4 = vadd.f32 %v568_v0, %v567_v60  ;;  %v593_v5 = vadd.f32 %v592_v1, %v591_v61  ;;  %489 = vst [vmem:[%s878_s4 + $0x8] sm:$0xff] %v473_v2  ;;  %497 = vst [vmem:[%s878_s4 + $0x48] sm:$0xff] %v481_v3  ;;  %v435_v6 = vmul.f32 %v566_v62, %v787_v40 }
 0x102   :  { %v443_v7 = vmul.f32 %v590_v63, %v787_v40 }
 0x103   :  { %v436_v8 = vmul.f32 %v569_v4, %v787_v40  ;;  %v444_v9 = vmul.f32 %v593_v5, %v787_v40  ;;  %v458_v12 = vadd.f32 %v792_v45, %v435_v6 }
 0x104   :  { %v466_v13 = vadd.f32 %v792_v45, %v443_v7 }
 0x105   :  { %v570_v10 = vpop.f32.mrb[8].mxu0  ;;  %v594_v11 = vpop.f32.mrb[8].mxu1  ;;  %v459_v16 = vadd.f32 %v792_v45, %v436_v8  ;;  %v467_v17 = vadd.f32 %v792_v45, %v444_v9  ;;  %v474_v22 = vmax.f32 %v458_v12, 0.0 }
 0x106   :  { %v571_v14 = vpop.f32.mrb[9].mxu0  ;;  %v595_v15 = vpop.f32.mrb[9].mxu1  ;;  %v482_v23 = vmax.f32 %v466_v13, 0.0 }
 0x107   :  { %v572_v18 = vadd.f32 %v571_v14, %v570_v10  ;;  %v596_v19 = vadd.f32 %v595_v15, %v594_v11  ;;  %v573_v20 = vpop.f32.mrb[10].mxu0  ;;  %v597_v21 = vpop.f32.mrb[10].mxu1  ;;  %v475_v26 = vmax.f32 %v459_v16, 0.0  ;;  %v483_v27 = vmax.f32 %v467_v17, 0.0  ;;  %490 = vst [vmem:[%s878_s4 + $0x10] sm:$0xff] %v474_v22 }
 0x108   :  { %v574_v24 = vpop.f32.mrb[11].mxu0  ;;  %v598_v25 = vpop.f32.mrb[11].mxu1  ;;  %498 = vst [vmem:[%s878_s4 + $0x50] sm:$0xff] %v482_v23 }
 0x109   :  { %v575_v28 = vadd.f32 %v574_v24, %v573_v20  ;;  %v599_v29 = vadd.f32 %v598_v25, %v597_v21  ;;  %491 = vst [vmem:[%s878_s4 + $0x18] sm:$0xff] %v475_v26  ;;  %499 = vst [vmem:[%s878_s4 + $0x58] sm:$0xff] %v483_v27  ;;  %v437_v30 = vmul.f32 %v572_v18, %v787_v40 }
 0x10a   :  { %v445_v31 = vmul.f32 %v596_v19, %v787_v40 }
 0x10b   :  { %v460_v32 = vadd.f32 %v792_v45, %v437_v30  ;;  %v438_v36 = vmul.f32 %v575_v28, %v787_v40  ;;  %v446_v37 = vmul.f32 %v599_v29, %v787_v40 }
 0x10c   :  { %v468_v33 = vadd.f32 %v792_v45, %v445_v31 }
 0x10d   :  { %v576_v34 = vpop.f32.mrb[12].mxu0  ;;  %v600_v35 = vpop.f32.mrb[12].mxu1  ;;  %v476_v41 = vmax.f32 %v460_v32, 0.0  ;;  %v461_v48 = vadd.f32 %v792_v45, %v438_v36  ;;  %v469_v49 = vadd.f32 %v792_v45, %v446_v37 }
 0x10e   :  { %v577_v38 = vpop.f32.mrb[13].mxu0  ;;  %v601_v39 = vpop.f32.mrb[13].mxu1  ;;  %v484_v42 = vmax.f32 %v468_v33, 0.0 }
 0x10f   :  { %v578_v43 = vadd.f32 %v577_v38, %v576_v34  ;;  %v602_v44 = vadd.f32 %v601_v39, %v600_v35  ;;  %v579_v46 = vpop.f32.mrb[14].mxu0  ;;  %v603_v47 = vpop.f32.mrb[14].mxu1  ;;  %492 = vst [vmem:[%s878_s4 + $0x20] sm:$0xff] %v476_v41  ;;  %v477_v54 = vmax.f32 %v461_v48, 0.0  ;;  %v485_v55 = vmax.f32 %v469_v49, 0.0 }
 0x110   :  { %v580_v50 = vpop.f32.mrb[15].mxu0  ;;  %v604_v51 = vpop.f32.mrb[15].mxu1  ;;  %500 = vst [vmem:[%s878_s4 + $0x60] sm:$0xff] %v484_v42 }
 0x111   :  { %v581_v52 = vadd.f32 %v580_v50, %v579_v46  ;;  %v605_v53 = vadd.f32 %v604_v51, %v603_v47  ;;  %v439_v56 = vmul.f32 %v578_v43, %v787_v40  ;;  %v447_v57 = vmul.f32 %v602_v44, %v787_v40  ;;  %493 = vst [vmem:[%s878_s4 + $0x28] sm:$0xff] %v477_v54 }
 0x112   :  { %501 = vst [vmem:[%s878_s4 + $0x68] sm:$0xff] %v485_v55 }
 0x113   :  { %v462_v58 = vadd.f32 %v792_v45, %v439_v56  ;;  %v470_v59 = vadd.f32 %v792_v45, %v447_v57  ;;  %v440_v60 = vmul.f32 %v581_v52, %v787_v40  ;;  %v448_v61 = vmul.f32 %v605_v53, %v787_v40 }
 0x115   :  { %v478_v62 = vmax.f32 %v462_v58, 0.0  ;;  %v486_v63 = vmax.f32 %v470_v59, 0.0  ;;  %v463_v0 = vadd.f32 %v792_v45, %v440_v60  ;;  %v471_v1 = vadd.f32 %v792_v45, %v448_v61 }
 0x117   :  { %494 = vst [vmem:[%s878_s4 + $0x30] sm:$0xff] %v478_v62  ;;  %502 = vst [vmem:[%s878_s4 + $0x70] sm:$0xff] %v486_v63  ;;  %v479_v2 = vmax.f32 %v463_v0, 0.0  ;;  %v487_v3 = vmax.f32 %v471_v1, 0.0 }
 0x119   :  { %495 = vst [vmem:[%s878_s4 + $0x38] sm:$0xff] %v479_v2  ;;  %503 = vst [vmem:[%s878_s4 + $0x78] sm:$0xff] %v487_v3 }

// kernel: drnseg_forward.28
= control target key start
LH: loop header
LB: loop body
LE: loop exit
PB: predicated region body
PF: predicated region fallthrough
CT: control target
= control target key end

     0   :  { %s1557_s15 = smov 0   ;;  %s1559_s16 = smov 0   ;;  %s1787_s0 = inlined_call_operand.vmem [shape: bf16[512,256], index: 0, kind: input, shape index: {}]   ;;  %s1788_s1 = inlined_call_operand.vmem [shape: bf16[256,128], index: 1, kind: input, shape index: {}]   ;;  %s1789_s2 = inlined_call_operand.vmem [shape: f32[1,128], index: 2, kind: input, shape index: {}]   ;;  %s1790_s3 = inlined_call_operand.vmem [shape: f32[1,128], index: 3, kind: input, shape index: {}]   ;;  %s1791_s4 = inlined_call_operand.vmem [shape: f32[512,128], index: 4, kind: output, shape index: {}]  }
   0x1   :  { %s1561_s17 = smov 0  }
   0x2 LB: > { %s33_s18 = sadd.s32 1, %s1526_s16  ;;  %p1232_p0 = scmp.ge.s32.totalorder %s1530_s17, 1  ;;  %s1530_s17 = sphi %s1561_s17, %s14_s17   ;;  %s1526_s16 = sphi %s1559_s16, %s1793_s16   ;;  %s1522_s15 = sphi %s1557_s15, %s1792_s15  }
   0x3   : > { %p35_p1 = scmp.ge.s32.totalorder %s33_s18, 2  ;;  %p224_p2 = scmp.lt.s32.totalorder %s1530_s17, 3 }
   0x5   : > { %s1795_s18 = smov (%p35_p1, %s33_s18), 0  ;;  %p225_p3 = pnand %p1232_p0, %p224_p2 }
   0x6   : > { %v1444_v0 = vld [vmem:[%s1788_s1 + $0x40] sm:$0xff] (!%p225_p3)   ;;  %s1233_s21 = sshll.u32 (!%p225_p3), %s1522_s15, 5  ;;  %v1446_v2 = vld [vmem:[%s1788_s1 + $0x48] sm:$0xff] (!%p225_p3)   ;;  %v1448_v4 = vld [vmem:[%s1788_s1 + $0x50] sm:$0xff] (!%p225_p3)  }
   0x7   : > { %228 = sbr.rel (%p225_p3) target bundleno = 319 (0x13f), region = 36  ;;  %v1445_v1 = vld [vmem:[%s1788_s1] sm:$0xff] (!%p225_p3)   ;;  %1291 = vmatprep.subr.bf16.mxu0 (!%p225_p3), %v1444_v0  ;;  %1403 = vmatprep.subr.bf16.mxu1 (!%p225_p3), %v1444_v0  ;;  %v1447_v3 = vld [vmem:[%s1788_s1 + $0x8] sm:$0xff] (!%p225_p3)   ;;  %p274_p4 = scmp.lt.s32.totalorder (!%p225_p3), %s1233_s21, 63  ;;  %v1449_v5 = vld [vmem:[%s1788_s1 + $0x10] sm:$0xff] (!%p225_p3)  }
   0x8   : > { %1292 = vmatpush3.bf16.msra.mxu0 (!%p225_p3), %v1445_v1  ;;  %1411 = vmatpush3.bf16.msra.mxu1 (!%p225_p3), %v1445_v1  ;;  %v1450_v6 = vld [vmem:[%s1788_s1 + $0x58] sm:$0xff] (!%p225_p3)   ;;  %v1452_v8 = vld [vmem:[%s1788_s1 + $0x60] sm:$0xff] (!%p225_p3)   ;;  %v1454_v10 = vld [vmem:[%s1788_s1 + $0x68] sm:$0xff] (!%p225_p3)  }
   0x9   : > { %1293 = vmatprep.subr.bf16.mxu0 (!%p225_p3), %v1446_v2  ;;  %1404 = vmatprep.subr.bf16.mxu1 (!%p225_p3), %v1446_v2  ;;  %v1451_v7 = vld [vmem:[%s1788_s1 + $0x18] sm:$0xff] (!%p225_p3)   ;;  %v1453_v9 = vld [vmem:[%s1788_s1 + $0x20] sm:$0xff] (!%p225_p3)   ;;  %v1455_v13 = vld [vmem:[%s1788_s1 + $0x28] sm:$0xff] (!%p225_p3)  }
   0xa   : > { %v1456_v14 = vld [vmem:[%s1788_s1 + $0x70] sm:$0xff] (!%p225_p3)   ;;  %v1458_v16 = vld [vmem:[%s1788_s1 + $0x78] sm:$0xff] (!%p225_p3)   ;;  %v1668_v56 = vld [vmem:[%s1789_s2] ss:$0 sm:$0xff] (!%p225_p3) }
   0xb   : > { %v1457_v15 = vld [vmem:[%s1788_s1 + $0x30] sm:$0xff] (!%p225_p3)   ;;  %v1459_v17 = vld [vmem:[%s1788_s1 + $0x38] sm:$0xff] (!%p225_p3)   ;;  %v1673_v61 = vld [vmem:[%s1790_s3] ss:$0 sm:$0xff] (!%p225_p3) }
   0xc   : > { %1294 = vmatpush3.bf16.msra.mxu0 (!%p225_p3), %v1447_v3  ;;  %1412 = vmatpush3.bf16.msra.mxu1 (!%p225_p3), %v1447_v3 }
   0xd   : > { %1295 = vmatprep.subr.bf16.mxu0 (!%p225_p3), %v1448_v4  ;;  %1405 = vmatprep.subr.bf16.mxu1 (!%p225_p3), %v1448_v4 }
   0xe   : > { %s1797_s21 = smov (!%p274_p4, %s1233_s21), 63 }
   0xf   : > { %s1290_s10 = sshll.u32 %s1797_s21, 3 }
  0x10   : > { %1296 = vmatpush3.bf16.msra.mxu0 %v1449_v5  ;;  %1413 = vmatpush3.bf16.msra.mxu1 %v1449_v5  ;;  %s1610_s15 = scalar_lea.vmem %s1787_s0, %s1290_s10 }
  0x11   : > { %1297 = vmatprep.subr.bf16.mxu0 %v1450_v6  ;;  %1406 = vmatprep.subr.bf16.mxu1 %v1450_v6  ;;  %v1462_v11 = vld [vmem:[%s1610_s15 + $0x4] ss:$8 sps:$4 sm:$0xff]   ;;  %v1460_v18 = vld [vmem:[%s1610_s15] ss:$8 sps:$4 sm:$0xff]   ;;  %v1466_v20 = vld [vmem:[%s1610_s15 + $0x14] ss:$8 sps:$4 sm:$0xff]  }
  0x12   : > { %v1465_v12 = vld [vmem:[%s1610_s15 + $0x84] ss:$8 sps:$4 sm:$0xff]   ;;  %729 = vmatprep.mubr.bf16.mxu0 %v1462_v11  ;;  %v1463_v19 = vld [vmem:[%s1610_s15 + $0x80] ss:$8 sps:$4 sm:$0xff]   ;;  %v1468_v21 = vld [vmem:[%s1610_s15 + $0x94] ss:$8 sps:$4 sm:$0xff]  }
  0x13   : > { %793 = vmatprep.mubr.bf16.mxu1 %v1465_v12  ;;  %v1470_v22 = vld [vmem:[%s1610_s15 + $0x10] ss:$8 sps:$4 sm:$0xff]   ;;  %v1472_v24 = vld [vmem:[%s1610_s15 + $0x24] ss:$8 sps:$4 sm:$0xff]   ;;  %v1476_v26 = vld [vmem:[%s1610_s15 + $0x20] ss:$8 sps:$4 sm:$0xff]  }
  0x14   : > { %1298 = vmatpush3.bf16.msra.mxu0 %v1451_v7  ;;  %1414 = vmatpush3.bf16.msra.mxu1 %v1451_v7  ;;  %v1471_v23 = vld [vmem:[%s1610_s15 + $0x90] ss:$8 sps:$4 sm:$0xff]   ;;  %v1474_v25 = vld [vmem:[%s1610_s15 + $0xa4] ss:$8 sps:$4 sm:$0xff]   ;;  %v1477_v27 = vld [vmem:[%s1610_s15 + $0xa0] ss:$8 sps:$4 sm:$0xff]  }
  0x15   : > { %1299 = vmatprep.subr.bf16.mxu0 %v1452_v8  ;;  %1407 = vmatprep.subr.bf16.mxu1 %v1452_v8  ;;  %v1478_v28 = vld [vmem:[%s1610_s15 + $0x34] ss:$8 sps:$4 sm:$0xff]   ;;  %v1482_v30 = vld [vmem:[%s1610_s15 + $0x30] ss:$8 sps:$4 sm:$0xff]   ;;  %v1484_v32 = vld [vmem:[%s1610_s15 + $0x44] ss:$8 sps:$4 sm:$0xff]  }
  0x16   : > { %v1480_v29 = vld [vmem:[%s1610_s15 + $0xb4] ss:$8 sps:$4 sm:$0xff]   ;;  %v1483_v31 = vld [vmem:[%s1610_s15 + $0xb0] ss:$8 sps:$4 sm:$0xff]   ;;  %v1486_v33 = vld [vmem:[%s1610_s15 + $0xc4] ss:$8 sps:$4 sm:$0xff]  }
  0x17   : > { %v1488_v34 = vld [vmem:[%s1610_s15 + $0x40] ss:$8 sps:$4 sm:$0xff]   ;;  %v1490_v36 = vld [vmem:[%s1610_s15 + $0x54] ss:$8 sps:$4 sm:$0xff]   ;;  %v1494_v38 = vld [vmem:[%s1610_s15 + $0x50] ss:$8 sps:$4 sm:$0xff]  }
  0x18   : > { %1300 = vmatpush3.bf16.msra.mxu0 %v1453_v9  ;;  %1415 = vmatpush3.bf16.msra.mxu1 %v1453_v9  ;;  %v1489_v35 = vld [vmem:[%s1610_s15 + $0xc0] ss:$8 sps:$4 sm:$0xff]   ;;  %v1492_v37 = vld [vmem:[%s1610_s15 + $0xd4] ss:$8 sps:$4 sm:$0xff]   ;;  %v1495_v39 = vld [vmem:[%s1610_s15 + $0xd0] ss:$8 sps:$4 sm:$0xff]  }
  0x19   : > { %1301 = vmatprep.subr.bf16.mxu0 %v1454_v10  ;;  %1408 = vmatprep.subr.bf16.mxu1 %v1454_v10  ;;  %v1496_v40 = vld [vmem:[%s1610_s15 + $0x64] ss:$8 sps:$4 sm:$0xff]   ;;  %v1500_v42 = vld [vmem:[%s1610_s15 + $0x60] ss:$8 sps:$4 sm:$0xff]   ;;  %v1502_v44 = vld [vmem:[%s1610_s15 + $0x74] ss:$8 sps:$4 sm:$0xff]  }
  0x1a   : > { %v1498_v41 = vld [vmem:[%s1610_s15 + $0xe4] ss:$8 sps:$4 sm:$0xff]   ;;  %v1501_v43 = vld [vmem:[%s1610_s15 + $0xe0] ss:$8 sps:$4 sm:$0xff]   ;;  %v1504_v45 = vld [vmem:[%s1610_s15 + $0xf4] ss:$8 sps:$4 sm:$0xff]  }
  0x1b   : > { %v1506_v46 = vld [vmem:[%s1610_s15 + $0x70] ss:$8 sps:$4 sm:$0xff]  }
  0x1c   : > { %1302 = vmatpush3.bf16.msra.mxu0 %v1455_v13  ;;  %1416 = vmatpush3.bf16.msra.mxu1 %v1455_v13  ;;  %v1507_v47 = vld [vmem:[%s1610_s15 + $0xf0] ss:$8 sps:$4 sm:$0xff]   ;;  %s1686_s15 = scalar_lea.vmem %s1791_s4, %s1290_s10 }
  0x1d   : > { %1303 = vmatprep.subr.bf16.mxu0 %v1456_v14  ;;  %1409 = vmatprep.subr.bf16.mxu1 %v1456_v14 }
  0x20   : > { %1304 = vmatpush3.bf16.msra.mxu0 %v1457_v15  ;;  %1417 = vmatpush3.bf16.msra.mxu1 %v1457_v15 }
  0x21   : > { %1305 = vmatprep.subr.bf16.mxu0 %v1458_v16  ;;  %1410 = vmatprep.subr.bf16.mxu1 %v1458_v16 }
  0x24   : > { %1306 = vmatpush3.bf16.msra.mxu0 %v1459_v17  ;;  %1418 = vmatpush3.bf16.msra.mxu1 %v1459_v17 }
  0x27   : > { %730 = vmatmul.mubr.bf16.vlgmr.msra.gmra.mrb[0].mxu0 %v1460_v18  ;;  %794 = vmatmul.mubr.bf16.vlgmr.msra.gmra.mrb[0].mxu1 %v1463_v19 }
  0x28   : > { %737 = vmatprep.mubr.bf16.mxu0 %v1466_v20  ;;  %801 = vmatprep.mubr.bf16.mxu1 %v1468_v21 }
  0x2f   : > { %738 = vmatmul.mubr.bf16.gmra.mrb[4].mxu0 %v1470_v22  ;;  %802 = vmatmul.mubr.bf16.gmra.mrb[4].mxu1 %v1471_v23 }
  0x30   : > { %745 = vmatprep.mubr.bf16.mxu0 %v1472_v24  ;;  %809 = vmatprep.mubr.bf16.mxu1 %v1474_v25 }
  0x37   : > { %746 = vmatmul.mubr.bf16.gmra.mrb[8].mxu0 %v1476_v26  ;;  %810 = vmatmul.mubr.bf16.gmra.mrb[8].mxu1 %v1477_v27 }
  0x38   : > { %753 = vmatprep.mubr.bf16.mxu0 %v1478_v28  ;;  %817 = vmatprep.mubr.bf16.mxu1 %v1480_v29 }
  0x3f   : > { %754 = vmatmul.mubr.bf16.gmra.mrb[12].mxu0 %v1482_v30  ;;  %818 = vmatmul.mubr.bf16.gmra.mrb[12].mxu1 %v1483_v31 }
  0x40   : > { %761 = vmatprep.mubr.bf16.mxu0 %v1484_v32  ;;  %825 = vmatprep.mubr.bf16.mxu1 %v1486_v33 }
  0x47   : > { %762 = vmatmul.mubr.bf16.gmra.mrb[16].mxu0 %v1488_v34  ;;  %826 = vmatmul.mubr.bf16.gmra.mrb[16].mxu1 %v1489_v35 }
  0x48   : > { %769 = vmatprep.mubr.bf16.mxu0 %v1490_v36  ;;  %833 = vmatprep.mubr.bf16.mxu1 %v1492_v37 }
  0x4f   : > { %770 = vmatmul.mubr.bf16.gmra.mrb[20].mxu0 %v1494_v38  ;;  %834 = vmatmul.mubr.bf16.gmra.mrb[20].mxu1 %v1495_v39 }
  0x50   : > { %777 = vmatprep.mubr.bf16.mxu0 %v1496_v40  ;;  %841 = vmatprep.mubr.bf16.mxu1 %v1498_v41 }
  0x57   : > { %778 = vmatmul.mubr.bf16.gmra.mrb[24].mxu0 %v1500_v42  ;;  %842 = vmatmul.mubr.bf16.gmra.mrb[24].mxu1 %v1501_v43 }
  0x58   : > { %785 = vmatprep.mubr.bf16.mxu0 %v1502_v44  ;;  %849 = vmatprep.mubr.bf16.mxu1 %v1504_v45 }
  0x5f   : > { %786 = vmatmul.mubr.bf16.gmra.mrb[28].mxu0 %v1506_v46  ;;  %850 = vmatmul.mubr.bf16.gmra.mrb[28].mxu1 %v1507_v47 }
  0xfa   : > { %v1307_v48 = vpop.f32.mrb[0].mxu0  ;;  %v1355_v49 = vpop.f32.mrb[0].mxu1 }
  0xfb   : > { %v1308_v50 = vpop.f32.mrb[1].mxu0  ;;  %v1356_v51 = vpop.f32.mrb[1].mxu1 }
  0xfc   : > { %v1309_v52 = vadd.f32 %v1308_v50, %v1307_v48  ;;  %v1357_v53 = vadd.f32 %v1356_v51, %v1355_v49  ;;  %v1310_v54 = vpop.f32.mrb[2].mxu0  ;;  %v1358_v55 = vpop.f32.mrb[2].mxu1 }
  0xfd   : > { %v1311_v57 = vpop.f32.mrb[3].mxu0  ;;  %v1359_v58 = vpop.f32.mrb[3].mxu1 }
  0xfe   : > { %v1312_v59 = vadd.f32 %v1311_v57, %v1310_v54  ;;  %v1360_v60 = vadd.f32 %v1359_v58, %v1358_v55  ;;  %v964_v62 = vmul.f32 %v1309_v52, %v1668_v56  ;;  %v980_v63 = vmul.f32 %v1357_v53, %v1668_v56 }
 0x100   : > { %v1003_v0 = vadd.f32 %v1673_v61, %v964_v62  ;;  %v1019_v1 = vadd.f32 %v1673_v61, %v980_v63  ;;  %v965_v2 = vmul.f32 %v1312_v59, %v1668_v56  ;;  %v981_v3 = vmul.f32 %v1360_v60, %v1668_v56 }
 0x102   : > { %v1313_v4 = vpop.f32.mrb[4].mxu0  ;;  %v1361_v5 = vpop.f32.mrb[4].mxu1  ;;  %v1035_v8 = vmax.f32 %v1003_v0, 0.0  ;;  %v1051_v9 = vmax.f32 %v1019_v1, 0.0  ;;  %v1004_v10 = vadd.f32 %v1673_v61, %v965_v2  ;;  %v1020_v11 = vadd.f32 %v1673_v61, %v981_v3 }
 0x103   : > { %v1314_v6 = vpop.f32.mrb[5].mxu0  ;;  %v1362_v7 = vpop.f32.mrb[5].mxu1 }
 0x104   : > { %v1316_v12 = vpop.f32.mrb[6].mxu0  ;;  %v1364_v13 = vpop.f32.mrb[6].mxu1  ;;  %v1315_v14 = vadd.f32 %v1314_v6, %v1313_v4  ;;  %v1363_v15 = vadd.f32 %v1362_v7, %v1361_v5  ;;  %1067 = vst [vmem:[%s1686_s15] sm:$0xff] %v1035_v8  ;;  %1083 = vst [vmem:[%s1686_s15 + $0x80] sm:$0xff] %v1051_v9  ;;  %v1036_v18 = vmax.f32 %v1004_v10, 0.0  ;;  %v1052_v19 = vmax.f32 %v1020_v11, 0.0 }
 0x105   : > { %v1317_v16 = vpop.f32.mrb[7].mxu0  ;;  %v1365_v17 = vpop.f32.mrb[7].mxu1 }
 0x106   : > { %v1318_v20 = vadd.f32 %v1317_v16, %v1316_v12  ;;  %v1366_v21 = vadd.f32 %v1365_v17, %v1364_v13  ;;  %1068 = vst [vmem:[%s1686_s15 + $0x8] sm:$0xff] %v1036_v18  ;;  %1084 = vst [vmem:[%s1686_s15 + $0x88] sm:$0xff] %v1052_v19  ;;  %v966_v22 = vmul.f32 %v1315_v14, %v1668_v56 }
 0x107   : > { %v982_v23 = vmul.f32 %v1363_v15, %v1668_v56 }
 0x108   : > { %v967_v24 = vmul.f32 %v1318_v20, %v1668_v56  ;;  %v983_v25 = vmul.f32 %v1366_v21, %v1668_v56  ;;  %v1005_v28 = vadd.f32 %v1673_v61, %v966_v22 }
 0x109   : > { %v1021_v29 = vadd.f32 %v1673_v61, %v982_v23 }
 0x10a   : > { %v1319_v26 = vpop.f32.mrb[8].mxu0  ;;  %v1367_v27 = vpop.f32.mrb[8].mxu1  ;;  %v1006_v32 = vadd.f32 %v1673_v61, %v967_v24  ;;  %v1022_v33 = vadd.f32 %v1673_v61, %v983_v25  ;;  %v1037_v38 = vmax.f32 %v1005_v28, 0.0 }
 0x10b   : > { %v1320_v30 = vpop.f32.mrb[9].mxu0  ;;  %v1368_v31 = vpop.f32.mrb[9].mxu1  ;;  %v1053_v39 = vmax.f32 %v1021_v29, 0.0 }
 0x10c   : > { %v1321_v34 = vadd.f32 %v1320_v30, %v1319_v26  ;;  %v1369_v35 = vadd.f32 %v1368_v31, %v1367_v27  ;;  %v1322_v36 = vpop.f32.mrb[10].mxu0  ;;  %v1370_v37 = vpop.f32.mrb[10].mxu1  ;;  %v1038_v42 = vmax.f32 %v1006_v32, 0.0  ;;  %v1054_v43 = vmax.f32 %v1022_v33, 0.0  ;;  %1069 = vst [vmem:[%s1686_s15 + $0x10] sm:$0xff] %v1037_v38 }
 0x10d   : > { %v1323_v40 = vpop.f32.mrb[11].mxu0  ;;  %v1371_v41 = vpop.f32.mrb[11].mxu1  ;;  %1085 = vst [vmem:[%s1686_s15 + $0x90] sm:$0xff] %v1053_v39 }
 0x10e   : > { %v1324_v44 = vadd.f32 %v1323_v40, %v1322_v36  ;;  %v1372_v45 = vadd.f32 %v1371_v41, %v1370_v37  ;;  %1070 = vst [vmem:[%s1686_s15 + $0x18] sm:$0xff] %v1038_v42  ;;  %1086 = vst [vmem:[%s1686_s15 + $0x98] sm:$0xff] %v1054_v43  ;;  %v968_v46 = vmul.f32 %v1321_v34, %v1668_v56 }
 0x10f   : > { %v984_v47 = vmul.f32 %v1369_v35, %v1668_v56 }
 0x110   : > { %v1007_v48 = vadd.f32 %v1673_v61, %v968_v46  ;;  %v969_v52 = vmul.f32 %v1324_v44, %v1668_v56  ;;  %v985_v53 = vmul.f32 %v1372_v45, %v1668_v56 }
 0x111   : > { %v1023_v49 = vadd.f32 %v1673_v61, %v984_v47 }
 0x112   : > { %v1325_v50 = vpop.f32.mrb[12].mxu0  ;;  %v1373_v51 = vpop.f32.mrb[12].mxu1  ;;  %v1039_v57 = vmax.f32 %v1007_v48, 0.0  ;;  %v1008_v0 = vadd.f32 %v1673_v61, %v969_v52  ;;  %v1024_v1 = vadd.f32 %v1673_v61, %v985_v53 }
 0x113   : > { %v1326_v54 = vpop.f32.mrb[13].mxu0  ;;  %v1374_v55 = vpop.f32.mrb[13].mxu1  ;;  %v1055_v58 = vmax.f32 %v1023_v49, 0.0 }
 0x114   : > { %v1327_v59 = vadd.f32 %v1326_v54, %v1325_v50  ;;  %v1375_v60 = vadd.f32 %v1374_v55, %v1373_v51  ;;  %v1328_v62 = vpop.f32.mrb[14].mxu0  ;;  %v1376_v63 = vpop.f32.mrb[14].mxu1  ;;  %1071 = vst [vmem:[%s1686_s15 + $0x20] sm:$0xff] %v1039_v57  ;;  %v1040_v6 = vmax.f32 %v1008_v0, 0.0  ;;  %v1056_v7 = vmax.f32 %v1024_v1, 0.0 }
 0x115   : > { %v1329_v2 = vpop.f32.mrb[15].mxu0  ;;  %v1377_v3 = vpop.f32.mrb[15].mxu1  ;;  %1087 = vst [vmem:[%s1686_s15 + $0xa0] sm:$0xff] %v1055_v58 }
 0x116   : > { %v1330_v4 = vadd.f32 %v1329_v2, %v1328_v62  ;;  %v1378_v5 = vadd.f32 %v1377_v3, %v1376_v63  ;;  %v970_v8 = vmul.f32 %v1327_v59, %v1668_v56  ;;  %v986_v9 = vmul.f32 %v1375_v60, %v1668_v56  ;;  %1072 = vst [vmem:[%s1686_s15 + $0x28] sm:$0xff] %v1040_v6 }
 0x117   : > { %1088 = vst [vmem:[%s1686_s15 + $0xa8] sm:$0xff] %v1056_v7 }
 0x118   : > { %v1009_v10 = vadd.f32 %v1673_v61, %v970_v8  ;;  %v1025_v11 = vadd.f32 %v1673_v61, %v986_v9  ;;  %v971_v12 = vmul.f32 %v1330_v4, %v1668_v56  ;;  %v987_v13 = vmul.f32 %v1378_v5, %v1668_v56 }
 0x11a   : > { %v1331_v14 = vpop.f32.mrb[16].mxu0  ;;  %v1379_v15 = vpop.f32.mrb[16].mxu1  ;;  %v1041_v18 = vmax.f32 %v1009_v10, 0.0  ;;  %v1057_v19 = vmax.f32 %v1025_v11, 0.0  ;;  %v1010_v20 = vadd.f32 %v1673_v61, %v971_v12  ;;  %v1026_v21 = vadd.f32 %v1673_v61, %v987_v13 }
 0x11b   : > { %v1332_v16 = vpop.f32.mrb[17].mxu0  ;;  %v1380_v17 = vpop.f32.mrb[17].mxu1 }
 0x11c   : > { %v1334_v22 = vpop.f32.mrb[18].mxu0  ;;  %v1382_v23 = vpop.f32.mrb[18].mxu1  ;;  %v1333_v24 = vadd.f32 %v1332_v16, %v1331_v14  ;;  %v1381_v25 = vadd.f32 %v1380_v17, %v1379_v15  ;;  %1073 = vst [vmem:[%s1686_s15 + $0x30] sm:$0xff] %v1041_v18  ;;  %1089 = vst [vmem:[%s1686_s15 + $0xb0] sm:$0xff] %v1057_v19  ;;  %v1042_v28 = vmax.f32 %v1010_v20, 0.0  ;;  %v1058_v29 = vmax.f32 %v1026_v21, 0.0 }
 0x11d   : > { %v1335_v26 = vpop.f32.mrb[19].mxu0  ;;  %v1383_v27 = vpop.f32.mrb[19].mxu1 }
 0x11e   : > { %v1336_v30 = vadd.f32 %v1335_v26, %v1334_v22  ;;  %v1384_v31 = vadd.f32 %v1383_v27, %v1382_v23  ;;  %1074 = vst [vmem:[%s1686_s15 + $0x38] sm:$0xff] %v1042_v28  ;;  %1090 = vst [vmem:[%s1686_s15 + $0xb8] sm:$0xff] %v1058_v29  ;;  %v972_v32 = vmul.f32 %v1333_v24, %v1668_v56 }
 0x11f   : > { %v988_v33 = vmul.f32 %v1381_v25, %v1668_v56 }
 0x120   : > { %v973_v34 = vmul.f32 %v1336_v30, %v1668_v56  ;;  %v989_v35 = vmul.f32 %v1384_v31, %v1668_v56  ;;  %v1011_v38 = vadd.f32 %v1673_v61, %v972_v32 }
 0x121   : > { %v1027_v39 = vadd.f32 %v1673_v61, %v988_v33 }
 0x122   : > { %v1337_v36 = vpop.f32.mrb[20].mxu0  ;;  %v1385_v37 = vpop.f32.mrb[20].mxu1  ;;  %v1012_v42 = vadd.f32 %v1673_v61, %v973_v34  ;;  %v1028_v43 = vadd.f32 %v1673_v61, %v989_v35  ;;  %v1043_v48 = vmax.f32 %v1011_v38, 0.0 }
 0x123   : > { %v1338_v40 = vpop.f32.mrb[21].mxu0  ;;  %v1386_v41 = vpop.f32.mrb[21].mxu1  ;;  %v1059_v49 = vmax.f32 %v1027_v39, 0.0 }
 0x124   : > { %v1339_v44 = vadd.f32 %v1338_v40, %v1337_v36  ;;  %v1387_v45 = vadd.f32 %v1386_v41, %v1385_v37  ;;  %v1340_v46 = vpop.f32.mrb[22].mxu0  ;;  %v1388_v47 = vpop.f32.mrb[22].mxu1  ;;  %v1044_v52 = vmax.f32 %v1012_v42, 0.0  ;;  %v1060_v53 = vmax.f32 %v1028_v43, 0.0  ;;  %1075 = vst [vmem:[%s1686_s15 + $0x40] sm:$0xff] %v1043_v48 }
 0x125   : > { %v1341_v50 = vpop.f32.mrb[23].mxu0  ;;  %v1389_v51 = vpop.f32.mrb[23].mxu1  ;;  %1091 = vst [vmem:[%s1686_s15 + $0xc0] sm:$0xff] %v1059_v49 }
 0x126   : > { %v1342_v54 = vadd.f32 %v1341_v50, %v1340_v46  ;;  %v1390_v55 = vadd.f32 %v1389_v51, %v1388_v47  ;;  %1076 = vst [vmem:[%s1686_s15 + $0x48] sm:$0xff] %v1044_v52  ;;  %1092 = vst [vmem:[%s1686_s15 + $0xc8] sm:$0xff] %v1060_v53  ;;  %v974_v57 = vmul.f32 %v1339_v44, %v1668_v56 }
 0x127   : > { %v990_v58 = vmul.f32 %v1387_v45, %v1668_v56 }
 0x128   : > { %v1013_v59 = vadd.f32 %v1673_v61, %v974_v57  ;;  %v975_v0 = vmul.f32 %v1342_v54, %v1668_v56  ;;  %v991_v1 = vmul.f32 %v1390_v55, %v1668_v56 }
 0x129   : > { %v1029_v60 = vadd.f32 %v1673_v61, %v990_v58 }
 0x12a   : > { %v1343_v62 = vpop.f32.mrb[24].mxu0  ;;  %v1391_v63 = vpop.f32.mrb[24].mxu1  ;;  %v1045_v4 = vmax.f32 %v1013_v59, 0.0  ;;  %v1014_v10 = vadd.f32 %v1673_v61, %v975_v0  ;;  %v1030_v11 = vadd.f32 %v1673_v61, %v991_v1 }
 0x12b   : > { %v1344_v2 = vpop.f32.mrb[25].mxu0  ;;  %v1392_v3 = vpop.f32.mrb[25].mxu1  ;;  %v1061_v5 = vmax.f32 %v1029_v60, 0.0 }
 0x12c   : > { %v1345_v6 = vadd.f32 %v1344_v2, %v1343_v62  ;;  %v1393_v7 = vadd.f32 %v1392_v3, %v1391_v63  ;;  %v1346_v8 = vpop.f32.mrb[26].mxu0  ;;  %v1394_v9 = vpop.f32.mrb[26].mxu1  ;;  %1077 = vst [vmem:[%s1686_s15 + $0x50] sm:$0xff] %v1045_v4  ;;  %v1046_v16 = vmax.f32 %v1014_v10, 0.0  ;;  %v1062_v17 = vmax.f32 %v1030_v11, 0.0 }
 0x12d   : > { %v1347_v12 = vpop.f32.mrb[27].mxu0  ;;  %v1395_v13 = vpop.f32.mrb[27].mxu1  ;;  %1093 = vst [vmem:[%s1686_s15 + $0xd0] sm:$0xff] %v1061_v5 }
 0x12e   : > { %v1348_v14 = vadd.f32 %v1347_v12, %v1346_v8  ;;  %v1396_v15 = vadd.f32 %v1395_v13, %v1394_v9  ;;  %v976_v18 = vmul.f32 %v1345_v6, %v1668_v56  ;;  %v992_v19 = vmul.f32 %v1393_v7, %v1668_v56  ;;  %1078 = vst [vmem:[%s1686_s15 + $0x58] sm:$0xff] %v1046_v16 }
 0x12f   : > { %1094 = vst [vmem:[%s1686_s15 + $0xd8] sm:$0xff] %v1062_v17 }
 0x130   : > { %v1015_v20 = vadd.f32 %v1673_v61, %v976_v18  ;;  %v1031_v21 = vadd.f32 %v1673_v61, %v992_v19  ;;  %v977_v22 = vmul.f32 %v1348_v14, %v1668_v56  ;;  %v993_v23 = vmul.f32 %v1396_v15, %v1668_v56 }
 0x132   : > { %v1349_v24 = vpop.f32.mrb[28].mxu0  ;;  %v1397_v25 = vpop.f32.mrb[28].mxu1  ;;  %v1047_v28 = vmax.f32 %v1015_v20, 0.0  ;;  %v1063_v29 = vmax.f32 %v1031_v21, 0.0  ;;  %v1016_v30 = vadd.f32 %v1673_v61, %v977_v22  ;;  %v1032_v31 = vadd.f32 %v1673_v61, %v993_v23 }
 0x133   : > { %v1350_v26 = vpop.f32.mrb[29].mxu0  ;;  %v1398_v27 = vpop.f32.mrb[29].mxu1 }
 0x134   : > { %v1352_v32 = vpop.f32.mrb[30].mxu0  ;;  %v1400_v33 = vpop.f32.mrb[30].mxu1  ;;  %v1351_v34 = vadd.f32 %v1350_v26, %v1349_v24  ;;  %v1399_v35 = vadd.f32 %v1398_v27, %v1397_v25  ;;  %1079 = vst [vmem:[%s1686_s15 + $0x60] sm:$0xff] %v1047_v28  ;;  %1095 = vst [vmem:[%s1686_s15 + $0xe0] sm:$0xff] %v1063_v29  ;;  %v1048_v38 = vmax.f32 %v1016_v30, 0.0  ;;  %v1064_v39 = vmax.f32 %v1032_v31, 0.0 }
 0x135   : > { %v1353_v36 = vpop.f32.mrb[31].mxu0  ;;  %v1401_v37 = vpop.f32.mrb[31].mxu1 }
 0x136   : > { %v1354_v40 = vadd.f32 %v1353_v36, %v1352_v32  ;;  %v1402_v41 = vadd.f32 %v1401_v37, %v1400_v33  ;;  %1080 = vst [vmem:[%s1686_s15 + $0x68] sm:$0xff] %v1048_v38  ;;  %1096 = vst [vmem:[%s1686_s15 + $0xe8] sm:$0xff] %v1064_v39  ;;  %v978_v42 = vmul.f32 %v1351_v34, %v1668_v56 }
 0x137   : > { %v994_v43 = vmul.f32 %v1399_v35, %v1668_v56 }
 0x138   : > { %v979_v44 = vmul.f32 %v1354_v40, %v1668_v56  ;;  %v995_v45 = vmul.f32 %v1402_v41, %v1668_v56  ;;  %v1017_v46 = vadd.f32 %v1673_v61, %v978_v42 }
 0x139   : > { %v1033_v47 = vadd.f32 %v1673_v61, %v994_v43 }
 0x13a   : > { %v1018_v48 = vadd.f32 %v1673_v61, %v979_v44  ;;  %v1034_v49 = vadd.f32 %v1673_v61, %v995_v45  ;;  %v1049_v50 = vmax.f32 %v1017_v46, 0.0 }
 0x13b   : > { %v1065_v51 = vmax.f32 %v1033_v47, 0.0 }
 0x13c   : > { %v1050_v52 = vmax.f32 %v1018_v48, 0.0  ;;  %v1066_v53 = vmax.f32 %v1034_v49, 0.0  ;;  %1081 = vst [vmem:[%s1686_s15 + $0x70] sm:$0xff] %v1049_v50 }
 0x13d   : > { %1097 = vst [vmem:[%s1686_s15 + $0xf0] sm:$0xff] %v1065_v51 }
 0x13e   : > { %1082 = vst [vmem:[%s1686_s15 + $0x78] sm:$0xff] %v1050_v52  ;;  %1098 = vst [vmem:[%s1686_s15 + $0xf8] sm:$0xff] %v1066_v53 }
 0x13f PF: > { %s14_s17 = sadd.s32 1, %s1530_s17   ;;  %s1792_s15 = smov %s1526_s16 }
 0x140   : > { %p11_p5 = scmp.ge.s32.totalorder %s14_s17, 4   ;;  %s1793_s16 = smov %s1795_s18 }
 0x142   :  { %13 = sbr.rel (!%p11_p5) target bundleno = 2 (0x2), region = 83 }

// kernel: drnseg_forward.31
= control target key start
LH: loop header
LB: loop body
LE: loop exit
PB: predicated region body
PF: predicated region fallthrough
CT: control target
= control target key end

     0   :  { %s665_s1 = inlined_call_operand.vmem [shape: bf16[384,128], index: 1, kind: input, shape index: {}]   ;;  %s666_s0 = inlined_call_operand.vmem [shape: bf16[32,384], index: 0, kind: input, shape index: {}]   ;;  %s667_s2 = inlined_call_operand.vmem [shape: f32[1,128], index: 2, kind: input, shape index: {}]   ;;  %s668_s3 = inlined_call_operand.vmem [shape: f32[1,128], index: 3, kind: input, shape index: {}]   ;;  %s669_s4 = inlined_call_operand.vmem [shape: f32[32,128], index: 4, kind: output, shape index: {}]  }
   0x1   :  { %v500_v0 = vld [vmem:[%s665_s1 + $0x40] sm:$0xff]   ;;  %v503_v3 = vld [vmem:[%s665_s1 + $0x48] sm:$0xff]   ;;  %v506_v6 = vld [vmem:[%s665_s1 + $0x50] sm:$0xff]  }
   0x2   :  { %v501_v1 = vld [vmem:[%s665_s1] sm:$0xff]   ;;  %441 = vmatprep.subr.bf16.mxu0 %v500_v0  ;;  %v504_v4 = vld [vmem:[%s665_s1 + $0x8] sm:$0xff]   ;;  %v507_v7 = vld [vmem:[%s665_s1 + $0x10] sm:$0xff]  }
   0x3   :  { %v502_v2 = vld [vmem:[%s665_s1 + $0x80] sm:$0xff]   ;;  %442 = vmatpush3.bf16.msra.mxu0 %v501_v1  ;;  %v505_v5 = vld [vmem:[%s665_s1 + $0x88] sm:$0xff]   ;;  %v508_v8 = vld [vmem:[%s665_s1 + $0x90] sm:$0xff]  }
   0x4   :  { %479 = vmatprep.subr.bf16.mxu1 %v502_v2  ;;  %443 = vmatprep.subr.bf16.mxu0 %v503_v3  ;;  %v509_v9 = vld [vmem:[%s665_s1 + $0x58] sm:$0xff]   ;;  %v512_v12 = vld [vmem:[%s665_s1 + $0x60] sm:$0xff]   ;;  %v515_v15 = vld [vmem:[%s665_s1 + $0x68] sm:$0xff]  }
   0x5   :  { %480 = vmatpush3.bf16.msra.mxu1 %v502_v2  ;;  %v510_v10 = vld [vmem:[%s665_s1 + $0x18] sm:$0xff]   ;;  %v514_v13 = vld [vmem:[%s665_s1 + $0xa0] sm:$0xff]   ;;  %v517_v16 = vld [vmem:[%s665_s1 + $0xa8] sm:$0xff]  }
   0x6   :  { %481 = vmatprep.subr.bf16.mxu1 %v505_v5  ;;  %v511_v11 = vld [vmem:[%s665_s1 + $0x98] sm:$0xff]   ;;  %v513_v14 = vld [vmem:[%s665_s1 + $0x20] sm:$0xff]   ;;  %v516_v17 = vld [vmem:[%s665_s1 + $0x28] sm:$0xff]  }
   0x7   :  { %444 = vmatpush3.bf16.msra.mxu0 %v504_v4  ;;  %v518_v18 = vld [vmem:[%s665_s1 + $0x70] sm:$0xff]   ;;  %v521_v21 = vld [vmem:[%s665_s1 + $0x78] sm:$0xff]   ;;  %v524_v26 = vld [vmem:[%s666_s0] ss:$12 sps:$4 sm:$0xff]  }
   0x8   :  { %445 = vmatprep.subr.bf16.mxu0 %v506_v6  ;;  %v519_v19 = vld [vmem:[%s665_s1 + $0x30] sm:$0xff]   ;;  %v523_v22 = vld [vmem:[%s665_s1 + $0xb8] sm:$0xff]   ;;  %v528_v28 = vld [vmem:[%s666_s0 + $0x20] ss:$12 sps:$4 sm:$0xff]  }
   0x9   :  { %482 = vmatpush3.bf16.msra.mxu1 %v505_v5  ;;  %v520_v20 = vld [vmem:[%s665_s1 + $0xb0] sm:$0xff]   ;;  %v522_v25 = vld [vmem:[%s665_s1 + $0x38] sm:$0xff]   ;;  %v439_v40 = vld [vmem:[%s667_s2] ss:$0 sm:$0xff] }
   0xa   :  { %483 = vmatprep.subr.bf16.mxu1 %v508_v8  ;;  %v526_v23 = vld [vmem:[%s666_s0 + $0x4] ss:$12 sps:$4 sm:$0xff]   ;;  %v527_v24 = vld [vmem:[%s666_s0 + $0x8] ss:$12 sps:$4 sm:$0xff]   ;;  %v440_v43 = vld [vmem:[%s668_s3] ss:$0 sm:$0xff] }
   0xb   :  { %446 = vmatpush3.bf16.msra.mxu0 %v507_v7  ;;  %294 = vmatprep.mubr.bf16.mxu0 %v526_v23  ;;  %v529_v27 = vld [vmem:[%s666_s0 + $0x1c] ss:$12 sps:$4 sm:$0xff]   ;;  %v531_v29 = vld [vmem:[%s666_s0 + $0x18] ss:$12 sps:$4 sm:$0xff]  }
   0xc   :  { %447 = vmatprep.subr.bf16.mxu0 %v509_v9  ;;  %495 = vmatprep.mubr.bf16.mxu1 %v527_v24 }
   0xd   :  { %484 = vmatpush3.bf16.msra.mxu1 %v508_v8 }
   0xe   :  { %485 = vmatprep.subr.bf16.mxu1 %v511_v11 }
   0xf   :  { %448 = vmatpush3.bf16.msra.mxu0 %v510_v10 }
  0x10   :  { %449 = vmatprep.subr.bf16.mxu0 %v512_v12 }
  0x11   :  { %486 = vmatpush3.bf16.msra.mxu1 %v511_v11 }
  0x12   :  { %487 = vmatprep.subr.bf16.mxu1 %v514_v13 }
  0x13   :  { %450 = vmatpush3.bf16.msra.mxu0 %v513_v14 }
  0x14   :  { %451 = vmatprep.subr.bf16.mxu0 %v515_v15 }
  0x15   :  { %488 = vmatpush3.bf16.msra.mxu1 %v514_v13 }
  0x16   :  { %489 = vmatprep.subr.bf16.mxu1 %v517_v16 }
  0x17   :  { %452 = vmatpush3.bf16.msra.mxu0 %v516_v17 }
  0x18   :  { %453 = vmatprep.subr.bf16.mxu0 %v518_v18 }
  0x19   :  { %490 = vmatpush3.bf16.msra.mxu1 %v517_v16 }
  0x1a   :  { %491 = vmatprep.subr.bf16.mxu1 %v520_v20 }
  0x1b   :  { %454 = vmatpush3.bf16.msra.mxu0 %v519_v19 }
  0x1c   :  { %455 = vmatprep.subr.bf16.mxu0 %v521_v21 }
  0x1d   :  { %492 = vmatpush3.bf16.msra.mxu1 %v520_v20 }
  0x1e   :  { %493 = vmatprep.subr.bf16.mxu1 %v523_v22 }
  0x1f   :  { %456 = vmatpush3.bf16.msra.mxu0 %v522_v25 }
  0x21   :  { %494 = vmatpush3.bf16.msra.mxu1 %v523_v22 }
  0x22   :  { %295 = vmatmul.mubr.bf16.vlgmr.msra.gmra.mrb[0].mxu0 %v524_v26 }
  0x23   :  { %302 = vmatprep.mubr.bf16.mxu0 %v529_v27 }
  0x24   :  { %496 = vmatmul.mubr.bf16.vlgmr.msra.gmra.mrb[0].mxu1 %v528_v28 }
  0x2a   :  { %303 = vmatmul.mubr.bf16.gmra.mrb[4].mxu0 %v531_v29 }
  0xf5   :  { %v457_v30 = vpop.f32.mrb[0].mxu0 }
  0xf6   :  { %v458_v31 = vpop.f32.mrb[1].mxu0 }
  0xf7   :  { %v459_v32 = vadd.f32 %v458_v31, %v457_v30  ;;  %v460_v33 = vpop.f32.mrb[2].mxu0  ;;  %v497_v34 = vpop.f32.mrb[0].mxu1 }
  0xf8   :  { %v461_v35 = vpop.f32.mrb[3].mxu0  ;;  %v345_v36 = vpop.f32.mrb[1].mxu1 }
  0xf9   :  { %v462_v37 = vadd.f32 %v461_v35, %v460_v33  ;;  %v346_v38 = vadd.f32 %v459_v32, %v345_v36  ;;  %v498_v39 = vpop.f32.mrb[2].mxu1 }
  0xfa   :  { %v348_v41 = vpop.f32.mrb[3].mxu1 }
  0xfb   :  { %v349_v42 = vadd.f32 %v462_v37, %v348_v41  ;;  %v382_v44 = vmul.f32 %v439_v40, %v346_v38 }
  0xfd   :  { %v463_v45 = vpop.f32.mrb[4].mxu0  ;;  %v393_v47 = vadd.f32 %v440_v43, %v382_v44  ;;  %v383_v48 = vmul.f32 %v439_v40, %v349_v42 }
  0xfe   :  { %v464_v46 = vpop.f32.mrb[5].mxu0 }
  0xff   :  { %v465_v49 = vadd.f32 %v464_v46, %v463_v45  ;;  %v466_v50 = vpop.f32.mrb[6].mxu0  ;;  %v397_v52 = vmax.f32 %v393_v47, 0.0  ;;  %v394_v53 = vadd.f32 %v440_v43, %v383_v48 }
 0x100   :  { %v467_v51 = vpop.f32.mrb[7].mxu0 }
 0x101   :  { %v354_v54 = vadd.f32 %v497_v34, %v465_v49  ;;  %v468_v55 = vadd.f32 %v467_v51, %v466_v50  ;;  %401 = vst [vmem:[%s669_s4] sm:$0xff] %v397_v52  ;;  %v398_v56 = vmax.f32 %v394_v53, 0.0 }
 0x103   :  { %v357_v57 = vadd.f32 %v498_v39, %v468_v55  ;;  %402 = vst [vmem:[%s669_s4 + $0x8] sm:$0xff] %v398_v56  ;;  %v384_v58 = vmul.f32 %v439_v40, %v354_v54 }
 0x105   :  { %v395_v59 = vadd.f32 %v440_v43, %v384_v58  ;;  %v385_v60 = vmul.f32 %v439_v40, %v357_v57 }
 0x107   :  { %v399_v61 = vmax.f32 %v395_v59, 0.0  ;;  %v396_v62 = vadd.f32 %v440_v43, %v385_v60 }
 0x109   :  { %403 = vst [vmem:[%s669_s4 + $0x10] sm:$0xff] %v399_v61  ;;  %v400_v63 = vmax.f32 %v396_v62, 0.0 }
 0x10b   :  { %404 = vst [vmem:[%s669_s4 + $0x18] sm:$0xff] %v400_v63 }

// kernel: drnseg_forward.34
= control target key start
LH: loop header
LB: loop body
LE: loop exit
PB: predicated region body
PF: predicated region fallthrough
CT: control target
= control target key end

     0   :  { %s1180_s15 = smov 0   ;;  %s1182_s16 = smov 0   ;;  %s1357_s0 = inlined_call_operand.vmem [shape: bf16[32,1024], index: 0, kind: input, shape index: {}]   ;;  %s1358_s1 = inlined_call_operand.vmem [shape: bf16[1024,128], index: 1, kind: input, shape index: {}]   ;;  %s1359_s2 = inlined_call_operand.vmem [shape: f32[1,128], index: 2, kind: input, shape index: {}]   ;;  %s1360_s3 = inlined_call_operand.vmem [shape: f32[1,128], index: 3, kind: input, shape index: {}]   ;;  %s1361_s4 = inlined_call_operand.vmem [shape: f32[32,128], index: 4, kind: output, shape index: {}]  }
   0x1   :  { %s1184_s17 = smov 0   ;;  %s1186_s18 = smov 0  }
   0x2   :  { %s1188_s19 = smov 0  }
   0x3 LB: > { %s26_s20 = sadd.s32 1, %s1148_s18  ;;  %p49_p1 = scmp.ne.s32.totalorder %s1140_s16, %s1136_s15  ;;  %s1152_s19 = sphi %s1188_s19, %s14_s19   ;;  %s1148_s18 = sphi %s1186_s18, %s1365_s18   ;;  %s1144_s17 = sphi %s1184_s17, %s1364_s17   ;;  %s1140_s16 = sphi %s1182_s16, %s1363_s16   ;;  %s1136_s15 = sphi %s1180_s15, %s1362_s15  }
   0x4   : > { %p27_p0 = scmp.ge.s32.totalorder %s26_s20, 2  ;;  %p50_p2 = scmp.eq.s32.totalorder %s1152_s19, 0 }
   0x5   : > { %s42_s22 = sadd.s32 1, %s1140_s16  ;;  %p916_p5 = scmp.ge.s32.totalorder %s1152_s19, 2 }
   0x6   : > { %s1367_s20 = smov (%p27_p0, %s26_s20), 0  ;;  %p51_p3 = por %p50_p2, %p49_p1 }
   0x7   : > { %s38_s21 = ssub.s32 %s1148_s18, %s1367_s20  ;;  %195 = sbr.rel (%p916_p5) target bundleno = 22 (0x16), region = 24 }
   0x8   : > { %p40_p4 = scmp.eq.s32.totalorder %s38_s21, 0 }
   0xa   : > { %s1215_s23 = scalar_select %p40_p4, %s1140_s16, %s42_s22  }
   0xe   : > { %198 = sbr.rel (!%p51_p3) target bundleno = 22 (0x16), region = 28  ;;  %s200_s24 = sand.u32 (%p51_p3), 1, %s1140_s16  }
   0xf   : > { %s972_s25 = sshll.u32 (%p51_p3), %s1148_s18, 4  ;;  %s917_s26 = sshll.u32 (%p51_p3), %s200_s24, 6 }
  0x10   : > { %s208_s29 = scalar_lea.vmem (%p51_p3), %s1357_s0, %s972_s25  ;;  %s202_s30 = scalar_lea.vmem (%p51_p3), [#allocation2], %s917_s26 }
  0x11   : > { %v221_v0 = vld [vmem:[%s208_s29] sm:$0xff] (%p51_p3)  ;;  %v223_v1 = vld [vmem:[%s208_s29 + $0x8] sm:$0xff] (%p51_p3) }
  0x12   : > { %v225_v2 = vld [vmem:[%s208_s29 + $0x20] sm:$0xff] (%p51_p3)  ;;  %222 = vst [vmem:[%s202_s30] sm:$0xff] (%p51_p3), %v221_v0  ;;  %224 = vst [vmem:[%s202_s30 + $0x8] sm:$0xff] (%p51_p3), %v223_v1  ;;  %v227_v3 = vld [vmem:[%s208_s29 + $0x28] sm:$0xff] (%p51_p3) }
  0x13   : > { %226 = vst [vmem:[%s202_s30 + $0x10] sm:$0xff] (%p51_p3), %v225_v2  ;;  %v229_v4 = vld [vmem:[%s208_s29 + $0x40] sm:$0xff] (%p51_p3)  ;;  %v231_v5 = vld [vmem:[%s208_s29 + $0x48] sm:$0xff] (%p51_p3)  ;;  %228 = vst [vmem:[%s202_s30 + $0x18] sm:$0xff] (%p51_p3), %v227_v3 }
  0x14   : > { %230 = vst [vmem:[%s202_s30 + $0x20] sm:$0xff] (%p51_p3), %v229_v4  ;;  %232 = vst [vmem:[%s202_s30 + $0x28] sm:$0xff] (%p51_p3), %v231_v5  ;;  %v233_v6 = vld [vmem:[%s208_s29 + $0x60] sm:$0xff] (%p51_p3)  ;;  %v235_v7 = vld [vmem:[%s208_s29 + $0x68] sm:$0xff] (%p51_p3) }
  0x15   : > { %234 = vst [vmem:[%s202_s30 + $0x30] sm:$0xff] %v233_v6  ;;  %236 = vst [vmem:[%s202_s30 + $0x38] sm:$0xff] %v235_v7 }
  0x16 PF: > { %p920_p6 = scmp.ge.s32.totalorder %s1152_s19, 1  ;;  %p253_p7 = scmp.lt.s32.totalorder %s1152_s19, 3 }
  0x18   : > { %p254_p8 = pnand %p920_p6, %p253_p7 }
  0x19   : > { %s260_s5 = sand.u32 (!%p254_p8), 1, %s1136_s15   ;;  %s922_s6 = sshll.u32 (!%p254_p8), %s1144_s17, 6 }
  0x1a   : > { %257 = sbr.rel (%p254_p8) target bundleno = 319 (0x13f), region = 55  ;;  %s921_s7 = sshll.u32 (!%p254_p8), %s260_s5, 6 }
  0x1b   : > { %p305_p9 = scmp.lt.s32.totalorder (!%p254_p8), %s922_s6, 127  ;;  %s1232_s12 = scalar_lea.vmem (!%p254_p8), [#allocation2], %s921_s7 }
  0x1c   : > { %p924_p10 = scmp.ne.s32.totalorder (!%p254_p8), %s1144_s17, 0 }
  0x21   : > { %s1369_s6 = smov (!%p305_p9, %s922_s6), 127  ;;  %332 = sbr.rel (%p924_p10) target bundleno = 40 (0x28), region = 63 }
  0x22   : > { %s923_s8 = sshll.u32 %s1369_s6, 2  ;;  %v1154_v8 = vmov (!%p924_p10), 0.0  }
  0x23   : > { %s1230_s11 = scalar_lea.vmem %s1358_s1, %s923_s8  ;;  %333 = vst [vmem:[%s1361_s4] sm:$0xff] (!%p924_p10), %v1154_v8  ;;  %334 = vst [vmem:[%s1361_s4 + $0x8] sm:$0xff] (!%p924_p10), %v1154_v8 }
  0x24   : > { %335 = vst [vmem:[%s1361_s4 + $0x10] sm:$0xff] (!%p924_p10), %v1154_v8  ;;  %336 = vst [vmem:[%s1361_s4 + $0x18] sm:$0xff] (!%p924_p10), %v1154_v8 }
  0x28 PF: > { %v1070_v9 = vld [vmem:[%s1230_s11 + $0x40] sm:$0xff]   ;;  %v1074_v13 = vld [vmem:[%s1230_s11 + $0x48] sm:$0xff]   ;;  %v1078_v17 = vld [vmem:[%s1230_s11 + $0x50] sm:$0xff]   ;;  %p965_p11 = scmp.ne.s32.totalorder %s1144_s17, 1 }
  0x29   : > { %v1071_v10 = vld [vmem:[%s1230_s11 + $0xc0] sm:$0xff]   ;;  %973 = vmatprep.subr.bf16.mxu0 %v1070_v9  ;;  %v1075_v14 = vld [vmem:[%s1230_s11 + $0xc8] sm:$0xff]   ;;  %v1079_v18 = vld [vmem:[%s1230_s11 + $0xd0] sm:$0xff]  }
  0x2a   : > { %v1072_v11 = vld [vmem:[%s1230_s11] sm:$0xff]   ;;  %1001 = vmatprep.subr.bf16.mxu1 %v1071_v10  ;;  %v1076_v15 = vld [vmem:[%s1230_s11 + $0x8] sm:$0xff]   ;;  %v1080_v19 = vld [vmem:[%s1230_s11 + $0x10] sm:$0xff]  }
  0x2b   : > { %v1073_v12 = vld [vmem:[%s1230_s11 + $0x80] sm:$0xff]   ;;  %974 = vmatpush3.bf16.msra.mxu0 %v1072_v11  ;;  %v1077_v16 = vld [vmem:[%s1230_s11 + $0x88] sm:$0xff]   ;;  %v1081_v20 = vld [vmem:[%s1230_s11 + $0x90] sm:$0xff]  }
  0x2c   : > { %1002 = vmatpush3.bf16.msra.mxu1 %v1073_v12  ;;  %975 = vmatprep.subr.bf16.mxu0 %v1074_v13  ;;  %v1082_v21 = vld [vmem:[%s1230_s11 + $0x58] sm:$0xff]   ;;  %v1086_v25 = vld [vmem:[%s1230_s11 + $0x60] sm:$0xff]   ;;  %v1090_v29 = vld [vmem:[%s1230_s11 + $0x68] sm:$0xff]  }
  0x2d   : > { %1003 = vmatprep.subr.bf16.mxu1 %v1075_v14  ;;  %v1083_v22 = vld [vmem:[%s1230_s11 + $0xd8] sm:$0xff]   ;;  %v1087_v26 = vld [vmem:[%s1230_s11 + $0xe0] sm:$0xff]   ;;  %v1091_v30 = vld [vmem:[%s1230_s11 + $0xe8] sm:$0xff]  }
  0x2e   : > { %v1084_v23 = vld [vmem:[%s1230_s11 + $0x18] sm:$0xff]   ;;  %v1088_v27 = vld [vmem:[%s1230_s11 + $0x20] sm:$0xff]   ;;  %v1092_v31 = vld [vmem:[%s1230_s11 + $0x28] sm:$0xff]  }
  0x2f   : > { %976 = vmatpush3.bf16.msra.mxu0 %v1076_v15  ;;  %v1085_v24 = vld [vmem:[%s1230_s11 + $0x98] sm:$0xff]   ;;  %v1089_v28 = vld [vmem:[%s1230_s11 + $0xa0] sm:$0xff]   ;;  %v1093_v32 = vld [vmem:[%s1230_s11 + $0xa8] sm:$0xff]  }
  0x30   : > { %1004 = vmatpush3.bf16.msra.mxu1 %v1077_v16  ;;  %977 = vmatprep.subr.bf16.mxu0 %v1078_v17  ;;  %v1094_v33 = vld [vmem:[%s1230_s11 + $0x70] sm:$0xff]   ;;  %v1098_v37 = vld [vmem:[%s1230_s11 + $0x78] sm:$0xff]   ;;  %v337_v58 = vld [vmem:[%s1361_s4] sm:$0xff] }
  0x31   : > { %1005 = vmatprep.subr.bf16.mxu1 %v1079_v18  ;;  %v1095_v34 = vld [vmem:[%s1230_s11 + $0xf0] sm:$0xff]   ;;  %v1099_v38 = vld [vmem:[%s1230_s11 + $0xf8] sm:$0xff]   ;;  %v338_v63 = vld [vmem:[%s1361_s4 + $0x8] sm:$0xff] }
  0x32   : > { %v1096_v35 = vld [vmem:[%s1230_s11 + $0x30] sm:$0xff]   ;;  %v1100_v39 = vld [vmem:[%s1230_s11 + $0x38] sm:$0xff]  }
  0x33   : > { %978 = vmatpush3.bf16.msra.mxu0 %v1080_v19  ;;  %v1097_v36 = vld [vmem:[%s1230_s11 + $0xb0] sm:$0xff]   ;;  %v1101_v40 = vld [vmem:[%s1230_s11 + $0xb8] sm:$0xff]  }
  0x34   : > { %1006 = vmatpush3.bf16.msra.mxu1 %v1081_v20  ;;  %979 = vmatprep.subr.bf16.mxu0 %v1082_v21  ;;  %v1102_v41 = vld [vmem:[%s1232_s12] ss:$16 sps:$4 sm:$0xff]   ;;  %v1104_v42 = vld [vmem:[%s1232_s12 + $0x4] ss:$16 sps:$4 sm:$0xff]   ;;  %v1105_v43 = vld [vmem:[%s1232_s12 + $0x8] ss:$16 sps:$4 sm:$0xff]  }
  0x35   : > { %1007 = vmatprep.subr.bf16.mxu1 %v1083_v22  ;;  %v1107_v44 = vld [vmem:[%s1232_s12 + $0xc] ss:$16 sps:$4 sm:$0xff]   ;;  %677 = vmatprep.mubr.bf16.mxu0 %v1104_v42  ;;  %v1108_v45 = vld [vmem:[%s1232_s12 + $0x24] ss:$16 sps:$4 sm:$0xff]   ;;  %v1112_v47 = vld [vmem:[%s1232_s12 + $0x20] ss:$16 sps:$4 sm:$0xff]  }
  0x36   : > { %726 = vmatprep.mubr.bf16.mxu1 %v1107_v44  ;;  %v1110_v46 = vld [vmem:[%s1232_s12 + $0x2c] ss:$16 sps:$4 sm:$0xff]   ;;  %v1113_v48 = vld [vmem:[%s1232_s12 + $0x28] ss:$16 sps:$4 sm:$0xff]   ;;  %v339_v12 = vld [vmem:[%s1361_s4 + $0x10] sm:$0xff] }
  0x37   : > { %980 = vmatpush3.bf16.msra.mxu0 %v1084_v23  ;;  %v340_v17 = vld [vmem:[%s1361_s4 + $0x18] sm:$0xff]  ;;  %v966_v22 = vld [vmem:[%s1359_s2] ss:$0 sm:$0xff] (!%p965_p11) }
  0x38   : > { %1008 = vmatpush3.bf16.msra.mxu1 %v1085_v24  ;;  %981 = vmatprep.subr.bf16.mxu0 %v1086_v25  ;;  %v967_v23 = vld [vmem:[%s1360_s3] ss:$0 sm:$0xff] (!%p965_p11) }
  0x39   : > { %1009 = vmatprep.subr.bf16.mxu1 %v1087_v26 }
  0x3b   : > { %982 = vmatpush3.bf16.msra.mxu0 %v1088_v27 }
  0x3c   : > { %1010 = vmatpush3.bf16.msra.mxu1 %v1089_v28  ;;  %983 = vmatprep.subr.bf16.mxu0 %v1090_v29 }
  0x3d   : > { %1011 = vmatprep.subr.bf16.mxu1 %v1091_v30 }
  0x3f   : > { %984 = vmatpush3.bf16.msra.mxu0 %v1092_v31 }
  0x40   : > { %1012 = vmatpush3.bf16.msra.mxu1 %v1093_v32  ;;  %985 = vmatprep.subr.bf16.mxu0 %v1094_v33 }
  0x41   : > { %1013 = vmatprep.subr.bf16.mxu1 %v1095_v34 }
  0x43   : > { %986 = vmatpush3.bf16.msra.mxu0 %v1096_v35 }
  0x44   : > { %1014 = vmatpush3.bf16.msra.mxu1 %v1097_v36  ;;  %987 = vmatprep.subr.bf16.mxu0 %v1098_v37 }
  0x45   : > { %1015 = vmatprep.subr.bf16.mxu1 %v1099_v38 }
  0x47   : > { %988 = vmatpush3.bf16.msra.mxu0 %v1100_v39 }
  0x48   : > { %1016 = vmatpush3.bf16.msra.mxu1 %v1101_v40 }
  0x4a   : > { %678 = vmatmul.mubr.bf16.vlgmr.msra.gmra.mrb[0].mxu0 %v1102_v41 }
  0x4b   : > { %727 = vmatmul.mubr.bf16.vlgmr.msra.gmra.mrb[0].mxu1 %v1105_v43  ;;  %685 = vmatprep.mubr.bf16.mxu0 %v1108_v45 }
  0x4c   : > { %734 = vmatprep.mubr.bf16.mxu1 %v1110_v46 }
  0x52   : > { %686 = vmatmul.mubr.bf16.gmra.mrb[4].mxu0 %v1112_v47 }
  0x53   : > { %735 = vmatmul.mubr.bf16.gmra.mrb[4].mxu1 %v1113_v48 }
 0x11d   : > { %v989_v49 = vpop.f32.mrb[0].mxu0 }
 0x11e   : > { %v1017_v50 = vpop.f32.mrb[0].mxu1  ;;  %v990_v51 = vpop.f32.mrb[1].mxu0 }
 0x11f   : > { %v991_v52 = vadd.f32 %v990_v51, %v989_v49  ;;  %v1018_v53 = vpop.f32.mrb[1].mxu1  ;;  %v992_v54 = vpop.f32.mrb[2].mxu0 }
 0x120   : > { %v1019_v55 = vadd.f32 %v1018_v53, %v1017_v50  ;;  %v1020_v56 = vpop.f32.mrb[2].mxu1  ;;  %v993_v57 = vpop.f32.mrb[3].mxu0 }
 0x121   : > { %v994_v59 = vadd.f32 %v993_v57, %v992_v54  ;;  %v1021_v60 = vpop.f32.mrb[3].mxu1 }
 0x122   : > { %v729_v61 = vadd.f32 %v1019_v55, %v991_v52  ;;  %v1022_v62 = vadd.f32 %v1021_v60, %v1020_v56 }
 0x124   : > { %v743_v0 = vadd.f32 %v729_v61, %v337_v58  ;;  %v732_v1 = vadd.f32 %v1022_v62, %v994_v59 }
 0x125   : > { %v995_v2 = vpop.f32.mrb[4].mxu0 }
 0x126   : > { %747 = vst [vmem:[%s1361_s4] sm:$0xff] %v743_v0  ;;  %v744_v3 = vadd.f32 %v732_v1, %v338_v63  ;;  %v1023_v4 = vpop.f32.mrb[4].mxu1  ;;  %v996_v5 = vpop.f32.mrb[5].mxu0 }
 0x127   : > { %v997_v6 = vadd.f32 %v996_v5, %v995_v2  ;;  %v1024_v7 = vpop.f32.mrb[5].mxu1  ;;  %v998_v8 = vpop.f32.mrb[6].mxu0 }
 0x128   : > { %748 = vst [vmem:[%s1361_s4 + $0x8] sm:$0xff] %v744_v3  ;;  %v1025_v9 = vadd.f32 %v1024_v7, %v1023_v4  ;;  %v1026_v10 = vpop.f32.mrb[6].mxu1  ;;  %v999_v11 = vpop.f32.mrb[7].mxu0 }
 0x129   : > { %v1000_v13 = vadd.f32 %v999_v11, %v998_v8  ;;  %v1027_v14 = vpop.f32.mrb[7].mxu1 }
 0x12a   : > { %v737_v15 = vadd.f32 %v1025_v9, %v997_v6  ;;  %v1028_v16 = vadd.f32 %v1027_v14, %v1026_v10  ;;  %754 = sbr.rel (%p965_p11) target bundleno = 319 (0x13f), region = 67 }
 0x12c   : > { %v745_v18 = vadd.f32 %v737_v15, %v339_v12  ;;  %v740_v19 = vadd.f32 %v1028_v16, %v1000_v13 }
 0x12d   : > { %v755_v21 = vld [vmem:[%s1361_s4] sm:$0xff] (!%p965_p11) }
 0x12e   : > { %749 = vst [vmem:[%s1361_s4 + $0x10] sm:$0xff] %v745_v18  ;;  %v746_v20 = vadd.f32 %v740_v19, %v340_v17  ;;  %v766_v24 = vmul.f32 (!%p965_p11), %v966_v22, %v755_v21 }
 0x12f   : > { %v756_v25 = vld [vmem:[%s1361_s4 + $0x8] sm:$0xff] (!%p965_p11) }
 0x130   : > { %750 = vst [vmem:[%s1361_s4 + $0x18] sm:$0xff] %v746_v20  ;;  %v767_v28 = vmul.f32 (!%p965_p11), %v966_v22, %v756_v25  ;;  %v777_v31 = vadd.f32 (!%p965_p11), %v967_v23, %v766_v24 }
 0x132   : > { %v778_v32 = vadd.f32 %v967_v23, %v767_v28  ;;  %v781_v35 = vmax.f32 %v777_v31, 0.0 }
 0x134   : > { %v782_v36 = vmax.f32 %v778_v32, 0.0  ;;  %785 = vst [vmem:[%s1361_s4] sm:$0xff] %v781_v35 }
 0x135   : > { %v757_v26 = vld [vmem:[%s1361_s4 + $0x10] sm:$0xff] }
 0x136   : > { %v768_v29 = vmul.f32 %v966_v22, %v757_v26  ;;  %786 = vst [vmem:[%s1361_s4 + $0x8] sm:$0xff] %v782_v36 }
 0x137   : > { %v758_v27 = vld [vmem:[%s1361_s4 + $0x18] sm:$0xff] }
 0x138   : > { %v769_v30 = vmul.f32 %v966_v22, %v758_v27  ;;  %v779_v33 = vadd.f32 %v967_v23, %v768_v29 }
 0x13a   : > { %v780_v34 = vadd.f32 %v967_v23, %v769_v30  ;;  %v783_v37 = vmax.f32 %v779_v33, 0.0 }
 0x13c   : > { %v784_v38 = vmax.f32 %v780_v34, 0.0  ;;  %787 = vst [vmem:[%s1361_s4 + $0x10] sm:$0xff] %v783_v37 }
 0x13e   : > { %788 = vst [vmem:[%s1361_s4 + $0x18] sm:$0xff] %v784_v38 }
 0x13f PF: > { %s14_s19 = sadd.s32 1, %s1152_s19   ;;  %s1362_s15 = smov %s1140_s16 }
 0x140   : > { %p11_p12 = scmp.ge.s32.totalorder %s14_s19, 4   ;;  %s1363_s16 = smov %s1215_s23 }
 0x141   : > { %s1364_s17 = smov %s1148_s18  ;;  %s1365_s18 = smov %s1367_s20 }
 0x142   :  { %13 = sbr.rel (!%p11_p12) target bundleno = 3 (0x3), region = 111 }

// kernel: drnseg_forward.33
= control target key start
LH: loop header
LB: loop body
LE: loop exit
PB: predicated region body
PF: predicated region fallthrough
CT: control target
= control target key end

     0   :  { %s1272_s18 = smov 0   ;;  %s1274_s19 = smov 0   ;;  %s1461_s0 = inlined_call_operand.vmem [shape: bf16[32,1024], index: 0, kind: input, shape index: {}]   ;;  %s1462_s1 = inlined_call_operand.vmem [shape: bf16[1024,128], index: 1, kind: input, shape index: {}]   ;;  %s1463_s2 = inlined_call_operand.vmem [shape: f32[1,128], index: 2, kind: input, shape index: {}]   ;;  %s1464_s3 = inlined_call_operand.vmem [shape: f32[1,128], index: 3, kind: input, shape index: {}]   ;;  %s1465_s4 = inlined_call_operand.vmem [shape: f32[32,128], index: 4, kind: input, shape index: {}]   ;;  %s1466_s5 = inlined_call_operand.vmem [shape: f32[32,128], index: 5, kind: output, shape index: {}]  }
   0x1   :  { %s1276_s20 = smov 0   ;;  %s1278_s21 = smov 0  }
   0x2   :  { %s1280_s22 = smov 0  }
   0x3 LB: > { %s27_s23 = sadd.s32 1, %s1235_s21  ;;  %p50_p1 = scmp.ne.s32.totalorder %s1227_s19, %s1223_s18  ;;  %s1239_s22 = sphi %s1280_s22, %s15_s22   ;;  %s1235_s21 = sphi %s1278_s21, %s1470_s21   ;;  %s1231_s20 = sphi %s1276_s20, %s1469_s20   ;;  %s1227_s19 = sphi %s1274_s19, %s1468_s19   ;;  %s1223_s18 = sphi %s1272_s18, %s1467_s18  }
   0x4   : > { %p28_p0 = scmp.ge.s32.totalorder %s27_s23, 2  ;;  %p51_p2 = scmp.eq.s32.totalorder %s1239_s22, 0 }
   0x5   : > { %s43_s25 = sadd.s32 1, %s1227_s19  ;;  %p1003_p5 = scmp.ge.s32.totalorder %s1239_s22, 2 }
   0x6   : > { %s1472_s23 = smov (%p28_p0, %s27_s23), 0  ;;  %p52_p3 = por %p51_p2, %p50_p1 }
   0x7   : > { %s39_s24 = ssub.s32 %s1235_s21, %s1472_s23  ;;  %236 = sbr.rel (%p1003_p5) target bundleno = 22 (0x16), region = 28 }
   0x8   : > { %p41_p4 = scmp.eq.s32.totalorder %s39_s24, 0 }
   0xa   : > { %s1307_s26 = scalar_select %p41_p4, %s1227_s19, %s43_s25  }
   0xe   : > { %239 = sbr.rel (!%p52_p3) target bundleno = 22 (0x16), region = 32  ;;  %s241_s27 = sand.u32 (%p52_p3), 1, %s1227_s19  }
   0xf   : > { %s1059_s28 = sshll.u32 (%p52_p3), %s1235_s21, 4  ;;  %s1004_s29 = sshll.u32 (%p52_p3), %s241_s27, 6 }
  0x10   : > { %s249_s7 = scalar_lea.vmem (%p52_p3), %s1461_s0, %s1059_s28  ;;  %s243_s8 = scalar_lea.vmem (%p52_p3), [#allocation2], %s1004_s29 }
  0x11   : > { %v262_v0 = vld [vmem:[%s249_s7] sm:$0xff] (%p52_p3)  ;;  %v264_v1 = vld [vmem:[%s249_s7 + $0x8] sm:$0xff] (%p52_p3) }
  0x12   : > { %v266_v2 = vld [vmem:[%s249_s7 + $0x20] sm:$0xff] (%p52_p3)  ;;  %263 = vst [vmem:[%s243_s8] sm:$0xff] (%p52_p3), %v262_v0  ;;  %265 = vst [vmem:[%s243_s8 + $0x8] sm:$0xff] (%p52_p3), %v264_v1  ;;  %v268_v3 = vld [vmem:[%s249_s7 + $0x28] sm:$0xff] (%p52_p3) }
  0x13   : > { %267 = vst [vmem:[%s243_s8 + $0x10] sm:$0xff] (%p52_p3), %v266_v2  ;;  %v270_v4 = vld [vmem:[%s249_s7 + $0x40] sm:$0xff] (%p52_p3)  ;;  %v272_v5 = vld [vmem:[%s249_s7 + $0x48] sm:$0xff] (%p52_p3)  ;;  %269 = vst [vmem:[%s243_s8 + $0x18] sm:$0xff] (%p52_p3), %v268_v3 }
  0x14   : > { %271 = vst [vmem:[%s243_s8 + $0x20] sm:$0xff] (%p52_p3), %v270_v4  ;;  %273 = vst [vmem:[%s243_s8 + $0x28] sm:$0xff] (%p52_p3), %v272_v5  ;;  %v274_v6 = vld [vmem:[%s249_s7 + $0x60] sm:$0xff] (%p52_p3)  ;;  %v276_v7 = vld [vmem:[%s249_s7 + $0x68] sm:$0xff] (%p52_p3) }
  0x15   : > { %275 = vst [vmem:[%s243_s8 + $0x30] sm:$0xff] %v274_v6  ;;  %277 = vst [vmem:[%s243_s8 + $0x38] sm:$0xff] %v276_v7 }
  0x16 PF: > { %p1007_p6 = scmp.ge.s32.totalorder %s1239_s22, 1  ;;  %p294_p7 = scmp.lt.s32.totalorder %s1239_s22, 3 }
  0x18   : > { %p295_p8 = pnand %p1007_p6, %p294_p7 }
  0x19   : > { %s301_s9 = sand.u32 (!%p295_p8), 1, %s1223_s18   ;;  %s1009_s10 = sshll.u32 (!%p295_p8), %s1231_s20, 6 }
  0x1a   : > { %298 = sbr.rel (%p295_p8) target bundleno = 321 (0x141), region = 59  ;;  %s1008_s11 = sshll.u32 (!%p295_p8), %s301_s9, 6 }
  0x1b   : > { %p356_p9 = scmp.lt.s32.totalorder (!%p295_p8), %s1009_s10, 127  ;;  %s1324_s16 = scalar_lea.vmem (!%p295_p8), [#allocation2], %s1008_s11 }
  0x1c   : > { %p1011_p10 = scmp.ne.s32.totalorder (!%p295_p8), %s1231_s20, 0 }
  0x21   : > { %s1474_s10 = smov (!%p356_p9, %s1009_s10), 127  ;;  %392 = sbr.rel (%p1011_p10) target bundleno = 40 (0x28), region = 67 }
  0x22   : > { %s1010_s12 = sshll.u32 %s1474_s10, 2  ;;  %v1241_v8 = vmov (!%p1011_p10), 0.0  }
  0x23   : > { %s1322_s15 = scalar_lea.vmem %s1462_s1, %s1010_s12  ;;  %393 = vst [vmem:[%s1466_s5] sm:$0xff] (!%p1011_p10), %v1241_v8  ;;  %394 = vst [vmem:[%s1466_s5 + $0x8] sm:$0xff] (!%p1011_p10), %v1241_v8 }
  0x24   : > { %395 = vst [vmem:[%s1466_s5 + $0x10] sm:$0xff] (!%p1011_p10), %v1241_v8  ;;  %396 = vst [vmem:[%s1466_s5 + $0x18] sm:$0xff] (!%p1011_p10), %v1241_v8 }
  0x28 PF: > { %v1157_v9 = vld [vmem:[%s1322_s15 + $0x40] sm:$0xff]   ;;  %v1161_v13 = vld [vmem:[%s1322_s15 + $0x48] sm:$0xff]   ;;  %v1165_v17 = vld [vmem:[%s1322_s15 + $0x50] sm:$0xff]   ;;  %p1052_p11 = scmp.ne.s32.totalorder %s1231_s20, 1 }
  0x29   : > { %v1158_v10 = vld [vmem:[%s1322_s15 + $0xc0] sm:$0xff]   ;;  %1060 = vmatprep.subr.bf16.mxu0 %v1157_v9  ;;  %v1162_v14 = vld [vmem:[%s1322_s15 + $0xc8] sm:$0xff]   ;;  %v1166_v18 = vld [vmem:[%s1322_s15 + $0xd0] sm:$0xff]  }
  0x2a   : > { %v1159_v11 = vld [vmem:[%s1322_s15] sm:$0xff]   ;;  %1088 = vmatprep.subr.bf16.mxu1 %v1158_v10  ;;  %v1163_v15 = vld [vmem:[%s1322_s15 + $0x8] sm:$0xff]   ;;  %v1167_v19 = vld [vmem:[%s1322_s15 + $0x10] sm:$0xff]  }
  0x2b   : > { %v1160_v12 = vld [vmem:[%s1322_s15 + $0x80] sm:$0xff]   ;;  %1061 = vmatpush3.bf16.msra.mxu0 %v1159_v11  ;;  %v1164_v16 = vld [vmem:[%s1322_s15 + $0x88] sm:$0xff]   ;;  %v1168_v20 = vld [vmem:[%s1322_s15 + $0x90] sm:$0xff]  }
  0x2c   : > { %1089 = vmatpush3.bf16.msra.mxu1 %v1160_v12  ;;  %1062 = vmatprep.subr.bf16.mxu0 %v1161_v13  ;;  %v1169_v21 = vld [vmem:[%s1322_s15 + $0x58] sm:$0xff]   ;;  %v1173_v25 = vld [vmem:[%s1322_s15 + $0x60] sm:$0xff]   ;;  %v1177_v29 = vld [vmem:[%s1322_s15 + $0x68] sm:$0xff]  }
  0x2d   : > { %1090 = vmatprep.subr.bf16.mxu1 %v1162_v14  ;;  %v1170_v22 = vld [vmem:[%s1322_s15 + $0xd8] sm:$0xff]   ;;  %v1174_v26 = vld [vmem:[%s1322_s15 + $0xe0] sm:$0xff]   ;;  %v1178_v30 = vld [vmem:[%s1322_s15 + $0xe8] sm:$0xff]  }
  0x2e   : > { %v1171_v23 = vld [vmem:[%s1322_s15 + $0x18] sm:$0xff]   ;;  %v1175_v27 = vld [vmem:[%s1322_s15 + $0x20] sm:$0xff]   ;;  %v1179_v31 = vld [vmem:[%s1322_s15 + $0x28] sm:$0xff]  }
  0x2f   : > { %1063 = vmatpush3.bf16.msra.mxu0 %v1163_v15  ;;  %v1172_v24 = vld [vmem:[%s1322_s15 + $0x98] sm:$0xff]   ;;  %v1176_v28 = vld [vmem:[%s1322_s15 + $0xa0] sm:$0xff]   ;;  %v1180_v32 = vld [vmem:[%s1322_s15 + $0xa8] sm:$0xff]  }
  0x30   : > { %1091 = vmatpush3.bf16.msra.mxu1 %v1164_v16  ;;  %1064 = vmatprep.subr.bf16.mxu0 %v1165_v17  ;;  %v1181_v33 = vld [vmem:[%s1322_s15 + $0x70] sm:$0xff]   ;;  %v1185_v37 = vld [vmem:[%s1322_s15 + $0x78] sm:$0xff]   ;;  %v397_v58 = vld [vmem:[%s1466_s5] sm:$0xff] }
  0x31   : > { %1092 = vmatprep.subr.bf16.mxu1 %v1166_v18  ;;  %v1182_v34 = vld [vmem:[%s1322_s15 + $0xf0] sm:$0xff]   ;;  %v1186_v38 = vld [vmem:[%s1322_s15 + $0xf8] sm:$0xff]   ;;  %v398_v63 = vld [vmem:[%s1466_s5 + $0x8] sm:$0xff] }
  0x32   : > { %v1183_v35 = vld [vmem:[%s1322_s15 + $0x30] sm:$0xff]   ;;  %v1187_v39 = vld [vmem:[%s1322_s15 + $0x38] sm:$0xff]  }
  0x33   : > { %1065 = vmatpush3.bf16.msra.mxu0 %v1167_v19  ;;  %v1184_v36 = vld [vmem:[%s1322_s15 + $0xb0] sm:$0xff]   ;;  %v1188_v40 = vld [vmem:[%s1322_s15 + $0xb8] sm:$0xff]  }
  0x34   : > { %1093 = vmatpush3.bf16.msra.mxu1 %v1168_v20  ;;  %1066 = vmatprep.subr.bf16.mxu0 %v1169_v21  ;;  %v1189_v41 = vld [vmem:[%s1324_s16] ss:$16 sps:$4 sm:$0xff]   ;;  %v1191_v42 = vld [vmem:[%s1324_s16 + $0x4] ss:$16 sps:$4 sm:$0xff]   ;;  %v1192_v43 = vld [vmem:[%s1324_s16 + $0x8] ss:$16 sps:$4 sm:$0xff]  }
  0x35   : > { %1094 = vmatprep.subr.bf16.mxu1 %v1170_v22  ;;  %v1194_v44 = vld [vmem:[%s1324_s16 + $0xc] ss:$16 sps:$4 sm:$0xff]   ;;  %737 = vmatprep.mubr.bf16.mxu0 %v1191_v42  ;;  %v1195_v45 = vld [vmem:[%s1324_s16 + $0x24] ss:$16 sps:$4 sm:$0xff]   ;;  %v1199_v47 = vld [vmem:[%s1324_s16 + $0x20] ss:$16 sps:$4 sm:$0xff]  }
  0x36   : > { %786 = vmatprep.mubr.bf16.mxu1 %v1194_v44  ;;  %v1197_v46 = vld [vmem:[%s1324_s16 + $0x2c] ss:$16 sps:$4 sm:$0xff]   ;;  %v1200_v48 = vld [vmem:[%s1324_s16 + $0x28] ss:$16 sps:$4 sm:$0xff]   ;;  %v399_v12 = vld [vmem:[%s1466_s5 + $0x10] sm:$0xff] }
  0x37   : > { %1067 = vmatpush3.bf16.msra.mxu0 %v1171_v23  ;;  %v400_v17 = vld [vmem:[%s1466_s5 + $0x18] sm:$0xff]  ;;  %v1053_v22 = vld [vmem:[%s1463_s2] ss:$0 sm:$0xff] (!%p1052_p11) }
  0x38   : > { %1095 = vmatpush3.bf16.msra.mxu1 %v1172_v24  ;;  %1068 = vmatprep.subr.bf16.mxu0 %v1173_v25  ;;  %v1054_v23 = vld [vmem:[%s1464_s3] ss:$0 sm:$0xff] (!%p1052_p11) }
  0x39   : > { %1096 = vmatprep.subr.bf16.mxu1 %v1174_v26  ;;  %v841_v26 = vld [vmem:[%s1465_s4] sm:$0xff] (!%p1052_p11) }
  0x3b   : > { %1069 = vmatpush3.bf16.msra.mxu0 %v1175_v27 }
  0x3c   : > { %1097 = vmatpush3.bf16.msra.mxu1 %v1176_v28  ;;  %1070 = vmatprep.subr.bf16.mxu0 %v1177_v29 }
  0x3d   : > { %1098 = vmatprep.subr.bf16.mxu1 %v1178_v30 }
  0x3f   : > { %1071 = vmatpush3.bf16.msra.mxu0 %v1179_v31  ;;  %v842_v31 = vld [vmem:[%s1465_s4 + $0x8] sm:$0xff] (!%p1052_p11) }
  0x40   : > { %1099 = vmatpush3.bf16.msra.mxu1 %v1180_v32  ;;  %1072 = vmatprep.subr.bf16.mxu0 %v1181_v33 }
  0x41   : > { %1100 = vmatprep.subr.bf16.mxu1 %v1182_v34 }
  0x43   : > { %1073 = vmatpush3.bf16.msra.mxu0 %v1183_v35  ;;  %v843_v35 = vld [vmem:[%s1465_s4 + $0x10] sm:$0xff] (!%p1052_p11) }
  0x44   : > { %1101 = vmatpush3.bf16.msra.mxu1 %v1184_v36  ;;  %1074 = vmatprep.subr.bf16.mxu0 %v1185_v37  ;;  %v844_v36 = vld [vmem:[%s1465_s4 + $0x18] sm:$0xff] (!%p1052_p11) }
  0x45   : > { %1102 = vmatprep.subr.bf16.mxu1 %v1186_v38 }
  0x47   : > { %1075 = vmatpush3.bf16.msra.mxu0 %v1187_v39 }
  0x48   : > { %1103 = vmatpush3.bf16.msra.mxu1 %v1188_v40 }
  0x4a   : > { %738 = vmatmul.mubr.bf16.vlgmr.msra.gmra.mrb[0].mxu0 %v1189_v41 }
  0x4b   : > { %787 = vmatmul.mubr.bf16.vlgmr.msra.gmra.mrb[0].mxu1 %v1192_v43  ;;  %745 = vmatprep.mubr.bf16.mxu0 %v1195_v45 }
  0x4c   : > { %794 = vmatprep.mubr.bf16.mxu1 %v1197_v46 }
  0x52   : > { %746 = vmatmul.mubr.bf16.gmra.mrb[4].mxu0 %v1199_v47 }
  0x53   : > { %795 = vmatmul.mubr.bf16.gmra.mrb[4].mxu1 %v1200_v48 }
 0x11d   : > { %v1076_v49 = vpop.f32.mrb[0].mxu0 }
 0x11e   : > { %v1104_v50 = vpop.f32.mrb[0].mxu1  ;;  %v1077_v51 = vpop.f32.mrb[1].mxu0 }
 0x11f   : > { %v1078_v52 = vadd.f32 %v1077_v51, %v1076_v49  ;;  %v1105_v53 = vpop.f32.mrb[1].mxu1  ;;  %v1079_v54 = vpop.f32.mrb[2].mxu0 }
 0x120   : > { %v1106_v55 = vadd.f32 %v1105_v53, %v1104_v50  ;;  %v1107_v56 = vpop.f32.mrb[2].mxu1  ;;  %v1080_v57 = vpop.f32.mrb[3].mxu0 }
 0x121   : > { %v1081_v59 = vadd.f32 %v1080_v57, %v1079_v54  ;;  %v1108_v60 = vpop.f32.mrb[3].mxu1 }
 0x122   : > { %v789_v61 = vadd.f32 %v1106_v55, %v1078_v52  ;;  %v1109_v62 = vadd.f32 %v1108_v60, %v1107_v56 }
 0x124   : > { %v803_v0 = vadd.f32 %v789_v61, %v397_v58  ;;  %v792_v1 = vadd.f32 %v1109_v62, %v1081_v59 }
 0x125   : > { %v1082_v2 = vpop.f32.mrb[4].mxu0 }
 0x126   : > { %807 = vst [vmem:[%s1466_s5] sm:$0xff] %v803_v0  ;;  %v804_v3 = vadd.f32 %v792_v1, %v398_v63  ;;  %v1110_v4 = vpop.f32.mrb[4].mxu1  ;;  %v1083_v5 = vpop.f32.mrb[5].mxu0 }
 0x127   : > { %v1084_v6 = vadd.f32 %v1083_v5, %v1082_v2  ;;  %v1111_v7 = vpop.f32.mrb[5].mxu1  ;;  %v1085_v8 = vpop.f32.mrb[6].mxu0 }
 0x128   : > { %808 = vst [vmem:[%s1466_s5 + $0x8] sm:$0xff] %v804_v3  ;;  %v1112_v9 = vadd.f32 %v1111_v7, %v1110_v4  ;;  %v1113_v10 = vpop.f32.mrb[6].mxu1  ;;  %v1086_v11 = vpop.f32.mrb[7].mxu0 }
 0x129   : > { %v1087_v13 = vadd.f32 %v1086_v11, %v1085_v8  ;;  %v1114_v14 = vpop.f32.mrb[7].mxu1 }
 0x12a   : > { %v797_v15 = vadd.f32 %v1112_v9, %v1084_v6  ;;  %v1115_v16 = vadd.f32 %v1114_v14, %v1113_v10  ;;  %814 = sbr.rel (%p1052_p11) target bundleno = 321 (0x141), region = 71 }
 0x12c   : > { %v805_v18 = vadd.f32 %v797_v15, %v399_v12  ;;  %v800_v19 = vadd.f32 %v1115_v16, %v1087_v13 }
 0x12d   : > { %v815_v21 = vld [vmem:[%s1466_s5] sm:$0xff] (!%p1052_p11) }
 0x12e   : > { %809 = vst [vmem:[%s1466_s5 + $0x10] sm:$0xff] %v805_v18  ;;  %v806_v20 = vadd.f32 %v800_v19, %v400_v17  ;;  %v826_v24 = vmul.f32 (!%p1052_p11), %v1053_v22, %v815_v21 }
 0x12f   : > { %v816_v25 = vld [vmem:[%s1466_s5 + $0x8] sm:$0xff] (!%p1052_p11) }
 0x130   : > { %810 = vst [vmem:[%s1466_s5 + $0x18] sm:$0xff] %v806_v20  ;;  %v827_v27 = vmul.f32 (!%p1052_p11), %v1053_v22, %v816_v25  ;;  %v837_v30 = vadd.f32 (!%p1052_p11), %v1054_v23, %v826_v24 }
 0x132   : > { %v838_v34 = vadd.f32 %v1054_v23, %v827_v27  ;;  %v845_v37 = vadd.f32 %v841_v26, %v837_v30 }
 0x134   : > { %v846_v40 = vadd.f32 %v842_v31, %v838_v34  ;;  %v849_v41 = vmax.f32 %v845_v37, 0.0 }
 0x135   : > { %v817_v28 = vld [vmem:[%s1466_s5 + $0x10] sm:$0xff] }
 0x136   : > { %v828_v32 = vmul.f32 %v1053_v22, %v817_v28  ;;  %v850_v44 = vmax.f32 %v846_v40, 0.0  ;;  %853 = vst [vmem:[%s1466_s5] sm:$0xff] %v849_v41 }
 0x137   : > { %v818_v29 = vld [vmem:[%s1466_s5 + $0x18] sm:$0xff] }
 0x138   : > { %v829_v33 = vmul.f32 %v1053_v22, %v818_v29  ;;  %v839_v38 = vadd.f32 %v1054_v23, %v828_v32  ;;  %854 = vst [vmem:[%s1466_s5 + $0x8] sm:$0xff] %v850_v44 }
 0x13a   : > { %v840_v39 = vadd.f32 %v1054_v23, %v829_v33  ;;  %v847_v42 = vadd.f32 %v843_v35, %v839_v38 }
 0x13c   : > { %v848_v43 = vadd.f32 %v844_v36, %v840_v39  ;;  %v851_v45 = vmax.f32 %v847_v42, 0.0 }
 0x13e   : > { %v852_v46 = vmax.f32 %v848_v43, 0.0  ;;  %855 = vst [vmem:[%s1466_s5 + $0x10] sm:$0xff] %v851_v45 }
 0x140   : > { %856 = vst [vmem:[%s1466_s5 + $0x18] sm:$0xff] %v852_v46 }
 0x141 PF: > { %s15_s22 = sadd.s32 1, %s1239_s22   ;;  %s1467_s18 = smov %s1227_s19 }
 0x142   : > { %p12_p12 = scmp.ge.s32.totalorder %s15_s22, 4   ;;  %s1468_s19 = smov %s1307_s26 }
 0x143   : > { %s1469_s20 = smov %s1235_s21  ;;  %s1470_s21 = smov %s1472_s23 }
 0x144   :  { %14 = sbr.rel (!%p12_p12) target bundleno = 3 (0x3), region = 118 }

// kernel: drnseg_forward.32
= control target key start
LH: loop header
LB: loop body
LE: loop exit
PB: predicated region body
PF: predicated region fallthrough
CT: control target
= control target key end

     0   :  { %s330_s1 = inlined_call_operand.vmem [shape: bf16[128,128], index: 1, kind: input, shape index: {}]   ;;  %s331_s0 = inlined_call_operand.vmem [shape: bf16[32,128], index: 0, kind: input, shape index: {}]   ;;  %s332_s2 = inlined_call_operand.vmem [shape: f32[1,128], index: 2, kind: input, shape index: {}]   ;;  %s333_s3 = inlined_call_operand.vmem [shape: f32[1,128], index: 3, kind: input, shape index: {}]   ;;  %s334_s4 = inlined_call_operand.vmem [shape: f32[32,128], index: 4, kind: output, shape index: {}]  }
   0x1   :  { %v247_v0 = vld [vmem:[%s330_s1] sm:$0xff]   ;;  %v248_v1 = vld [vmem:[%s330_s1 + $0x8] sm:$0xff]   ;;  %v249_v2 = vld [vmem:[%s330_s1 + $0x10] sm:$0xff]  }
   0x2   :  { %226 = vmatprep.subr.bf16.mxu0 %v247_v0  ;;  %v250_v3 = vld [vmem:[%s330_s1 + $0x18] sm:$0xff]   ;;  %v255_v4 = vld [vmem:[%s331_s0] sm:$0xff]   ;;  %v252_v6 = vld [vmem:[%s330_s1 + $0x28] sm:$0xff]  }
   0x3   :  { %227 = vmatpush3.bf16.msra.mxu0 %v247_v0  ;;  %242 = vmatprep.mubr.bf16.mxu0 %v255_v4  ;;  %v251_v5 = vld [vmem:[%s330_s1 + $0x20] sm:$0xff]   ;;  %v253_v7 = vld [vmem:[%s330_s1 + $0x30] sm:$0xff]   ;;  %v254_v8 = vld [vmem:[%s330_s1 + $0x38] sm:$0xff]  }
   0x4   :  { %228 = vmatprep.subr.bf16.mxu0 %v248_v1  ;;  %v256_v9 = vld [vmem:[%s331_s0 + $0x8] sm:$0xff]   ;;  %v214_v11 = vld [vmem:[%s332_s2] ss:$0 sm:$0xff] }
   0x5   :  { %v215_v13 = vld [vmem:[%s333_s3] ss:$0 sm:$0xff] }
   0x7   :  { %229 = vmatpush3.bf16.msra.mxu0 %v248_v1 }
   0x8   :  { %230 = vmatprep.subr.bf16.mxu0 %v249_v2 }
   0xb   :  { %231 = vmatpush3.bf16.msra.mxu0 %v249_v2 }
   0xc   :  { %232 = vmatprep.subr.bf16.mxu0 %v250_v3 }
   0xf   :  { %233 = vmatpush3.bf16.msra.mxu0 %v250_v3 }
  0x10   :  { %234 = vmatprep.subr.bf16.mxu0 %v251_v5 }
  0x13   :  { %235 = vmatpush3.bf16.msra.mxu0 %v251_v5 }
  0x14   :  { %236 = vmatprep.subr.bf16.mxu0 %v252_v6 }
  0x17   :  { %237 = vmatpush3.bf16.msra.mxu0 %v252_v6 }
  0x18   :  { %238 = vmatprep.subr.bf16.mxu0 %v253_v7 }
  0x1b   :  { %239 = vmatpush3.bf16.msra.mxu0 %v253_v7 }
  0x1c   :  { %240 = vmatprep.subr.bf16.mxu0 %v254_v8 }
  0x1f   :  { %241 = vmatpush3.bf16.msra.mxu0 %v254_v8 }
  0x22   :  { %243 = vmatmul.mubr.bf16.vlgmr.msra.gmra.mrb[0].mxu0 %v256_v9 }
  0xf5   :  { %v244_v10 = vpop.f32.mrb[0].mxu0 }
  0xf6   :  { %v144_v12 = vpop.f32.mrb[1].mxu0  ;;  %v183_v15 = vmul.f32 %v244_v10, %v214_v11 }
  0xf7   :  { %v245_v14 = vpop.f32.mrb[2].mxu0  ;;  %v181_v17 = vmul.f32 %v214_v11, %v144_v12 }
  0xf8   :  { %v147_v16 = vpop.f32.mrb[3].mxu0  ;;  %v194_v18 = vadd.f32 %v215_v13, %v183_v15  ;;  %v184_v19 = vmul.f32 %v245_v14, %v214_v11 }
  0xf9   :  { %v192_v20 = vadd.f32 %v215_v13, %v181_v17  ;;  %v182_v21 = vmul.f32 %v214_v11, %v147_v16 }
  0xfa   :  { %198 = vst [vmem:[%s334_s4 + $0x10] sm:$0xff] %v194_v18  ;;  %v195_v22 = vadd.f32 %v215_v13, %v184_v19 }
  0xfb   :  { %196 = vst [vmem:[%s334_s4] sm:$0xff] %v192_v20  ;;  %v193_v23 = vadd.f32 %v215_v13, %v182_v21 }
  0xfc   :  { %199 = vst [vmem:[%s334_s4 + $0x18] sm:$0xff] %v195_v22 }
  0xfd   :  { %197 = vst [vmem:[%s334_s4 + $0x8] sm:$0xff] %v193_v23 }

// kernel: drnseg_forward.37
= control target key start
LH: loop header
LB: loop body
LE: loop exit
PB: predicated region body
PF: predicated region fallthrough
CT: control target
= control target key end

     0   :  { %v223_v0 = vmov 0.0   ;;  %vm224_vm0 = vmmov 0   ;;  %s289_s1 = inlined_call_operand.vmem [shape: bf16[128,128], index: 1, kind: input, shape index: {}]   ;;  %s290_s0 = inlined_call_operand.vmem [shape: bf16[16,128], index: 0, kind: input, shape index: {}]   ;;  %s291_s2 = inlined_call_operand.vmem [shape: f32[1,128], index: 2, kind: input, shape index: {}]   ;;  %s292_s3 = inlined_call_operand.vmem [shape: f32[1,128], index: 3, kind: input, shape index: {}]   ;;  %s293_s4 = inlined_call_operand.vmem [shape: f32[16,128], index: 4, kind: output, shape index: {}]  }
   0x1   :  { %192 = vmatprep.subr.bf16.mxu0 %v223_v0  ;;  %v214_v1 = vld [vmem:[%s289_s1] sm:$0xff]   ;;  %208 = vmatprep.mubr.msk.bf16.mxu0 %vm224_vm0, %v223_v0  ;;  %v215_v2 = vld [vmem:[%s289_s1 + $0x8] sm:$0xff]   ;;  %v216_v3 = vld [vmem:[%s289_s1 + $0x10] sm:$0xff]  }
   0x2   :  { %193 = vmatpush3.bf16.msra.mxu0 %v214_v1  ;;  %v217_v4 = vld [vmem:[%s289_s1 + $0x18] sm:$0xff]   ;;  %v218_v5 = vld [vmem:[%s289_s1 + $0x20] sm:$0xff]   ;;  %v219_v6 = vld [vmem:[%s289_s1 + $0x28] sm:$0xff]  }
   0x3   :  { %194 = vmatprep.subr.bf16.mxu0 %v223_v0  ;;  %v220_v7 = vld [vmem:[%s289_s1 + $0x30] sm:$0xff]   ;;  %v221_v8 = vld [vmem:[%s289_s1 + $0x38] sm:$0xff]   ;;  %v222_v9 = vld [vmem:[%s290_s0] sm:$0xff]  }
   0x4   :  { %v181_v11 = vld [vmem:[%s291_s2] ss:$0 sm:$0xff] }
   0x5   :  { %v182_v13 = vld [vmem:[%s292_s3] ss:$0 sm:$0xff] }
   0x6   :  { %195 = vmatpush3.bf16.msra.mxu0 %v215_v2 }
   0x7   :  { %196 = vmatprep.subr.bf16.mxu0 %v223_v0 }
   0xa   :  { %197 = vmatpush3.bf16.msra.mxu0 %v216_v3 }
   0xb   :  { %198 = vmatprep.subr.bf16.mxu0 %v223_v0 }
   0xe   :  { %199 = vmatpush3.bf16.msra.mxu0 %v217_v4 }
   0xf   :  { %200 = vmatprep.subr.bf16.mxu0 %v223_v0 }
  0x12   :  { %201 = vmatpush3.bf16.msra.mxu0 %v218_v5 }
  0x13   :  { %202 = vmatprep.subr.bf16.mxu0 %v223_v0 }
  0x16   :  { %203 = vmatpush3.bf16.msra.mxu0 %v219_v6 }
  0x17   :  { %204 = vmatprep.subr.bf16.mxu0 %v223_v0 }
  0x1a   :  { %205 = vmatpush3.bf16.msra.mxu0 %v220_v7 }
  0x1b   :  { %206 = vmatprep.subr.bf16.mxu0 %v223_v0 }
  0x1e   :  { %207 = vmatpush3.bf16.msra.mxu0 %v221_v8 }
  0x21   :  { %209 = vmatmul.mubr.bf16.vlgmr.msra.gmra.mrb[0].mxu0 %v222_v9 }
  0xf4   :  { %v132_v10 = vpop.f32.mrb[0].mxu0 }
  0xf5   :  { %v210_v12 = vpop.f32.mrb[1].mxu0  ;;  %v155_v15 = vmul.f32 %v181_v11, %v132_v10 }
  0xf6   :  { %v135_v14 = vpop.f32.mrb[2].mxu0 }
  0xf7   :  { %v211_v16 = vpop.f32.mrb[3].mxu0  ;;  %v164_v17 = vadd.f32 %v182_v13, %v155_v15  ;;  %v156_v18 = vmul.f32 %v181_v11, %v135_v14 }
  0xf9   :  { %166 = vst [vmem:[%s293_s4] sm:$0xff] %v164_v17  ;;  %v165_v19 = vadd.f32 %v182_v13, %v156_v18 }
  0xfb   :  { %167 = vst [vmem:[%s293_s4 + $0x8] sm:$0xff] %v165_v19 }

// kernel: drnseg_forward.36
= control target key start
LH: loop header
LB: loop body
LE: loop exit
PB: predicated region body
PF: predicated region fallthrough
CT: control target
= control target key end

     0   :  { %s1092_s15 = smov 0   ;;  %s1094_s16 = smov 0   ;;  %s1235_s0 = inlined_call_operand.vmem [shape: bf16[16,1024], index: 0, kind: input, shape index: {}]   ;;  %s1236_s1 = inlined_call_operand.vmem [shape: bf16[1024,128], index: 1, kind: input, shape index: {}]   ;;  %s1237_s2 = inlined_call_operand.vmem [shape: f32[1,128], index: 2, kind: input, shape index: {}]   ;;  %s1238_s3 = inlined_call_operand.vmem [shape: f32[1,128], index: 3, kind: input, shape index: {}]   ;;  %s1239_s4 = inlined_call_operand.vmem [shape: f32[16,128], index: 4, kind: output, shape index: {}]  }
   0x1   :  { %s1096_s17 = smov 0   ;;  %s1098_s18 = smov 0  }
   0x2   :  { %s1100_s19 = smov 0  }
   0x3 LB: > { %s26_s20 = sadd.s32 1, %s1060_s18  ;;  %p49_p1 = scmp.ne.s32.totalorder %s1052_s16, %s1048_s15  ;;  %s1064_s19 = sphi %s1100_s19, %s14_s19   ;;  %s1060_s18 = sphi %s1098_s18, %s1243_s18   ;;  %s1056_s17 = sphi %s1096_s17, %s1242_s17   ;;  %s1052_s16 = sphi %s1094_s16, %s1241_s16   ;;  %s1048_s15 = sphi %s1092_s15, %s1240_s15  }
   0x4   : > { %p27_p0 = scmp.ge.s32.totalorder %s26_s20, 2  ;;  %p50_p2 = scmp.eq.s32.totalorder %s1064_s19, 0 }
   0x5   : > { %s42_s22 = sadd.s32 1, %s1052_s16  ;;  %p850_p5 = scmp.ge.s32.totalorder %s1064_s19, 2 }
   0x6   : > { %s1245_s20 = smov (%p27_p0, %s26_s20), 0  ;;  %p51_p3 = por %p50_p2, %p49_p1 }
   0x7   : > { %s38_s21 = ssub.s32 %s1060_s18, %s1245_s20  ;;  %195 = sbr.rel (%p850_p5) target bundleno = 21 (0x15), region = 24 }
   0x8   : > { %p40_p4 = scmp.eq.s32.totalorder %s38_s21, 0 }
   0xa   : > { %s1127_s23 = scalar_select %p40_p4, %s1052_s16, %s42_s22  }
   0xe   : > { %198 = sbr.rel (!%p51_p3) target bundleno = 21 (0x15), region = 28  ;;  %s200_s24 = sand.u32 (%p51_p3), 1, %s1052_s16  }
   0xf   : > { %s902_s25 = sshll.u32 (%p51_p3), %s1060_s18, 4  ;;  %s851_s26 = sshll.u32 (%p51_p3), %s200_s24, 5 }
  0x10   : > { %s208_s29 = scalar_lea.vmem (%p51_p3), %s1235_s0, %s902_s25  ;;  %s202_s30 = scalar_lea.vmem (%p51_p3), [#allocation2], %s851_s26 }
  0x11   : > { %v221_v0 = vld [vmem:[%s208_s29] sm:$0xff] (%p51_p3)  ;;  %v223_v1 = vld [vmem:[%s208_s29 + $0x8] sm:$0xff] (%p51_p3) }
  0x12   : > { %v225_v2 = vld [vmem:[%s208_s29 + $0x20] sm:$0xff] (%p51_p3)  ;;  %222 = vst [vmem:[%s202_s30] sm:$0xff] (%p51_p3), %v221_v0  ;;  %224 = vst [vmem:[%s202_s30 + $0x8] sm:$0xff] (%p51_p3), %v223_v1  ;;  %v227_v3 = vld [vmem:[%s208_s29 + $0x28] sm:$0xff] (%p51_p3) }
  0x13   : > { %226 = vst [vmem:[%s202_s30 + $0x10] sm:$0xff] (%p51_p3), %v225_v2  ;;  %228 = vst [vmem:[%s202_s30 + $0x18] sm:$0xff] (%p51_p3), %v227_v3 }
  0x15 PF: > { %p854_p6 = scmp.ge.s32.totalorder %s1064_s19, 1  ;;  %p245_p7 = scmp.lt.s32.totalorder %s1064_s19, 3 }
  0x17   : > { %p246_p8 = pnand %p854_p6, %p245_p7 }
  0x18   : > { %s252_s5 = sand.u32 (!%p246_p8), 1, %s1048_s15   ;;  %s856_s6 = sshll.u32 (!%p246_p8), %s1056_s17, 6 }
  0x19   : > { %249 = sbr.rel (%p246_p8) target bundleno = 310 (0x136), region = 55  ;;  %s855_s7 = sshll.u32 (!%p246_p8), %s252_s5, 5 }
  0x1a   : > { %p297_p9 = scmp.lt.s32.totalorder (!%p246_p8), %s856_s6, 127  ;;  %s1144_s12 = scalar_lea.vmem (!%p246_p8), [#allocation2], %s855_s7 }
  0x1b   : > { %p858_p10 = scmp.ne.s32.totalorder (!%p246_p8), %s1056_s17, 0 }
  0x20   : > { %s1247_s6 = smov (!%p297_p9, %s856_s6), 127  ;;  %324 = sbr.rel (%p858_p10) target bundleno = 39 (0x27), region = 63 }
  0x21   : > { %s857_s8 = sshll.u32 %s1247_s6, 2  ;;  %v1066_v4 = vmov (!%p858_p10), 0.0  }
  0x22   : > { %s1142_s11 = scalar_lea.vmem %s1236_s1, %s857_s8  ;;  %325 = vst [vmem:[%s1239_s4] sm:$0xff] (!%p858_p10), %v1066_v4  ;;  %326 = vst [vmem:[%s1239_s4 + $0x8] sm:$0xff] (!%p858_p10), %v1066_v4 }
  0x27 PF: > { %v988_v5 = vld [vmem:[%s1142_s11 + $0x40] sm:$0xff]   ;;  %v992_v9 = vld [vmem:[%s1142_s11 + $0x48] sm:$0xff]   ;;  %v996_v13 = vld [vmem:[%s1142_s11 + $0x50] sm:$0xff]   ;;  %p895_p11 = scmp.ne.s32.totalorder %s1056_s17, 1 }
  0x28   : > { %v989_v6 = vld [vmem:[%s1142_s11 + $0xc0] sm:$0xff]   ;;  %903 = vmatprep.subr.bf16.mxu0 %v988_v5  ;;  %v993_v10 = vld [vmem:[%s1142_s11 + $0xc8] sm:$0xff]   ;;  %v997_v14 = vld [vmem:[%s1142_s11 + $0xd0] sm:$0xff]  }
  0x29   : > { %v990_v7 = vld [vmem:[%s1142_s11] sm:$0xff]   ;;  %925 = vmatprep.subr.bf16.mxu1 %v989_v6  ;;  %v994_v11 = vld [vmem:[%s1142_s11 + $0x8] sm:$0xff]   ;;  %v998_v15 = vld [vmem:[%s1142_s11 + $0x10] sm:$0xff]  }
  0x2a   : > { %v991_v8 = vld [vmem:[%s1142_s11 + $0x80] sm:$0xff]   ;;  %904 = vmatpush3.bf16.msra.mxu0 %v990_v7  ;;  %v995_v12 = vld [vmem:[%s1142_s11 + $0x88] sm:$0xff]   ;;  %v999_v16 = vld [vmem:[%s1142_s11 + $0x90] sm:$0xff]  }
  0x2b   : > { %926 = vmatpush3.bf16.msra.mxu1 %v991_v8  ;;  %905 = vmatprep.subr.bf16.mxu0 %v992_v9  ;;  %v1000_v17 = vld [vmem:[%s1142_s11 + $0x58] sm:$0xff]   ;;  %v1004_v21 = vld [vmem:[%s1142_s11 + $0x60] sm:$0xff]   ;;  %v1008_v25 = vld [vmem:[%s1142_s11 + $0x68] sm:$0xff]  }
  0x2c   : > { %927 = vmatprep.subr.bf16.mxu1 %v993_v10  ;;  %v1001_v18 = vld [vmem:[%s1142_s11 + $0xd8] sm:$0xff]   ;;  %v1005_v22 = vld [vmem:[%s1142_s11 + $0xe0] sm:$0xff]   ;;  %v1009_v26 = vld [vmem:[%s1142_s11 + $0xe8] sm:$0xff]  }
  0x2d   : > { %v1002_v19 = vld [vmem:[%s1142_s11 + $0x18] sm:$0xff]   ;;  %v1006_v23 = vld [vmem:[%s1142_s11 + $0x20] sm:$0xff]   ;;  %v1010_v27 = vld [vmem:[%s1142_s11 + $0x28] sm:$0xff]  }
  0x2e   : > { %906 = vmatpush3.bf16.msra.mxu0 %v994_v11  ;;  %v1003_v20 = vld [vmem:[%s1142_s11 + $0x98] sm:$0xff]   ;;  %v1007_v24 = vld [vmem:[%s1142_s11 + $0xa0] sm:$0xff]   ;;  %v1011_v28 = vld [vmem:[%s1142_s11 + $0xa8] sm:$0xff]  }
  0x2f   : > { %928 = vmatpush3.bf16.msra.mxu1 %v995_v12  ;;  %907 = vmatprep.subr.bf16.mxu0 %v996_v13  ;;  %v1012_v29 = vld [vmem:[%s1142_s11 + $0x70] sm:$0xff]   ;;  %v1016_v33 = vld [vmem:[%s1142_s11 + $0x78] sm:$0xff]   ;;  %v327_v50 = vld [vmem:[%s1239_s4] sm:$0xff] }
  0x30   : > { %929 = vmatprep.subr.bf16.mxu1 %v997_v14  ;;  %v1013_v30 = vld [vmem:[%s1142_s11 + $0xf0] sm:$0xff]   ;;  %v1017_v34 = vld [vmem:[%s1142_s11 + $0xf8] sm:$0xff]   ;;  %v328_v55 = vld [vmem:[%s1239_s4 + $0x8] sm:$0xff] }
  0x31   : > { %v1014_v31 = vld [vmem:[%s1142_s11 + $0x30] sm:$0xff]   ;;  %v1018_v35 = vld [vmem:[%s1142_s11 + $0x38] sm:$0xff]   ;;  %v896_v60 = vld [vmem:[%s1237_s2] ss:$0 sm:$0xff] (!%p895_p11) }
  0x32   : > { %908 = vmatpush3.bf16.msra.mxu0 %v998_v15  ;;  %v1015_v32 = vld [vmem:[%s1142_s11 + $0xb0] sm:$0xff]   ;;  %v1019_v36 = vld [vmem:[%s1142_s11 + $0xb8] sm:$0xff]   ;;  %v897_v61 = vld [vmem:[%s1238_s3] ss:$0 sm:$0xff] (!%p895_p11) }
  0x33   : > { %930 = vmatpush3.bf16.msra.mxu1 %v999_v16  ;;  %909 = vmatprep.subr.bf16.mxu0 %v1000_v17  ;;  %v1020_v37 = vld [vmem:[%s1144_s12] ss:$16 sps:$4 sm:$0xff]   ;;  %v1022_v38 = vld [vmem:[%s1144_s12 + $0x4] ss:$16 sps:$4 sm:$0xff]   ;;  %v1023_v39 = vld [vmem:[%s1144_s12 + $0x8] ss:$16 sps:$4 sm:$0xff]  }
  0x34   : > { %931 = vmatprep.subr.bf16.mxu1 %v1001_v18  ;;  %v1025_v40 = vld [vmem:[%s1144_s12 + $0xc] ss:$16 sps:$4 sm:$0xff]   ;;  %641 = vmatprep.mubr.bf16.mxu0 %v1022_v38 }
  0x35   : > { %682 = vmatprep.mubr.bf16.mxu1 %v1025_v40 }
  0x36   : > { %910 = vmatpush3.bf16.msra.mxu0 %v1002_v19 }
  0x37   : > { %932 = vmatpush3.bf16.msra.mxu1 %v1003_v20  ;;  %911 = vmatprep.subr.bf16.mxu0 %v1004_v21 }
  0x38   : > { %933 = vmatprep.subr.bf16.mxu1 %v1005_v22 }
  0x3a   : > { %912 = vmatpush3.bf16.msra.mxu0 %v1006_v23 }
  0x3b   : > { %934 = vmatpush3.bf16.msra.mxu1 %v1007_v24  ;;  %913 = vmatprep.subr.bf16.mxu0 %v1008_v25 }
  0x3c   : > { %935 = vmatprep.subr.bf16.mxu1 %v1009_v26 }
  0x3e   : > { %914 = vmatpush3.bf16.msra.mxu0 %v1010_v27 }
  0x3f   : > { %936 = vmatpush3.bf16.msra.mxu1 %v1011_v28  ;;  %915 = vmatprep.subr.bf16.mxu0 %v1012_v29 }
  0x40   : > { %937 = vmatprep.subr.bf16.mxu1 %v1013_v30 }
  0x42   : > { %916 = vmatpush3.bf16.msra.mxu0 %v1014_v31 }
  0x43   : > { %938 = vmatpush3.bf16.msra.mxu1 %v1015_v32  ;;  %917 = vmatprep.subr.bf16.mxu0 %v1016_v33 }
  0x44   : > { %939 = vmatprep.subr.bf16.mxu1 %v1017_v34 }
  0x46   : > { %918 = vmatpush3.bf16.msra.mxu0 %v1018_v35 }
  0x47   : > { %940 = vmatpush3.bf16.msra.mxu1 %v1019_v36 }
  0x49   : > { %642 = vmatmul.mubr.bf16.vlgmr.msra.gmra.mrb[0].mxu0 %v1020_v37 }
  0x4a   : > { %683 = vmatmul.mubr.bf16.vlgmr.msra.gmra.mrb[0].mxu1 %v1023_v39 }
 0x11c   : > { %v919_v41 = vpop.f32.mrb[0].mxu0 }
 0x11d   : > { %v941_v42 = vpop.f32.mrb[0].mxu1  ;;  %v920_v43 = vpop.f32.mrb[1].mxu0 }
 0x11e   : > { %v921_v44 = vadd.f32 %v920_v43, %v919_v41  ;;  %v942_v45 = vpop.f32.mrb[1].mxu1  ;;  %v922_v46 = vpop.f32.mrb[2].mxu0 }
 0x11f   : > { %v943_v47 = vadd.f32 %v942_v45, %v941_v42  ;;  %v944_v48 = vpop.f32.mrb[2].mxu1  ;;  %v923_v49 = vpop.f32.mrb[3].mxu0 }
 0x120   : > { %v924_v51 = vadd.f32 %v923_v49, %v922_v46  ;;  %v945_v52 = vpop.f32.mrb[3].mxu1 }
 0x121   : > { %v685_v53 = vadd.f32 %v943_v47, %v921_v44  ;;  %v946_v54 = vadd.f32 %v945_v52, %v944_v48  ;;  %698 = sbr.rel (%p895_p11) target bundleno = 310 (0x136), region = 67 }
 0x123   : > { %v691_v56 = vadd.f32 %v685_v53, %v327_v50  ;;  %v688_v57 = vadd.f32 %v946_v54, %v924_v51 }
 0x125   : > { %693 = vst [vmem:[%s1239_s4] sm:$0xff] %v691_v56  ;;  %v692_v58 = vadd.f32 %v688_v57, %v328_v55 }
 0x127   : > { %694 = vst [vmem:[%s1239_s4 + $0x8] sm:$0xff] %v692_v58 }
 0x12c   : > { %v699_v59 = vld [vmem:[%s1239_s4] sm:$0xff] }
 0x12d   : > { %v708_v62 = vmul.f32 %v896_v60, %v699_v59 }
 0x12e   : > { %v700_v63 = vld [vmem:[%s1239_s4 + $0x8] sm:$0xff] }
 0x12f   : > { %v709_v0 = vmul.f32 %v896_v60, %v700_v63  ;;  %v717_v1 = vadd.f32 %v897_v61, %v708_v62 }
 0x131   : > { %v718_v2 = vadd.f32 %v897_v61, %v709_v0  ;;  %v719_v3 = vmax.f32 %v717_v1, 0.0 }
 0x133   : > { %v720_v4 = vmax.f32 %v718_v2, 0.0  ;;  %721 = vst [vmem:[%s1239_s4] sm:$0xff] %v719_v3 }
 0x135   : > { %722 = vst [vmem:[%s1239_s4 + $0x8] sm:$0xff] %v720_v4 }
 0x136 PF: > { %s14_s19 = sadd.s32 1, %s1064_s19   ;;  %s1240_s15 = smov %s1052_s16 }
 0x137   : > { %p11_p12 = scmp.ge.s32.totalorder %s14_s19, 4   ;;  %s1241_s16 = smov %s1127_s23 }
 0x138   : > { %s1242_s17 = smov %s1060_s18  ;;  %s1243_s18 = smov %s1245_s20 }
 0x139   :  { %13 = sbr.rel (!%p11_p12) target bundleno = 3 (0x3), region = 111 }

// kernel: drnseg_forward.39
= control target key start
LH: loop header
LB: loop body
LE: loop exit
PB: predicated region body
PF: predicated region fallthrough
CT: control target
= control target key end

     0   :  { %s1092_s15 = smov 0   ;;  %s1094_s16 = smov 0   ;;  %s1235_s0 = inlined_call_operand.vmem [shape: bf16[16,1536], index: 0, kind: input, shape index: {}]   ;;  %s1236_s1 = inlined_call_operand.vmem [shape: bf16[1536,128], index: 1, kind: input, shape index: {}]   ;;  %s1237_s2 = inlined_call_operand.vmem [shape: f32[1,128], index: 2, kind: input, shape index: {}]   ;;  %s1238_s3 = inlined_call_operand.vmem [shape: f32[1,128], index: 3, kind: input, shape index: {}]   ;;  %s1239_s4 = inlined_call_operand.vmem [shape: f32[16,128], index: 4, kind: output, shape index: {}]  }
   0x1   :  { %s1096_s17 = smov 0   ;;  %s1098_s18 = smov 0  }
   0x2   :  { %s1100_s19 = smov 0  }
   0x3 LB: > { %s26_s20 = sadd.s32 1, %s1060_s18  ;;  %p49_p1 = scmp.ne.s32.totalorder %s1052_s16, %s1048_s15  ;;  %s1064_s19 = sphi %s1100_s19, %s14_s19   ;;  %s1060_s18 = sphi %s1098_s18, %s1243_s18   ;;  %s1056_s17 = sphi %s1096_s17, %s1242_s17   ;;  %s1052_s16 = sphi %s1094_s16, %s1241_s16   ;;  %s1048_s15 = sphi %s1092_s15, %s1240_s15  }
   0x4   : > { %p27_p0 = scmp.ge.s32.totalorder %s26_s20, 3  ;;  %p50_p2 = scmp.eq.s32.totalorder %s1064_s19, 0 }
   0x5   : > { %s42_s22 = sadd.s32 1, %s1052_s16  ;;  %p850_p5 = scmp.ge.s32.totalorder %s1064_s19, 3 }
   0x6   : > { %s1245_s20 = smov (%p27_p0, %s26_s20), 0  ;;  %p51_p3 = por %p50_p2, %p49_p1 }
   0x7   : > { %s38_s21 = ssub.s32 %s1060_s18, %s1245_s20  ;;  %195 = sbr.rel (%p850_p5) target bundleno = 21 (0x15), region = 24 }
   0x8   : > { %p40_p4 = scmp.eq.s32.totalorder %s38_s21, 0 }
   0xa   : > { %s1127_s23 = scalar_select %p40_p4, %s1052_s16, %s42_s22  }
   0xe   : > { %198 = sbr.rel (!%p51_p3) target bundleno = 21 (0x15), region = 28  ;;  %s200_s24 = sand.u32 (%p51_p3), 1, %s1052_s16  }
   0xf   : > { %s902_s25 = sshll.u32 (%p51_p3), %s1060_s18, 4  ;;  %s851_s26 = sshll.u32 (%p51_p3), %s200_s24, 5 }
  0x10   : > { %s208_s29 = scalar_lea.vmem (%p51_p3), %s1235_s0, %s902_s25  ;;  %s202_s30 = scalar_lea.vmem (%p51_p3), [#allocation2], %s851_s26 }
  0x11   : > { %v221_v0 = vld [vmem:[%s208_s29] sm:$0xff] (%p51_p3)  ;;  %v223_v1 = vld [vmem:[%s208_s29 + $0x8] sm:$0xff] (%p51_p3)  ;;  %v225_v2 = vld [vmem:[%s208_s29 + $0x30] sm:$0xff] (%p51_p3) }
  0x12   : > { %222 = vst [vmem:[%s202_s30] sm:$0xff] (%p51_p3), %v221_v0  ;;  %224 = vst [vmem:[%s202_s30 + $0x8] sm:$0xff] (%p51_p3), %v223_v1  ;;  %v227_v3 = vld [vmem:[%s208_s29 + $0x38] sm:$0xff] (%p51_p3) }
  0x13   : > { %226 = vst [vmem:[%s202_s30 + $0x10] sm:$0xff] (%p51_p3), %v225_v2  ;;  %228 = vst [vmem:[%s202_s30 + $0x18] sm:$0xff] (%p51_p3), %v227_v3 }
  0x15 PF: > { %p854_p6 = scmp.ge.s32.totalorder %s1064_s19, 1  ;;  %p245_p7 = scmp.lt.s32.totalorder %s1064_s19, 4 }
  0x17   : > { %p246_p8 = pnand %p854_p6, %p245_p7 }
  0x18   : > { %s252_s5 = sand.u32 (!%p246_p8), 1, %s1048_s15   ;;  %s856_s6 = sshll.u32 (!%p246_p8), %s1056_s17, 6 }
  0x19   : > { %249 = sbr.rel (%p246_p8) target bundleno = 310 (0x136), region = 55  ;;  %s855_s7 = sshll.u32 (!%p246_p8), %s252_s5, 5 }
  0x1a   : > { %p297_p9 = scmp.lt.s32.totalorder (!%p246_p8), %s856_s6, 191  ;;  %s1144_s12 = scalar_lea.vmem (!%p246_p8), [#allocation2], %s855_s7 }
  0x1b   : > { %p858_p10 = scmp.ne.s32.totalorder (!%p246_p8), %s1056_s17, 0 }
  0x20   : > { %s1247_s6 = smov (!%p297_p9, %s856_s6), 191  ;;  %324 = sbr.rel (%p858_p10) target bundleno = 39 (0x27), region = 63 }
  0x21   : > { %s857_s8 = sshll.u32 %s1247_s6, 2  ;;  %v1066_v4 = vmov (!%p858_p10), 0.0  }
  0x22   : > { %s1142_s11 = scalar_lea.vmem %s1236_s1, %s857_s8  ;;  %325 = vst [vmem:[%s1239_s4] sm:$0xff] (!%p858_p10), %v1066_v4  ;;  %326 = vst [vmem:[%s1239_s4 + $0x8] sm:$0xff] (!%p858_p10), %v1066_v4 }
  0x27 PF: > { %v988_v5 = vld [vmem:[%s1142_s11 + $0x40] sm:$0xff]   ;;  %v992_v9 = vld [vmem:[%s1142_s11 + $0x48] sm:$0xff]   ;;  %v996_v13 = vld [vmem:[%s1142_s11 + $0x50] sm:$0xff]   ;;  %p895_p11 = scmp.ne.s32.totalorder %s1056_s17, 2 }
  0x28   : > { %v989_v6 = vld [vmem:[%s1142_s11 + $0xc0] sm:$0xff]   ;;  %903 = vmatprep.subr.bf16.mxu0 %v988_v5  ;;  %v993_v10 = vld [vmem:[%s1142_s11 + $0xc8] sm:$0xff]   ;;  %v997_v14 = vld [vmem:[%s1142_s11 + $0xd0] sm:$0xff]  }
  0x29   : > { %v990_v7 = vld [vmem:[%s1142_s11] sm:$0xff]   ;;  %925 = vmatprep.subr.bf16.mxu1 %v989_v6  ;;  %v994_v11 = vld [vmem:[%s1142_s11 + $0x8] sm:$0xff]   ;;  %v998_v15 = vld [vmem:[%s1142_s11 + $0x10] sm:$0xff]  }
  0x2a   : > { %v991_v8 = vld [vmem:[%s1142_s11 + $0x80] sm:$0xff]   ;;  %904 = vmatpush3.bf16.msra.mxu0 %v990_v7  ;;  %v995_v12 = vld [vmem:[%s1142_s11 + $0x88] sm:$0xff]   ;;  %v999_v16 = vld [vmem:[%s1142_s11 + $0x90] sm:$0xff]  }
  0x2b   : > { %926 = vmatpush3.bf16.msra.mxu1 %v991_v8  ;;  %905 = vmatprep.subr.bf16.mxu0 %v992_v9  ;;  %v1000_v17 = vld [vmem:[%s1142_s11 + $0x58] sm:$0xff]   ;;  %v1004_v21 = vld [vmem:[%s1142_s11 + $0x60] sm:$0xff]   ;;  %v1008_v25 = vld [vmem:[%s1142_s11 + $0x68] sm:$0xff]  }
  0x2c   : > { %927 = vmatprep.subr.bf16.mxu1 %v993_v10  ;;  %v1001_v18 = vld [vmem:[%s1142_s11 + $0xd8] sm:$0xff]   ;;  %v1005_v22 = vld [vmem:[%s1142_s11 + $0xe0] sm:$0xff]   ;;  %v1009_v26 = vld [vmem:[%s1142_s11 + $0xe8] sm:$0xff]  }
  0x2d   : > { %v1002_v19 = vld [vmem:[%s1142_s11 + $0x18] sm:$0xff]   ;;  %v1006_v23 = vld [vmem:[%s1142_s11 + $0x20] sm:$0xff]   ;;  %v1010_v27 = vld [vmem:[%s1142_s11 + $0x28] sm:$0xff]  }
  0x2e   : > { %906 = vmatpush3.bf16.msra.mxu0 %v994_v11  ;;  %v1003_v20 = vld [vmem:[%s1142_s11 + $0x98] sm:$0xff]   ;;  %v1007_v24 = vld [vmem:[%s1142_s11 + $0xa0] sm:$0xff]   ;;  %v1011_v28 = vld [vmem:[%s1142_s11 + $0xa8] sm:$0xff]  }
  0x2f   : > { %928 = vmatpush3.bf16.msra.mxu1 %v995_v12  ;;  %907 = vmatprep.subr.bf16.mxu0 %v996_v13  ;;  %v1012_v29 = vld [vmem:[%s1142_s11 + $0x70] sm:$0xff]   ;;  %v1016_v33 = vld [vmem:[%s1142_s11 + $0x78] sm:$0xff]   ;;  %v327_v50 = vld [vmem:[%s1239_s4] sm:$0xff] }
  0x30   : > { %929 = vmatprep.subr.bf16.mxu1 %v997_v14  ;;  %v1013_v30 = vld [vmem:[%s1142_s11 + $0xf0] sm:$0xff]   ;;  %v1017_v34 = vld [vmem:[%s1142_s11 + $0xf8] sm:$0xff]   ;;  %v328_v55 = vld [vmem:[%s1239_s4 + $0x8] sm:$0xff] }
  0x31   : > { %v1014_v31 = vld [vmem:[%s1142_s11 + $0x30] sm:$0xff]   ;;  %v1018_v35 = vld [vmem:[%s1142_s11 + $0x38] sm:$0xff]   ;;  %v896_v60 = vld [vmem:[%s1237_s2] ss:$0 sm:$0xff] (!%p895_p11) }
  0x32   : > { %908 = vmatpush3.bf16.msra.mxu0 %v998_v15  ;;  %v1015_v32 = vld [vmem:[%s1142_s11 + $0xb0] sm:$0xff]   ;;  %v1019_v36 = vld [vmem:[%s1142_s11 + $0xb8] sm:$0xff]   ;;  %v897_v61 = vld [vmem:[%s1238_s3] ss:$0 sm:$0xff] (!%p895_p11) }
  0x33   : > { %930 = vmatpush3.bf16.msra.mxu1 %v999_v16  ;;  %909 = vmatprep.subr.bf16.mxu0 %v1000_v17  ;;  %v1020_v37 = vld [vmem:[%s1144_s12] ss:$16 sps:$4 sm:$0xff]   ;;  %v1022_v38 = vld [vmem:[%s1144_s12 + $0x4] ss:$16 sps:$4 sm:$0xff]   ;;  %v1023_v39 = vld [vmem:[%s1144_s12 + $0x8] ss:$16 sps:$4 sm:$0xff]  }
  0x34   : > { %931 = vmatprep.subr.bf16.mxu1 %v1001_v18  ;;  %v1025_v40 = vld [vmem:[%s1144_s12 + $0xc] ss:$16 sps:$4 sm:$0xff]   ;;  %641 = vmatprep.mubr.bf16.mxu0 %v1022_v38 }
  0x35   : > { %682 = vmatprep.mubr.bf16.mxu1 %v1025_v40 }
  0x36   : > { %910 = vmatpush3.bf16.msra.mxu0 %v1002_v19 }
  0x37   : > { %932 = vmatpush3.bf16.msra.mxu1 %v1003_v20  ;;  %911 = vmatprep.subr.bf16.mxu0 %v1004_v21 }
  0x38   : > { %933 = vmatprep.subr.bf16.mxu1 %v1005_v22 }
  0x3a   : > { %912 = vmatpush3.bf16.msra.mxu0 %v1006_v23 }
  0x3b   : > { %934 = vmatpush3.bf16.msra.mxu1 %v1007_v24  ;;  %913 = vmatprep.subr.bf16.mxu0 %v1008_v25 }
  0x3c   : > { %935 = vmatprep.subr.bf16.mxu1 %v1009_v26 }
  0x3e   : > { %914 = vmatpush3.bf16.msra.mxu0 %v1010_v27 }
  0x3f   : > { %936 = vmatpush3.bf16.msra.mxu1 %v1011_v28  ;;  %915 = vmatprep.subr.bf16.mxu0 %v1012_v29 }
  0x40   : > { %937 = vmatprep.subr.bf16.mxu1 %v1013_v30 }
  0x42   : > { %916 = vmatpush3.bf16.msra.mxu0 %v1014_v31 }
  0x43   : > { %938 = vmatpush3.bf16.msra.mxu1 %v1015_v32  ;;  %917 = vmatprep.subr.bf16.mxu0 %v1016_v33 }
  0x44   : > { %939 = vmatprep.subr.bf16.mxu1 %v1017_v34 }
  0x46   : > { %918 = vmatpush3.bf16.msra.mxu0 %v1018_v35 }
  0x47   : > { %940 = vmatpush3.bf16.msra.mxu1 %v1019_v36 }
  0x49   : > { %642 = vmatmul.mubr.bf16.vlgmr.msra.gmra.mrb[0].mxu0 %v1020_v37 }
  0x4a   : > { %683 = vmatmul.mubr.bf16.vlgmr.msra.gmra.mrb[0].mxu1 %v1023_v39 }
 0x11c   : > { %v919_v41 = vpop.f32.mrb[0].mxu0 }
 0x11d   : > { %v941_v42 = vpop.f32.mrb[0].mxu1  ;;  %v920_v43 = vpop.f32.mrb[1].mxu0 }
 0x11e   : > { %v921_v44 = vadd.f32 %v920_v43, %v919_v41  ;;  %v942_v45 = vpop.f32.mrb[1].mxu1  ;;  %v922_v46 = vpop.f32.mrb[2].mxu0 }
 0x11f   : > { %v943_v47 = vadd.f32 %v942_v45, %v941_v42  ;;  %v944_v48 = vpop.f32.mrb[2].mxu1  ;;  %v923_v49 = vpop.f32.mrb[3].mxu0 }
 0x120   : > { %v924_v51 = vadd.f32 %v923_v49, %v922_v46  ;;  %v945_v52 = vpop.f32.mrb[3].mxu1 }
 0x121   : > { %v685_v53 = vadd.f32 %v943_v47, %v921_v44  ;;  %v946_v54 = vadd.f32 %v945_v52, %v944_v48  ;;  %698 = sbr.rel (%p895_p11) target bundleno = 310 (0x136), region = 67 }
 0x123   : > { %v691_v56 = vadd.f32 %v685_v53, %v327_v50  ;;  %v688_v57 = vadd.f32 %v946_v54, %v924_v51 }
 0x125   : > { %693 = vst [vmem:[%s1239_s4] sm:$0xff] %v691_v56  ;;  %v692_v58 = vadd.f32 %v688_v57, %v328_v55 }
 0x127   : > { %694 = vst [vmem:[%s1239_s4 + $0x8] sm:$0xff] %v692_v58 }
 0x12c   : > { %v699_v59 = vld [vmem:[%s1239_s4] sm:$0xff] }
 0x12d   : > { %v708_v62 = vmul.f32 %v896_v60, %v699_v59 }
 0x12e   : > { %v700_v63 = vld [vmem:[%s1239_s4 + $0x8] sm:$0xff] }
 0x12f   : > { %v709_v0 = vmul.f32 %v896_v60, %v700_v63  ;;  %v717_v1 = vadd.f32 %v897_v61, %v708_v62 }
 0x131   : > { %v718_v2 = vadd.f32 %v897_v61, %v709_v0  ;;  %v719_v3 = vmax.f32 %v717_v1, 0.0 }
 0x133   : > { %v720_v4 = vmax.f32 %v718_v2, 0.0  ;;  %721 = vst [vmem:[%s1239_s4] sm:$0xff] %v719_v3 }
 0x135   : > { %722 = vst [vmem:[%s1239_s4 + $0x8] sm:$0xff] %v720_v4 }
 0x136 PF: > { %s14_s19 = sadd.s32 1, %s1064_s19   ;;  %s1240_s15 = smov %s1052_s16 }
 0x137   : > { %p11_p12 = scmp.ge.s32.totalorder %s14_s19, 5   ;;  %s1241_s16 = smov %s1127_s23 }
 0x138   : > { %s1242_s17 = smov %s1060_s18  ;;  %s1243_s18 = smov %s1245_s20 }
 0x139   :  { %13 = sbr.rel (!%p11_p12) target bundleno = 3 (0x3), region = 111 }

// kernel: drnseg_forward.38
= control target key start
LH: loop header
LB: loop body
LE: loop exit
PB: predicated region body
PF: predicated region fallthrough
CT: control target
= control target key end

     0   :  { %s1180_s18 = smov 0   ;;  %s1182_s19 = smov 0   ;;  %s1329_s0 = inlined_call_operand.vmem [shape: bf16[16,1536], index: 0, kind: input, shape index: {}]   ;;  %s1330_s1 = inlined_call_operand.vmem [shape: bf16[1536,128], index: 1, kind: input, shape index: {}]   ;;  %s1331_s2 = inlined_call_operand.vmem [shape: f32[1,128], index: 2, kind: input, shape index: {}]   ;;  %s1332_s3 = inlined_call_operand.vmem [shape: f32[1,128], index: 3, kind: input, shape index: {}]   ;;  %s1333_s4 = inlined_call_operand.vmem [shape: f32[16,128], index: 4, kind: input, shape index: {}]   ;;  %s1334_s5 = inlined_call_operand.vmem [shape: f32[16,128], index: 5, kind: output, shape index: {}]  }
   0x1   :  { %s1184_s20 = smov 0   ;;  %s1186_s21 = smov 0  }
   0x2   :  { %s1188_s22 = smov 0  }
   0x3 LB: > { %s27_s23 = sadd.s32 1, %s1143_s21  ;;  %p50_p1 = scmp.ne.s32.totalorder %s1135_s19, %s1131_s18  ;;  %s1147_s22 = sphi %s1188_s22, %s15_s22   ;;  %s1143_s21 = sphi %s1186_s21, %s1338_s21   ;;  %s1139_s20 = sphi %s1184_s20, %s1337_s20   ;;  %s1135_s19 = sphi %s1182_s19, %s1336_s19   ;;  %s1131_s18 = sphi %s1180_s18, %s1335_s18  }
   0x4   : > { %p28_p0 = scmp.ge.s32.totalorder %s27_s23, 3  ;;  %p51_p2 = scmp.eq.s32.totalorder %s1147_s22, 0 }
   0x5   : > { %s43_s25 = sadd.s32 1, %s1135_s19  ;;  %p933_p5 = scmp.ge.s32.totalorder %s1147_s22, 3 }
   0x6   : > { %s1340_s23 = smov (%p28_p0, %s27_s23), 0  ;;  %p52_p3 = por %p51_p2, %p50_p1 }
   0x7   : > { %s39_s24 = ssub.s32 %s1143_s21, %s1340_s23  ;;  %236 = sbr.rel (%p933_p5) target bundleno = 21 (0x15), region = 28 }
   0x8   : > { %p41_p4 = scmp.eq.s32.totalorder %s39_s24, 0 }
   0xa   : > { %s1215_s26 = scalar_select %p41_p4, %s1135_s19, %s43_s25  }
   0xe   : > { %239 = sbr.rel (!%p52_p3) target bundleno = 21 (0x15), region = 32  ;;  %s241_s27 = sand.u32 (%p52_p3), 1, %s1135_s19  }
   0xf   : > { %s985_s28 = sshll.u32 (%p52_p3), %s1143_s21, 4  ;;  %s934_s29 = sshll.u32 (%p52_p3), %s241_s27, 5 }
  0x10   : > { %s249_s7 = scalar_lea.vmem (%p52_p3), %s1329_s0, %s985_s28  ;;  %s243_s8 = scalar_lea.vmem (%p52_p3), [#allocation2], %s934_s29 }
  0x11   : > { %v262_v0 = vld [vmem:[%s249_s7] sm:$0xff] (%p52_p3)  ;;  %v264_v1 = vld [vmem:[%s249_s7 + $0x8] sm:$0xff] (%p52_p3)  ;;  %v266_v2 = vld [vmem:[%s249_s7 + $0x30] sm:$0xff] (%p52_p3) }
  0x12   : > { %263 = vst [vmem:[%s243_s8] sm:$0xff] (%p52_p3), %v262_v0  ;;  %265 = vst [vmem:[%s243_s8 + $0x8] sm:$0xff] (%p52_p3), %v264_v1  ;;  %v268_v3 = vld [vmem:[%s249_s7 + $0x38] sm:$0xff] (%p52_p3) }
  0x13   : > { %267 = vst [vmem:[%s243_s8 + $0x10] sm:$0xff] (%p52_p3), %v266_v2  ;;  %269 = vst [vmem:[%s243_s8 + $0x18] sm:$0xff] (%p52_p3), %v268_v3 }
  0x15 PF: > { %p937_p6 = scmp.ge.s32.totalorder %s1147_s22, 1  ;;  %p286_p7 = scmp.lt.s32.totalorder %s1147_s22, 4 }
  0x17   : > { %p287_p8 = pnand %p937_p6, %p286_p7 }
  0x18   : > { %s293_s9 = sand.u32 (!%p287_p8), 1, %s1131_s18   ;;  %s939_s10 = sshll.u32 (!%p287_p8), %s1139_s20, 6 }
  0x19   : > { %290 = sbr.rel (%p287_p8) target bundleno = 312 (0x138), region = 59  ;;  %s938_s11 = sshll.u32 (!%p287_p8), %s293_s9, 5 }
  0x1a   : > { %p348_p9 = scmp.lt.s32.totalorder (!%p287_p8), %s939_s10, 191  ;;  %s1232_s16 = scalar_lea.vmem (!%p287_p8), [#allocation2], %s938_s11 }
  0x1b   : > { %p941_p10 = scmp.ne.s32.totalorder (!%p287_p8), %s1139_s20, 0 }
  0x20   : > { %s1342_s10 = smov (!%p348_p9, %s939_s10), 191  ;;  %384 = sbr.rel (%p941_p10) target bundleno = 39 (0x27), region = 67 }
  0x21   : > { %s940_s12 = sshll.u32 %s1342_s10, 2  ;;  %v1149_v4 = vmov (!%p941_p10), 0.0  }
  0x22   : > { %s1230_s15 = scalar_lea.vmem %s1330_s1, %s940_s12  ;;  %385 = vst [vmem:[%s1334_s5] sm:$0xff] (!%p941_p10), %v1149_v4  ;;  %386 = vst [vmem:[%s1334_s5 + $0x8] sm:$0xff] (!%p941_p10), %v1149_v4 }
  0x27 PF: > { %v1071_v5 = vld [vmem:[%s1230_s15 + $0x40] sm:$0xff]   ;;  %v1075_v9 = vld [vmem:[%s1230_s15 + $0x48] sm:$0xff]   ;;  %v1079_v13 = vld [vmem:[%s1230_s15 + $0x50] sm:$0xff]   ;;  %p978_p11 = scmp.ne.s32.totalorder %s1139_s20, 2 }
  0x28   : > { %v1072_v6 = vld [vmem:[%s1230_s15 + $0xc0] sm:$0xff]   ;;  %986 = vmatprep.subr.bf16.mxu0 %v1071_v5  ;;  %v1076_v10 = vld [vmem:[%s1230_s15 + $0xc8] sm:$0xff]   ;;  %v1080_v14 = vld [vmem:[%s1230_s15 + $0xd0] sm:$0xff]  }
  0x29   : > { %v1073_v7 = vld [vmem:[%s1230_s15] sm:$0xff]   ;;  %1008 = vmatprep.subr.bf16.mxu1 %v1072_v6  ;;  %v1077_v11 = vld [vmem:[%s1230_s15 + $0x8] sm:$0xff]   ;;  %v1081_v15 = vld [vmem:[%s1230_s15 + $0x10] sm:$0xff]  }
  0x2a   : > { %v1074_v8 = vld [vmem:[%s1230_s15 + $0x80] sm:$0xff]   ;;  %987 = vmatpush3.bf16.msra.mxu0 %v1073_v7  ;;  %v1078_v12 = vld [vmem:[%s1230_s15 + $0x88] sm:$0xff]   ;;  %v1082_v16 = vld [vmem:[%s1230_s15 + $0x90] sm:$0xff]  }
  0x2b   : > { %1009 = vmatpush3.bf16.msra.mxu1 %v1074_v8  ;;  %988 = vmatprep.subr.bf16.mxu0 %v1075_v9  ;;  %v1083_v17 = vld [vmem:[%s1230_s15 + $0x58] sm:$0xff]   ;;  %v1087_v21 = vld [vmem:[%s1230_s15 + $0x60] sm:$0xff]   ;;  %v1091_v25 = vld [vmem:[%s1230_s15 + $0x68] sm:$0xff]  }
  0x2c   : > { %1010 = vmatprep.subr.bf16.mxu1 %v1076_v10  ;;  %v1084_v18 = vld [vmem:[%s1230_s15 + $0xd8] sm:$0xff]   ;;  %v1088_v22 = vld [vmem:[%s1230_s15 + $0xe0] sm:$0xff]   ;;  %v1092_v26 = vld [vmem:[%s1230_s15 + $0xe8] sm:$0xff]  }
  0x2d   : > { %v1085_v19 = vld [vmem:[%s1230_s15 + $0x18] sm:$0xff]   ;;  %v1089_v23 = vld [vmem:[%s1230_s15 + $0x20] sm:$0xff]   ;;  %v1093_v27 = vld [vmem:[%s1230_s15 + $0x28] sm:$0xff]  }
  0x2e   : > { %989 = vmatpush3.bf16.msra.mxu0 %v1077_v11  ;;  %v1086_v20 = vld [vmem:[%s1230_s15 + $0x98] sm:$0xff]   ;;  %v1090_v24 = vld [vmem:[%s1230_s15 + $0xa0] sm:$0xff]   ;;  %v1094_v28 = vld [vmem:[%s1230_s15 + $0xa8] sm:$0xff]  }
  0x2f   : > { %1011 = vmatpush3.bf16.msra.mxu1 %v1078_v12  ;;  %990 = vmatprep.subr.bf16.mxu0 %v1079_v13  ;;  %v1095_v29 = vld [vmem:[%s1230_s15 + $0x70] sm:$0xff]   ;;  %v1099_v33 = vld [vmem:[%s1230_s15 + $0x78] sm:$0xff]   ;;  %v387_v50 = vld [vmem:[%s1334_s5] sm:$0xff] }
  0x30   : > { %1012 = vmatprep.subr.bf16.mxu1 %v1080_v14  ;;  %v1096_v30 = vld [vmem:[%s1230_s15 + $0xf0] sm:$0xff]   ;;  %v1100_v34 = vld [vmem:[%s1230_s15 + $0xf8] sm:$0xff]   ;;  %v388_v55 = vld [vmem:[%s1334_s5 + $0x8] sm:$0xff] }
  0x31   : > { %v1097_v31 = vld [vmem:[%s1230_s15 + $0x30] sm:$0xff]   ;;  %v1101_v35 = vld [vmem:[%s1230_s15 + $0x38] sm:$0xff]   ;;  %v979_v60 = vld [vmem:[%s1331_s2] ss:$0 sm:$0xff] (!%p978_p11) }
  0x32   : > { %991 = vmatpush3.bf16.msra.mxu0 %v1081_v15  ;;  %v1098_v32 = vld [vmem:[%s1230_s15 + $0xb0] sm:$0xff]   ;;  %v1102_v36 = vld [vmem:[%s1230_s15 + $0xb8] sm:$0xff]   ;;  %v980_v61 = vld [vmem:[%s1332_s3] ss:$0 sm:$0xff] (!%p978_p11) }
  0x33   : > { %1013 = vmatpush3.bf16.msra.mxu1 %v1082_v16  ;;  %992 = vmatprep.subr.bf16.mxu0 %v1083_v17  ;;  %v1103_v37 = vld [vmem:[%s1232_s16] ss:$16 sps:$4 sm:$0xff]   ;;  %v1105_v38 = vld [vmem:[%s1232_s16 + $0x4] ss:$16 sps:$4 sm:$0xff]   ;;  %v1106_v39 = vld [vmem:[%s1232_s16 + $0x8] ss:$16 sps:$4 sm:$0xff]  }
  0x34   : > { %1014 = vmatprep.subr.bf16.mxu1 %v1084_v18  ;;  %v1108_v40 = vld [vmem:[%s1232_s16 + $0xc] ss:$16 sps:$4 sm:$0xff]   ;;  %701 = vmatprep.mubr.bf16.mxu0 %v1105_v38  ;;  %v779_v0 = vld [vmem:[%s1333_s4] sm:$0xff] (!%p978_p11) }
  0x35   : > { %742 = vmatprep.mubr.bf16.mxu1 %v1108_v40  ;;  %v780_v3 = vld [vmem:[%s1333_s4 + $0x8] sm:$0xff] (!%p978_p11) }
  0x36   : > { %993 = vmatpush3.bf16.msra.mxu0 %v1085_v19 }
  0x37   : > { %1015 = vmatpush3.bf16.msra.mxu1 %v1086_v20  ;;  %994 = vmatprep.subr.bf16.mxu0 %v1087_v21 }
  0x38   : > { %1016 = vmatprep.subr.bf16.mxu1 %v1088_v22 }
  0x3a   : > { %995 = vmatpush3.bf16.msra.mxu0 %v1089_v23 }
  0x3b   : > { %1017 = vmatpush3.bf16.msra.mxu1 %v1090_v24  ;;  %996 = vmatprep.subr.bf16.mxu0 %v1091_v25 }
  0x3c   : > { %1018 = vmatprep.subr.bf16.mxu1 %v1092_v26 }
  0x3e   : > { %997 = vmatpush3.bf16.msra.mxu0 %v1093_v27 }
  0x3f   : > { %1019 = vmatpush3.bf16.msra.mxu1 %v1094_v28  ;;  %998 = vmatprep.subr.bf16.mxu0 %v1095_v29 }
  0x40   : > { %1020 = vmatprep.subr.bf16.mxu1 %v1096_v30 }
  0x42   : > { %999 = vmatpush3.bf16.msra.mxu0 %v1097_v31 }
  0x43   : > { %1021 = vmatpush3.bf16.msra.mxu1 %v1098_v32  ;;  %1000 = vmatprep.subr.bf16.mxu0 %v1099_v33 }
  0x44   : > { %1022 = vmatprep.subr.bf16.mxu1 %v1100_v34 }
  0x46   : > { %1001 = vmatpush3.bf16.msra.mxu0 %v1101_v35 }
  0x47   : > { %1023 = vmatpush3.bf16.msra.mxu1 %v1102_v36 }
  0x49   : > { %702 = vmatmul.mubr.bf16.vlgmr.msra.gmra.mrb[0].mxu0 %v1103_v37 }
  0x4a   : > { %743 = vmatmul.mubr.bf16.vlgmr.msra.gmra.mrb[0].mxu1 %v1106_v39 }
 0x11c   : > { %v1002_v41 = vpop.f32.mrb[0].mxu0 }
 0x11d   : > { %v1024_v42 = vpop.f32.mrb[0].mxu1  ;;  %v1003_v43 = vpop.f32.mrb[1].mxu0 }
 0x11e   : > { %v1004_v44 = vadd.f32 %v1003_v43, %v1002_v41  ;;  %v1025_v45 = vpop.f32.mrb[1].mxu1  ;;  %v1005_v46 = vpop.f32.mrb[2].mxu0 }
 0x11f   : > { %v1026_v47 = vadd.f32 %v1025_v45, %v1024_v42  ;;  %v1027_v48 = vpop.f32.mrb[2].mxu1  ;;  %v1006_v49 = vpop.f32.mrb[3].mxu0 }
 0x120   : > { %v1007_v51 = vadd.f32 %v1006_v49, %v1005_v46  ;;  %v1028_v52 = vpop.f32.mrb[3].mxu1 }
 0x121   : > { %v745_v53 = vadd.f32 %v1026_v47, %v1004_v44  ;;  %v1029_v54 = vadd.f32 %v1028_v52, %v1027_v48  ;;  %758 = sbr.rel (%p978_p11) target bundleno = 312 (0x138), region = 71 }
 0x123   : > { %v751_v56 = vadd.f32 %v745_v53, %v387_v50  ;;  %v748_v57 = vadd.f32 %v1029_v54, %v1007_v51 }
 0x125   : > { %753 = vst [vmem:[%s1334_s5] sm:$0xff] %v751_v56  ;;  %v752_v58 = vadd.f32 %v748_v57, %v388_v55 }
 0x127   : > { %754 = vst [vmem:[%s1334_s5 + $0x8] sm:$0xff] %v752_v58 }
 0x12c   : > { %v759_v59 = vld [vmem:[%s1334_s5] sm:$0xff] }
 0x12d   : > { %v768_v62 = vmul.f32 %v979_v60, %v759_v59 }
 0x12e   : > { %v760_v63 = vld [vmem:[%s1334_s5 + $0x8] sm:$0xff] }
 0x12f   : > { %v769_v1 = vmul.f32 %v979_v60, %v760_v63  ;;  %v777_v2 = vadd.f32 %v980_v61, %v768_v62 }
 0x131   : > { %v778_v4 = vadd.f32 %v980_v61, %v769_v1  ;;  %v781_v5 = vadd.f32 %v779_v0, %v777_v2 }
 0x133   : > { %v782_v6 = vadd.f32 %v780_v3, %v778_v4  ;;  %v783_v7 = vmax.f32 %v781_v5, 0.0 }
 0x135   : > { %v784_v8 = vmax.f32 %v782_v6, 0.0  ;;  %785 = vst [vmem:[%s1334_s5] sm:$0xff] %v783_v7 }
 0x137   : > { %786 = vst [vmem:[%s1334_s5 + $0x8] sm:$0xff] %v784_v8 }
 0x138 PF: > { %s15_s22 = sadd.s32 1, %s1147_s22   ;;  %s1335_s18 = smov %s1135_s19 }
 0x139   : > { %p12_p12 = scmp.ge.s32.totalorder %s15_s22, 5   ;;  %s1336_s19 = smov %s1215_s26 }
 0x13a   : > { %s1337_s20 = smov %s1143_s21  ;;  %s1338_s21 = smov %s1340_s23 }
 0x13b   :  { %14 = sbr.rel (!%p12_p12) target bundleno = 3 (0x3), region = 118 }

// kernel: drnseg_forward.41
= control target key start
LH: loop header
LB: loop body
LE: loop exit
PB: predicated region body
PF: predicated region fallthrough
CT: control target
= control target key end

     0   :  { %s1342_s15 = smov 0   ;;  %s1344_s16 = smov 0   ;;  %s1547_s0 = inlined_call_operand.vmem [shape: bf16[16,1536], index: 0, kind: input, shape index: {}]   ;;  %s1548_s1 = inlined_call_operand.vmem [shape: bf16[1536,256], index: 1, kind: input, shape index: {}]   ;;  %s1549_s2 = inlined_call_operand.vmem [shape: f32[1,256], index: 2, kind: input, shape index: {}]   ;;  %s1550_s3 = inlined_call_operand.vmem [shape: f32[1,256], index: 3, kind: input, shape index: {}]   ;;  %s1551_s4 = inlined_call_operand.vmem [shape: f32[16,256], index: 4, kind: output, shape index: {}]  }
   0x1   :  { %s1346_s17 = smov 0   ;;  %s1348_s18 = smov 0  }
   0x2   :  { %s1350_s19 = smov 0  }
   0x3 LB: > { %s26_s20 = sadd.s32 1, %s1310_s18  ;;  %p49_p1 = scmp.ne.s32.totalorder %s1302_s16, %s1298_s15  ;;  %s1314_s19 = sphi %s1350_s19, %s14_s19   ;;  %s1310_s18 = sphi %s1348_s18, %s1555_s18   ;;  %s1306_s17 = sphi %s1346_s17, %s1554_s17   ;;  %s1302_s16 = sphi %s1344_s16, %s1553_s16   ;;  %s1298_s15 = sphi %s1342_s15, %s1552_s15  }
   0x4   : > { %p27_p0 = scmp.ge.s32.totalorder %s26_s20, 3  ;;  %p50_p2 = scmp.eq.s32.totalorder %s1314_s19, 0 }
   0x5   : > { %s42_s22 = sadd.s32 1, %s1302_s16  ;;  %p1044_p5 = scmp.ge.s32.totalorder %s1314_s19, 3 }
   0x6   : > { %s1557_s20 = smov (%p27_p0, %s26_s20), 0  ;;  %p51_p3 = por %p50_p2, %p49_p1 }
   0x7   : > { %s38_s21 = ssub.s32 %s1310_s18, %s1557_s20  ;;  %199 = sbr.rel (%p1044_p5) target bundleno = 21 (0x15), region = 24 }
   0x8   : > { %p40_p4 = scmp.eq.s32.totalorder %s38_s21, 0 }
   0xa   : > { %s1377_s23 = scalar_select %p40_p4, %s1302_s16, %s42_s22  }
   0xe   : > { %202 = sbr.rel (!%p51_p3) target bundleno = 21 (0x15), region = 28  ;;  %s204_s24 = sand.u32 (%p51_p3), 1, %s1302_s16  }
   0xf   : > { %s1127_s25 = sshll.u32 (%p51_p3), %s1310_s18, 4  ;;  %s1045_s26 = sshll.u32 (%p51_p3), %s204_s24, 5 }
  0x10   : > { %s212_s29 = scalar_lea.vmem (%p51_p3), %s1547_s0, %s1127_s25  ;;  %s206_s30 = scalar_lea.vmem (%p51_p3), [#allocation2], %s1045_s26 }
  0x11   : > { %v225_v0 = vld [vmem:[%s212_s29] sm:$0xff] (%p51_p3)  ;;  %v227_v1 = vld [vmem:[%s212_s29 + $0x8] sm:$0xff] (%p51_p3)  ;;  %v229_v2 = vld [vmem:[%s212_s29 + $0x30] sm:$0xff] (%p51_p3) }
  0x12   : > { %226 = vst [vmem:[%s206_s30] sm:$0xff] (%p51_p3), %v225_v0  ;;  %228 = vst [vmem:[%s206_s30 + $0x8] sm:$0xff] (%p51_p3), %v227_v1  ;;  %v231_v3 = vld [vmem:[%s212_s29 + $0x38] sm:$0xff] (%p51_p3) }
  0x13   : > { %230 = vst [vmem:[%s206_s30 + $0x10] sm:$0xff] (%p51_p3), %v229_v2  ;;  %232 = vst [vmem:[%s206_s30 + $0x18] sm:$0xff] (%p51_p3), %v231_v3 }
  0x15 PF: > { %p1048_p6 = scmp.ge.s32.totalorder %s1314_s19, 1  ;;  %p252_p7 = scmp.lt.s32.totalorder %s1314_s19, 4 }
  0x17   : > { %p253_p8 = pnand %p1048_p6, %p252_p7 }
  0x18   : > { %s259_s5 = sand.u32 (!%p253_p8), 1, %s1298_s15   ;;  %s1050_s6 = sshll.u32 (!%p253_p8), %s1306_s17, 6 }
  0x19   : > { %256 = sbr.rel (%p253_p8) target bundleno = 339 (0x153), region = 55  ;;  %s1049_s7 = sshll.u32 (!%p253_p8), %s259_s5, 5 }
  0x1a   : > { %p311_p9 = scmp.lt.s32.totalorder (!%p253_p8), %s1050_s6, 191  ;;  %s1394_s12 = scalar_lea.vmem (!%p253_p8), [#allocation2], %s1049_s7 }
  0x1b   : > { %p1053_p10 = scmp.ne.s32.totalorder (!%p253_p8), %s1306_s17, 0 }
  0x20   : > { %s1559_s6 = smov (!%p311_p9, %s1050_s6), 191  ;;  %346 = sbr.rel (%p1053_p10) target bundleno = 39 (0x27), region = 63 }
  0x21   : > { %s1128_s8 = sshll.u32 %s1559_s6, 3  ;;  %v1316_v4 = vmov (!%p1053_p10), 0.0  }
  0x22   : > { %s1392_s11 = scalar_lea.vmem %s1548_s1, %s1128_s8  ;;  %347 = vst [vmem:[%s1551_s4] sm:$0xff] (!%p1053_p10), %v1316_v4  ;;  %348 = vst [vmem:[%s1551_s4 + $0x8] sm:$0xff] (!%p1053_p10), %v1316_v4 }
  0x23   : > { %349 = vst [vmem:[%s1551_s4 + $0x10] sm:$0xff] (!%p1053_p10), %v1316_v4  ;;  %350 = vst [vmem:[%s1551_s4 + $0x18] sm:$0xff] (!%p1053_p10), %v1316_v4 }
  0x27 PF: > { %v1174_v5 = vld [vmem:[%s1392_s11 + $0x4] ss:$8 sps:$4 sm:$0xff]   ;;  %v1178_v7 = vld [vmem:[%s1392_s11] ss:$8 sps:$4 sm:$0xff]   ;;  %v1180_v9 = vld [vmem:[%s1392_s11 + $0x14] ss:$8 sps:$4 sm:$0xff]  }
  0x28   : > { %v1176_v6 = vld [vmem:[%s1392_s11 + $0x104] ss:$8 sps:$4 sm:$0xff]   ;;  %763 = vmatprep.subr.bf16.mxu1 %v1174_v5  ;;  %v1179_v8 = vld [vmem:[%s1392_s11 + $0x100] ss:$8 sps:$4 sm:$0xff]   ;;  %v1182_v10 = vld [vmem:[%s1392_s11 + $0x114] ss:$8 sps:$4 sm:$0xff]  }
  0x29   : > { %806 = vmatprep.subr.bf16.mxu0 %v1176_v6  ;;  %764 = vmatpush1.bf16.msra.mxu1 %v1178_v7  ;;  %v1184_v11 = vld [vmem:[%s1392_s11 + $0x10] ss:$8 sps:$4 sm:$0xff]   ;;  %v1186_v13 = vld [vmem:[%s1392_s11 + $0x24] ss:$8 sps:$4 sm:$0xff]   ;;  %v1190_v15 = vld [vmem:[%s1392_s11 + $0x20] ss:$8 sps:$4 sm:$0xff]  }
  0x2a   : > { %807 = vmatpush1.bf16.msra.mxu0 %v1179_v8  ;;  %765 = vmatprep.subr.bf16.mxu1 %v1180_v9  ;;  %v1185_v12 = vld [vmem:[%s1392_s11 + $0x110] ss:$8 sps:$4 sm:$0xff]   ;;  %v1188_v14 = vld [vmem:[%s1392_s11 + $0x124] ss:$8 sps:$4 sm:$0xff]   ;;  %v1191_v16 = vld [vmem:[%s1392_s11 + $0x120] ss:$8 sps:$4 sm:$0xff]  }
  0x2b   : > { %808 = vmatprep.subr.bf16.mxu0 %v1182_v10  ;;  %v1192_v17 = vld [vmem:[%s1392_s11 + $0x34] ss:$8 sps:$4 sm:$0xff]   ;;  %v1196_v19 = vld [vmem:[%s1392_s11 + $0x30] ss:$8 sps:$4 sm:$0xff]   ;;  %v1198_v21 = vld [vmem:[%s1392_s11 + $0x44] ss:$8 sps:$4 sm:$0xff]  }
  0x2c   : > { %v1194_v18 = vld [vmem:[%s1392_s11 + $0x134] ss:$8 sps:$4 sm:$0xff]   ;;  %v1197_v20 = vld [vmem:[%s1392_s11 + $0x130] ss:$8 sps:$4 sm:$0xff]   ;;  %v1200_v22 = vld [vmem:[%s1392_s11 + $0x144] ss:$8 sps:$4 sm:$0xff]  }
  0x2d   : > { %766 = vmatpush1.bf16.msra.mxu1 %v1184_v11  ;;  %v1202_v23 = vld [vmem:[%s1392_s11 + $0x40] ss:$8 sps:$4 sm:$0xff]   ;;  %v1204_v25 = vld [vmem:[%s1392_s11 + $0x54] ss:$8 sps:$4 sm:$0xff]   ;;  %v1208_v27 = vld [vmem:[%s1392_s11 + $0x50] ss:$8 sps:$4 sm:$0xff]  }
  0x2e   : > { %809 = vmatpush1.bf16.msra.mxu0 %v1185_v12  ;;  %767 = vmatprep.subr.bf16.mxu1 %v1186_v13  ;;  %v1203_v24 = vld [vmem:[%s1392_s11 + $0x140] ss:$8 sps:$4 sm:$0xff]   ;;  %v1206_v26 = vld [vmem:[%s1392_s11 + $0x154] ss:$8 sps:$4 sm:$0xff]   ;;  %v1209_v28 = vld [vmem:[%s1392_s11 + $0x150] ss:$8 sps:$4 sm:$0xff]  }
  0x2f   : > { %810 = vmatprep.subr.bf16.mxu0 %v1188_v14  ;;  %v1210_v29 = vld [vmem:[%s1392_s11 + $0x64] ss:$8 sps:$4 sm:$0xff]   ;;  %v1214_v31 = vld [vmem:[%s1392_s11 + $0x60] ss:$8 sps:$4 sm:$0xff]   ;;  %v1216_v33 = vld [vmem:[%s1392_s11 + $0x74] ss:$8 sps:$4 sm:$0xff]  }
  0x30   : > { %v1212_v30 = vld [vmem:[%s1392_s11 + $0x164] ss:$8 sps:$4 sm:$0xff]   ;;  %v1215_v32 = vld [vmem:[%s1392_s11 + $0x160] ss:$8 sps:$4 sm:$0xff]   ;;  %v1218_v34 = vld [vmem:[%s1392_s11 + $0x174] ss:$8 sps:$4 sm:$0xff]  }
  0x31   : > { %768 = vmatpush1.bf16.msra.mxu1 %v1190_v15  ;;  %v1220_v35 = vld [vmem:[%s1392_s11 + $0x70] ss:$8 sps:$4 sm:$0xff]   ;;  %v1222_v37 = vld [vmem:[%s1392_s11 + $0x84] ss:$8 sps:$4 sm:$0xff]   ;;  %v1226_v39 = vld [vmem:[%s1392_s11 + $0x80] ss:$8 sps:$4 sm:$0xff]  }
  0x32   : > { %811 = vmatpush1.bf16.msra.mxu0 %v1191_v16  ;;  %769 = vmatprep.subr.bf16.mxu1 %v1192_v17  ;;  %v1221_v36 = vld [vmem:[%s1392_s11 + $0x170] ss:$8 sps:$4 sm:$0xff]   ;;  %v1224_v38 = vld [vmem:[%s1392_s11 + $0x184] ss:$8 sps:$4 sm:$0xff]   ;;  %v1227_v40 = vld [vmem:[%s1392_s11 + $0x180] ss:$8 sps:$4 sm:$0xff]  }
  0x33   : > { %812 = vmatprep.subr.bf16.mxu0 %v1194_v18  ;;  %v1228_v41 = vld [vmem:[%s1392_s11 + $0x94] ss:$8 sps:$4 sm:$0xff]   ;;  %v1232_v43 = vld [vmem:[%s1392_s11 + $0x90] ss:$8 sps:$4 sm:$0xff]   ;;  %v1234_v45 = vld [vmem:[%s1392_s11 + $0xa4] ss:$8 sps:$4 sm:$0xff]  }
  0x34   : > { %v1230_v42 = vld [vmem:[%s1392_s11 + $0x194] ss:$8 sps:$4 sm:$0xff]   ;;  %v1233_v44 = vld [vmem:[%s1392_s11 + $0x190] ss:$8 sps:$4 sm:$0xff]   ;;  %v1236_v46 = vld [vmem:[%s1392_s11 + $0x1a4] ss:$8 sps:$4 sm:$0xff]  }
  0x35   : > { %770 = vmatpush1.bf16.msra.mxu1 %v1196_v19  ;;  %v1238_v47 = vld [vmem:[%s1392_s11 + $0xa0] ss:$8 sps:$4 sm:$0xff]   ;;  %v1240_v49 = vld [vmem:[%s1392_s11 + $0xb4] ss:$8 sps:$4 sm:$0xff]   ;;  %v1244_v51 = vld [vmem:[%s1392_s11 + $0xb0] ss:$8 sps:$4 sm:$0xff]  }
  0x36   : > { %813 = vmatpush1.bf16.msra.mxu0 %v1197_v20  ;;  %771 = vmatprep.subr.bf16.mxu1 %v1198_v21  ;;  %v1239_v48 = vld [vmem:[%s1392_s11 + $0x1a0] ss:$8 sps:$4 sm:$0xff]   ;;  %v1242_v50 = vld [vmem:[%s1392_s11 + $0x1b4] ss:$8 sps:$4 sm:$0xff]   ;;  %v1245_v53 = vld [vmem:[%s1392_s11 + $0x1b0] ss:$8 sps:$4 sm:$0xff]  }
  0x37   : > { %814 = vmatprep.subr.bf16.mxu0 %v1200_v22  ;;  %v1272_v52 = vld [vmem:[%s1394_s12 + $0x4] ss:$16 sps:$4 sm:$0xff]   ;;  %v1275_v56 = vld [vmem:[%s1394_s12 + $0xc] ss:$16 sps:$4 sm:$0xff]   ;;  %v1250_v57 = vld [vmem:[%s1392_s11 + $0xc0] ss:$8 sps:$4 sm:$0xff]  }
  0x38   : > { %v1246_v54 = vld [vmem:[%s1392_s11 + $0xc4] ss:$8 sps:$4 sm:$0xff]   ;;  %795 = vmatprep.mubr.bf16.mxu1 %v1272_v52  ;;  %838 = vmatprep.mubr.bf16.mxu0 %v1275_v56  ;;  %v1251_v58 = vld [vmem:[%s1392_s11 + $0x1c0] ss:$8 sps:$4 sm:$0xff]   ;;  %v1252_v59 = vld [vmem:[%s1392_s11 + $0xd4] ss:$8 sps:$4 sm:$0xff]  }
  0x39   : > { %772 = vmatpush1.bf16.msra.mxu1 %v1202_v23  ;;  %v1248_v55 = vld [vmem:[%s1392_s11 + $0x1c4] ss:$8 sps:$4 sm:$0xff]   ;;  %v1254_v60 = vld [vmem:[%s1392_s11 + $0x1d4] ss:$8 sps:$4 sm:$0xff]   ;;  %v1256_v61 = vld [vmem:[%s1392_s11 + $0xd0] ss:$8 sps:$4 sm:$0xff]  }
  0x3a   : > { %815 = vmatpush1.bf16.msra.mxu0 %v1203_v24  ;;  %773 = vmatprep.subr.bf16.mxu1 %v1204_v25  ;;  %v1257_v62 = vld [vmem:[%s1392_s11 + $0x1d0] ss:$8 sps:$4 sm:$0xff]   ;;  %v1258_v63 = vld [vmem:[%s1392_s11 + $0xe4] ss:$8 sps:$4 sm:$0xff]   ;;  %v1262_v1 = vld [vmem:[%s1392_s11 + $0xe0] ss:$8 sps:$4 sm:$0xff]  }
  0x3b   : > { %816 = vmatprep.subr.bf16.mxu0 %v1206_v26  ;;  %v1260_v0 = vld [vmem:[%s1392_s11 + $0x1e4] ss:$8 sps:$4 sm:$0xff]   ;;  %v1263_v2 = vld [vmem:[%s1392_s11 + $0x1e0] ss:$8 sps:$4 sm:$0xff]   ;;  %v1264_v3 = vld [vmem:[%s1392_s11 + $0xf4] ss:$8 sps:$4 sm:$0xff]  }
  0x3c   : > { %v1266_v4 = vld [vmem:[%s1392_s11 + $0x1f4] ss:$8 sps:$4 sm:$0xff]   ;;  %v1268_v5 = vld [vmem:[%s1392_s11 + $0xf0] ss:$8 sps:$4 sm:$0xff]   ;;  %v351_v10 = vld [vmem:[%s1551_s4] sm:$0xff]  ;;  %p1122_p11 = scmp.ne.s32.totalorder %s1306_s17, 2 }
  0x3d   : > { %774 = vmatpush1.bf16.msra.mxu1 %v1208_v27  ;;  %v1269_v6 = vld [vmem:[%s1392_s11 + $0x1f0] ss:$8 sps:$4 sm:$0xff]   ;;  %v352_v14 = vld [vmem:[%s1551_s4 + $0x8] sm:$0xff] }
  0x3e   : > { %817 = vmatpush1.bf16.msra.mxu0 %v1209_v28  ;;  %775 = vmatprep.subr.bf16.mxu1 %v1210_v29  ;;  %v1270_v7 = vld [vmem:[%s1394_s12] ss:$16 sps:$4 sm:$0xff]   ;;  %v1273_v8 = vld [vmem:[%s1394_s12 + $0x8] ss:$16 sps:$4 sm:$0xff]   ;;  %v867_v29 = vlaneseq (!%p1122_p11) }
  0x3f   : > { %818 = vmatprep.subr.bf16.mxu0 %v1212_v30  ;;  %v353_v18 = vld [vmem:[%s1551_s4 + $0x10] sm:$0xff]  ;;  %v354_v23 = vld [vmem:[%s1551_s4 + $0x18] sm:$0xff] }
  0x40   : > { %v868_v30 = vshrl.u32 (!%p1122_p11), %v867_v29, 7 }
  0x41   : > { %776 = vmatpush1.bf16.msra.mxu1 %v1214_v31  ;;  %v865_v31 = vld [vmem:[%s1549_s2] sm:$0x3] (!%p1122_p11) }
  0x42   : > { %819 = vmatpush1.bf16.msra.mxu0 %v1215_v32  ;;  %777 = vmatprep.subr.bf16.mxu1 %v1216_v33  ;;  %v881_v32 = vld [vmem:[%s1550_s3] sm:$0x3] (!%p1122_p11) }
  0x43   : > { %820 = vmatprep.subr.bf16.mxu0 %v1218_v34  ;;  %v869_v34 = vsub.s32 (!%p1122_p11), 0, %v868_v30 }
  0x45   : > { %778 = vmatpush1.bf16.msra.mxu1 %v1220_v35  ;;  %v873_v35 = vsub.s32 (!%p1122_p11), 1, %v868_v30 }
  0x46   : > { %821 = vmatpush1.bf16.msra.mxu0 %v1221_v36  ;;  %779 = vmatprep.subr.bf16.mxu1 %v1222_v37 }
  0x47   : > { %822 = vmatprep.subr.bf16.mxu0 %v1224_v38 }
  0x49   : > { %780 = vmatpush1.bf16.msra.mxu1 %v1226_v39  ;;  %v870_v39 = vrot.slane (!%p1122_p11), %v865_v31, %v869_v34 }
  0x4a   : > { %823 = vmatpush1.bf16.msra.mxu0 %v1227_v40  ;;  %781 = vmatprep.subr.bf16.mxu1 %v1228_v41  ;;  %v886_v40 = vrot.slane (!%p1122_p11), %v881_v32, %v869_v34  ;;  %v874_v41 = vrot.slane (!%p1122_p11), %v865_v31, %v873_v35 }
  0x4b   : > { %824 = vmatprep.subr.bf16.mxu0 %v1230_v42  ;;  %v890_v42 = vrot.slane (!%p1122_p11), %v881_v32, %v873_v35 }
  0x4d   : > { %782 = vmatpush1.bf16.msra.mxu1 %v1232_v43 }
  0x4e   : > { %825 = vmatpush1.bf16.msra.mxu0 %v1233_v44  ;;  %783 = vmatprep.subr.bf16.mxu1 %v1234_v45 }
  0x4f   : > { %826 = vmatprep.subr.bf16.mxu0 %v1236_v46 }
  0x51   : > { %784 = vmatpush1.bf16.msra.mxu1 %v1238_v47 }
  0x52   : > { %827 = vmatpush1.bf16.msra.mxu0 %v1239_v48  ;;  %785 = vmatprep.subr.bf16.mxu1 %v1240_v49 }
  0x53   : > { %828 = vmatprep.subr.bf16.mxu0 %v1242_v50 }
  0x55   : > { %786 = vmatpush1.bf16.msra.mxu1 %v1244_v51 }
  0x56   : > { %829 = vmatpush1.bf16.msra.mxu0 %v1245_v53  ;;  %787 = vmatprep.subr.bf16.mxu1 %v1246_v54 }
  0x57   : > { %830 = vmatprep.subr.bf16.mxu0 %v1248_v55 }
  0x59   : > { %788 = vmatpush1.bf16.msra.mxu1 %v1250_v57 }
  0x5a   : > { %831 = vmatpush1.bf16.msra.mxu0 %v1251_v58  ;;  %789 = vmatprep.subr.bf16.mxu1 %v1252_v59 }
  0x5b   : > { %832 = vmatprep.subr.bf16.mxu0 %v1254_v60 }
  0x5d   : > { %790 = vmatpush1.bf16.msra.mxu1 %v1256_v61 }
  0x5e   : > { %833 = vmatpush1.bf16.msra.mxu0 %v1257_v62  ;;  %791 = vmatprep.subr.bf16.mxu1 %v1258_v63 }
  0x5f   : > { %834 = vmatprep.subr.bf16.mxu0 %v1260_v0 }
  0x61   : > { %792 = vmatpush1.bf16.msra.mxu1 %v1262_v1 }
  0x62   : > { %835 = vmatpush1.bf16.msra.mxu0 %v1263_v2  ;;  %793 = vmatprep.subr.bf16.mxu1 %v1264_v3 }
  0x63   : > { %836 = vmatprep.subr.bf16.mxu0 %v1266_v4 }
  0x65   : > { %794 = vmatpush1.bf16.msra.mxu1 %v1268_v5 }
  0x66   : > { %837 = vmatpush1.bf16.msra.mxu0 %v1269_v6 }
  0x68   : > { %796 = vmatmul.mubr.bf16.vlgmr.msra.gmra.mrb[0].mxu1 %v1270_v7 }
  0x69   : > { %839 = vmatmul.mubr.bf16.vlgmr.msra.gmra.mrb[0].mxu0 %v1273_v8 }
 0x13b   : > { %v797_v9 = vpop.f32.mrb[0].mxu1 }
 0x13c   : > { %v840_v11 = vpop.f32.mrb[0].mxu0  ;;  %v799_v13 = vpop.f32.mrb[1].mxu1 }
 0x13d   : > { %v841_v12 = vadd.f32 %v840_v11, %v797_v9  ;;  %v842_v15 = vpop.f32.mrb[1].mxu0  ;;  %v801_v17 = vpop.f32.mrb[2].mxu1 }
 0x13e   : > { %v843_v16 = vadd.f32 %v842_v15, %v799_v13  ;;  %v844_v19 = vpop.f32.mrb[2].mxu0  ;;  %v803_v22 = vpop.f32.mrb[3].mxu1  ;;  %860 = sbr.rel (%p1122_p11) target bundleno = 339 (0x153), region = 67 }
 0x13f   : > { %v849_v20 = vadd.f32 %v841_v12, %v351_v10  ;;  %v845_v21 = vadd.f32 %v844_v19, %v801_v17  ;;  %v846_v24 = vpop.f32.mrb[3].mxu0 }
 0x140   : > { %v850_v25 = vadd.f32 %v843_v16, %v352_v14  ;;  %v847_v26 = vadd.f32 %v846_v24, %v803_v22 }
 0x141   : > { %853 = vst [vmem:[%s1551_s4] sm:$0xff] %v849_v20  ;;  %v851_v27 = vadd.f32 %v845_v21, %v353_v18 }
 0x142   : > { %854 = vst [vmem:[%s1551_s4 + $0x8] sm:$0xff] %v850_v25  ;;  %v852_v28 = vadd.f32 %v847_v26, %v354_v23 }
 0x143   : > { %855 = vst [vmem:[%s1551_s4 + $0x10] sm:$0xff] %v851_v27 }
 0x144   : > { %856 = vst [vmem:[%s1551_s4 + $0x18] sm:$0xff] %v852_v28 }
 0x148   : > { %v861_v33 = vld [vmem:[%s1551_s4] sm:$0xff] }
 0x149   : > { %v862_v36 = vld [vmem:[%s1551_s4 + $0x8] sm:$0xff]  ;;  %v877_v43 = vmul.f32 %v870_v39, %v861_v33 }
 0x14a   : > { %v863_v37 = vld [vmem:[%s1551_s4 + $0x10] sm:$0xff]  ;;  %v878_v44 = vmul.f32 %v874_v41, %v862_v36 }
 0x14b   : > { %v864_v38 = vld [vmem:[%s1551_s4 + $0x18] sm:$0xff]  ;;  %v879_v45 = vmul.f32 %v870_v39, %v863_v37  ;;  %v893_v47 = vadd.f32 %v886_v40, %v877_v43 }
 0x14c   : > { %v880_v46 = vmul.f32 %v874_v41, %v864_v38  ;;  %v894_v48 = vadd.f32 %v890_v42, %v878_v44 }
 0x14d   : > { %v895_v49 = vadd.f32 %v886_v40, %v879_v45  ;;  %v897_v51 = vmax.f32 %v893_v47, 0.0 }
 0x14e   : > { %v896_v50 = vadd.f32 %v890_v42, %v880_v46  ;;  %v898_v52 = vmax.f32 %v894_v48, 0.0 }
 0x14f   : > { %v899_v53 = vmax.f32 %v895_v49, 0.0  ;;  %901 = vst [vmem:[%s1551_s4] sm:$0xff] %v897_v51 }
 0x150   : > { %v900_v54 = vmax.f32 %v896_v50, 0.0  ;;  %902 = vst [vmem:[%s1551_s4 + $0x8] sm:$0xff] %v898_v52 }
 0x151   : > { %903 = vst [vmem:[%s1551_s4 + $0x10] sm:$0xff] %v899_v53 }
 0x152   : > { %904 = vst [vmem:[%s1551_s4 + $0x18] sm:$0xff] %v900_v54 }
 0x153 PF: > { %s14_s19 = sadd.s32 1, %s1314_s19   ;;  %s1552_s15 = smov %s1302_s16 }
 0x154   : > { %p11_p12 = scmp.ge.s32.totalorder %s14_s19, 5   ;;  %s1553_s16 = smov %s1377_s23 }
 0x155   : > { %s1554_s17 = smov %s1310_s18  ;;  %s1555_s18 = smov %s1557_s20 }
 0x156   :  { %13 = sbr.rel (!%p11_p12) target bundleno = 3 (0x3), region = 111 }

// kernel: drnseg_forward.42
= control target key start
LH: loop header
LB: loop body
LE: loop exit
PB: predicated region body
PF: predicated region fallthrough
CT: control target
= control target key end

     0   :  { %v276_v1 = vmov 0   ;;  %v194_v18 = vlaneseq  ;;  %s371_s1 = inlined_call_operand.vmem [shape: bf16[128,256], index: 1, kind: input, shape index: {}]   ;;  %s372_s0 = inlined_call_operand.vmem [shape: bf16[16,128], index: 0, kind: input, shape index: {}]   ;;  %s373_s2 = inlined_call_operand.vmem [shape: f32[1,256], index: 2, kind: input, shape index: {}]   ;;  %s374_s3 = inlined_call_operand.vmem [shape: f32[1,256], index: 3, kind: input, shape index: {}]   ;;  %s375_s4 = inlined_call_operand.vmem [shape: f32[16,256], index: 4, kind: output, shape index: {}]  }
   0x1   :  { %v251_v0 = vld [vmem:[%s371_s1 + $0x4] ss:$8 sps:$4 sm:$0xff]   ;;  %166 = vmatprep.mubr.bf16.mxu0 %v276_v1  ;;  %v253_v2 = vld [vmem:[%s371_s1] ss:$8 sps:$4 sm:$0xff]   ;;  %v254_v3 = vld [vmem:[%s371_s1 + $0x14] ss:$8 sps:$4 sm:$0xff]  }
   0x2   :  { %134 = vmatprep.subr.bf16.mxu0 %v251_v0  ;;  %v256_v4 = vld [vmem:[%s371_s1 + $0x10] ss:$8 sps:$4 sm:$0xff]   ;;  %v257_v5 = vld [vmem:[%s371_s1 + $0x24] ss:$8 sps:$4 sm:$0xff]   ;;  %v259_v6 = vld [vmem:[%s371_s1 + $0x20] ss:$8 sps:$4 sm:$0xff]  }
   0x3   :  { %135 = vmatpush1.bf16.msra.mxu0 %v253_v2  ;;  %v260_v7 = vld [vmem:[%s371_s1 + $0x34] ss:$8 sps:$4 sm:$0xff]   ;;  %v262_v8 = vld [vmem:[%s371_s1 + $0x30] ss:$8 sps:$4 sm:$0xff]   ;;  %v263_v9 = vld [vmem:[%s371_s1 + $0x44] ss:$8 sps:$4 sm:$0xff]  }
   0x4   :  { %136 = vmatprep.subr.bf16.mxu0 %v254_v3  ;;  %v265_v10 = vld [vmem:[%s371_s1 + $0x40] ss:$8 sps:$4 sm:$0xff]   ;;  %v266_v11 = vld [vmem:[%s371_s1 + $0x54] ss:$8 sps:$4 sm:$0xff]   ;;  %v268_v12 = vld [vmem:[%s371_s1 + $0x50] ss:$8 sps:$4 sm:$0xff]  }
   0x5   :  { %v269_v13 = vld [vmem:[%s371_s1 + $0x64] ss:$8 sps:$4 sm:$0xff]   ;;  %v271_v14 = vld [vmem:[%s371_s1 + $0x60] ss:$8 sps:$4 sm:$0xff]   ;;  %v272_v15 = vld [vmem:[%s371_s1 + $0x74] ss:$8 sps:$4 sm:$0xff]  }
   0x6   :  { %v274_v16 = vld [vmem:[%s371_s1 + $0x70] ss:$8 sps:$4 sm:$0xff]   ;;  %v275_v17 = vld [vmem:[%s372_s0] sm:$0xff]   ;;  %v195_v19 = vshrl.u32 %v194_v18, 7 }
   0x7   :  { %137 = vmatpush1.bf16.msra.mxu0 %v256_v4  ;;  %v192_v21 = vld [vmem:[%s373_s2] sm:$0x3] }
   0x8   :  { %138 = vmatprep.subr.bf16.mxu0 %v257_v5  ;;  %v196_v20 = vsub.s32 0, %v195_v19  ;;  %v200_v22 = vsub.s32 1, %v195_v19  ;;  %v208_v23 = vld [vmem:[%s374_s3] sm:$0x3] }
   0xa   :  { %v197_v24 = vrot.slane %v192_v21, %v196_v20  ;;  %v201_v26 = vrot.slane %v192_v21, %v200_v22  ;;  %v213_v27 = vrot.slane %v208_v23, %v196_v20  ;;  %v217_v29 = vrot.slane %v208_v23, %v200_v22 }
   0xb   :  { %139 = vmatpush1.bf16.msra.mxu0 %v259_v6 }
   0xc   :  { %140 = vmatprep.subr.bf16.mxu0 %v260_v7 }
   0xf   :  { %141 = vmatpush1.bf16.msra.mxu0 %v262_v8 }
  0x10   :  { %142 = vmatprep.subr.bf16.mxu0 %v263_v9 }
  0x13   :  { %143 = vmatpush1.bf16.msra.mxu0 %v265_v10 }
  0x14   :  { %144 = vmatprep.subr.bf16.mxu0 %v266_v11 }
  0x17   :  { %145 = vmatpush1.bf16.msra.mxu0 %v268_v12 }
  0x18   :  { %146 = vmatprep.subr.bf16.mxu0 %v269_v13 }
  0x1b   :  { %147 = vmatpush1.bf16.msra.mxu0 %v271_v14 }
  0x1c   :  { %148 = vmatprep.subr.bf16.mxu0 %v272_v15 }
  0x1f   :  { %149 = vmatpush1.bf16.msra.mxu0 %v274_v16 }
  0x22   :  { %167 = vmatmul.mubr.bf16.vlgmr.msra.gmra.mrb[0].mxu0 %v275_v17 }
  0xf5   :  { %v168_v25 = vpop.f32.mrb[0].mxu0 }
  0xf6   :  { %v170_v28 = vpop.f32.mrb[1].mxu0  ;;  %v204_v31 = vmul.f32 %v197_v24, %v168_v25 }
  0xf7   :  { %v172_v30 = vpop.f32.mrb[2].mxu0  ;;  %v205_v33 = vmul.f32 %v201_v26, %v170_v28 }
  0xf8   :  { %v174_v32 = vpop.f32.mrb[3].mxu0  ;;  %v220_v34 = vadd.f32 %v213_v27, %v204_v31  ;;  %v206_v35 = vmul.f32 %v197_v24, %v172_v30 }
  0xf9   :  { %v221_v36 = vadd.f32 %v217_v29, %v205_v33  ;;  %v207_v37 = vmul.f32 %v201_v26, %v174_v32 }
  0xfa   :  { %224 = vst [vmem:[%s375_s4] sm:$0xff] %v220_v34  ;;  %v222_v38 = vadd.f32 %v213_v27, %v206_v35 }
  0xfb   :  { %225 = vst [vmem:[%s375_s4 + $0x8] sm:$0xff] %v221_v36  ;;  %v223_v39 = vadd.f32 %v217_v29, %v207_v37 }
  0xfc   :  { %226 = vst [vmem:[%s375_s4 + $0x10] sm:$0xff] %v222_v38 }
  0xfd   :  { %227 = vst [vmem:[%s375_s4 + $0x18] sm:$0xff] %v223_v39 }

// kernel: drnseg_forward.44
= control target key start
LH: loop header
LB: loop body
LE: loop exit
PB: predicated region body
PF: predicated region fallthrough
CT: control target
= control target key end

     0   :  { %s1342_s15 = smov 0   ;;  %s1344_s16 = smov 0   ;;  %s1547_s0 = inlined_call_operand.vmem [shape: bf16[16,2560], index: 0, kind: input, shape index: {}]   ;;  %s1548_s1 = inlined_call_operand.vmem [shape: bf16[2560,256], index: 1, kind: input, shape index: {}]   ;;  %s1549_s2 = inlined_call_operand.vmem [shape: f32[1,256], index: 2, kind: input, shape index: {}]   ;;  %s1550_s3 = inlined_call_operand.vmem [shape: f32[1,256], index: 3, kind: input, shape index: {}]   ;;  %s1551_s4 = inlined_call_operand.vmem [shape: f32[16,256], index: 4, kind: output, shape index: {}]  }
   0x1   :  { %s1346_s17 = smov 0   ;;  %s1348_s18 = smov 0  }
   0x2   :  { %s1350_s19 = smov 0  }
   0x3 LB: > { %s26_s20 = sadd.s32 1, %s1310_s18  ;;  %p49_p1 = scmp.ne.s32.totalorder %s1302_s16, %s1298_s15  ;;  %s1314_s19 = sphi %s1350_s19, %s14_s19   ;;  %s1310_s18 = sphi %s1348_s18, %s1555_s18   ;;  %s1306_s17 = sphi %s1346_s17, %s1554_s17   ;;  %s1302_s16 = sphi %s1344_s16, %s1553_s16   ;;  %s1298_s15 = sphi %s1342_s15, %s1552_s15  }
   0x4   : > { %p27_p0 = scmp.ge.s32.totalorder %s26_s20, 5  ;;  %p50_p2 = scmp.eq.s32.totalorder %s1314_s19, 0 }
   0x5   : > { %s42_s22 = sadd.s32 1, %s1302_s16  ;;  %p1044_p5 = scmp.ge.s32.totalorder %s1314_s19, 5 }
   0x6   : > { %s1557_s20 = smov (%p27_p0, %s26_s20), 0  ;;  %p51_p3 = por %p50_p2, %p49_p1 }
   0x7   : > { %s38_s21 = ssub.s32 %s1310_s18, %s1557_s20  ;;  %199 = sbr.rel (%p1044_p5) target bundleno = 21 (0x15), region = 24 }
   0x8   : > { %p40_p4 = scmp.eq.s32.totalorder %s38_s21, 0 }
   0xa   : > { %s1377_s23 = scalar_select %p40_p4, %s1302_s16, %s42_s22  }
   0xe   : > { %202 = sbr.rel (!%p51_p3) target bundleno = 21 (0x15), region = 28  ;;  %s204_s24 = sand.u32 (%p51_p3), 1, %s1302_s16  }
   0xf   : > { %s1127_s25 = sshll.u32 (%p51_p3), %s1310_s18, 4  ;;  %s1045_s26 = sshll.u32 (%p51_p3), %s204_s24, 5 }
  0x10   : > { %s212_s29 = scalar_lea.vmem (%p51_p3), %s1547_s0, %s1127_s25  ;;  %s206_s30 = scalar_lea.vmem (%p51_p3), [#allocation2], %s1045_s26 }
  0x11   : > { %v225_v0 = vld [vmem:[%s212_s29] sm:$0xff] (%p51_p3)  ;;  %v227_v1 = vld [vmem:[%s212_s29 + $0x8] sm:$0xff] (%p51_p3)  ;;  %v229_v2 = vld [vmem:[%s212_s29 + $0x50] sm:$0xff] (%p51_p3) }
  0x12   : > { %226 = vst [vmem:[%s206_s30] sm:$0xff] (%p51_p3), %v225_v0  ;;  %228 = vst [vmem:[%s206_s30 + $0x8] sm:$0xff] (%p51_p3), %v227_v1  ;;  %v231_v3 = vld [vmem:[%s212_s29 + $0x58] sm:$0xff] (%p51_p3) }
  0x13   : > { %230 = vst [vmem:[%s206_s30 + $0x10] sm:$0xff] (%p51_p3), %v229_v2  ;;  %232 = vst [vmem:[%s206_s30 + $0x18] sm:$0xff] (%p51_p3), %v231_v3 }
  0x15 PF: > { %p1048_p6 = scmp.ge.s32.totalorder %s1314_s19, 1  ;;  %p252_p7 = scmp.lt.s32.totalorder %s1314_s19, 6 }
  0x17   : > { %p253_p8 = pnand %p1048_p6, %p252_p7 }
  0x18   : > { %s259_s5 = sand.u32 (!%p253_p8), 1, %s1298_s15   ;;  %s1050_s6 = sshll.u32 (!%p253_p8), %s1306_s17, 6 }
  0x19   : > { %256 = sbr.rel (%p253_p8) target bundleno = 339 (0x153), region = 55  ;;  %s1049_s7 = sshll.u32 (!%p253_p8), %s259_s5, 5 }
  0x1a   : > { %p311_p9 = scmp.lt.s32.totalorder (!%p253_p8), %s1050_s6, 319  ;;  %s1394_s12 = scalar_lea.vmem (!%p253_p8), [#allocation2], %s1049_s7 }
  0x1b   : > { %p1053_p10 = scmp.ne.s32.totalorder (!%p253_p8), %s1306_s17, 0 }
  0x20   : > { %s1559_s6 = smov (!%p311_p9, %s1050_s6), 319  ;;  %346 = sbr.rel (%p1053_p10) target bundleno = 39 (0x27), region = 63 }
  0x21   : > { %s1128_s8 = sshll.u32 %s1559_s6, 3  ;;  %v1316_v4 = vmov (!%p1053_p10), 0.0  }
  0x22   : > { %s1392_s11 = scalar_lea.vmem %s1548_s1, %s1128_s8  ;;  %347 = vst [vmem:[%s1551_s4] sm:$0xff] (!%p1053_p10), %v1316_v4  ;;  %348 = vst [vmem:[%s1551_s4 + $0x8] sm:$0xff] (!%p1053_p10), %v1316_v4 }
  0x23   : > { %349 = vst [vmem:[%s1551_s4 + $0x10] sm:$0xff] (!%p1053_p10), %v1316_v4  ;;  %350 = vst [vmem:[%s1551_s4 + $0x18] sm:$0xff] (!%p1053_p10), %v1316_v4 }
  0x27 PF: > { %v1174_v5 = vld [vmem:[%s1392_s11 + $0x4] ss:$8 sps:$4 sm:$0xff]   ;;  %v1178_v7 = vld [vmem:[%s1392_s11] ss:$8 sps:$4 sm:$0xff]   ;;  %v1180_v9 = vld [vmem:[%s1392_s11 + $0x14] ss:$8 sps:$4 sm:$0xff]  }
  0x28   : > { %v1176_v6 = vld [vmem:[%s1392_s11 + $0x104] ss:$8 sps:$4 sm:$0xff]   ;;  %763 = vmatprep.subr.bf16.mxu1 %v1174_v5  ;;  %v1179_v8 = vld [vmem:[%s1392_s11 + $0x100] ss:$8 sps:$4 sm:$0xff]   ;;  %v1182_v10 = vld [vmem:[%s1392_s11 + $0x114] ss:$8 sps:$4 sm:$0xff]  }
  0x29   : > { %806 = vmatprep.subr.bf16.mxu0 %v1176_v6  ;;  %764 = vmatpush1.bf16.msra.mxu1 %v1178_v7  ;;  %v1184_v11 = vld [vmem:[%s1392_s11 + $0x10] ss:$8 sps:$4 sm:$0xff]   ;;  %v1186_v13 = vld [vmem:[%s1392_s11 + $0x24] ss:$8 sps:$4 sm:$0xff]   ;;  %v1190_v15 = vld [vmem:[%s1392_s11 + $0x20] ss:$8 sps:$4 sm:$0xff]  }
  0x2a   : > { %807 = vmatpush1.bf16.msra.mxu0 %v1179_v8  ;;  %765 = vmatprep.subr.bf16.mxu1 %v1180_v9  ;;  %v1185_v12 = vld [vmem:[%s1392_s11 + $0x110] ss:$8 sps:$4 sm:$0xff]   ;;  %v1188_v14 = vld [vmem:[%s1392_s11 + $0x124] ss:$8 sps:$4 sm:$0xff]   ;;  %v1191_v16 = vld [vmem:[%s1392_s11 + $0x120] ss:$8 sps:$4 sm:$0xff]  }
  0x2b   : > { %808 = vmatprep.subr.bf16.mxu0 %v1182_v10  ;;  %v1192_v17 = vld [vmem:[%s1392_s11 + $0x34] ss:$8 sps:$4 sm:$0xff]   ;;  %v1196_v19 = vld [vmem:[%s1392_s11 + $0x30] ss:$8 sps:$4 sm:$0xff]   ;;  %v1198_v21 = vld [vmem:[%s1392_s11 + $0x44] ss:$8 sps:$4 sm:$0xff]  }
  0x2c   : > { %v1194_v18 = vld [vmem:[%s1392_s11 + $0x134] ss:$8 sps:$4 sm:$0xff]   ;;  %v1197_v20 = vld [vmem:[%s1392_s11 + $0x130] ss:$8 sps:$4 sm:$0xff]   ;;  %v1200_v22 = vld [vmem:[%s1392_s11 + $0x144] ss:$8 sps:$4 sm:$0xff]  }
  0x2d   : > { %766 = vmatpush1.bf16.msra.mxu1 %v1184_v11  ;;  %v1202_v23 = vld [vmem:[%s1392_s11 + $0x40] ss:$8 sps:$4 sm:$0xff]   ;;  %v1204_v25 = vld [vmem:[%s1392_s11 + $0x54] ss:$8 sps:$4 sm:$0xff]   ;;  %v1208_v27 = vld [vmem:[%s1392_s11 + $0x50] ss:$8 sps:$4 sm:$0xff]  }
  0x2e   : > { %809 = vmatpush1.bf16.msra.mxu0 %v1185_v12  ;;  %767 = vmatprep.subr.bf16.mxu1 %v1186_v13  ;;  %v1203_v24 = vld [vmem:[%s1392_s11 + $0x140] ss:$8 sps:$4 sm:$0xff]   ;;  %v1206_v26 = vld [vmem:[%s1392_s11 + $0x154] ss:$8 sps:$4 sm:$0xff]   ;;  %v1209_v28 = vld [vmem:[%s1392_s11 + $0x150] ss:$8 sps:$4 sm:$0xff]  }
  0x2f   : > { %810 = vmatprep.subr.bf16.mxu0 %v1188_v14  ;;  %v1210_v29 = vld [vmem:[%s1392_s11 + $0x64] ss:$8 sps:$4 sm:$0xff]   ;;  %v1214_v31 = vld [vmem:[%s1392_s11 + $0x60] ss:$8 sps:$4 sm:$0xff]   ;;  %v1216_v33 = vld [vmem:[%s1392_s11 + $0x74] ss:$8 sps:$4 sm:$0xff]  }
  0x30   : > { %v1212_v30 = vld [vmem:[%s1392_s11 + $0x164] ss:$8 sps:$4 sm:$0xff]   ;;  %v1215_v32 = vld [vmem:[%s1392_s11 + $0x160] ss:$8 sps:$4 sm:$0xff]   ;;  %v1218_v34 = vld [vmem:[%s1392_s11 + $0x174] ss:$8 sps:$4 sm:$0xff]  }
  0x31   : > { %768 = vmatpush1.bf16.msra.mxu1 %v1190_v15  ;;  %v1220_v35 = vld [vmem:[%s1392_s11 + $0x70] ss:$8 sps:$4 sm:$0xff]   ;;  %v1222_v37 = vld [vmem:[%s1392_s11 + $0x84] ss:$8 sps:$4 sm:$0xff]   ;;  %v1226_v39 = vld [vmem:[%s1392_s11 + $0x80] ss:$8 sps:$4 sm:$0xff]  }
  0x32   : > { %811 = vmatpush1.bf16.msra.mxu0 %v1191_v16  ;;  %769 = vmatprep.subr.bf16.mxu1 %v1192_v17  ;;  %v1221_v36 = vld [vmem:[%s1392_s11 + $0x170] ss:$8 sps:$4 sm:$0xff]   ;;  %v1224_v38 = vld [vmem:[%s1392_s11 + $0x184] ss:$8 sps:$4 sm:$0xff]   ;;  %v1227_v40 = vld [vmem:[%s1392_s11 + $0x180] ss:$8 sps:$4 sm:$0xff]  }
  0x33   : > { %812 = vmatprep.subr.bf16.mxu0 %v1194_v18  ;;  %v1228_v41 = vld [vmem:[%s1392_s11 + $0x94] ss:$8 sps:$4 sm:$0xff]   ;;  %v1232_v43 = vld [vmem:[%s1392_s11 + $0x90] ss:$8 sps:$4 sm:$0xff]   ;;  %v1234_v45 = vld [vmem:[%s1392_s11 + $0xa4] ss:$8 sps:$4 sm:$0xff]  }
  0x34   : > { %v1230_v42 = vld [vmem:[%s1392_s11 + $0x194] ss:$8 sps:$4 sm:$0xff]   ;;  %v1233_v44 = vld [vmem:[%s1392_s11 + $0x190] ss:$8 sps:$4 sm:$0xff]   ;;  %v1236_v46 = vld [vmem:[%s1392_s11 + $0x1a4] ss:$8 sps:$4 sm:$0xff]  }
  0x35   : > { %770 = vmatpush1.bf16.msra.mxu1 %v1196_v19  ;;  %v1238_v47 = vld [vmem:[%s1392_s11 + $0xa0] ss:$8 sps:$4 sm:$0xff]   ;;  %v1240_v49 = vld [vmem:[%s1392_s11 + $0xb4] ss:$8 sps:$4 sm:$0xff]   ;;  %v1244_v51 = vld [vmem:[%s1392_s11 + $0xb0] ss:$8 sps:$4 sm:$0xff]  }
  0x36   : > { %813 = vmatpush1.bf16.msra.mxu0 %v1197_v20  ;;  %771 = vmatprep.subr.bf16.mxu1 %v1198_v21  ;;  %v1239_v48 = vld [vmem:[%s1392_s11 + $0x1a0] ss:$8 sps:$4 sm:$0xff]   ;;  %v1242_v50 = vld [vmem:[%s1392_s11 + $0x1b4] ss:$8 sps:$4 sm:$0xff]   ;;  %v1245_v53 = vld [vmem:[%s1392_s11 + $0x1b0] ss:$8 sps:$4 sm:$0xff]  }
  0x37   : > { %814 = vmatprep.subr.bf16.mxu0 %v1200_v22  ;;  %v1272_v52 = vld [vmem:[%s1394_s12 + $0x4] ss:$16 sps:$4 sm:$0xff]   ;;  %v1275_v56 = vld [vmem:[%s1394_s12 + $0xc] ss:$16 sps:$4 sm:$0xff]   ;;  %v1250_v57 = vld [vmem:[%s1392_s11 + $0xc0] ss:$8 sps:$4 sm:$0xff]  }
  0x38   : > { %v1246_v54 = vld [vmem:[%s1392_s11 + $0xc4] ss:$8 sps:$4 sm:$0xff]   ;;  %795 = vmatprep.mubr.bf16.mxu1 %v1272_v52  ;;  %838 = vmatprep.mubr.bf16.mxu0 %v1275_v56  ;;  %v1251_v58 = vld [vmem:[%s1392_s11 + $0x1c0] ss:$8 sps:$4 sm:$0xff]   ;;  %v1252_v59 = vld [vmem:[%s1392_s11 + $0xd4] ss:$8 sps:$4 sm:$0xff]  }
  0x39   : > { %772 = vmatpush1.bf16.msra.mxu1 %v1202_v23  ;;  %v1248_v55 = vld [vmem:[%s1392_s11 + $0x1c4] ss:$8 sps:$4 sm:$0xff]   ;;  %v1254_v60 = vld [vmem:[%s1392_s11 + $0x1d4] ss:$8 sps:$4 sm:$0xff]   ;;  %v1256_v61 = vld [vmem:[%s1392_s11 + $0xd0] ss:$8 sps:$4 sm:$0xff]  }
  0x3a   : > { %815 = vmatpush1.bf16.msra.mxu0 %v1203_v24  ;;  %773 = vmatprep.subr.bf16.mxu1 %v1204_v25  ;;  %v1257_v62 = vld [vmem:[%s1392_s11 + $0x1d0] ss:$8 sps:$4 sm:$0xff]   ;;  %v1258_v63 = vld [vmem:[%s1392_s11 + $0xe4] ss:$8 sps:$4 sm:$0xff]   ;;  %v1262_v1 = vld [vmem:[%s1392_s11 + $0xe0] ss:$8 sps:$4 sm:$0xff]  }
  0x3b   : > { %816 = vmatprep.subr.bf16.mxu0 %v1206_v26  ;;  %v1260_v0 = vld [vmem:[%s1392_s11 + $0x1e4] ss:$8 sps:$4 sm:$0xff]   ;;  %v1263_v2 = vld [vmem:[%s1392_s11 + $0x1e0] ss:$8 sps:$4 sm:$0xff]   ;;  %v1264_v3 = vld [vmem:[%s1392_s11 + $0xf4] ss:$8 sps:$4 sm:$0xff]  }
  0x3c   : > { %v1266_v4 = vld [vmem:[%s1392_s11 + $0x1f4] ss:$8 sps:$4 sm:$0xff]   ;;  %v1268_v5 = vld [vmem:[%s1392_s11 + $0xf0] ss:$8 sps:$4 sm:$0xff]   ;;  %v351_v10 = vld [vmem:[%s1551_s4] sm:$0xff]  ;;  %p1122_p11 = scmp.ne.s32.totalorder %s1306_s17, 4 }
  0x3d   : > { %774 = vmatpush1.bf16.msra.mxu1 %v1208_v27  ;;  %v1269_v6 = vld [vmem:[%s1392_s11 + $0x1f0] ss:$8 sps:$4 sm:$0xff]   ;;  %v352_v14 = vld [vmem:[%s1551_s4 + $0x8] sm:$0xff] }
  0x3e   : > { %817 = vmatpush1.bf16.msra.mxu0 %v1209_v28  ;;  %775 = vmatprep.subr.bf16.mxu1 %v1210_v29  ;;  %v1270_v7 = vld [vmem:[%s1394_s12] ss:$16 sps:$4 sm:$0xff]   ;;  %v1273_v8 = vld [vmem:[%s1394_s12 + $0x8] ss:$16 sps:$4 sm:$0xff]   ;;  %v867_v29 = vlaneseq (!%p1122_p11) }
  0x3f   : > { %818 = vmatprep.subr.bf16.mxu0 %v1212_v30  ;;  %v353_v18 = vld [vmem:[%s1551_s4 + $0x10] sm:$0xff]  ;;  %v354_v23 = vld [vmem:[%s1551_s4 + $0x18] sm:$0xff] }
  0x40   : > { %v868_v30 = vshrl.u32 (!%p1122_p11), %v867_v29, 7 }
  0x41   : > { %776 = vmatpush1.bf16.msra.mxu1 %v1214_v31  ;;  %v865_v31 = vld [vmem:[%s1549_s2] sm:$0x3] (!%p1122_p11) }
  0x42   : > { %819 = vmatpush1.bf16.msra.mxu0 %v1215_v32  ;;  %777 = vmatprep.subr.bf16.mxu1 %v1216_v33  ;;  %v881_v32 = vld [vmem:[%s1550_s3] sm:$0x3] (!%p1122_p11) }
  0x43   : > { %820 = vmatprep.subr.bf16.mxu0 %v1218_v34  ;;  %v869_v34 = vsub.s32 (!%p1122_p11), 0, %v868_v30 }
  0x45   : > { %778 = vmatpush1.bf16.msra.mxu1 %v1220_v35  ;;  %v873_v35 = vsub.s32 (!%p1122_p11), 1, %v868_v30 }
  0x46   : > { %821 = vmatpush1.bf16.msra.mxu0 %v1221_v36  ;;  %779 = vmatprep.subr.bf16.mxu1 %v1222_v37 }
  0x47   : > { %822 = vmatprep.subr.bf16.mxu0 %v1224_v38 }
  0x49   : > { %780 = vmatpush1.bf16.msra.mxu1 %v1226_v39  ;;  %v870_v39 = vrot.slane (!%p1122_p11), %v865_v31, %v869_v34 }
  0x4a   : > { %823 = vmatpush1.bf16.msra.mxu0 %v1227_v40  ;;  %781 = vmatprep.subr.bf16.mxu1 %v1228_v41  ;;  %v886_v40 = vrot.slane (!%p1122_p11), %v881_v32, %v869_v34  ;;  %v874_v41 = vrot.slane (!%p1122_p11), %v865_v31, %v873_v35 }
  0x4b   : > { %824 = vmatprep.subr.bf16.mxu0 %v1230_v42  ;;  %v890_v42 = vrot.slane (!%p1122_p11), %v881_v32, %v873_v35 }
  0x4d   : > { %782 = vmatpush1.bf16.msra.mxu1 %v1232_v43 }
  0x4e   : > { %825 = vmatpush1.bf16.msra.mxu0 %v1233_v44  ;;  %783 = vmatprep.subr.bf16.mxu1 %v1234_v45 }
  0x4f   : > { %826 = vmatprep.subr.bf16.mxu0 %v1236_v46 }
  0x51   : > { %784 = vmatpush1.bf16.msra.mxu1 %v1238_v47 }
  0x52   : > { %827 = vmatpush1.bf16.msra.mxu0 %v1239_v48  ;;  %785 = vmatprep.subr.bf16.mxu1 %v1240_v49 }
  0x53   : > { %828 = vmatprep.subr.bf16.mxu0 %v1242_v50 }
  0x55   : > { %786 = vmatpush1.bf16.msra.mxu1 %v1244_v51 }
  0x56   : > { %829 = vmatpush1.bf16.msra.mxu0 %v1245_v53  ;;  %787 = vmatprep.subr.bf16.mxu1 %v1246_v54 }
  0x57   : > { %830 = vmatprep.subr.bf16.mxu0 %v1248_v55 }
  0x59   : > { %788 = vmatpush1.bf16.msra.mxu1 %v1250_v57 }
  0x5a   : > { %831 = vmatpush1.bf16.msra.mxu0 %v1251_v58  ;;  %789 = vmatprep.subr.bf16.mxu1 %v1252_v59 }
  0x5b   : > { %832 = vmatprep.subr.bf16.mxu0 %v1254_v60 }
  0x5d   : > { %790 = vmatpush1.bf16.msra.mxu1 %v1256_v61 }
  0x5e   : > { %833 = vmatpush1.bf16.msra.mxu0 %v1257_v62  ;;  %791 = vmatprep.subr.bf16.mxu1 %v1258_v63 }
  0x5f   : > { %834 = vmatprep.subr.bf16.mxu0 %v1260_v0 }
  0x61   : > { %792 = vmatpush1.bf16.msra.mxu1 %v1262_v1 }
  0x62   : > { %835 = vmatpush1.bf16.msra.mxu0 %v1263_v2  ;;  %793 = vmatprep.subr.bf16.mxu1 %v1264_v3 }
  0x63   : > { %836 = vmatprep.subr.bf16.mxu0 %v1266_v4 }
  0x65   : > { %794 = vmatpush1.bf16.msra.mxu1 %v1268_v5 }
  0x66   : > { %837 = vmatpush1.bf16.msra.mxu0 %v1269_v6 }
  0x68   : > { %796 = vmatmul.mubr.bf16.vlgmr.msra.gmra.mrb[0].mxu1 %v1270_v7 }
  0x69   : > { %839 = vmatmul.mubr.bf16.vlgmr.msra.gmra.mrb[0].mxu0 %v1273_v8 }
 0x13b   : > { %v797_v9 = vpop.f32.mrb[0].mxu1 }
 0x13c   : > { %v840_v11 = vpop.f32.mrb[0].mxu0  ;;  %v799_v13 = vpop.f32.mrb[1].mxu1 }
 0x13d   : > { %v841_v12 = vadd.f32 %v840_v11, %v797_v9  ;;  %v842_v15 = vpop.f32.mrb[1].mxu0  ;;  %v801_v17 = vpop.f32.mrb[2].mxu1 }
 0x13e   : > { %v843_v16 = vadd.f32 %v842_v15, %v799_v13  ;;  %v844_v19 = vpop.f32.mrb[2].mxu0  ;;  %v803_v22 = vpop.f32.mrb[3].mxu1  ;;  %860 = sbr.rel (%p1122_p11) target bundleno = 339 (0x153), region = 67 }
 0x13f   : > { %v849_v20 = vadd.f32 %v841_v12, %v351_v10  ;;  %v845_v21 = vadd.f32 %v844_v19, %v801_v17  ;;  %v846_v24 = vpop.f32.mrb[3].mxu0 }
 0x140   : > { %v850_v25 = vadd.f32 %v843_v16, %v352_v14  ;;  %v847_v26 = vadd.f32 %v846_v24, %v803_v22 }
 0x141   : > { %853 = vst [vmem:[%s1551_s4] sm:$0xff] %v849_v20  ;;  %v851_v27 = vadd.f32 %v845_v21, %v353_v18 }
 0x142   : > { %854 = vst [vmem:[%s1551_s4 + $0x8] sm:$0xff] %v850_v25  ;;  %v852_v28 = vadd.f32 %v847_v26, %v354_v23 }
 0x143   : > { %855 = vst [vmem:[%s1551_s4 + $0x10] sm:$0xff] %v851_v27 }
 0x144   : > { %856 = vst [vmem:[%s1551_s4 + $0x18] sm:$0xff] %v852_v28 }
 0x148   : > { %v861_v33 = vld [vmem:[%s1551_s4] sm:$0xff] }
 0x149   : > { %v862_v36 = vld [vmem:[%s1551_s4 + $0x8] sm:$0xff]  ;;  %v877_v43 = vmul.f32 %v870_v39, %v861_v33 }
 0x14a   : > { %v863_v37 = vld [vmem:[%s1551_s4 + $0x10] sm:$0xff]  ;;  %v878_v44 = vmul.f32 %v874_v41, %v862_v36 }
 0x14b   : > { %v864_v38 = vld [vmem:[%s1551_s4 + $0x18] sm:$0xff]  ;;  %v879_v45 = vmul.f32 %v870_v39, %v863_v37  ;;  %v893_v47 = vadd.f32 %v886_v40, %v877_v43 }
 0x14c   : > { %v880_v46 = vmul.f32 %v874_v41, %v864_v38  ;;  %v894_v48 = vadd.f32 %v890_v42, %v878_v44 }
 0x14d   : > { %v895_v49 = vadd.f32 %v886_v40, %v879_v45  ;;  %v897_v51 = vmax.f32 %v893_v47, 0.0 }
 0x14e   : > { %v896_v50 = vadd.f32 %v890_v42, %v880_v46  ;;  %v898_v52 = vmax.f32 %v894_v48, 0.0 }
 0x14f   : > { %v899_v53 = vmax.f32 %v895_v49, 0.0  ;;  %901 = vst [vmem:[%s1551_s4] sm:$0xff] %v897_v51 }
 0x150   : > { %v900_v54 = vmax.f32 %v896_v50, 0.0  ;;  %902 = vst [vmem:[%s1551_s4 + $0x8] sm:$0xff] %v898_v52 }
 0x151   : > { %903 = vst [vmem:[%s1551_s4 + $0x10] sm:$0xff] %v899_v53 }
 0x152   : > { %904 = vst [vmem:[%s1551_s4 + $0x18] sm:$0xff] %v900_v54 }
 0x153 PF: > { %s14_s19 = sadd.s32 1, %s1314_s19   ;;  %s1552_s15 = smov %s1302_s16 }
 0x154   : > { %p11_p12 = scmp.ge.s32.totalorder %s14_s19, 7   ;;  %s1553_s16 = smov %s1377_s23 }
 0x155   : > { %s1554_s17 = smov %s1310_s18  ;;  %s1555_s18 = smov %s1557_s20 }
 0x156   :  { %13 = sbr.rel (!%p11_p12) target bundleno = 3 (0x3), region = 111 }

// kernel: drnseg_forward.43
= control target key start
LH: loop header
LB: loop body
LE: loop exit
PB: predicated region body
PF: predicated region fallthrough
CT: control target
= control target key end

     0   :  { %s1445_s18 = smov 0   ;;  %s1447_s19 = smov 0   ;;  %s1662_s0 = inlined_call_operand.vmem [shape: bf16[16,2560], index: 0, kind: input, shape index: {}]   ;;  %s1663_s1 = inlined_call_operand.vmem [shape: bf16[2560,256], index: 1, kind: input, shape index: {}]   ;;  %s1664_s2 = inlined_call_operand.vmem [shape: f32[1,256], index: 2, kind: input, shape index: {}]   ;;  %s1665_s3 = inlined_call_operand.vmem [shape: f32[1,256], index: 3, kind: input, shape index: {}]   ;;  %s1666_s4 = inlined_call_operand.vmem [shape: f32[16,256], index: 4, kind: input, shape index: {}]   ;;  %s1667_s5 = inlined_call_operand.vmem [shape: f32[16,256], index: 5, kind: output, shape index: {}]  }
   0x1   :  { %s1449_s20 = smov 0   ;;  %s1451_s21 = smov 0  }
   0x2   :  { %s1453_s22 = smov 0  }
   0x3 LB: > { %s27_s23 = sadd.s32 1, %s1408_s21  ;;  %p50_p1 = scmp.ne.s32.totalorder %s1400_s19, %s1396_s18  ;;  %s1412_s22 = sphi %s1453_s22, %s15_s22   ;;  %s1408_s21 = sphi %s1451_s21, %s1671_s21   ;;  %s1404_s20 = sphi %s1449_s20, %s1670_s20   ;;  %s1400_s19 = sphi %s1447_s19, %s1669_s19   ;;  %s1396_s18 = sphi %s1445_s18, %s1668_s18  }
   0x4   : > { %p28_p0 = scmp.ge.s32.totalorder %s27_s23, 5  ;;  %p51_p2 = scmp.eq.s32.totalorder %s1412_s22, 0 }
   0x5   : > { %s43_s25 = sadd.s32 1, %s1400_s19  ;;  %p1142_p5 = scmp.ge.s32.totalorder %s1412_s22, 5 }
   0x6   : > { %s1673_s23 = smov (%p28_p0, %s27_s23), 0  ;;  %p52_p3 = por %p51_p2, %p50_p1 }
   0x7   : > { %s39_s24 = ssub.s32 %s1408_s21, %s1673_s23  ;;  %243 = sbr.rel (%p1142_p5) target bundleno = 21 (0x15), region = 28 }
   0x8   : > { %p41_p4 = scmp.eq.s32.totalorder %s39_s24, 0 }
   0xa   : > { %s1480_s26 = scalar_select %p41_p4, %s1400_s19, %s43_s25  }
   0xe   : > { %246 = sbr.rel (!%p52_p3) target bundleno = 21 (0x15), region = 32  ;;  %s248_s27 = sand.u32 (%p52_p3), 1, %s1400_s19  }
   0xf   : > { %s1225_s28 = sshll.u32 (%p52_p3), %s1408_s21, 4  ;;  %s1143_s29 = sshll.u32 (%p52_p3), %s248_s27, 5 }
  0x10   : > { %s256_s7 = scalar_lea.vmem (%p52_p3), %s1662_s0, %s1225_s28  ;;  %s250_s8 = scalar_lea.vmem (%p52_p3), [#allocation2], %s1143_s29 }
  0x11   : > { %v269_v0 = vld [vmem:[%s256_s7] sm:$0xff] (%p52_p3)  ;;  %v271_v1 = vld [vmem:[%s256_s7 + $0x8] sm:$0xff] (%p52_p3)  ;;  %v273_v2 = vld [vmem:[%s256_s7 + $0x50] sm:$0xff] (%p52_p3) }
  0x12   : > { %270 = vst [vmem:[%s250_s8] sm:$0xff] (%p52_p3), %v269_v0  ;;  %272 = vst [vmem:[%s250_s8 + $0x8] sm:$0xff] (%p52_p3), %v271_v1  ;;  %v275_v3 = vld [vmem:[%s256_s7 + $0x58] sm:$0xff] (%p52_p3) }
  0x13   : > { %274 = vst [vmem:[%s250_s8 + $0x10] sm:$0xff] (%p52_p3), %v273_v2  ;;  %276 = vst [vmem:[%s250_s8 + $0x18] sm:$0xff] (%p52_p3), %v275_v3 }
  0x15 PF: > { %p1146_p6 = scmp.ge.s32.totalorder %s1412_s22, 1  ;;  %p296_p7 = scmp.lt.s32.totalorder %s1412_s22, 6 }
  0x17   : > { %p297_p8 = pnand %p1146_p6, %p296_p7 }
  0x18   : > { %s303_s9 = sand.u32 (!%p297_p8), 1, %s1396_s18   ;;  %s1148_s10 = sshll.u32 (!%p297_p8), %s1404_s20, 6 }
  0x19   : > { %300 = sbr.rel (%p297_p8) target bundleno = 341 (0x155), region = 59  ;;  %s1147_s11 = sshll.u32 (!%p297_p8), %s303_s9, 5 }
  0x1a   : > { %p367_p9 = scmp.lt.s32.totalorder (!%p297_p8), %s1148_s10, 319  ;;  %s1497_s16 = scalar_lea.vmem (!%p297_p8), [#allocation2], %s1147_s11 }
  0x1b   : > { %p1151_p10 = scmp.ne.s32.totalorder (!%p297_p8), %s1404_s20, 0 }
  0x20   : > { %s1675_s10 = smov (!%p367_p9, %s1148_s10), 319  ;;  %414 = sbr.rel (%p1151_p10) target bundleno = 39 (0x27), region = 67 }
  0x21   : > { %s1226_s12 = sshll.u32 %s1675_s10, 3  ;;  %v1414_v4 = vmov (!%p1151_p10), 0.0  }
  0x22   : > { %s1495_s15 = scalar_lea.vmem %s1663_s1, %s1226_s12  ;;  %415 = vst [vmem:[%s1667_s5] sm:$0xff] (!%p1151_p10), %v1414_v4  ;;  %416 = vst [vmem:[%s1667_s5 + $0x8] sm:$0xff] (!%p1151_p10), %v1414_v4 }
  0x23   : > { %417 = vst [vmem:[%s1667_s5 + $0x10] sm:$0xff] (!%p1151_p10), %v1414_v4  ;;  %418 = vst [vmem:[%s1667_s5 + $0x18] sm:$0xff] (!%p1151_p10), %v1414_v4 }
  0x27 PF: > { %v1272_v5 = vld [vmem:[%s1495_s15 + $0x4] ss:$8 sps:$4 sm:$0xff]   ;;  %v1276_v7 = vld [vmem:[%s1495_s15] ss:$8 sps:$4 sm:$0xff]   ;;  %v1278_v9 = vld [vmem:[%s1495_s15 + $0x14] ss:$8 sps:$4 sm:$0xff]  }
  0x28   : > { %v1274_v6 = vld [vmem:[%s1495_s15 + $0x104] ss:$8 sps:$4 sm:$0xff]   ;;  %831 = vmatprep.subr.bf16.mxu1 %v1272_v5  ;;  %v1277_v8 = vld [vmem:[%s1495_s15 + $0x100] ss:$8 sps:$4 sm:$0xff]   ;;  %v1280_v10 = vld [vmem:[%s1495_s15 + $0x114] ss:$8 sps:$4 sm:$0xff]  }
  0x29   : > { %874 = vmatprep.subr.bf16.mxu0 %v1274_v6  ;;  %832 = vmatpush1.bf16.msra.mxu1 %v1276_v7  ;;  %v1282_v11 = vld [vmem:[%s1495_s15 + $0x10] ss:$8 sps:$4 sm:$0xff]   ;;  %v1284_v13 = vld [vmem:[%s1495_s15 + $0x24] ss:$8 sps:$4 sm:$0xff]   ;;  %v1288_v15 = vld [vmem:[%s1495_s15 + $0x20] ss:$8 sps:$4 sm:$0xff]  }
  0x2a   : > { %875 = vmatpush1.bf16.msra.mxu0 %v1277_v8  ;;  %833 = vmatprep.subr.bf16.mxu1 %v1278_v9  ;;  %v1283_v12 = vld [vmem:[%s1495_s15 + $0x110] ss:$8 sps:$4 sm:$0xff]   ;;  %v1286_v14 = vld [vmem:[%s1495_s15 + $0x124] ss:$8 sps:$4 sm:$0xff]   ;;  %v1289_v16 = vld [vmem:[%s1495_s15 + $0x120] ss:$8 sps:$4 sm:$0xff]  }
  0x2b   : > { %876 = vmatprep.subr.bf16.mxu0 %v1280_v10  ;;  %v1290_v17 = vld [vmem:[%s1495_s15 + $0x34] ss:$8 sps:$4 sm:$0xff]   ;;  %v1294_v19 = vld [vmem:[%s1495_s15 + $0x30] ss:$8 sps:$4 sm:$0xff]   ;;  %v1296_v21 = vld [vmem:[%s1495_s15 + $0x44] ss:$8 sps:$4 sm:$0xff]  }
  0x2c   : > { %v1292_v18 = vld [vmem:[%s1495_s15 + $0x134] ss:$8 sps:$4 sm:$0xff]   ;;  %v1295_v20 = vld [vmem:[%s1495_s15 + $0x130] ss:$8 sps:$4 sm:$0xff]   ;;  %v1298_v22 = vld [vmem:[%s1495_s15 + $0x144] ss:$8 sps:$4 sm:$0xff]  }
  0x2d   : > { %834 = vmatpush1.bf16.msra.mxu1 %v1282_v11  ;;  %v1300_v23 = vld [vmem:[%s1495_s15 + $0x40] ss:$8 sps:$4 sm:$0xff]   ;;  %v1302_v25 = vld [vmem:[%s1495_s15 + $0x54] ss:$8 sps:$4 sm:$0xff]   ;;  %v1306_v27 = vld [vmem:[%s1495_s15 + $0x50] ss:$8 sps:$4 sm:$0xff]  }
  0x2e   : > { %877 = vmatpush1.bf16.msra.mxu0 %v1283_v12  ;;  %835 = vmatprep.subr.bf16.mxu1 %v1284_v13  ;;  %v1301_v24 = vld [vmem:[%s1495_s15 + $0x140] ss:$8 sps:$4 sm:$0xff]   ;;  %v1304_v26 = vld [vmem:[%s1495_s15 + $0x154] ss:$8 sps:$4 sm:$0xff]   ;;  %v1307_v28 = vld [vmem:[%s1495_s15 + $0x150] ss:$8 sps:$4 sm:$0xff]  }
  0x2f   : > { %878 = vmatprep.subr.bf16.mxu0 %v1286_v14  ;;  %v1308_v29 = vld [vmem:[%s1495_s15 + $0x64] ss:$8 sps:$4 sm:$0xff]   ;;  %v1312_v31 = vld [vmem:[%s1495_s15 + $0x60] ss:$8 sps:$4 sm:$0xff]   ;;  %v1314_v33 = vld [vmem:[%s1495_s15 + $0x74] ss:$8 sps:$4 sm:$0xff]  }
  0x30   : > { %v1310_v30 = vld [vmem:[%s1495_s15 + $0x164] ss:$8 sps:$4 sm:$0xff]   ;;  %v1313_v32 = vld [vmem:[%s1495_s15 + $0x160] ss:$8 sps:$4 sm:$0xff]   ;;  %v1316_v34 = vld [vmem:[%s1495_s15 + $0x174] ss:$8 sps:$4 sm:$0xff]  }
  0x31   : > { %836 = vmatpush1.bf16.msra.mxu1 %v1288_v15  ;;  %v1318_v35 = vld [vmem:[%s1495_s15 + $0x70] ss:$8 sps:$4 sm:$0xff]   ;;  %v1320_v37 = vld [vmem:[%s1495_s15 + $0x84] ss:$8 sps:$4 sm:$0xff]   ;;  %v1324_v39 = vld [vmem:[%s1495_s15 + $0x80] ss:$8 sps:$4 sm:$0xff]  }
  0x32   : > { %879 = vmatpush1.bf16.msra.mxu0 %v1289_v16  ;;  %837 = vmatprep.subr.bf16.mxu1 %v1290_v17  ;;  %v1319_v36 = vld [vmem:[%s1495_s15 + $0x170] ss:$8 sps:$4 sm:$0xff]   ;;  %v1322_v38 = vld [vmem:[%s1495_s15 + $0x184] ss:$8 sps:$4 sm:$0xff]   ;;  %v1325_v40 = vld [vmem:[%s1495_s15 + $0x180] ss:$8 sps:$4 sm:$0xff]  }
  0x33   : > { %880 = vmatprep.subr.bf16.mxu0 %v1292_v18  ;;  %v1326_v41 = vld [vmem:[%s1495_s15 + $0x94] ss:$8 sps:$4 sm:$0xff]   ;;  %v1330_v43 = vld [vmem:[%s1495_s15 + $0x90] ss:$8 sps:$4 sm:$0xff]   ;;  %v1332_v45 = vld [vmem:[%s1495_s15 + $0xa4] ss:$8 sps:$4 sm:$0xff]  }
  0x34   : > { %v1328_v42 = vld [vmem:[%s1495_s15 + $0x194] ss:$8 sps:$4 sm:$0xff]   ;;  %v1331_v44 = vld [vmem:[%s1495_s15 + $0x190] ss:$8 sps:$4 sm:$0xff]   ;;  %v1334_v46 = vld [vmem:[%s1495_s15 + $0x1a4] ss:$8 sps:$4 sm:$0xff]  }
  0x35   : > { %838 = vmatpush1.bf16.msra.mxu1 %v1294_v19  ;;  %v1336_v47 = vld [vmem:[%s1495_s15 + $0xa0] ss:$8 sps:$4 sm:$0xff]   ;;  %v1338_v49 = vld [vmem:[%s1495_s15 + $0xb4] ss:$8 sps:$4 sm:$0xff]   ;;  %v1342_v51 = vld [vmem:[%s1495_s15 + $0xb0] ss:$8 sps:$4 sm:$0xff]  }
  0x36   : > { %881 = vmatpush1.bf16.msra.mxu0 %v1295_v20  ;;  %839 = vmatprep.subr.bf16.mxu1 %v1296_v21  ;;  %v1337_v48 = vld [vmem:[%s1495_s15 + $0x1a0] ss:$8 sps:$4 sm:$0xff]   ;;  %v1340_v50 = vld [vmem:[%s1495_s15 + $0x1b4] ss:$8 sps:$4 sm:$0xff]   ;;  %v1343_v53 = vld [vmem:[%s1495_s15 + $0x1b0] ss:$8 sps:$4 sm:$0xff]  }
  0x37   : > { %882 = vmatprep.subr.bf16.mxu0 %v1298_v22  ;;  %v1370_v52 = vld [vmem:[%s1497_s16 + $0x4] ss:$16 sps:$4 sm:$0xff]   ;;  %v1373_v56 = vld [vmem:[%s1497_s16 + $0xc] ss:$16 sps:$4 sm:$0xff]   ;;  %v1348_v57 = vld [vmem:[%s1495_s15 + $0xc0] ss:$8 sps:$4 sm:$0xff]  }
  0x38   : > { %v1344_v54 = vld [vmem:[%s1495_s15 + $0xc4] ss:$8 sps:$4 sm:$0xff]   ;;  %863 = vmatprep.mubr.bf16.mxu1 %v1370_v52  ;;  %906 = vmatprep.mubr.bf16.mxu0 %v1373_v56  ;;  %v1349_v58 = vld [vmem:[%s1495_s15 + $0x1c0] ss:$8 sps:$4 sm:$0xff]   ;;  %v1350_v59 = vld [vmem:[%s1495_s15 + $0xd4] ss:$8 sps:$4 sm:$0xff]  }
  0x39   : > { %840 = vmatpush1.bf16.msra.mxu1 %v1300_v23  ;;  %v1346_v55 = vld [vmem:[%s1495_s15 + $0x1c4] ss:$8 sps:$4 sm:$0xff]   ;;  %v1352_v60 = vld [vmem:[%s1495_s15 + $0x1d4] ss:$8 sps:$4 sm:$0xff]   ;;  %v1354_v61 = vld [vmem:[%s1495_s15 + $0xd0] ss:$8 sps:$4 sm:$0xff]  }
  0x3a   : > { %883 = vmatpush1.bf16.msra.mxu0 %v1301_v24  ;;  %841 = vmatprep.subr.bf16.mxu1 %v1302_v25  ;;  %v1355_v62 = vld [vmem:[%s1495_s15 + $0x1d0] ss:$8 sps:$4 sm:$0xff]   ;;  %v1356_v63 = vld [vmem:[%s1495_s15 + $0xe4] ss:$8 sps:$4 sm:$0xff]   ;;  %v1360_v1 = vld [vmem:[%s1495_s15 + $0xe0] ss:$8 sps:$4 sm:$0xff]  }
  0x3b   : > { %884 = vmatprep.subr.bf16.mxu0 %v1304_v26  ;;  %v1358_v0 = vld [vmem:[%s1495_s15 + $0x1e4] ss:$8 sps:$4 sm:$0xff]   ;;  %v1361_v2 = vld [vmem:[%s1495_s15 + $0x1e0] ss:$8 sps:$4 sm:$0xff]   ;;  %v1362_v3 = vld [vmem:[%s1495_s15 + $0xf4] ss:$8 sps:$4 sm:$0xff]  }
  0x3c   : > { %v1364_v4 = vld [vmem:[%s1495_s15 + $0x1f4] ss:$8 sps:$4 sm:$0xff]   ;;  %v1366_v5 = vld [vmem:[%s1495_s15 + $0xf0] ss:$8 sps:$4 sm:$0xff]   ;;  %v419_v10 = vld [vmem:[%s1667_s5] sm:$0xff]  ;;  %p1220_p11 = scmp.ne.s32.totalorder %s1404_s20, 4 }
  0x3d   : > { %842 = vmatpush1.bf16.msra.mxu1 %v1306_v27  ;;  %v1367_v6 = vld [vmem:[%s1495_s15 + $0x1f0] ss:$8 sps:$4 sm:$0xff]   ;;  %v420_v14 = vld [vmem:[%s1667_s5 + $0x8] sm:$0xff] }
  0x3e   : > { %885 = vmatpush1.bf16.msra.mxu0 %v1307_v28  ;;  %843 = vmatprep.subr.bf16.mxu1 %v1308_v29  ;;  %v1368_v7 = vld [vmem:[%s1497_s16] ss:$16 sps:$4 sm:$0xff]   ;;  %v1371_v8 = vld [vmem:[%s1497_s16 + $0x8] ss:$16 sps:$4 sm:$0xff]   ;;  %v935_v29 = vlaneseq (!%p1220_p11) }
  0x3f   : > { %886 = vmatprep.subr.bf16.mxu0 %v1310_v30  ;;  %v421_v18 = vld [vmem:[%s1667_s5 + $0x10] sm:$0xff]  ;;  %v422_v23 = vld [vmem:[%s1667_s5 + $0x18] sm:$0xff] }
  0x40   : > { %v936_v30 = vshrl.u32 (!%p1220_p11), %v935_v29, 7 }
  0x41   : > { %844 = vmatpush1.bf16.msra.mxu1 %v1312_v31  ;;  %v933_v31 = vld [vmem:[%s1664_s2] sm:$0x3] (!%p1220_p11) }
  0x42   : > { %887 = vmatpush1.bf16.msra.mxu0 %v1313_v32  ;;  %845 = vmatprep.subr.bf16.mxu1 %v1314_v33  ;;  %v949_v32 = vld [vmem:[%s1665_s3] sm:$0x3] (!%p1220_p11) }
  0x43   : > { %888 = vmatprep.subr.bf16.mxu0 %v1316_v34  ;;  %v937_v34 = vsub.s32 (!%p1220_p11), 0, %v936_v30 }
  0x45   : > { %846 = vmatpush1.bf16.msra.mxu1 %v1318_v35  ;;  %v941_v35 = vsub.s32 (!%p1220_p11), 1, %v936_v30 }
  0x46   : > { %889 = vmatpush1.bf16.msra.mxu0 %v1319_v36  ;;  %847 = vmatprep.subr.bf16.mxu1 %v1320_v37 }
  0x47   : > { %890 = vmatprep.subr.bf16.mxu0 %v1322_v38 }
  0x49   : > { %848 = vmatpush1.bf16.msra.mxu1 %v1324_v39  ;;  %v938_v39 = vrot.slane (!%p1220_p11), %v933_v31, %v937_v34 }
  0x4a   : > { %891 = vmatpush1.bf16.msra.mxu0 %v1325_v40  ;;  %849 = vmatprep.subr.bf16.mxu1 %v1326_v41  ;;  %v954_v40 = vrot.slane (!%p1220_p11), %v949_v32, %v937_v34  ;;  %v942_v41 = vrot.slane (!%p1220_p11), %v933_v31, %v941_v35 }
  0x4b   : > { %892 = vmatprep.subr.bf16.mxu0 %v1328_v42  ;;  %v958_v42 = vrot.slane (!%p1220_p11), %v949_v32, %v941_v35 }
  0x4d   : > { %850 = vmatpush1.bf16.msra.mxu1 %v1330_v43 }
  0x4e   : > { %893 = vmatpush1.bf16.msra.mxu0 %v1331_v44  ;;  %851 = vmatprep.subr.bf16.mxu1 %v1332_v45  ;;  %v965_v44 = vld [vmem:[%s1666_s4] sm:$0xff] (!%p1220_p11) }
  0x4f   : > { %894 = vmatprep.subr.bf16.mxu0 %v1334_v46 }
  0x51   : > { %852 = vmatpush1.bf16.msra.mxu1 %v1336_v47 }
  0x52   : > { %895 = vmatpush1.bf16.msra.mxu0 %v1337_v48  ;;  %853 = vmatprep.subr.bf16.mxu1 %v1338_v49  ;;  %v966_v48 = vld [vmem:[%s1666_s4 + $0x8] sm:$0xff] (!%p1220_p11)  ;;  %v967_v49 = vld [vmem:[%s1666_s4 + $0x10] sm:$0xff] (!%p1220_p11) }
  0x53   : > { %896 = vmatprep.subr.bf16.mxu0 %v1340_v50  ;;  %v968_v50 = vld [vmem:[%s1666_s4 + $0x18] sm:$0xff] (!%p1220_p11) }
  0x55   : > { %854 = vmatpush1.bf16.msra.mxu1 %v1342_v51 }
  0x56   : > { %897 = vmatpush1.bf16.msra.mxu0 %v1343_v53  ;;  %855 = vmatprep.subr.bf16.mxu1 %v1344_v54 }
  0x57   : > { %898 = vmatprep.subr.bf16.mxu0 %v1346_v55 }
  0x59   : > { %856 = vmatpush1.bf16.msra.mxu1 %v1348_v57 }
  0x5a   : > { %899 = vmatpush1.bf16.msra.mxu0 %v1349_v58  ;;  %857 = vmatprep.subr.bf16.mxu1 %v1350_v59 }
  0x5b   : > { %900 = vmatprep.subr.bf16.mxu0 %v1352_v60 }
  0x5d   : > { %858 = vmatpush1.bf16.msra.mxu1 %v1354_v61 }
  0x5e   : > { %901 = vmatpush1.bf16.msra.mxu0 %v1355_v62  ;;  %859 = vmatprep.subr.bf16.mxu1 %v1356_v63 }
  0x5f   : > { %902 = vmatprep.subr.bf16.mxu0 %v1358_v0 }
  0x61   : > { %860 = vmatpush1.bf16.msra.mxu1 %v1360_v1 }
  0x62   : > { %903 = vmatpush1.bf16.msra.mxu0 %v1361_v2  ;;  %861 = vmatprep.subr.bf16.mxu1 %v1362_v3 }
  0x63   : > { %904 = vmatprep.subr.bf16.mxu0 %v1364_v4 }
  0x65   : > { %862 = vmatpush1.bf16.msra.mxu1 %v1366_v5 }
  0x66   : > { %905 = vmatpush1.bf16.msra.mxu0 %v1367_v6 }
  0x68   : > { %864 = vmatmul.mubr.bf16.vlgmr.msra.gmra.mrb[0].mxu1 %v1368_v7 }
  0x69   : > { %907 = vmatmul.mubr.bf16.vlgmr.msra.gmra.mrb[0].mxu0 %v1371_v8 }
 0x13b   : > { %v865_v9 = vpop.f32.mrb[0].mxu1 }
 0x13c   : > { %v908_v11 = vpop.f32.mrb[0].mxu0  ;;  %v867_v13 = vpop.f32.mrb[1].mxu1 }
 0x13d   : > { %v909_v12 = vadd.f32 %v908_v11, %v865_v9  ;;  %v910_v15 = vpop.f32.mrb[1].mxu0  ;;  %v869_v17 = vpop.f32.mrb[2].mxu1 }
 0x13e   : > { %v911_v16 = vadd.f32 %v910_v15, %v867_v13  ;;  %v912_v19 = vpop.f32.mrb[2].mxu0  ;;  %v871_v22 = vpop.f32.mrb[3].mxu1  ;;  %928 = sbr.rel (%p1220_p11) target bundleno = 341 (0x155), region = 71 }
 0x13f   : > { %v917_v20 = vadd.f32 %v909_v12, %v419_v10  ;;  %v913_v21 = vadd.f32 %v912_v19, %v869_v17  ;;  %v914_v24 = vpop.f32.mrb[3].mxu0 }
 0x140   : > { %v918_v25 = vadd.f32 %v911_v16, %v420_v14  ;;  %v915_v26 = vadd.f32 %v914_v24, %v871_v22 }
 0x141   : > { %921 = vst [vmem:[%s1667_s5] sm:$0xff] %v917_v20  ;;  %v919_v27 = vadd.f32 %v913_v21, %v421_v18 }
 0x142   : > { %922 = vst [vmem:[%s1667_s5 + $0x8] sm:$0xff] %v918_v25  ;;  %v920_v28 = vadd.f32 %v915_v26, %v422_v23 }
 0x143   : > { %923 = vst [vmem:[%s1667_s5 + $0x10] sm:$0xff] %v919_v27 }
 0x144   : > { %924 = vst [vmem:[%s1667_s5 + $0x18] sm:$0xff] %v920_v28 }
 0x148   : > { %v929_v33 = vld [vmem:[%s1667_s5] sm:$0xff] }
 0x149   : > { %v930_v36 = vld [vmem:[%s1667_s5 + $0x8] sm:$0xff]  ;;  %v945_v43 = vmul.f32 %v938_v39, %v929_v33 }
 0x14a   : > { %v931_v37 = vld [vmem:[%s1667_s5 + $0x10] sm:$0xff]  ;;  %v946_v45 = vmul.f32 %v942_v41, %v930_v36 }
 0x14b   : > { %v932_v38 = vld [vmem:[%s1667_s5 + $0x18] sm:$0xff]  ;;  %v947_v46 = vmul.f32 %v938_v39, %v931_v37  ;;  %v961_v51 = vadd.f32 %v954_v40, %v945_v43 }
 0x14c   : > { %v948_v47 = vmul.f32 %v942_v41, %v932_v38  ;;  %v962_v52 = vadd.f32 %v958_v42, %v946_v45 }
 0x14d   : > { %v963_v53 = vadd.f32 %v954_v40, %v947_v46  ;;  %v969_v55 = vadd.f32 %v965_v44, %v961_v51 }
 0x14e   : > { %v964_v54 = vadd.f32 %v958_v42, %v948_v47  ;;  %v970_v56 = vadd.f32 %v966_v48, %v962_v52 }
 0x14f   : > { %v971_v57 = vadd.f32 %v967_v49, %v963_v53  ;;  %v973_v59 = vmax.f32 %v969_v55, 0.0 }
 0x150   : > { %v972_v58 = vadd.f32 %v968_v50, %v964_v54  ;;  %v974_v60 = vmax.f32 %v970_v56, 0.0 }
 0x151   : > { %v975_v61 = vmax.f32 %v971_v57, 0.0  ;;  %977 = vst [vmem:[%s1667_s5] sm:$0xff] %v973_v59 }
 0x152   : > { %v976_v62 = vmax.f32 %v972_v58, 0.0  ;;  %978 = vst [vmem:[%s1667_s5 + $0x8] sm:$0xff] %v974_v60 }
 0x153   : > { %979 = vst [vmem:[%s1667_s5 + $0x10] sm:$0xff] %v975_v61 }
 0x154   : > { %980 = vst [vmem:[%s1667_s5 + $0x18] sm:$0xff] %v976_v62 }
 0x155 PF: > { %s15_s22 = sadd.s32 1, %s1412_s22   ;;  %s1668_s18 = smov %s1400_s19 }
 0x156   : > { %p12_p12 = scmp.ge.s32.totalorder %s15_s22, 7   ;;  %s1669_s19 = smov %s1480_s26 }
 0x157   : > { %s1670_s20 = smov %s1408_s21  ;;  %s1671_s21 = smov %s1673_s23 }
 0x158   :  { %14 = sbr.rel (!%p12_p12) target bundleno = 3 (0x3), region = 118 }

// kernel: drnseg_forward.46
= control target key start
LH: loop header
LB: loop body
LE: loop exit
PB: predicated region body
PF: predicated region fallthrough
CT: control target
= control target key end

     0   :  { %s2032_s15 = smov 0   ;;  %s2034_s16 = smov 0   ;;  %s2361_s0 = inlined_call_operand.vmem [shape: bf16[16,2560], index: 0, kind: input, shape index: {}]   ;;  %s2362_s1 = inlined_call_operand.vmem [shape: bf16[2560,512], index: 1, kind: input, shape index: {}]   ;;  %s2363_s2 = inlined_call_operand.vmem [shape: f32[1,512], index: 2, kind: input, shape index: {}]   ;;  %s2364_s3 = inlined_call_operand.vmem [shape: f32[1,512], index: 3, kind: input, shape index: {}]   ;;  %s2365_s4 = inlined_call_operand.vmem [shape: f32[16,512], index: 4, kind: output, shape index: {}]  }
   0x1   :  { %s2036_s17 = smov 0   ;;  %s2038_s18 = smov 0  }
   0x2   :  { %s2040_s19 = smov 0  }
   0x3 LB: > { %s26_s20 = sadd.s32 1, %s2000_s18  ;;  %p49_p1 = scmp.ne.s32.totalorder %s1992_s16, %s1988_s15  ;;  %s2004_s19 = sphi %s2040_s19, %s14_s19   ;;  %s2000_s18 = sphi %s2038_s18, %s2369_s18   ;;  %s1996_s17 = sphi %s2036_s17, %s2368_s17   ;;  %s1992_s16 = sphi %s2034_s16, %s2367_s16   ;;  %s1988_s15 = sphi %s2032_s15, %s2366_s15  }
   0x4   : > { %p27_p0 = scmp.ge.s32.totalorder %s26_s20, 5  ;;  %p50_p2 = scmp.eq.s32.totalorder %s2004_s19, 0 }
   0x5   : > { %s42_s22 = sadd.s32 1, %s1992_s16  ;;  %p1570_p5 = scmp.ge.s32.totalorder %s2004_s19, 5 }
   0x6   : > { %s2371_s20 = smov (%p27_p0, %s26_s20), 0  ;;  %p51_p3 = por %p50_p2, %p49_p1 }
   0x7   : > { %s38_s21 = ssub.s32 %s2000_s18, %s2371_s20  ;;  %199 = sbr.rel (%p1570_p5) target bundleno = 21 (0x15), region = 24 }
   0x8   : > { %p40_p4 = scmp.eq.s32.totalorder %s38_s21, 0 }
   0xa   : > { %s2067_s23 = scalar_select %p40_p4, %s1992_s16, %s42_s22  }
   0xe   : > { %202 = sbr.rel (!%p51_p3) target bundleno = 21 (0x15), region = 28  ;;  %s204_s24 = sand.u32 (%p51_p3), 1, %s1992_s16  }
   0xf   : > { %s1717_s25 = sshll.u32 (%p51_p3), %s2000_s18, 4  ;;  %s1571_s26 = sshll.u32 (%p51_p3), %s204_s24, 5 }
  0x10   : > { %s212_s29 = scalar_lea.vmem (%p51_p3), %s2361_s0, %s1717_s25  ;;  %s206_s30 = scalar_lea.vmem (%p51_p3), [#allocation2], %s1571_s26 }
  0x11   : > { %v225_v0 = vld [vmem:[%s212_s29] sm:$0xff] (%p51_p3)  ;;  %v227_v1 = vld [vmem:[%s212_s29 + $0x8] sm:$0xff] (%p51_p3)  ;;  %v229_v2 = vld [vmem:[%s212_s29 + $0x50] sm:$0xff] (%p51_p3) }
  0x12   : > { %226 = vst [vmem:[%s206_s30] sm:$0xff] (%p51_p3), %v225_v0  ;;  %228 = vst [vmem:[%s206_s30 + $0x8] sm:$0xff] (%p51_p3), %v227_v1  ;;  %v231_v3 = vld [vmem:[%s212_s29 + $0x58] sm:$0xff] (%p51_p3) }
  0x13   : > { %230 = vst [vmem:[%s206_s30 + $0x10] sm:$0xff] (%p51_p3), %v229_v2  ;;  %232 = vst [vmem:[%s206_s30 + $0x18] sm:$0xff] (%p51_p3), %v231_v3 }
  0x15 PF: > { %p1574_p6 = scmp.ge.s32.totalorder %s2004_s19, 1  ;;  %p252_p7 = scmp.lt.s32.totalorder %s2004_s19, 6 }
  0x17   : > { %p253_p8 = pnand %p1574_p6, %p252_p7 }
  0x18   : > { %s259_s5 = sand.u32 (!%p253_p8), 1, %s1988_s15   ;;  %s1576_s6 = sshll.u32 (!%p253_p8), %s1996_s17, 6 }
  0x19   : > { %256 = sbr.rel (%p253_p8) target bundleno = 400 (0x190), region = 55  ;;  %s1575_s7 = sshll.u32 (!%p253_p8), %s259_s5, 5 }
  0x1a   : > { %p311_p9 = scmp.lt.s32.totalorder (!%p253_p8), %s1576_s6, 319  ;;  %s2084_s12 = scalar_lea.vmem (!%p253_p8), [#allocation2], %s1575_s7 }
  0x1b   : > { %p1579_p10 = scmp.ne.s32.totalorder (!%p253_p8), %s1996_s17, 0 }
  0x20   : > { %s2373_s6 = smov (!%p311_p9, %s1576_s6), 319  ;;  %346 = sbr.rel (%p1579_p10) target bundleno = 39 (0x27), region = 63 }
  0x21   : > { %s1718_s8 = sshll.u32 %s2373_s6, 4  ;;  %v2006_v4 = vmov (!%p1579_p10), 0.0  }
  0x22   : > { %s2082_s11 = scalar_lea.vmem %s2362_s1, %s1718_s8  ;;  %347 = vst [vmem:[%s2365_s4] sm:$0xff] (!%p1579_p10), %v2006_v4  ;;  %348 = vst [vmem:[%s2365_s4 + $0x8] sm:$0xff] (!%p1579_p10), %v2006_v4 }
  0x23   : > { %349 = vst [vmem:[%s2365_s4 + $0x10] sm:$0xff] (!%p1579_p10), %v2006_v4  ;;  %350 = vst [vmem:[%s2365_s4 + $0x18] sm:$0xff] (!%p1579_p10), %v2006_v4 }
  0x24   : > { %351 = vst [vmem:[%s2365_s4 + $0x20] sm:$0xff] (!%p1579_p10), %v2006_v4  ;;  %352 = vst [vmem:[%s2365_s4 + $0x28] sm:$0xff] (!%p1579_p10), %v2006_v4 }
  0x25   : > { %353 = vst [vmem:[%s2365_s4 + $0x30] sm:$0xff] (!%p1579_p10), %v2006_v4  ;;  %354 = vst [vmem:[%s2365_s4 + $0x38] sm:$0xff] (!%p1579_p10), %v2006_v4 }
  0x27 PF: > { %v1768_v5 = vld [vmem:[%s2082_s11 + $0x4] ss:$16 sps:$4 sm:$0xff]   ;;  %v1770_v6 = vld [vmem:[%s2082_s11 + $0xc] ss:$16 sps:$4 sm:$0xff]   ;;  %v1772_v7 = vld [vmem:[%s2082_s11] ss:$16 sps:$4 sm:$0xff]  }
  0x28   : > { %1155 = vmatprep.subr.bf16.mxu0 %v1768_v5  ;;  %v1773_v8 = vld [vmem:[%s2082_s11 + $0x8] ss:$16 sps:$4 sm:$0xff]   ;;  %1241 = vmatprep.subr.bf16.mxu1 %v1770_v6  ;;  %v1774_v9 = vld [vmem:[%s2082_s11 + $0x24] ss:$16 sps:$4 sm:$0xff]   ;;  %v1776_v10 = vld [vmem:[%s2082_s11 + $0x2c] ss:$16 sps:$4 sm:$0xff]  }
  0x29   : > { %1156 = vmatpush1.bf16.msra.mxu0 %v1772_v7  ;;  %1242 = vmatpush1.bf16.msra.mxu1 %v1773_v8  ;;  %v1778_v11 = vld [vmem:[%s2082_s11 + $0x20] ss:$16 sps:$4 sm:$0xff]   ;;  %v1779_v12 = vld [vmem:[%s2082_s11 + $0x28] ss:$16 sps:$4 sm:$0xff]   ;;  %v1780_v13 = vld [vmem:[%s2082_s11 + $0x44] ss:$16 sps:$4 sm:$0xff]  }
  0x2a   : > { %1157 = vmatprep.subr.bf16.mxu0 %v1774_v9  ;;  %1243 = vmatprep.subr.bf16.mxu1 %v1776_v10  ;;  %v1782_v14 = vld [vmem:[%s2082_s11 + $0x4c] ss:$16 sps:$4 sm:$0xff]   ;;  %v1784_v15 = vld [vmem:[%s2082_s11 + $0x40] ss:$16 sps:$4 sm:$0xff]   ;;  %v1785_v16 = vld [vmem:[%s2082_s11 + $0x48] ss:$16 sps:$4 sm:$0xff]  }
  0x2b   : > { %v1786_v17 = vld [vmem:[%s2082_s11 + $0x64] ss:$16 sps:$4 sm:$0xff]   ;;  %v1788_v18 = vld [vmem:[%s2082_s11 + $0x6c] ss:$16 sps:$4 sm:$0xff]   ;;  %v1790_v19 = vld [vmem:[%s2082_s11 + $0x60] ss:$16 sps:$4 sm:$0xff]  }
  0x2c   : > { %v1791_v20 = vld [vmem:[%s2082_s11 + $0x68] ss:$16 sps:$4 sm:$0xff]   ;;  %v1792_v21 = vld [vmem:[%s2082_s11 + $0x84] ss:$16 sps:$4 sm:$0xff]   ;;  %v1794_v22 = vld [vmem:[%s2082_s11 + $0x8c] ss:$16 sps:$4 sm:$0xff]  }
  0x2d   : > { %1158 = vmatpush1.bf16.msra.mxu0 %v1778_v11  ;;  %1244 = vmatpush1.bf16.msra.mxu1 %v1779_v12  ;;  %v1796_v23 = vld [vmem:[%s2082_s11 + $0x80] ss:$16 sps:$4 sm:$0xff]   ;;  %v1797_v24 = vld [vmem:[%s2082_s11 + $0x88] ss:$16 sps:$4 sm:$0xff]   ;;  %v1798_v25 = vld [vmem:[%s2082_s11 + $0xa4] ss:$16 sps:$4 sm:$0xff]  }
  0x2e   : > { %1159 = vmatprep.subr.bf16.mxu0 %v1780_v13  ;;  %1245 = vmatprep.subr.bf16.mxu1 %v1782_v14  ;;  %v1800_v26 = vld [vmem:[%s2082_s11 + $0xac] ss:$16 sps:$4 sm:$0xff]   ;;  %v1802_v27 = vld [vmem:[%s2082_s11 + $0xa0] ss:$16 sps:$4 sm:$0xff]   ;;  %v1803_v28 = vld [vmem:[%s2082_s11 + $0xa8] ss:$16 sps:$4 sm:$0xff]  }
  0x2f   : > { %v1804_v29 = vld [vmem:[%s2082_s11 + $0xc4] ss:$16 sps:$4 sm:$0xff]   ;;  %v1806_v30 = vld [vmem:[%s2082_s11 + $0xcc] ss:$16 sps:$4 sm:$0xff]   ;;  %v1808_v31 = vld [vmem:[%s2082_s11 + $0xc0] ss:$16 sps:$4 sm:$0xff]  }
  0x30   : > { %v1809_v32 = vld [vmem:[%s2082_s11 + $0xc8] ss:$16 sps:$4 sm:$0xff]   ;;  %v1810_v33 = vld [vmem:[%s2082_s11 + $0xe4] ss:$16 sps:$4 sm:$0xff]   ;;  %v1812_v34 = vld [vmem:[%s2082_s11 + $0xec] ss:$16 sps:$4 sm:$0xff]  }
  0x31   : > { %1160 = vmatpush1.bf16.msra.mxu0 %v1784_v15  ;;  %1246 = vmatpush1.bf16.msra.mxu1 %v1785_v16  ;;  %v1814_v35 = vld [vmem:[%s2082_s11 + $0xe0] ss:$16 sps:$4 sm:$0xff]   ;;  %v1815_v36 = vld [vmem:[%s2082_s11 + $0xe8] ss:$16 sps:$4 sm:$0xff]   ;;  %v1816_v37 = vld [vmem:[%s2082_s11 + $0x104] ss:$16 sps:$4 sm:$0xff]  }
  0x32   : > { %1161 = vmatprep.subr.bf16.mxu0 %v1786_v17  ;;  %1247 = vmatprep.subr.bf16.mxu1 %v1788_v18  ;;  %v1818_v38 = vld [vmem:[%s2082_s11 + $0x10c] ss:$16 sps:$4 sm:$0xff]   ;;  %v1820_v39 = vld [vmem:[%s2082_s11 + $0x100] ss:$16 sps:$4 sm:$0xff]   ;;  %v1821_v40 = vld [vmem:[%s2082_s11 + $0x108] ss:$16 sps:$4 sm:$0xff]  }
  0x33   : > { %v1822_v41 = vld [vmem:[%s2082_s11 + $0x124] ss:$16 sps:$4 sm:$0xff]   ;;  %v1824_v42 = vld [vmem:[%s2082_s11 + $0x12c] ss:$16 sps:$4 sm:$0xff]   ;;  %v1826_v43 = vld [vmem:[%s2082_s11 + $0x120] ss:$16 sps:$4 sm:$0xff]  }
  0x34   : > { %v1827_v44 = vld [vmem:[%s2082_s11 + $0x128] ss:$16 sps:$4 sm:$0xff]   ;;  %v1828_v45 = vld [vmem:[%s2082_s11 + $0x144] ss:$16 sps:$4 sm:$0xff]   ;;  %v1830_v46 = vld [vmem:[%s2082_s11 + $0x14c] ss:$16 sps:$4 sm:$0xff]  }
  0x35   : > { %1162 = vmatpush1.bf16.msra.mxu0 %v1790_v19  ;;  %1248 = vmatpush1.bf16.msra.mxu1 %v1791_v20  ;;  %v1832_v47 = vld [vmem:[%s2082_s11 + $0x140] ss:$16 sps:$4 sm:$0xff]   ;;  %v1833_v48 = vld [vmem:[%s2082_s11 + $0x148] ss:$16 sps:$4 sm:$0xff]   ;;  %v1834_v49 = vld [vmem:[%s2082_s11 + $0x164] ss:$16 sps:$4 sm:$0xff]  }
  0x36   : > { %1163 = vmatprep.subr.bf16.mxu0 %v1792_v21  ;;  %1249 = vmatprep.subr.bf16.mxu1 %v1794_v22  ;;  %v1836_v50 = vld [vmem:[%s2082_s11 + $0x16c] ss:$16 sps:$4 sm:$0xff]   ;;  %v1838_v51 = vld [vmem:[%s2082_s11 + $0x160] ss:$16 sps:$4 sm:$0xff]   ;;  %v1839_v52 = vld [vmem:[%s2082_s11 + $0x168] ss:$16 sps:$4 sm:$0xff]  }
  0x37   : > { %v1866_v53 = vld [vmem:[%s2084_s12 + $0x4] ss:$16 sps:$4 sm:$0xff]   ;;  %v1842_v55 = vld [vmem:[%s2082_s11 + $0x18c] ss:$16 sps:$4 sm:$0xff]   ;;  %v1844_v56 = vld [vmem:[%s2082_s11 + $0x180] ss:$16 sps:$4 sm:$0xff]  }
  0x38   : > { %v1840_v54 = vld [vmem:[%s2082_s11 + $0x184] ss:$16 sps:$4 sm:$0xff]   ;;  %1187 = vmatprep.mubr.bf16.mxu0 %v1866_v53  ;;  %1273 = vmatprep.mubr.bf16.mxu1 %v1866_v53  ;;  %v1845_v57 = vld [vmem:[%s2082_s11 + $0x188] ss:$16 sps:$4 sm:$0xff]   ;;  %v1848_v59 = vld [vmem:[%s2082_s11 + $0x1ac] ss:$16 sps:$4 sm:$0xff]  }
  0x39   : > { %1164 = vmatpush1.bf16.msra.mxu0 %v1796_v23  ;;  %1250 = vmatpush1.bf16.msra.mxu1 %v1797_v24  ;;  %v1846_v58 = vld [vmem:[%s2082_s11 + $0x1a4] ss:$16 sps:$4 sm:$0xff]   ;;  %v1850_v60 = vld [vmem:[%s2082_s11 + $0x1a0] ss:$16 sps:$4 sm:$0xff]   ;;  %v1851_v61 = vld [vmem:[%s2082_s11 + $0x1a8] ss:$16 sps:$4 sm:$0xff]  }
  0x3a   : > { %1165 = vmatprep.subr.bf16.mxu0 %v1798_v25  ;;  %1251 = vmatprep.subr.bf16.mxu1 %v1800_v26  ;;  %v1852_v62 = vld [vmem:[%s2082_s11 + $0x1c4] ss:$16 sps:$4 sm:$0xff]   ;;  %v1854_v63 = vld [vmem:[%s2082_s11 + $0x1cc] ss:$16 sps:$4 sm:$0xff]   ;;  %v1856_v0 = vld [vmem:[%s2082_s11 + $0x1c0] ss:$16 sps:$4 sm:$0xff]  }
  0x3b   : > { %v1857_v1 = vld [vmem:[%s2082_s11 + $0x1c8] ss:$16 sps:$4 sm:$0xff]   ;;  %v1858_v2 = vld [vmem:[%s2082_s11 + $0x1e4] ss:$16 sps:$4 sm:$0xff]   ;;  %v1860_v3 = vld [vmem:[%s2082_s11 + $0x1ec] ss:$16 sps:$4 sm:$0xff]  }
  0x3c   : > { %v1862_v4 = vld [vmem:[%s2082_s11 + $0x1e0] ss:$16 sps:$4 sm:$0xff]   ;;  %v1863_v5 = vld [vmem:[%s2082_s11 + $0x1e8] ss:$16 sps:$4 sm:$0xff]   ;;  %v1869_v6 = vld [vmem:[%s2082_s11 + $0x204] ss:$16 sps:$4 sm:$0xff]  }
  0x3d   : > { %1166 = vmatpush1.bf16.msra.mxu0 %v1802_v27  ;;  %1252 = vmatpush1.bf16.msra.mxu1 %v1803_v28  ;;  %v1872_v7 = vld [vmem:[%s2082_s11 + $0x20c] ss:$16 sps:$4 sm:$0xff]   ;;  %v1864_v8 = vld [vmem:[%s2084_s12] ss:$16 sps:$4 sm:$0xff]   ;;  %v1870_v10 = vld [vmem:[%s2082_s11 + $0x208] ss:$16 sps:$4 sm:$0xff]  }
  0x3e   : > { %1167 = vmatprep.subr.bf16.mxu0 %v1804_v29  ;;  %1253 = vmatprep.subr.bf16.mxu1 %v1806_v30  ;;  %v1867_v9 = vld [vmem:[%s2082_s11 + $0x200] ss:$16 sps:$4 sm:$0xff]   ;;  %v1875_v11 = vld [vmem:[%s2082_s11 + $0x224] ss:$16 sps:$4 sm:$0xff]   ;;  %v1878_v12 = vld [vmem:[%s2082_s11 + $0x22c] ss:$16 sps:$4 sm:$0xff]  }
  0x3f   : > { %v1873_v13 = vld [vmem:[%s2082_s11 + $0x220] ss:$16 sps:$4 sm:$0xff]   ;;  %v1876_v14 = vld [vmem:[%s2082_s11 + $0x228] ss:$16 sps:$4 sm:$0xff]   ;;  %v1881_v15 = vld [vmem:[%s2082_s11 + $0x244] ss:$16 sps:$4 sm:$0xff]  }
  0x40   : > { %v1884_v16 = vld [vmem:[%s2082_s11 + $0x24c] ss:$16 sps:$4 sm:$0xff]   ;;  %v1879_v17 = vld [vmem:[%s2082_s11 + $0x240] ss:$16 sps:$4 sm:$0xff]   ;;  %v1882_v18 = vld [vmem:[%s2082_s11 + $0x248] ss:$16 sps:$4 sm:$0xff]  }
  0x41   : > { %1168 = vmatpush1.bf16.msra.mxu0 %v1808_v31  ;;  %1254 = vmatpush1.bf16.msra.mxu1 %v1809_v32  ;;  %v1887_v19 = vld [vmem:[%s2082_s11 + $0x264] ss:$16 sps:$4 sm:$0xff]   ;;  %v1890_v20 = vld [vmem:[%s2082_s11 + $0x26c] ss:$16 sps:$4 sm:$0xff]   ;;  %v1885_v21 = vld [vmem:[%s2082_s11 + $0x260] ss:$16 sps:$4 sm:$0xff]  }
  0x42   : > { %1169 = vmatprep.subr.bf16.mxu0 %v1810_v33  ;;  %1255 = vmatprep.subr.bf16.mxu1 %v1812_v34  ;;  %v1888_v22 = vld [vmem:[%s2082_s11 + $0x268] ss:$16 sps:$4 sm:$0xff]   ;;  %v1893_v23 = vld [vmem:[%s2082_s11 + $0x284] ss:$16 sps:$4 sm:$0xff]   ;;  %v1896_v24 = vld [vmem:[%s2082_s11 + $0x28c] ss:$16 sps:$4 sm:$0xff]  }
  0x43   : > { %v1891_v25 = vld [vmem:[%s2082_s11 + $0x280] ss:$16 sps:$4 sm:$0xff]   ;;  %v1894_v26 = vld [vmem:[%s2082_s11 + $0x288] ss:$16 sps:$4 sm:$0xff]   ;;  %v1899_v27 = vld [vmem:[%s2082_s11 + $0x2a4] ss:$16 sps:$4 sm:$0xff]  }
  0x44   : > { %v1902_v28 = vld [vmem:[%s2082_s11 + $0x2ac] ss:$16 sps:$4 sm:$0xff]   ;;  %v1897_v29 = vld [vmem:[%s2082_s11 + $0x2a0] ss:$16 sps:$4 sm:$0xff]   ;;  %v1900_v30 = vld [vmem:[%s2082_s11 + $0x2a8] ss:$16 sps:$4 sm:$0xff]  }
  0x45   : > { %1170 = vmatpush1.bf16.msra.mxu0 %v1814_v35  ;;  %1256 = vmatpush1.bf16.msra.mxu1 %v1815_v36  ;;  %v1905_v31 = vld [vmem:[%s2082_s11 + $0x2c4] ss:$16 sps:$4 sm:$0xff]   ;;  %v1908_v32 = vld [vmem:[%s2082_s11 + $0x2cc] ss:$16 sps:$4 sm:$0xff]   ;;  %v1903_v34 = vld [vmem:[%s2082_s11 + $0x2c0] ss:$16 sps:$4 sm:$0xff]  }
  0x46   : > { %1171 = vmatprep.subr.bf16.mxu0 %v1816_v37  ;;  %1257 = vmatprep.subr.bf16.mxu1 %v1818_v38  ;;  %v1965_v33 = vld [vmem:[%s2084_s12 + $0xc] ss:$16 sps:$4 sm:$0xff]   ;;  %v1906_v35 = vld [vmem:[%s2082_s11 + $0x2c8] ss:$16 sps:$4 sm:$0xff]   ;;  %v1911_v36 = vld [vmem:[%s2082_s11 + $0x2e4] ss:$16 sps:$4 sm:$0xff]  }
  0x47   : > { %v1914_v37 = vld [vmem:[%s2082_s11 + $0x2ec] ss:$16 sps:$4 sm:$0xff]   ;;  %v1909_v38 = vld [vmem:[%s2082_s11 + $0x2e0] ss:$16 sps:$4 sm:$0xff]   ;;  %p1712_p11 = scmp.ne.s32.totalorder %s1996_s17, 4 }
  0x48   : > { %v1938_v53 = vld [vmem:[%s2082_s11 + $0x36c] ss:$16 sps:$4 sm:$0xff]  }
  0x49   : > { %1172 = vmatpush1.bf16.msra.mxu0 %v1820_v39  ;;  %1258 = vmatpush1.bf16.msra.mxu1 %v1821_v40  ;;  %v1912_v39 = vld [vmem:[%s2082_s11 + $0x2e8] ss:$16 sps:$4 sm:$0xff]   ;;  %v1917_v40 = vld [vmem:[%s2082_s11 + $0x304] ss:$16 sps:$4 sm:$0xff]  }
  0x4a   : > { %1173 = vmatprep.subr.bf16.mxu0 %v1822_v41  ;;  %1259 = vmatprep.subr.bf16.mxu1 %v1824_v42  ;;  %v1920_v41 = vld [vmem:[%s2082_s11 + $0x30c] ss:$16 sps:$4 sm:$0xff]   ;;  %v1915_v42 = vld [vmem:[%s2082_s11 + $0x300] ss:$16 sps:$4 sm:$0xff]  }
  0x4d   : > { %1174 = vmatpush1.bf16.msra.mxu0 %v1826_v43  ;;  %1260 = vmatpush1.bf16.msra.mxu1 %v1827_v44  ;;  %v1918_v43 = vld [vmem:[%s2082_s11 + $0x308] ss:$16 sps:$4 sm:$0xff]   ;;  %v1923_v44 = vld [vmem:[%s2082_s11 + $0x324] ss:$16 sps:$4 sm:$0xff]  }
  0x4e   : > { %1175 = vmatprep.subr.bf16.mxu0 %v1828_v45  ;;  %1261 = vmatprep.subr.bf16.mxu1 %v1830_v46  ;;  %v1926_v45 = vld [vmem:[%s2082_s11 + $0x32c] ss:$16 sps:$4 sm:$0xff]   ;;  %v1921_v46 = vld [vmem:[%s2082_s11 + $0x320] ss:$16 sps:$4 sm:$0xff]  }
  0x51   : > { %1176 = vmatpush1.bf16.msra.mxu0 %v1832_v47  ;;  %1262 = vmatpush1.bf16.msra.mxu1 %v1833_v48  ;;  %v1924_v47 = vld [vmem:[%s2082_s11 + $0x328] ss:$16 sps:$4 sm:$0xff]   ;;  %v1929_v48 = vld [vmem:[%s2082_s11 + $0x344] ss:$16 sps:$4 sm:$0xff]  }
  0x52   : > { %1177 = vmatprep.subr.bf16.mxu0 %v1834_v49  ;;  %1263 = vmatprep.subr.bf16.mxu1 %v1836_v50  ;;  %v1932_v49 = vld [vmem:[%s2082_s11 + $0x34c] ss:$16 sps:$4 sm:$0xff]   ;;  %v1927_v50 = vld [vmem:[%s2082_s11 + $0x340] ss:$16 sps:$4 sm:$0xff]  }
  0x55   : > { %1178 = vmatpush1.bf16.msra.mxu0 %v1838_v51  ;;  %1264 = vmatpush1.bf16.msra.mxu1 %v1839_v52  ;;  %v1930_v51 = vld [vmem:[%s2082_s11 + $0x348] ss:$16 sps:$4 sm:$0xff]   ;;  %v1935_v52 = vld [vmem:[%s2082_s11 + $0x364] ss:$16 sps:$4 sm:$0xff]  }
  0x56   : > { %1179 = vmatprep.subr.bf16.mxu0 %v1840_v54  ;;  %1265 = vmatprep.subr.bf16.mxu1 %v1842_v55  ;;  %v1933_v54 = vld [vmem:[%s2082_s11 + $0x360] ss:$16 sps:$4 sm:$0xff]   ;;  %v1936_v55 = vld [vmem:[%s2082_s11 + $0x368] ss:$16 sps:$4 sm:$0xff]  }
  0x59   : > { %1180 = vmatpush1.bf16.msra.mxu0 %v1844_v56  ;;  %1266 = vmatpush1.bf16.msra.mxu1 %v1845_v57  ;;  %v1941_v56 = vld [vmem:[%s2082_s11 + $0x384] ss:$16 sps:$4 sm:$0xff]   ;;  %v1944_v57 = vld [vmem:[%s2082_s11 + $0x38c] ss:$16 sps:$4 sm:$0xff]  }
  0x5a   : > { %1181 = vmatprep.subr.bf16.mxu0 %v1846_v58  ;;  %1267 = vmatprep.subr.bf16.mxu1 %v1848_v59  ;;  %v1939_v58 = vld [vmem:[%s2082_s11 + $0x380] ss:$16 sps:$4 sm:$0xff]   ;;  %v1942_v59 = vld [vmem:[%s2082_s11 + $0x388] ss:$16 sps:$4 sm:$0xff]  }
  0x5d   : > { %1182 = vmatpush1.bf16.msra.mxu0 %v1850_v60  ;;  %1268 = vmatpush1.bf16.msra.mxu1 %v1851_v61  ;;  %v1947_v60 = vld [vmem:[%s2082_s11 + $0x3a4] ss:$16 sps:$4 sm:$0xff]   ;;  %v1950_v61 = vld [vmem:[%s2082_s11 + $0x3ac] ss:$16 sps:$4 sm:$0xff]  }
  0x5e   : > { %1183 = vmatprep.subr.bf16.mxu0 %v1852_v62  ;;  %1269 = vmatprep.subr.bf16.mxu1 %v1854_v63  ;;  %v1945_v62 = vld [vmem:[%s2082_s11 + $0x3a0] ss:$16 sps:$4 sm:$0xff]   ;;  %v1948_v63 = vld [vmem:[%s2082_s11 + $0x3a8] ss:$16 sps:$4 sm:$0xff]  }
  0x61   : > { %1184 = vmatpush1.bf16.msra.mxu0 %v1856_v0  ;;  %1270 = vmatpush1.bf16.msra.mxu1 %v1857_v1  ;;  %v1953_v0 = vld [vmem:[%s2082_s11 + $0x3c4] ss:$16 sps:$4 sm:$0xff]   ;;  %v1956_v1 = vld [vmem:[%s2082_s11 + $0x3cc] ss:$16 sps:$4 sm:$0xff]  }
  0x62   : > { %1185 = vmatprep.subr.bf16.mxu0 %v1858_v2  ;;  %1271 = vmatprep.subr.bf16.mxu1 %v1860_v3  ;;  %v1951_v2 = vld [vmem:[%s2082_s11 + $0x3c0] ss:$16 sps:$4 sm:$0xff]   ;;  %v1954_v3 = vld [vmem:[%s2082_s11 + $0x3c8] ss:$16 sps:$4 sm:$0xff]  }
  0x65   : > { %1186 = vmatpush1.bf16.msra.mxu0 %v1862_v4  ;;  %1272 = vmatpush1.bf16.msra.mxu1 %v1863_v5  ;;  %v1959_v4 = vld [vmem:[%s2082_s11 + $0x3e4] ss:$16 sps:$4 sm:$0xff]   ;;  %v1962_v5 = vld [vmem:[%s2082_s11 + $0x3ec] ss:$16 sps:$4 sm:$0xff]  }
  0x66   : > { %1198 = vmatprep.subr.bf16.mxu0 %v1869_v6  ;;  %1284 = vmatprep.subr.bf16.mxu1 %v1872_v7  ;;  %v1957_v6 = vld [vmem:[%s2082_s11 + $0x3e0] ss:$16 sps:$4 sm:$0xff]   ;;  %v1960_v7 = vld [vmem:[%s2082_s11 + $0x3e8] ss:$16 sps:$4 sm:$0xff]  }
  0x68   : > { %1188 = vmatmul.mubr.bf16.vlgmr.msra.gmra.mrb[0].mxu0 %v1864_v8  ;;  %1274 = vmatmul.mubr.bf16.vlgmr.msra.gmra.mrb[0].mxu1 %v1864_v8  ;;  %v1963_v8 = vld [vmem:[%s2084_s12 + $0x8] ss:$16 sps:$4 sm:$0xff]  }
  0x69   : > { %1199 = vmatpush1.bf16.msra.mxu0 %v1867_v9  ;;  %1285 = vmatpush1.bf16.msra.mxu1 %v1870_v10  ;;  %v355_v9 = vld [vmem:[%s2365_s4] sm:$0xff]  ;;  %v357_v10 = vld [vmem:[%s2365_s4 + $0x10] sm:$0xff] }
  0x6a   : > { %1200 = vmatprep.subr.bf16.mxu0 %v1875_v11  ;;  %1286 = vmatprep.subr.bf16.mxu1 %v1878_v12  ;;  %v356_v11 = vld [vmem:[%s2365_s4 + $0x8] sm:$0xff]  ;;  %v358_v12 = vld [vmem:[%s2365_s4 + $0x18] sm:$0xff] }
  0x6b   : > { %1230 = vmatprep.mubr.bf16.mxu0 %v1965_v33  ;;  %1316 = vmatprep.mubr.bf16.mxu1 %v1965_v33  ;;  %v1357_v33 = vlaneseq (!%p1712_p11) }
  0x6d   : > { %1201 = vmatpush1.bf16.msra.mxu0 %v1873_v13  ;;  %1287 = vmatpush1.bf16.msra.mxu1 %v1876_v14 }
  0x6e   : > { %1202 = vmatprep.subr.bf16.mxu0 %v1881_v15  ;;  %1288 = vmatprep.subr.bf16.mxu1 %v1884_v16  ;;  %v359_v15 = vld [vmem:[%s2365_s4 + $0x20] sm:$0xff]  ;;  %v361_v16 = vld [vmem:[%s2365_s4 + $0x30] sm:$0xff] }
  0x71   : > { %1203 = vmatpush1.bf16.msra.mxu0 %v1879_v17  ;;  %1289 = vmatpush1.bf16.msra.mxu1 %v1882_v18 }
  0x72   : > { %1204 = vmatprep.subr.bf16.mxu0 %v1887_v19  ;;  %1290 = vmatprep.subr.bf16.mxu1 %v1890_v20 }
  0x75   : > { %1205 = vmatpush1.bf16.msra.mxu0 %v1885_v21  ;;  %1291 = vmatpush1.bf16.msra.mxu1 %v1888_v22  ;;  %v360_v21 = vld [vmem:[%s2365_s4 + $0x28] sm:$0xff]  ;;  %v362_v22 = vld [vmem:[%s2365_s4 + $0x38] sm:$0xff] }
  0x76   : > { %1206 = vmatprep.subr.bf16.mxu0 %v1893_v23  ;;  %1292 = vmatprep.subr.bf16.mxu1 %v1896_v24 }
  0x79   : > { %1207 = vmatpush1.bf16.msra.mxu0 %v1891_v25  ;;  %1293 = vmatpush1.bf16.msra.mxu1 %v1894_v26 }
  0x7a   : > { %1208 = vmatprep.subr.bf16.mxu0 %v1899_v27  ;;  %1294 = vmatprep.subr.bf16.mxu1 %v1902_v28 }
  0x7d   : > { %1209 = vmatpush1.bf16.msra.mxu0 %v1897_v29  ;;  %1295 = vmatpush1.bf16.msra.mxu1 %v1900_v30 }
  0x7e   : > { %1210 = vmatprep.subr.bf16.mxu0 %v1905_v31  ;;  %1296 = vmatprep.subr.bf16.mxu1 %v1908_v32 }
  0x81   : > { %1211 = vmatpush1.bf16.msra.mxu0 %v1903_v34  ;;  %1297 = vmatpush1.bf16.msra.mxu1 %v1906_v35  ;;  %v1358_v34 = vshrl.u32 (!%p1712_p11), %v1357_v33, 7  ;;  %v1355_v35 = vld [vmem:[%s2363_s2] sm:$0xf] (!%p1712_p11) }
  0x82   : > { %1212 = vmatprep.subr.bf16.mxu0 %v1911_v36  ;;  %1298 = vmatprep.subr.bf16.mxu1 %v1914_v37  ;;  %v1385_v36 = vld [vmem:[%s2364_s3] sm:$0xf] (!%p1712_p11) }
  0x85   : > { %1213 = vmatpush1.bf16.msra.mxu0 %v1909_v38  ;;  %1299 = vmatpush1.bf16.msra.mxu1 %v1912_v39  ;;  %v1359_v38 = vsub.s32 (!%p1712_p11), 0, %v1358_v34 }
  0x86   : > { %1214 = vmatprep.subr.bf16.mxu0 %v1917_v40  ;;  %1300 = vmatprep.subr.bf16.mxu1 %v1920_v41  ;;  %v1363_v40 = vsub.s32 (!%p1712_p11), 1, %v1358_v34  ;;  %v1367_v41 = vsub.s32 (!%p1712_p11), 2, %v1358_v34 }
  0x89   : > { %1215 = vmatpush1.bf16.msra.mxu0 %v1915_v42  ;;  %1301 = vmatpush1.bf16.msra.mxu1 %v1918_v43  ;;  %v1371_v42 = vsub.s32 (!%p1712_p11), 3, %v1358_v34 }
  0x8a   : > { %1216 = vmatprep.subr.bf16.mxu0 %v1923_v44  ;;  %1302 = vmatprep.subr.bf16.mxu1 %v1926_v45 }
  0x8d   : > { %1217 = vmatpush1.bf16.msra.mxu0 %v1921_v46  ;;  %1303 = vmatpush1.bf16.msra.mxu1 %v1924_v47  ;;  %v1360_v46 = vrot.slane (!%p1712_p11), %v1355_v35, %v1359_v38  ;;  %v1390_v47 = vrot.slane (!%p1712_p11), %v1385_v36, %v1359_v38 }
  0x8e   : > { %1218 = vmatprep.subr.bf16.mxu0 %v1929_v48  ;;  %1304 = vmatprep.subr.bf16.mxu1 %v1932_v49  ;;  %v1364_v48 = vrot.slane (!%p1712_p11), %v1355_v35, %v1363_v40  ;;  %v1394_v49 = vrot.slane (!%p1712_p11), %v1385_v36, %v1363_v40 }
  0x91   : > { %1219 = vmatpush1.bf16.msra.mxu0 %v1927_v50  ;;  %1305 = vmatpush1.bf16.msra.mxu1 %v1930_v51 }
  0x92   : > { %1220 = vmatprep.subr.bf16.mxu0 %v1935_v52  ;;  %1306 = vmatprep.subr.bf16.mxu1 %v1938_v53  ;;  %v1368_v53 = vrot.slane (!%p1712_p11), %v1355_v35, %v1367_v41 }
  0x95   : > { %1221 = vmatpush1.bf16.msra.mxu0 %v1933_v54  ;;  %1307 = vmatpush1.bf16.msra.mxu1 %v1936_v55  ;;  %v1398_v54 = vrot.slane (!%p1712_p11), %v1385_v36, %v1367_v41  ;;  %v1372_v55 = vrot.slane (!%p1712_p11), %v1355_v35, %v1371_v42 }
  0x96   : > { %1222 = vmatprep.subr.bf16.mxu0 %v1941_v56  ;;  %1308 = vmatprep.subr.bf16.mxu1 %v1944_v57  ;;  %v1402_v56 = vrot.slane (!%p1712_p11), %v1385_v36, %v1371_v42 }
  0x99   : > { %1223 = vmatpush1.bf16.msra.mxu0 %v1939_v58  ;;  %1309 = vmatpush1.bf16.msra.mxu1 %v1942_v59 }
  0x9a   : > { %1224 = vmatprep.subr.bf16.mxu0 %v1947_v60  ;;  %1310 = vmatprep.subr.bf16.mxu1 %v1950_v61 }
  0x9d   : > { %1225 = vmatpush1.bf16.msra.mxu0 %v1945_v62  ;;  %1311 = vmatpush1.bf16.msra.mxu1 %v1948_v63 }
  0x9e   : > { %1226 = vmatprep.subr.bf16.mxu0 %v1953_v0  ;;  %1312 = vmatprep.subr.bf16.mxu1 %v1956_v1 }
  0xa1   : > { %1227 = vmatpush1.bf16.msra.mxu0 %v1951_v2  ;;  %1313 = vmatpush1.bf16.msra.mxu1 %v1954_v3 }
  0xa2   : > { %1228 = vmatprep.subr.bf16.mxu0 %v1959_v4  ;;  %1314 = vmatprep.subr.bf16.mxu1 %v1962_v5 }
  0xa5   : > { %1229 = vmatpush1.bf16.msra.mxu0 %v1957_v6  ;;  %1315 = vmatpush1.bf16.msra.mxu1 %v1960_v7 }
  0xa8   : > { %1231 = vmatmul.mubr.bf16.vlgmr.msra.gmra.mrb[0].mxu0 %v1963_v8  ;;  %1317 = vmatmul.mubr.bf16.vlgmr.msra.gmra.mrb[0].mxu1 %v1963_v8 }
 0x17b   : > { %v1232_v13 = vpop.f32.mrb[0].mxu0  ;;  %v1318_v14 = vpop.f32.mrb[0].mxu1  ;;  %1346 = sbr.rel (%p1712_p11) target bundleno = 400 (0x190), region = 67 }
 0x17c   : > { %v1327_v17 = vadd.f32 %v1232_v13, %v355_v9  ;;  %v1329_v18 = vadd.f32 %v1318_v14, %v357_v10  ;;  %v1234_v19 = vpop.f32.mrb[1].mxu0  ;;  %v1320_v20 = vpop.f32.mrb[1].mxu1 }
 0x17d   : > { %v1328_v23 = vadd.f32 %v1234_v19, %v356_v11  ;;  %v1330_v24 = vadd.f32 %v1320_v20, %v358_v12  ;;  %v1236_v25 = vpop.f32.mrb[2].mxu0  ;;  %v1322_v26 = vpop.f32.mrb[2].mxu1 }
 0x17e   : > { %1335 = vst [vmem:[%s2365_s4] sm:$0xff] %v1327_v17  ;;  %1337 = vst [vmem:[%s2365_s4 + $0x10] sm:$0xff] %v1329_v18  ;;  %v1331_v27 = vadd.f32 %v1236_v25, %v359_v15  ;;  %v1333_v28 = vadd.f32 %v1322_v26, %v361_v16  ;;  %v1238_v29 = vpop.f32.mrb[3].mxu0  ;;  %v1324_v30 = vpop.f32.mrb[3].mxu1 }
 0x17f   : > { %1336 = vst [vmem:[%s2365_s4 + $0x8] sm:$0xff] %v1328_v23  ;;  %1338 = vst [vmem:[%s2365_s4 + $0x18] sm:$0xff] %v1330_v24  ;;  %v1332_v31 = vadd.f32 %v1238_v29, %v360_v21  ;;  %v1334_v32 = vadd.f32 %v1324_v30, %v362_v22 }
 0x180   : > { %1339 = vst [vmem:[%s2365_s4 + $0x20] sm:$0xff] %v1331_v27  ;;  %1341 = vst [vmem:[%s2365_s4 + $0x30] sm:$0xff] %v1333_v28 }
 0x181   : > { %1340 = vst [vmem:[%s2365_s4 + $0x28] sm:$0xff] %v1332_v31  ;;  %1342 = vst [vmem:[%s2365_s4 + $0x38] sm:$0xff] %v1334_v32 }
 0x185   : > { %v1347_v37 = vld [vmem:[%s2365_s4] sm:$0xff]  ;;  %v1349_v43 = vld [vmem:[%s2365_s4 + $0x10] sm:$0xff] }
 0x186   : > { %v1348_v39 = vld [vmem:[%s2365_s4 + $0x8] sm:$0xff]  ;;  %v1350_v50 = vld [vmem:[%s2365_s4 + $0x18] sm:$0xff]  ;;  %v1377_v57 = vmul.f32 %v1360_v46, %v1347_v37  ;;  %v1379_v61 = vmul.f32 %v1368_v53, %v1349_v43 }
 0x187   : > { %v1351_v44 = vld [vmem:[%s2365_s4 + $0x20] sm:$0xff]  ;;  %v1353_v51 = vld [vmem:[%s2365_s4 + $0x30] sm:$0xff]  ;;  %v1378_v58 = vmul.f32 %v1364_v48, %v1348_v39  ;;  %v1380_v62 = vmul.f32 %v1372_v55, %v1350_v50 }
 0x188   : > { %v1352_v45 = vld [vmem:[%s2365_s4 + $0x28] sm:$0xff]  ;;  %v1354_v52 = vld [vmem:[%s2365_s4 + $0x38] sm:$0xff]  ;;  %v1381_v59 = vmul.f32 %v1360_v46, %v1351_v44  ;;  %v1383_v63 = vmul.f32 %v1368_v53, %v1353_v51  ;;  %v1407_v1 = vadd.f32 %v1390_v47, %v1377_v57  ;;  %v1409_v5 = vadd.f32 %v1398_v54, %v1379_v61 }
 0x189   : > { %v1382_v60 = vmul.f32 %v1364_v48, %v1352_v45  ;;  %v1384_v0 = vmul.f32 %v1372_v55, %v1354_v52  ;;  %v1408_v2 = vadd.f32 %v1394_v49, %v1378_v58  ;;  %v1410_v6 = vadd.f32 %v1402_v56, %v1380_v62 }
 0x18a   : > { %v1411_v3 = vadd.f32 %v1390_v47, %v1381_v59  ;;  %v1413_v7 = vadd.f32 %v1398_v54, %v1383_v63  ;;  %v1415_v9 = vmax.f32 %v1407_v1, 0.0  ;;  %v1417_v13 = vmax.f32 %v1409_v5, 0.0 }
 0x18b   : > { %v1412_v4 = vadd.f32 %v1394_v49, %v1382_v60  ;;  %v1414_v8 = vadd.f32 %v1402_v56, %v1384_v0  ;;  %v1416_v10 = vmax.f32 %v1408_v2, 0.0  ;;  %v1418_v14 = vmax.f32 %v1410_v6, 0.0 }
 0x18c   : > { %v1419_v11 = vmax.f32 %v1411_v3, 0.0  ;;  %v1421_v15 = vmax.f32 %v1413_v7, 0.0  ;;  %1423 = vst [vmem:[%s2365_s4] sm:$0xff] %v1415_v9  ;;  %1425 = vst [vmem:[%s2365_s4 + $0x10] sm:$0xff] %v1417_v13 }
 0x18d   : > { %v1420_v12 = vmax.f32 %v1412_v4, 0.0  ;;  %v1422_v16 = vmax.f32 %v1414_v8, 0.0  ;;  %1424 = vst [vmem:[%s2365_s4 + $0x8] sm:$0xff] %v1416_v10  ;;  %1426 = vst [vmem:[%s2365_s4 + $0x18] sm:$0xff] %v1418_v14 }
 0x18e   : > { %1427 = vst [vmem:[%s2365_s4 + $0x20] sm:$0xff] %v1419_v11  ;;  %1429 = vst [vmem:[%s2365_s4 + $0x30] sm:$0xff] %v1421_v15 }
 0x18f   : > { %1428 = vst [vmem:[%s2365_s4 + $0x28] sm:$0xff] %v1420_v12  ;;  %1430 = vst [vmem:[%s2365_s4 + $0x38] sm:$0xff] %v1422_v16 }
 0x190 PF: > { %s14_s19 = sadd.s32 1, %s2004_s19   ;;  %s2366_s15 = smov %s1992_s16 }
 0x191   : > { %p11_p12 = scmp.ge.s32.totalorder %s14_s19, 7   ;;  %s2367_s16 = smov %s2067_s23 }
 0x192   : > { %s2368_s17 = smov %s2000_s18  ;;  %s2369_s18 = smov %s2371_s20 }
 0x193   :  { %13 = sbr.rel (!%p11_p12) target bundleno = 3 (0x3), region = 111 }

// kernel: drnseg_forward.47
= control target key start
LH: loop header
LB: loop body
LE: loop exit
PB: predicated region body
PF: predicated region fallthrough
CT: control target
= control target key end

     0   :  { %s1037_s1 = inlined_call_operand.vmem [shape: bf16[256,512], index: 1, kind: input, shape index: {}]   ;;  %s1038_s0 = inlined_call_operand.vmem [shape: bf16[16,256], index: 0, kind: input, shape index: {}]   ;;  %s1039_s2 = inlined_call_operand.vmem [shape: f32[1,512], index: 2, kind: input, shape index: {}]   ;;  %s1040_s3 = inlined_call_operand.vmem [shape: f32[1,512], index: 3, kind: input, shape index: {}]   ;;  %s1041_s4 = inlined_call_operand.vmem [shape: f32[16,512], index: 4, kind: output, shape index: {}]  }
   0x1   :  { %v685_v0 = vld [vmem:[%s1037_s1 + $0x4] ss:$16 sps:$4 sm:$0xff]   ;;  %v687_v1 = vld [vmem:[%s1037_s1 + $0xc] ss:$16 sps:$4 sm:$0xff]   ;;  %v689_v2 = vld [vmem:[%s1037_s1] ss:$16 sps:$4 sm:$0xff]  }
   0x2   :  { %433 = vmatprep.subr.bf16.mxu0 %v685_v0  ;;  %v690_v3 = vld [vmem:[%s1037_s1 + $0x8] ss:$16 sps:$4 sm:$0xff]   ;;  %476 = vmatprep.subr.bf16.mxu1 %v687_v1  ;;  %v691_v4 = vld [vmem:[%s1037_s1 + $0x24] ss:$16 sps:$4 sm:$0xff]   ;;  %v693_v5 = vld [vmem:[%s1037_s1 + $0x2c] ss:$16 sps:$4 sm:$0xff]  }
   0x3   :  { %434 = vmatpush1.bf16.msra.mxu0 %v689_v2  ;;  %477 = vmatpush1.bf16.msra.mxu1 %v690_v3  ;;  %v695_v6 = vld [vmem:[%s1037_s1 + $0x20] ss:$16 sps:$4 sm:$0xff]   ;;  %v696_v7 = vld [vmem:[%s1037_s1 + $0x28] ss:$16 sps:$4 sm:$0xff]   ;;  %v697_v8 = vld [vmem:[%s1037_s1 + $0x44] ss:$16 sps:$4 sm:$0xff]   ;;  %v548_v2 = vlaneseq }
   0x4   :  { %435 = vmatprep.subr.bf16.mxu0 %v691_v4  ;;  %478 = vmatprep.subr.bf16.mxu1 %v693_v5  ;;  %v699_v9 = vld [vmem:[%s1037_s1 + $0x4c] ss:$16 sps:$4 sm:$0xff]   ;;  %v701_v10 = vld [vmem:[%s1037_s1 + $0x40] ss:$16 sps:$4 sm:$0xff]   ;;  %v702_v11 = vld [vmem:[%s1037_s1 + $0x48] ss:$16 sps:$4 sm:$0xff]  }
   0x5   :  { %v703_v12 = vld [vmem:[%s1037_s1 + $0x64] ss:$16 sps:$4 sm:$0xff]   ;;  %v705_v13 = vld [vmem:[%s1037_s1 + $0x6c] ss:$16 sps:$4 sm:$0xff]   ;;  %v707_v14 = vld [vmem:[%s1037_s1 + $0x60] ss:$16 sps:$4 sm:$0xff]  }
   0x6   :  { %v708_v15 = vld [vmem:[%s1037_s1 + $0x68] ss:$16 sps:$4 sm:$0xff]   ;;  %v709_v16 = vld [vmem:[%s1037_s1 + $0x84] ss:$16 sps:$4 sm:$0xff]   ;;  %v711_v17 = vld [vmem:[%s1037_s1 + $0x8c] ss:$16 sps:$4 sm:$0xff]  }
   0x7   :  { %436 = vmatpush1.bf16.msra.mxu0 %v695_v6  ;;  %479 = vmatpush1.bf16.msra.mxu1 %v696_v7  ;;  %v713_v18 = vld [vmem:[%s1037_s1 + $0x80] ss:$16 sps:$4 sm:$0xff]   ;;  %v714_v19 = vld [vmem:[%s1037_s1 + $0x88] ss:$16 sps:$4 sm:$0xff]   ;;  %v715_v20 = vld [vmem:[%s1037_s1 + $0xa4] ss:$16 sps:$4 sm:$0xff]  }
   0x8   :  { %437 = vmatprep.subr.bf16.mxu0 %v697_v8  ;;  %480 = vmatprep.subr.bf16.mxu1 %v699_v9  ;;  %v717_v21 = vld [vmem:[%s1037_s1 + $0xac] ss:$16 sps:$4 sm:$0xff]   ;;  %v719_v22 = vld [vmem:[%s1037_s1 + $0xa0] ss:$16 sps:$4 sm:$0xff]   ;;  %v720_v23 = vld [vmem:[%s1037_s1 + $0xa8] ss:$16 sps:$4 sm:$0xff]  }
   0x9   :  { %v721_v24 = vld [vmem:[%s1037_s1 + $0xc4] ss:$16 sps:$4 sm:$0xff]   ;;  %v723_v25 = vld [vmem:[%s1037_s1 + $0xcc] ss:$16 sps:$4 sm:$0xff]   ;;  %v725_v26 = vld [vmem:[%s1037_s1 + $0xc0] ss:$16 sps:$4 sm:$0xff]  }
   0xa   :  { %v726_v27 = vld [vmem:[%s1037_s1 + $0xc8] ss:$16 sps:$4 sm:$0xff]   ;;  %v727_v28 = vld [vmem:[%s1037_s1 + $0xe4] ss:$16 sps:$4 sm:$0xff]   ;;  %v729_v29 = vld [vmem:[%s1037_s1 + $0xec] ss:$16 sps:$4 sm:$0xff]  }
   0xb   :  { %438 = vmatpush1.bf16.msra.mxu0 %v701_v10  ;;  %481 = vmatpush1.bf16.msra.mxu1 %v702_v11  ;;  %v731_v30 = vld [vmem:[%s1037_s1 + $0xe0] ss:$16 sps:$4 sm:$0xff]   ;;  %v732_v31 = vld [vmem:[%s1037_s1 + $0xe8] ss:$16 sps:$4 sm:$0xff]   ;;  %v733_v32 = vld [vmem:[%s1037_s1 + $0x104] ss:$16 sps:$4 sm:$0xff]  }
   0xc   :  { %439 = vmatprep.subr.bf16.mxu0 %v703_v12  ;;  %482 = vmatprep.subr.bf16.mxu1 %v705_v13  ;;  %v735_v33 = vld [vmem:[%s1037_s1 + $0x10c] ss:$16 sps:$4 sm:$0xff]   ;;  %v737_v34 = vld [vmem:[%s1037_s1 + $0x100] ss:$16 sps:$4 sm:$0xff]   ;;  %v738_v35 = vld [vmem:[%s1037_s1 + $0x108] ss:$16 sps:$4 sm:$0xff]  }
   0xd   :  { %v739_v36 = vld [vmem:[%s1037_s1 + $0x124] ss:$16 sps:$4 sm:$0xff]   ;;  %v741_v37 = vld [vmem:[%s1037_s1 + $0x12c] ss:$16 sps:$4 sm:$0xff]   ;;  %v743_v38 = vld [vmem:[%s1037_s1 + $0x120] ss:$16 sps:$4 sm:$0xff]  }
   0xe   :  { %v744_v39 = vld [vmem:[%s1037_s1 + $0x128] ss:$16 sps:$4 sm:$0xff]   ;;  %v745_v40 = vld [vmem:[%s1037_s1 + $0x144] ss:$16 sps:$4 sm:$0xff]   ;;  %v747_v41 = vld [vmem:[%s1037_s1 + $0x14c] ss:$16 sps:$4 sm:$0xff]  }
   0xf   :  { %440 = vmatpush1.bf16.msra.mxu0 %v707_v14  ;;  %483 = vmatpush1.bf16.msra.mxu1 %v708_v15  ;;  %v749_v42 = vld [vmem:[%s1037_s1 + $0x140] ss:$16 sps:$4 sm:$0xff]   ;;  %v750_v43 = vld [vmem:[%s1037_s1 + $0x148] ss:$16 sps:$4 sm:$0xff]   ;;  %v751_v44 = vld [vmem:[%s1037_s1 + $0x164] ss:$16 sps:$4 sm:$0xff]  }
  0x10   :  { %441 = vmatprep.subr.bf16.mxu0 %v709_v16  ;;  %484 = vmatprep.subr.bf16.mxu1 %v711_v17  ;;  %v753_v45 = vld [vmem:[%s1037_s1 + $0x16c] ss:$16 sps:$4 sm:$0xff]   ;;  %v755_v47 = vld [vmem:[%s1037_s1 + $0x160] ss:$16 sps:$4 sm:$0xff]   ;;  %v756_v48 = vld [vmem:[%s1037_s1 + $0x168] ss:$16 sps:$4 sm:$0xff]  }
  0x11   :  { %v783_v46 = vld [vmem:[%s1038_s0 + $0x4] ss:$8 sps:$4 sm:$0xff]   ;;  %v761_v51 = vld [vmem:[%s1037_s1 + $0x180] ss:$16 sps:$4 sm:$0xff]   ;;  %v762_v52 = vld [vmem:[%s1037_s1 + $0x188] ss:$16 sps:$4 sm:$0xff]  }
  0x12   :  { %v757_v49 = vld [vmem:[%s1037_s1 + $0x184] ss:$16 sps:$4 sm:$0xff]   ;;  %v759_v50 = vld [vmem:[%s1037_s1 + $0x18c] ss:$16 sps:$4 sm:$0xff]   ;;  %465 = vmatprep.mubr.bf16.mxu0 %v783_v46  ;;  %508 = vmatprep.mubr.bf16.mxu1 %v783_v46  ;;  %v767_v55 = vld [vmem:[%s1037_s1 + $0x1a0] ss:$16 sps:$4 sm:$0xff]  }
  0x13   :  { %442 = vmatpush1.bf16.msra.mxu0 %v713_v18  ;;  %485 = vmatpush1.bf16.msra.mxu1 %v714_v19  ;;  %v763_v53 = vld [vmem:[%s1037_s1 + $0x1a4] ss:$16 sps:$4 sm:$0xff]   ;;  %v765_v54 = vld [vmem:[%s1037_s1 + $0x1ac] ss:$16 sps:$4 sm:$0xff]   ;;  %v768_v56 = vld [vmem:[%s1037_s1 + $0x1a8] ss:$16 sps:$4 sm:$0xff]  }
  0x14   :  { %443 = vmatprep.subr.bf16.mxu0 %v715_v20  ;;  %486 = vmatprep.subr.bf16.mxu1 %v717_v21  ;;  %v769_v57 = vld [vmem:[%s1037_s1 + $0x1c4] ss:$16 sps:$4 sm:$0xff]   ;;  %v771_v58 = vld [vmem:[%s1037_s1 + $0x1cc] ss:$16 sps:$4 sm:$0xff]   ;;  %v773_v59 = vld [vmem:[%s1037_s1 + $0x1c0] ss:$16 sps:$4 sm:$0xff]  }
  0x15   :  { %v774_v60 = vld [vmem:[%s1037_s1 + $0x1c8] ss:$16 sps:$4 sm:$0xff]   ;;  %v775_v61 = vld [vmem:[%s1037_s1 + $0x1e4] ss:$16 sps:$4 sm:$0xff]   ;;  %v777_v62 = vld [vmem:[%s1037_s1 + $0x1ec] ss:$16 sps:$4 sm:$0xff]  }
  0x16   :  { %v779_v63 = vld [vmem:[%s1037_s1 + $0x1e0] ss:$16 sps:$4 sm:$0xff]   ;;  %v780_v0 = vld [vmem:[%s1037_s1 + $0x1e8] ss:$16 sps:$4 sm:$0xff]   ;;  %v549_v3 = vshrl.u32 %v548_v2, 7 }
  0x17   :  { %444 = vmatpush1.bf16.msra.mxu0 %v719_v22  ;;  %487 = vmatpush1.bf16.msra.mxu1 %v720_v23  ;;  %v781_v1 = vld [vmem:[%s1038_s0] ss:$8 sps:$4 sm:$0xff]  }
  0x18   :  { %445 = vmatprep.subr.bf16.mxu0 %v721_v24  ;;  %488 = vmatprep.subr.bf16.mxu1 %v723_v25  ;;  %v550_v4 = vsub.s32 0, %v549_v3  ;;  %v558_v5 = vsub.s32 2, %v549_v3  ;;  %v546_v6 = vld [vmem:[%s1039_s2] sm:$0xf]  ;;  %v554_v7 = vsub.s32 1, %v549_v3  ;;  %v562_v8 = vsub.s32 3, %v549_v3 }
  0x19   :  { %v576_v9 = vld [vmem:[%s1040_s3] sm:$0xf] }
  0x1a   :  { %v551_v10 = vrot.slane %v546_v6, %v550_v4  ;;  %v559_v11 = vrot.slane %v546_v6, %v558_v5  ;;  %v555_v14 = vrot.slane %v546_v6, %v554_v7  ;;  %v563_v15 = vrot.slane %v546_v6, %v562_v8 }
  0x1b   :  { %446 = vmatpush1.bf16.msra.mxu0 %v725_v26  ;;  %489 = vmatpush1.bf16.msra.mxu1 %v726_v27  ;;  %v581_v16 = vrot.slane %v576_v9, %v550_v4  ;;  %v589_v17 = vrot.slane %v576_v9, %v558_v5  ;;  %v585_v20 = vrot.slane %v576_v9, %v554_v7 }
  0x1c   :  { %447 = vmatprep.subr.bf16.mxu0 %v727_v28  ;;  %490 = vmatprep.subr.bf16.mxu1 %v729_v29  ;;  %v593_v21 = vrot.slane %v576_v9, %v562_v8 }
  0x1f   :  { %448 = vmatpush1.bf16.msra.mxu0 %v731_v30  ;;  %491 = vmatpush1.bf16.msra.mxu1 %v732_v31 }
  0x20   :  { %449 = vmatprep.subr.bf16.mxu0 %v733_v32  ;;  %492 = vmatprep.subr.bf16.mxu1 %v735_v33 }
  0x23   :  { %450 = vmatpush1.bf16.msra.mxu0 %v737_v34  ;;  %493 = vmatpush1.bf16.msra.mxu1 %v738_v35 }
  0x24   :  { %451 = vmatprep.subr.bf16.mxu0 %v739_v36  ;;  %494 = vmatprep.subr.bf16.mxu1 %v741_v37 }
  0x27   :  { %452 = vmatpush1.bf16.msra.mxu0 %v743_v38  ;;  %495 = vmatpush1.bf16.msra.mxu1 %v744_v39 }
  0x28   :  { %453 = vmatprep.subr.bf16.mxu0 %v745_v40  ;;  %496 = vmatprep.subr.bf16.mxu1 %v747_v41 }
  0x2b   :  { %454 = vmatpush1.bf16.msra.mxu0 %v749_v42  ;;  %497 = vmatpush1.bf16.msra.mxu1 %v750_v43 }
  0x2c   :  { %455 = vmatprep.subr.bf16.mxu0 %v751_v44  ;;  %498 = vmatprep.subr.bf16.mxu1 %v753_v45 }
  0x2f   :  { %456 = vmatpush1.bf16.msra.mxu0 %v755_v47  ;;  %499 = vmatpush1.bf16.msra.mxu1 %v756_v48 }
  0x30   :  { %457 = vmatprep.subr.bf16.mxu0 %v757_v49  ;;  %500 = vmatprep.subr.bf16.mxu1 %v759_v50 }
  0x33   :  { %458 = vmatpush1.bf16.msra.mxu0 %v761_v51  ;;  %501 = vmatpush1.bf16.msra.mxu1 %v762_v52 }
  0x34   :  { %459 = vmatprep.subr.bf16.mxu0 %v763_v53  ;;  %502 = vmatprep.subr.bf16.mxu1 %v765_v54 }
  0x37   :  { %460 = vmatpush1.bf16.msra.mxu0 %v767_v55  ;;  %503 = vmatpush1.bf16.msra.mxu1 %v768_v56 }
  0x38   :  { %461 = vmatprep.subr.bf16.mxu0 %v769_v57  ;;  %504 = vmatprep.subr.bf16.mxu1 %v771_v58 }
  0x3b   :  { %462 = vmatpush1.bf16.msra.mxu0 %v773_v59  ;;  %505 = vmatpush1.bf16.msra.mxu1 %v774_v60 }
  0x3c   :  { %463 = vmatprep.subr.bf16.mxu0 %v775_v61  ;;  %506 = vmatprep.subr.bf16.mxu1 %v777_v62 }
  0x3f   :  { %464 = vmatpush1.bf16.msra.mxu0 %v779_v63  ;;  %507 = vmatpush1.bf16.msra.mxu1 %v780_v0 }
  0x42   :  { %466 = vmatmul.mubr.bf16.vlgmr.msra.gmra.mrb[0].mxu0 %v781_v1  ;;  %509 = vmatmul.mubr.bf16.vlgmr.msra.gmra.mrb[0].mxu1 %v781_v1 }
 0x115   :  { %v467_v12 = vpop.f32.mrb[0].mxu0  ;;  %v510_v13 = vpop.f32.mrb[0].mxu1 }
 0x116   :  { %v469_v18 = vpop.f32.mrb[1].mxu0  ;;  %v512_v19 = vpop.f32.mrb[1].mxu1  ;;  %v568_v24 = vmul.f32 %v551_v10, %v467_v12  ;;  %v570_v25 = vmul.f32 %v559_v11, %v510_v13 }
 0x117   :  { %v471_v22 = vpop.f32.mrb[2].mxu0  ;;  %v514_v23 = vpop.f32.mrb[2].mxu1  ;;  %v569_v28 = vmul.f32 %v555_v14, %v469_v18  ;;  %v571_v29 = vmul.f32 %v563_v15, %v512_v19 }
 0x118   :  { %v473_v26 = vpop.f32.mrb[3].mxu0  ;;  %v516_v27 = vpop.f32.mrb[3].mxu1  ;;  %v598_v30 = vadd.f32 %v581_v16, %v568_v24  ;;  %v600_v31 = vadd.f32 %v589_v17, %v570_v25  ;;  %v572_v32 = vmul.f32 %v551_v10, %v471_v22  ;;  %v574_v33 = vmul.f32 %v559_v11, %v514_v23 }
 0x119   :  { %v599_v34 = vadd.f32 %v585_v20, %v569_v28  ;;  %v601_v35 = vadd.f32 %v593_v21, %v571_v29  ;;  %v573_v36 = vmul.f32 %v555_v14, %v473_v26  ;;  %v575_v37 = vmul.f32 %v563_v15, %v516_v27 }
 0x11a   :  { %606 = vst [vmem:[%s1041_s4] sm:$0xff] %v598_v30  ;;  %608 = vst [vmem:[%s1041_s4 + $0x10] sm:$0xff] %v600_v31  ;;  %v602_v38 = vadd.f32 %v581_v16, %v572_v32  ;;  %v604_v39 = vadd.f32 %v589_v17, %v574_v33 }
 0x11b   :  { %607 = vst [vmem:[%s1041_s4 + $0x8] sm:$0xff] %v599_v34  ;;  %609 = vst [vmem:[%s1041_s4 + $0x18] sm:$0xff] %v601_v35  ;;  %v603_v40 = vadd.f32 %v585_v20, %v573_v36  ;;  %v605_v41 = vadd.f32 %v593_v21, %v575_v37 }
 0x11c   :  { %610 = vst [vmem:[%s1041_s4 + $0x20] sm:$0xff] %v602_v38  ;;  %612 = vst [vmem:[%s1041_s4 + $0x30] sm:$0xff] %v604_v39 }
 0x11d   :  { %611 = vst [vmem:[%s1041_s4 + $0x28] sm:$0xff] %v603_v40  ;;  %613 = vst [vmem:[%s1041_s4 + $0x38] sm:$0xff] %v605_v41 }

// kernel: drnseg_forward.49
= control target key start
LH: loop header
LB: loop body
LE: loop exit
PB: predicated region body
PF: predicated region fallthrough
CT: control target
= control target key end

     0   :  { %s2032_s15 = smov 0   ;;  %s2034_s16 = smov 0   ;;  %s2361_s0 = inlined_call_operand.vmem [shape: bf16[16,4608], index: 0, kind: input, shape index: {}]   ;;  %s2362_s1 = inlined_call_operand.vmem [shape: bf16[4608,512], index: 1, kind: input, shape index: {}]   ;;  %s2363_s2 = inlined_call_operand.vmem [shape: f32[1,512], index: 2, kind: input, shape index: {}]   ;;  %s2364_s3 = inlined_call_operand.vmem [shape: f32[1,512], index: 3, kind: input, shape index: {}]   ;;  %s2365_s4 = inlined_call_operand.vmem [shape: f32[16,512], index: 4, kind: output, shape index: {}]  }
   0x1   :  { %s2036_s17 = smov 0   ;;  %s2038_s18 = smov 0  }
   0x2   :  { %s2040_s19 = smov 0  }
   0x3 LB: > { %s26_s20 = sadd.s32 1, %s2000_s18  ;;  %p49_p1 = scmp.ne.s32.totalorder %s1992_s16, %s1988_s15  ;;  %s2004_s19 = sphi %s2040_s19, %s14_s19   ;;  %s2000_s18 = sphi %s2038_s18, %s2369_s18   ;;  %s1996_s17 = sphi %s2036_s17, %s2368_s17   ;;  %s1992_s16 = sphi %s2034_s16, %s2367_s16   ;;  %s1988_s15 = sphi %s2032_s15, %s2366_s15  }
   0x4   : > { %p27_p0 = scmp.ge.s32.totalorder %s26_s20, 9  ;;  %p50_p2 = scmp.eq.s32.totalorder %s2004_s19, 0 }
   0x5   : > { %s42_s22 = sadd.s32 1, %s1992_s16  ;;  %p1570_p5 = scmp.ge.s32.totalorder %s2004_s19, 9 }
   0x6   : > { %s2371_s20 = smov (%p27_p0, %s26_s20), 0  ;;  %p51_p3 = por %p50_p2, %p49_p1 }
   0x7   : > { %s38_s21 = ssub.s32 %s2000_s18, %s2371_s20  ;;  %199 = sbr.rel (%p1570_p5) target bundleno = 21 (0x15), region = 24 }
   0x8   : > { %p40_p4 = scmp.eq.s32.totalorder %s38_s21, 0 }
   0xa   : > { %s2067_s23 = scalar_select %p40_p4, %s1992_s16, %s42_s22  }
   0xe   : > { %202 = sbr.rel (!%p51_p3) target bundleno = 21 (0x15), region = 28  ;;  %s204_s24 = sand.u32 (%p51_p3), 1, %s1992_s16  }
   0xf   : > { %s1717_s25 = sshll.u32 (%p51_p3), %s2000_s18, 4  ;;  %s1571_s26 = sshll.u32 (%p51_p3), %s204_s24, 5 }
  0x10   : > { %s212_s29 = scalar_lea.vmem (%p51_p3), %s2361_s0, %s1717_s25  ;;  %s206_s30 = scalar_lea.vmem (%p51_p3), [#allocation2], %s1571_s26 }
  0x11   : > { %v225_v0 = vld [vmem:[%s212_s29] sm:$0xff] (%p51_p3)  ;;  %v227_v1 = vld [vmem:[%s212_s29 + $0x8] sm:$0xff] (%p51_p3)  ;;  %v229_v2 = vld [vmem:[%s212_s29 + $0x90] sm:$0xff] (%p51_p3) }
  0x12   : > { %226 = vst [vmem:[%s206_s30] sm:$0xff] (%p51_p3), %v225_v0  ;;  %228 = vst [vmem:[%s206_s30 + $0x8] sm:$0xff] (%p51_p3), %v227_v1  ;;  %v231_v3 = vld [vmem:[%s212_s29 + $0x98] sm:$0xff] (%p51_p3) }
  0x13   : > { %230 = vst [vmem:[%s206_s30 + $0x10] sm:$0xff] (%p51_p3), %v229_v2  ;;  %232 = vst [vmem:[%s206_s30 + $0x18] sm:$0xff] (%p51_p3), %v231_v3 }
  0x15 PF: > { %p1574_p6 = scmp.ge.s32.totalorder %s2004_s19, 1  ;;  %p252_p7 = scmp.lt.s32.totalorder %s2004_s19, 10 }
  0x17   : > { %p253_p8 = pnand %p1574_p6, %p252_p7 }
  0x18   : > { %s259_s5 = sand.u32 (!%p253_p8), 1, %s1988_s15   ;;  %s1576_s6 = sshll.u32 (!%p253_p8), %s1996_s17, 6 }
  0x19   : > { %256 = sbr.rel (%p253_p8) target bundleno = 400 (0x190), region = 55  ;;  %s1575_s7 = sshll.u32 (!%p253_p8), %s259_s5, 5 }
  0x1a   : > { %p311_p9 = scmp.lt.s32.totalorder (!%p253_p8), %s1576_s6, 575  ;;  %s2084_s12 = scalar_lea.vmem (!%p253_p8), [#allocation2], %s1575_s7 }
  0x1b   : > { %p1579_p10 = scmp.ne.s32.totalorder (!%p253_p8), %s1996_s17, 0 }
  0x20   : > { %s2373_s6 = smov (!%p311_p9, %s1576_s6), 575  ;;  %346 = sbr.rel (%p1579_p10) target bundleno = 39 (0x27), region = 63 }
  0x21   : > { %s1718_s8 = sshll.u32 %s2373_s6, 4  ;;  %v2006_v4 = vmov (!%p1579_p10), 0.0  }
  0x22   : > { %s2082_s11 = scalar_lea.vmem %s2362_s1, %s1718_s8  ;;  %347 = vst [vmem:[%s2365_s4] sm:$0xff] (!%p1579_p10), %v2006_v4  ;;  %348 = vst [vmem:[%s2365_s4 + $0x8] sm:$0xff] (!%p1579_p10), %v2006_v4 }
  0x23   : > { %349 = vst [vmem:[%s2365_s4 + $0x10] sm:$0xff] (!%p1579_p10), %v2006_v4  ;;  %350 = vst [vmem:[%s2365_s4 + $0x18] sm:$0xff] (!%p1579_p10), %v2006_v4 }
  0x24   : > { %351 = vst [vmem:[%s2365_s4 + $0x20] sm:$0xff] (!%p1579_p10), %v2006_v4  ;;  %352 = vst [vmem:[%s2365_s4 + $0x28] sm:$0xff] (!%p1579_p10), %v2006_v4 }
  0x25   : > { %353 = vst [vmem:[%s2365_s4 + $0x30] sm:$0xff] (!%p1579_p10), %v2006_v4  ;;  %354 = vst [vmem:[%s2365_s4 + $0x38] sm:$0xff] (!%p1579_p10), %v2006_v4 }
  0x27 PF: > { %v1768_v5 = vld [vmem:[%s2082_s11 + $0x4] ss:$16 sps:$4 sm:$0xff]   ;;  %v1770_v6 = vld [vmem:[%s2082_s11 + $0xc] ss:$16 sps:$4 sm:$0xff]   ;;  %v1772_v7 = vld [vmem:[%s2082_s11] ss:$16 sps:$4 sm:$0xff]  }
  0x28   : > { %1155 = vmatprep.subr.bf16.mxu0 %v1768_v5  ;;  %v1773_v8 = vld [vmem:[%s2082_s11 + $0x8] ss:$16 sps:$4 sm:$0xff]   ;;  %1241 = vmatprep.subr.bf16.mxu1 %v1770_v6  ;;  %v1774_v9 = vld [vmem:[%s2082_s11 + $0x24] ss:$16 sps:$4 sm:$0xff]   ;;  %v1776_v10 = vld [vmem:[%s2082_s11 + $0x2c] ss:$16 sps:$4 sm:$0xff]  }
  0x29   : > { %1156 = vmatpush1.bf16.msra.mxu0 %v1772_v7  ;;  %1242 = vmatpush1.bf16.msra.mxu1 %v1773_v8  ;;  %v1778_v11 = vld [vmem:[%s2082_s11 + $0x20] ss:$16 sps:$4 sm:$0xff]   ;;  %v1779_v12 = vld [vmem:[%s2082_s11 + $0x28] ss:$16 sps:$4 sm:$0xff]   ;;  %v1780_v13 = vld [vmem:[%s2082_s11 + $0x44] ss:$16 sps:$4 sm:$0xff]  }
  0x2a   : > { %1157 = vmatprep.subr.bf16.mxu0 %v1774_v9  ;;  %1243 = vmatprep.subr.bf16.mxu1 %v1776_v10  ;;  %v1782_v14 = vld [vmem:[%s2082_s11 + $0x4c] ss:$16 sps:$4 sm:$0xff]   ;;  %v1784_v15 = vld [vmem:[%s2082_s11 + $0x40] ss:$16 sps:$4 sm:$0xff]   ;;  %v1785_v16 = vld [vmem:[%s2082_s11 + $0x48] ss:$16 sps:$4 sm:$0xff]  }
  0x2b   : > { %v1786_v17 = vld [vmem:[%s2082_s11 + $0x64] ss:$16 sps:$4 sm:$0xff]   ;;  %v1788_v18 = vld [vmem:[%s2082_s11 + $0x6c] ss:$16 sps:$4 sm:$0xff]   ;;  %v1790_v19 = vld [vmem:[%s2082_s11 + $0x60] ss:$16 sps:$4 sm:$0xff]  }
  0x2c   : > { %v1791_v20 = vld [vmem:[%s2082_s11 + $0x68] ss:$16 sps:$4 sm:$0xff]   ;;  %v1792_v21 = vld [vmem:[%s2082_s11 + $0x84] ss:$16 sps:$4 sm:$0xff]   ;;  %v1794_v22 = vld [vmem:[%s2082_s11 + $0x8c] ss:$16 sps:$4 sm:$0xff]  }
  0x2d   : > { %1158 = vmatpush1.bf16.msra.mxu0 %v1778_v11  ;;  %1244 = vmatpush1.bf16.msra.mxu1 %v1779_v12  ;;  %v1796_v23 = vld [vmem:[%s2082_s11 + $0x80] ss:$16 sps:$4 sm:$0xff]   ;;  %v1797_v24 = vld [vmem:[%s2082_s11 + $0x88] ss:$16 sps:$4 sm:$0xff]   ;;  %v1798_v25 = vld [vmem:[%s2082_s11 + $0xa4] ss:$16 sps:$4 sm:$0xff]  }
  0x2e   : > { %1159 = vmatprep.subr.bf16.mxu0 %v1780_v13  ;;  %1245 = vmatprep.subr.bf16.mxu1 %v1782_v14  ;;  %v1800_v26 = vld [vmem:[%s2082_s11 + $0xac] ss:$16 sps:$4 sm:$0xff]   ;;  %v1802_v27 = vld [vmem:[%s2082_s11 + $0xa0] ss:$16 sps:$4 sm:$0xff]   ;;  %v1803_v28 = vld [vmem:[%s2082_s11 + $0xa8] ss:$16 sps:$4 sm:$0xff]  }
  0x2f   : > { %v1804_v29 = vld [vmem:[%s2082_s11 + $0xc4] ss:$16 sps:$4 sm:$0xff]   ;;  %v1806_v30 = vld [vmem:[%s2082_s11 + $0xcc] ss:$16 sps:$4 sm:$0xff]   ;;  %v1808_v31 = vld [vmem:[%s2082_s11 + $0xc0] ss:$16 sps:$4 sm:$0xff]  }
  0x30   : > { %v1809_v32 = vld [vmem:[%s2082_s11 + $0xc8] ss:$16 sps:$4 sm:$0xff]   ;;  %v1810_v33 = vld [vmem:[%s2082_s11 + $0xe4] ss:$16 sps:$4 sm:$0xff]   ;;  %v1812_v34 = vld [vmem:[%s2082_s11 + $0xec] ss:$16 sps:$4 sm:$0xff]  }
  0x31   : > { %1160 = vmatpush1.bf16.msra.mxu0 %v1784_v15  ;;  %1246 = vmatpush1.bf16.msra.mxu1 %v1785_v16  ;;  %v1814_v35 = vld [vmem:[%s2082_s11 + $0xe0] ss:$16 sps:$4 sm:$0xff]   ;;  %v1815_v36 = vld [vmem:[%s2082_s11 + $0xe8] ss:$16 sps:$4 sm:$0xff]   ;;  %v1816_v37 = vld [vmem:[%s2082_s11 + $0x104] ss:$16 sps:$4 sm:$0xff]  }
  0x32   : > { %1161 = vmatprep.subr.bf16.mxu0 %v1786_v17  ;;  %1247 = vmatprep.subr.bf16.mxu1 %v1788_v18  ;;  %v1818_v38 = vld [vmem:[%s2082_s11 + $0x10c] ss:$16 sps:$4 sm:$0xff]   ;;  %v1820_v39 = vld [vmem:[%s2082_s11 + $0x100] ss:$16 sps:$4 sm:$0xff]   ;;  %v1821_v40 = vld [vmem:[%s2082_s11 + $0x108] ss:$16 sps:$4 sm:$0xff]  }
  0x33   : > { %v1822_v41 = vld [vmem:[%s2082_s11 + $0x124] ss:$16 sps:$4 sm:$0xff]   ;;  %v1824_v42 = vld [vmem:[%s2082_s11 + $0x12c] ss:$16 sps:$4 sm:$0xff]   ;;  %v1826_v43 = vld [vmem:[%s2082_s11 + $0x120] ss:$16 sps:$4 sm:$0xff]  }
  0x34   : > { %v1827_v44 = vld [vmem:[%s2082_s11 + $0x128] ss:$16 sps:$4 sm:$0xff]   ;;  %v1828_v45 = vld [vmem:[%s2082_s11 + $0x144] ss:$16 sps:$4 sm:$0xff]   ;;  %v1830_v46 = vld [vmem:[%s2082_s11 + $0x14c] ss:$16 sps:$4 sm:$0xff]  }
  0x35   : > { %1162 = vmatpush1.bf16.msra.mxu0 %v1790_v19  ;;  %1248 = vmatpush1.bf16.msra.mxu1 %v1791_v20  ;;  %v1832_v47 = vld [vmem:[%s2082_s11 + $0x140] ss:$16 sps:$4 sm:$0xff]   ;;  %v1833_v48 = vld [vmem:[%s2082_s11 + $0x148] ss:$16 sps:$4 sm:$0xff]   ;;  %v1834_v49 = vld [vmem:[%s2082_s11 + $0x164] ss:$16 sps:$4 sm:$0xff]  }
  0x36   : > { %1163 = vmatprep.subr.bf16.mxu0 %v1792_v21  ;;  %1249 = vmatprep.subr.bf16.mxu1 %v1794_v22  ;;  %v1836_v50 = vld [vmem:[%s2082_s11 + $0x16c] ss:$16 sps:$4 sm:$0xff]   ;;  %v1838_v51 = vld [vmem:[%s2082_s11 + $0x160] ss:$16 sps:$4 sm:$0xff]   ;;  %v1839_v52 = vld [vmem:[%s2082_s11 + $0x168] ss:$16 sps:$4 sm:$0xff]  }
  0x37   : > { %v1866_v53 = vld [vmem:[%s2084_s12 + $0x4] ss:$16 sps:$4 sm:$0xff]   ;;  %v1842_v55 = vld [vmem:[%s2082_s11 + $0x18c] ss:$16 sps:$4 sm:$0xff]   ;;  %v1844_v56 = vld [vmem:[%s2082_s11 + $0x180] ss:$16 sps:$4 sm:$0xff]  }
  0x38   : > { %v1840_v54 = vld [vmem:[%s2082_s11 + $0x184] ss:$16 sps:$4 sm:$0xff]   ;;  %1187 = vmatprep.mubr.bf16.mxu0 %v1866_v53  ;;  %1273 = vmatprep.mubr.bf16.mxu1 %v1866_v53  ;;  %v1845_v57 = vld [vmem:[%s2082_s11 + $0x188] ss:$16 sps:$4 sm:$0xff]   ;;  %v1848_v59 = vld [vmem:[%s2082_s11 + $0x1ac] ss:$16 sps:$4 sm:$0xff]  }
  0x39   : > { %1164 = vmatpush1.bf16.msra.mxu0 %v1796_v23  ;;  %1250 = vmatpush1.bf16.msra.mxu1 %v1797_v24  ;;  %v1846_v58 = vld [vmem:[%s2082_s11 + $0x1a4] ss:$16 sps:$4 sm:$0xff]   ;;  %v1850_v60 = vld [vmem:[%s2082_s11 + $0x1a0] ss:$16 sps:$4 sm:$0xff]   ;;  %v1851_v61 = vld [vmem:[%s2082_s11 + $0x1a8] ss:$16 sps:$4 sm:$0xff]  }
  0x3a   : > { %1165 = vmatprep.subr.bf16.mxu0 %v1798_v25  ;;  %1251 = vmatprep.subr.bf16.mxu1 %v1800_v26  ;;  %v1852_v62 = vld [vmem:[%s2082_s11 + $0x1c4] ss:$16 sps:$4 sm:$0xff]   ;;  %v1854_v63 = vld [vmem:[%s2082_s11 + $0x1cc] ss:$16 sps:$4 sm:$0xff]   ;;  %v1856_v0 = vld [vmem:[%s2082_s11 + $0x1c0] ss:$16 sps:$4 sm:$0xff]  }
  0x3b   : > { %v1857_v1 = vld [vmem:[%s2082_s11 + $0x1c8] ss:$16 sps:$4 sm:$0xff]   ;;  %v1858_v2 = vld [vmem:[%s2082_s11 + $0x1e4] ss:$16 sps:$4 sm:$0xff]   ;;  %v1860_v3 = vld [vmem:[%s2082_s11 + $0x1ec] ss:$16 sps:$4 sm:$0xff]  }
  0x3c   : > { %v1862_v4 = vld [vmem:[%s2082_s11 + $0x1e0] ss:$16 sps:$4 sm:$0xff]   ;;  %v1863_v5 = vld [vmem:[%s2082_s11 + $0x1e8] ss:$16 sps:$4 sm:$0xff]   ;;  %v1869_v6 = vld [vmem:[%s2082_s11 + $0x204] ss:$16 sps:$4 sm:$0xff]  }
  0x3d   : > { %1166 = vmatpush1.bf16.msra.mxu0 %v1802_v27  ;;  %1252 = vmatpush1.bf16.msra.mxu1 %v1803_v28  ;;  %v1872_v7 = vld [vmem:[%s2082_s11 + $0x20c] ss:$16 sps:$4 sm:$0xff]   ;;  %v1864_v8 = vld [vmem:[%s2084_s12] ss:$16 sps:$4 sm:$0xff]   ;;  %v1870_v10 = vld [vmem:[%s2082_s11 + $0x208] ss:$16 sps:$4 sm:$0xff]  }
  0x3e   : > { %1167 = vmatprep.subr.bf16.mxu0 %v1804_v29  ;;  %1253 = vmatprep.subr.bf16.mxu1 %v1806_v30  ;;  %v1867_v9 = vld [vmem:[%s2082_s11 + $0x200] ss:$16 sps:$4 sm:$0xff]   ;;  %v1875_v11 = vld [vmem:[%s2082_s11 + $0x224] ss:$16 sps:$4 sm:$0xff]   ;;  %v1878_v12 = vld [vmem:[%s2082_s11 + $0x22c] ss:$16 sps:$4 sm:$0xff]  }
  0x3f   : > { %v1873_v13 = vld [vmem:[%s2082_s11 + $0x220] ss:$16 sps:$4 sm:$0xff]   ;;  %v1876_v14 = vld [vmem:[%s2082_s11 + $0x228] ss:$16 sps:$4 sm:$0xff]   ;;  %v1881_v15 = vld [vmem:[%s2082_s11 + $0x244] ss:$16 sps:$4 sm:$0xff]  }
  0x40   : > { %v1884_v16 = vld [vmem:[%s2082_s11 + $0x24c] ss:$16 sps:$4 sm:$0xff]   ;;  %v1879_v17 = vld [vmem:[%s2082_s11 + $0x240] ss:$16 sps:$4 sm:$0xff]   ;;  %v1882_v18 = vld [vmem:[%s2082_s11 + $0x248] ss:$16 sps:$4 sm:$0xff]  }
  0x41   : > { %1168 = vmatpush1.bf16.msra.mxu0 %v1808_v31  ;;  %1254 = vmatpush1.bf16.msra.mxu1 %v1809_v32  ;;  %v1887_v19 = vld [vmem:[%s2082_s11 + $0x264] ss:$16 sps:$4 sm:$0xff]   ;;  %v1890_v20 = vld [vmem:[%s2082_s11 + $0x26c] ss:$16 sps:$4 sm:$0xff]   ;;  %v1885_v21 = vld [vmem:[%s2082_s11 + $0x260] ss:$16 sps:$4 sm:$0xff]  }
  0x42   : > { %1169 = vmatprep.subr.bf16.mxu0 %v1810_v33  ;;  %1255 = vmatprep.subr.bf16.mxu1 %v1812_v34  ;;  %v1888_v22 = vld [vmem:[%s2082_s11 + $0x268] ss:$16 sps:$4 sm:$0xff]   ;;  %v1893_v23 = vld [vmem:[%s2082_s11 + $0x284] ss:$16 sps:$4 sm:$0xff]   ;;  %v1896_v24 = vld [vmem:[%s2082_s11 + $0x28c] ss:$16 sps:$4 sm:$0xff]  }
  0x43   : > { %v1891_v25 = vld [vmem:[%s2082_s11 + $0x280] ss:$16 sps:$4 sm:$0xff]   ;;  %v1894_v26 = vld [vmem:[%s2082_s11 + $0x288] ss:$16 sps:$4 sm:$0xff]   ;;  %v1899_v27 = vld [vmem:[%s2082_s11 + $0x2a4] ss:$16 sps:$4 sm:$0xff]  }
  0x44   : > { %v1902_v28 = vld [vmem:[%s2082_s11 + $0x2ac] ss:$16 sps:$4 sm:$0xff]   ;;  %v1897_v29 = vld [vmem:[%s2082_s11 + $0x2a0] ss:$16 sps:$4 sm:$0xff]   ;;  %v1900_v30 = vld [vmem:[%s2082_s11 + $0x2a8] ss:$16 sps:$4 sm:$0xff]  }
  0x45   : > { %1170 = vmatpush1.bf16.msra.mxu0 %v1814_v35  ;;  %1256 = vmatpush1.bf16.msra.mxu1 %v1815_v36  ;;  %v1905_v31 = vld [vmem:[%s2082_s11 + $0x2c4] ss:$16 sps:$4 sm:$0xff]   ;;  %v1908_v32 = vld [vmem:[%s2082_s11 + $0x2cc] ss:$16 sps:$4 sm:$0xff]   ;;  %v1903_v34 = vld [vmem:[%s2082_s11 + $0x2c0] ss:$16 sps:$4 sm:$0xff]  }
  0x46   : > { %1171 = vmatprep.subr.bf16.mxu0 %v1816_v37  ;;  %1257 = vmatprep.subr.bf16.mxu1 %v1818_v38  ;;  %v1965_v33 = vld [vmem:[%s2084_s12 + $0xc] ss:$16 sps:$4 sm:$0xff]   ;;  %v1906_v35 = vld [vmem:[%s2082_s11 + $0x2c8] ss:$16 sps:$4 sm:$0xff]   ;;  %v1911_v36 = vld [vmem:[%s2082_s11 + $0x2e4] ss:$16 sps:$4 sm:$0xff]  }
  0x47   : > { %v1914_v37 = vld [vmem:[%s2082_s11 + $0x2ec] ss:$16 sps:$4 sm:$0xff]   ;;  %v1909_v38 = vld [vmem:[%s2082_s11 + $0x2e0] ss:$16 sps:$4 sm:$0xff]   ;;  %p1712_p11 = scmp.ne.s32.totalorder %s1996_s17, 8 }
  0x48   : > { %v1938_v53 = vld [vmem:[%s2082_s11 + $0x36c] ss:$16 sps:$4 sm:$0xff]  }
  0x49   : > { %1172 = vmatpush1.bf16.msra.mxu0 %v1820_v39  ;;  %1258 = vmatpush1.bf16.msra.mxu1 %v1821_v40  ;;  %v1912_v39 = vld [vmem:[%s2082_s11 + $0x2e8] ss:$16 sps:$4 sm:$0xff]   ;;  %v1917_v40 = vld [vmem:[%s2082_s11 + $0x304] ss:$16 sps:$4 sm:$0xff]  }
  0x4a   : > { %1173 = vmatprep.subr.bf16.mxu0 %v1822_v41  ;;  %1259 = vmatprep.subr.bf16.mxu1 %v1824_v42  ;;  %v1920_v41 = vld [vmem:[%s2082_s11 + $0x30c] ss:$16 sps:$4 sm:$0xff]   ;;  %v1915_v42 = vld [vmem:[%s2082_s11 + $0x300] ss:$16 sps:$4 sm:$0xff]  }
  0x4d   : > { %1174 = vmatpush1.bf16.msra.mxu0 %v1826_v43  ;;  %1260 = vmatpush1.bf16.msra.mxu1 %v1827_v44  ;;  %v1918_v43 = vld [vmem:[%s2082_s11 + $0x308] ss:$16 sps:$4 sm:$0xff]   ;;  %v1923_v44 = vld [vmem:[%s2082_s11 + $0x324] ss:$16 sps:$4 sm:$0xff]  }
  0x4e   : > { %1175 = vmatprep.subr.bf16.mxu0 %v1828_v45  ;;  %1261 = vmatprep.subr.bf16.mxu1 %v1830_v46  ;;  %v1926_v45 = vld [vmem:[%s2082_s11 + $0x32c] ss:$16 sps:$4 sm:$0xff]   ;;  %v1921_v46 = vld [vmem:[%s2082_s11 + $0x320] ss:$16 sps:$4 sm:$0xff]  }
  0x51   : > { %1176 = vmatpush1.bf16.msra.mxu0 %v1832_v47  ;;  %1262 = vmatpush1.bf16.msra.mxu1 %v1833_v48  ;;  %v1924_v47 = vld [vmem:[%s2082_s11 + $0x328] ss:$16 sps:$4 sm:$0xff]   ;;  %v1929_v48 = vld [vmem:[%s2082_s11 + $0x344] ss:$16 sps:$4 sm:$0xff]  }
  0x52   : > { %1177 = vmatprep.subr.bf16.mxu0 %v1834_v49  ;;  %1263 = vmatprep.subr.bf16.mxu1 %v1836_v50  ;;  %v1932_v49 = vld [vmem:[%s2082_s11 + $0x34c] ss:$16 sps:$4 sm:$0xff]   ;;  %v1927_v50 = vld [vmem:[%s2082_s11 + $0x340] ss:$16 sps:$4 sm:$0xff]  }
  0x55   : > { %1178 = vmatpush1.bf16.msra.mxu0 %v1838_v51  ;;  %1264 = vmatpush1.bf16.msra.mxu1 %v1839_v52  ;;  %v1930_v51 = vld [vmem:[%s2082_s11 + $0x348] ss:$16 sps:$4 sm:$0xff]   ;;  %v1935_v52 = vld [vmem:[%s2082_s11 + $0x364] ss:$16 sps:$4 sm:$0xff]  }
  0x56   : > { %1179 = vmatprep.subr.bf16.mxu0 %v1840_v54  ;;  %1265 = vmatprep.subr.bf16.mxu1 %v1842_v55  ;;  %v1933_v54 = vld [vmem:[%s2082_s11 + $0x360] ss:$16 sps:$4 sm:$0xff]   ;;  %v1936_v55 = vld [vmem:[%s2082_s11 + $0x368] ss:$16 sps:$4 sm:$0xff]  }
  0x59   : > { %1180 = vmatpush1.bf16.msra.mxu0 %v1844_v56  ;;  %1266 = vmatpush1.bf16.msra.mxu1 %v1845_v57  ;;  %v1941_v56 = vld [vmem:[%s2082_s11 + $0x384] ss:$16 sps:$4 sm:$0xff]   ;;  %v1944_v57 = vld [vmem:[%s2082_s11 + $0x38c] ss:$16 sps:$4 sm:$0xff]  }
  0x5a   : > { %1181 = vmatprep.subr.bf16.mxu0 %v1846_v58  ;;  %1267 = vmatprep.subr.bf16.mxu1 %v1848_v59  ;;  %v1939_v58 = vld [vmem:[%s2082_s11 + $0x380] ss:$16 sps:$4 sm:$0xff]   ;;  %v1942_v59 = vld [vmem:[%s2082_s11 + $0x388] ss:$16 sps:$4 sm:$0xff]  }
  0x5d   : > { %1182 = vmatpush1.bf16.msra.mxu0 %v1850_v60  ;;  %1268 = vmatpush1.bf16.msra.mxu1 %v1851_v61  ;;  %v1947_v60 = vld [vmem:[%s2082_s11 + $0x3a4] ss:$16 sps:$4 sm:$0xff]   ;;  %v1950_v61 = vld [vmem:[%s2082_s11 + $0x3ac] ss:$16 sps:$4 sm:$0xff]  }
  0x5e   : > { %1183 = vmatprep.subr.bf16.mxu0 %v1852_v62  ;;  %1269 = vmatprep.subr.bf16.mxu1 %v1854_v63  ;;  %v1945_v62 = vld [vmem:[%s2082_s11 + $0x3a0] ss:$16 sps:$4 sm:$0xff]   ;;  %v1948_v63 = vld [vmem:[%s2082_s11 + $0x3a8] ss:$16 sps:$4 sm:$0xff]  }
  0x61   : > { %1184 = vmatpush1.bf16.msra.mxu0 %v1856_v0  ;;  %1270 = vmatpush1.bf16.msra.mxu1 %v1857_v1  ;;  %v1953_v0 = vld [vmem:[%s2082_s11 + $0x3c4] ss:$16 sps:$4 sm:$0xff]   ;;  %v1956_v1 = vld [vmem:[%s2082_s11 + $0x3cc] ss:$16 sps:$4 sm:$0xff]  }
  0x62   : > { %1185 = vmatprep.subr.bf16.mxu0 %v1858_v2  ;;  %1271 = vmatprep.subr.bf16.mxu1 %v1860_v3  ;;  %v1951_v2 = vld [vmem:[%s2082_s11 + $0x3c0] ss:$16 sps:$4 sm:$0xff]   ;;  %v1954_v3 = vld [vmem:[%s2082_s11 + $0x3c8] ss:$16 sps:$4 sm:$0xff]  }
  0x65   : > { %1186 = vmatpush1.bf16.msra.mxu0 %v1862_v4  ;;  %1272 = vmatpush1.bf16.msra.mxu1 %v1863_v5  ;;  %v1959_v4 = vld [vmem:[%s2082_s11 + $0x3e4] ss:$16 sps:$4 sm:$0xff]   ;;  %v1962_v5 = vld [vmem:[%s2082_s11 + $0x3ec] ss:$16 sps:$4 sm:$0xff]  }
  0x66   : > { %1198 = vmatprep.subr.bf16.mxu0 %v1869_v6  ;;  %1284 = vmatprep.subr.bf16.mxu1 %v1872_v7  ;;  %v1957_v6 = vld [vmem:[%s2082_s11 + $0x3e0] ss:$16 sps:$4 sm:$0xff]   ;;  %v1960_v7 = vld [vmem:[%s2082_s11 + $0x3e8] ss:$16 sps:$4 sm:$0xff]  }
  0x68   : > { %1188 = vmatmul.mubr.bf16.vlgmr.msra.gmra.mrb[0].mxu0 %v1864_v8  ;;  %1274 = vmatmul.mubr.bf16.vlgmr.msra.gmra.mrb[0].mxu1 %v1864_v8  ;;  %v1963_v8 = vld [vmem:[%s2084_s12 + $0x8] ss:$16 sps:$4 sm:$0xff]  }
  0x69   : > { %1199 = vmatpush1.bf16.msra.mxu0 %v1867_v9  ;;  %1285 = vmatpush1.bf16.msra.mxu1 %v1870_v10  ;;  %v355_v9 = vld [vmem:[%s2365_s4] sm:$0xff]  ;;  %v357_v10 = vld [vmem:[%s2365_s4 + $0x10] sm:$0xff] }
  0x6a   : > { %1200 = vmatprep.subr.bf16.mxu0 %v1875_v11  ;;  %1286 = vmatprep.subr.bf16.mxu1 %v1878_v12  ;;  %v356_v11 = vld [vmem:[%s2365_s4 + $0x8] sm:$0xff]  ;;  %v358_v12 = vld [vmem:[%s2365_s4 + $0x18] sm:$0xff] }
  0x6b   : > { %1230 = vmatprep.mubr.bf16.mxu0 %v1965_v33  ;;  %1316 = vmatprep.mubr.bf16.mxu1 %v1965_v33  ;;  %v1357_v33 = vlaneseq (!%p1712_p11) }
  0x6d   : > { %1201 = vmatpush1.bf16.msra.mxu0 %v1873_v13  ;;  %1287 = vmatpush1.bf16.msra.mxu1 %v1876_v14 }
  0x6e   : > { %1202 = vmatprep.subr.bf16.mxu0 %v1881_v15  ;;  %1288 = vmatprep.subr.bf16.mxu1 %v1884_v16  ;;  %v359_v15 = vld [vmem:[%s2365_s4 + $0x20] sm:$0xff]  ;;  %v361_v16 = vld [vmem:[%s2365_s4 + $0x30] sm:$0xff] }
  0x71   : > { %1203 = vmatpush1.bf16.msra.mxu0 %v1879_v17  ;;  %1289 = vmatpush1.bf16.msra.mxu1 %v1882_v18 }
  0x72   : > { %1204 = vmatprep.subr.bf16.mxu0 %v1887_v19  ;;  %1290 = vmatprep.subr.bf16.mxu1 %v1890_v20 }
  0x75   : > { %1205 = vmatpush1.bf16.msra.mxu0 %v1885_v21  ;;  %1291 = vmatpush1.bf16.msra.mxu1 %v1888_v22  ;;  %v360_v21 = vld [vmem:[%s2365_s4 + $0x28] sm:$0xff]  ;;  %v362_v22 = vld [vmem:[%s2365_s4 + $0x38] sm:$0xff] }
  0x76   : > { %1206 = vmatprep.subr.bf16.mxu0 %v1893_v23  ;;  %1292 = vmatprep.subr.bf16.mxu1 %v1896_v24 }
  0x79   : > { %1207 = vmatpush1.bf16.msra.mxu0 %v1891_v25  ;;  %1293 = vmatpush1.bf16.msra.mxu1 %v1894_v26 }
  0x7a   : > { %1208 = vmatprep.subr.bf16.mxu0 %v1899_v27  ;;  %1294 = vmatprep.subr.bf16.mxu1 %v1902_v28 }
  0x7d   : > { %1209 = vmatpush1.bf16.msra.mxu0 %v1897_v29  ;;  %1295 = vmatpush1.bf16.msra.mxu1 %v1900_v30 }
  0x7e   : > { %1210 = vmatprep.subr.bf16.mxu0 %v1905_v31  ;;  %1296 = vmatprep.subr.bf16.mxu1 %v1908_v32 }
  0x81   : > { %1211 = vmatpush1.bf16.msra.mxu0 %v1903_v34  ;;  %1297 = vmatpush1.bf16.msra.mxu1 %v1906_v35  ;;  %v1358_v34 = vshrl.u32 (!%p1712_p11), %v1357_v33, 7  ;;  %v1355_v35 = vld [vmem:[%s2363_s2] sm:$0xf] (!%p1712_p11) }
  0x82   : > { %1212 = vmatprep.subr.bf16.mxu0 %v1911_v36  ;;  %1298 = vmatprep.subr.bf16.mxu1 %v1914_v37  ;;  %v1385_v36 = vld [vmem:[%s2364_s3] sm:$0xf] (!%p1712_p11) }
  0x85   : > { %1213 = vmatpush1.bf16.msra.mxu0 %v1909_v38  ;;  %1299 = vmatpush1.bf16.msra.mxu1 %v1912_v39  ;;  %v1359_v38 = vsub.s32 (!%p1712_p11), 0, %v1358_v34 }
  0x86   : > { %1214 = vmatprep.subr.bf16.mxu0 %v1917_v40  ;;  %1300 = vmatprep.subr.bf16.mxu1 %v1920_v41  ;;  %v1363_v40 = vsub.s32 (!%p1712_p11), 1, %v1358_v34  ;;  %v1367_v41 = vsub.s32 (!%p1712_p11), 2, %v1358_v34 }
  0x89   : > { %1215 = vmatpush1.bf16.msra.mxu0 %v1915_v42  ;;  %1301 = vmatpush1.bf16.msra.mxu1 %v1918_v43  ;;  %v1371_v42 = vsub.s32 (!%p1712_p11), 3, %v1358_v34 }
  0x8a   : > { %1216 = vmatprep.subr.bf16.mxu0 %v1923_v44  ;;  %1302 = vmatprep.subr.bf16.mxu1 %v1926_v45 }
  0x8d   : > { %1217 = vmatpush1.bf16.msra.mxu0 %v1921_v46  ;;  %1303 = vmatpush1.bf16.msra.mxu1 %v1924_v47  ;;  %v1360_v46 = vrot.slane (!%p1712_p11), %v1355_v35, %v1359_v38  ;;  %v1390_v47 = vrot.slane (!%p1712_p11), %v1385_v36, %v1359_v38 }
  0x8e   : > { %1218 = vmatprep.subr.bf16.mxu0 %v1929_v48  ;;  %1304 = vmatprep.subr.bf16.mxu1 %v1932_v49  ;;  %v1364_v48 = vrot.slane (!%p1712_p11), %v1355_v35, %v1363_v40  ;;  %v1394_v49 = vrot.slane (!%p1712_p11), %v1385_v36, %v1363_v40 }
  0x91   : > { %1219 = vmatpush1.bf16.msra.mxu0 %v1927_v50  ;;  %1305 = vmatpush1.bf16.msra.mxu1 %v1930_v51 }
  0x92   : > { %1220 = vmatprep.subr.bf16.mxu0 %v1935_v52  ;;  %1306 = vmatprep.subr.bf16.mxu1 %v1938_v53  ;;  %v1368_v53 = vrot.slane (!%p1712_p11), %v1355_v35, %v1367_v41 }
  0x95   : > { %1221 = vmatpush1.bf16.msra.mxu0 %v1933_v54  ;;  %1307 = vmatpush1.bf16.msra.mxu1 %v1936_v55  ;;  %v1398_v54 = vrot.slane (!%p1712_p11), %v1385_v36, %v1367_v41  ;;  %v1372_v55 = vrot.slane (!%p1712_p11), %v1355_v35, %v1371_v42 }
  0x96   : > { %1222 = vmatprep.subr.bf16.mxu0 %v1941_v56  ;;  %1308 = vmatprep.subr.bf16.mxu1 %v1944_v57  ;;  %v1402_v56 = vrot.slane (!%p1712_p11), %v1385_v36, %v1371_v42 }
  0x99   : > { %1223 = vmatpush1.bf16.msra.mxu0 %v1939_v58  ;;  %1309 = vmatpush1.bf16.msra.mxu1 %v1942_v59 }
  0x9a   : > { %1224 = vmatprep.subr.bf16.mxu0 %v1947_v60  ;;  %1310 = vmatprep.subr.bf16.mxu1 %v1950_v61 }
  0x9d   : > { %1225 = vmatpush1.bf16.msra.mxu0 %v1945_v62  ;;  %1311 = vmatpush1.bf16.msra.mxu1 %v1948_v63 }
  0x9e   : > { %1226 = vmatprep.subr.bf16.mxu0 %v1953_v0  ;;  %1312 = vmatprep.subr.bf16.mxu1 %v1956_v1 }
  0xa1   : > { %1227 = vmatpush1.bf16.msra.mxu0 %v1951_v2  ;;  %1313 = vmatpush1.bf16.msra.mxu1 %v1954_v3 }
  0xa2   : > { %1228 = vmatprep.subr.bf16.mxu0 %v1959_v4  ;;  %1314 = vmatprep.subr.bf16.mxu1 %v1962_v5 }
  0xa5   : > { %1229 = vmatpush1.bf16.msra.mxu0 %v1957_v6  ;;  %1315 = vmatpush1.bf16.msra.mxu1 %v1960_v7 }
  0xa8   : > { %1231 = vmatmul.mubr.bf16.vlgmr.msra.gmra.mrb[0].mxu0 %v1963_v8  ;;  %1317 = vmatmul.mubr.bf16.vlgmr.msra.gmra.mrb[0].mxu1 %v1963_v8 }
 0x17b   : > { %v1232_v13 = vpop.f32.mrb[0].mxu0  ;;  %v1318_v14 = vpop.f32.mrb[0].mxu1  ;;  %1346 = sbr.rel (%p1712_p11) target bundleno = 400 (0x190), region = 67 }
 0x17c   : > { %v1327_v17 = vadd.f32 %v1232_v13, %v355_v9  ;;  %v1329_v18 = vadd.f32 %v1318_v14, %v357_v10  ;;  %v1234_v19 = vpop.f32.mrb[1].mxu0  ;;  %v1320_v20 = vpop.f32.mrb[1].mxu1 }
 0x17d   : > { %v1328_v23 = vadd.f32 %v1234_v19, %v356_v11  ;;  %v1330_v24 = vadd.f32 %v1320_v20, %v358_v12  ;;  %v1236_v25 = vpop.f32.mrb[2].mxu0  ;;  %v1322_v26 = vpop.f32.mrb[2].mxu1 }
 0x17e   : > { %1335 = vst [vmem:[%s2365_s4] sm:$0xff] %v1327_v17  ;;  %1337 = vst [vmem:[%s2365_s4 + $0x10] sm:$0xff] %v1329_v18  ;;  %v1331_v27 = vadd.f32 %v1236_v25, %v359_v15  ;;  %v1333_v28 = vadd.f32 %v1322_v26, %v361_v16  ;;  %v1238_v29 = vpop.f32.mrb[3].mxu0  ;;  %v1324_v30 = vpop.f32.mrb[3].mxu1 }
 0x17f   : > { %1336 = vst [vmem:[%s2365_s4 + $0x8] sm:$0xff] %v1328_v23  ;;  %1338 = vst [vmem:[%s2365_s4 + $0x18] sm:$0xff] %v1330_v24  ;;  %v1332_v31 = vadd.f32 %v1238_v29, %v360_v21  ;;  %v1334_v32 = vadd.f32 %v1324_v30, %v362_v22 }
 0x180   : > { %1339 = vst [vmem:[%s2365_s4 + $0x20] sm:$0xff] %v1331_v27  ;;  %1341 = vst [vmem:[%s2365_s4 + $0x30] sm:$0xff] %v1333_v28 }
 0x181   : > { %1340 = vst [vmem:[%s2365_s4 + $0x28] sm:$0xff] %v1332_v31  ;;  %1342 = vst [vmem:[%s2365_s4 + $0x38] sm:$0xff] %v1334_v32 }
 0x185   : > { %v1347_v37 = vld [vmem:[%s2365_s4] sm:$0xff]  ;;  %v1349_v43 = vld [vmem:[%s2365_s4 + $0x10] sm:$0xff] }
 0x186   : > { %v1348_v39 = vld [vmem:[%s2365_s4 + $0x8] sm:$0xff]  ;;  %v1350_v50 = vld [vmem:[%s2365_s4 + $0x18] sm:$0xff]  ;;  %v1377_v57 = vmul.f32 %v1360_v46, %v1347_v37  ;;  %v1379_v61 = vmul.f32 %v1368_v53, %v1349_v43 }
 0x187   : > { %v1351_v44 = vld [vmem:[%s2365_s4 + $0x20] sm:$0xff]  ;;  %v1353_v51 = vld [vmem:[%s2365_s4 + $0x30] sm:$0xff]  ;;  %v1378_v58 = vmul.f32 %v1364_v48, %v1348_v39  ;;  %v1380_v62 = vmul.f32 %v1372_v55, %v1350_v50 }
 0x188   : > { %v1352_v45 = vld [vmem:[%s2365_s4 + $0x28] sm:$0xff]  ;;  %v1354_v52 = vld [vmem:[%s2365_s4 + $0x38] sm:$0xff]  ;;  %v1381_v59 = vmul.f32 %v1360_v46, %v1351_v44  ;;  %v1383_v63 = vmul.f32 %v1368_v53, %v1353_v51  ;;  %v1407_v1 = vadd.f32 %v1390_v47, %v1377_v57  ;;  %v1409_v5 = vadd.f32 %v1398_v54, %v1379_v61 }
 0x189   : > { %v1382_v60 = vmul.f32 %v1364_v48, %v1352_v45  ;;  %v1384_v0 = vmul.f32 %v1372_v55, %v1354_v52  ;;  %v1408_v2 = vadd.f32 %v1394_v49, %v1378_v58  ;;  %v1410_v6 = vadd.f32 %v1402_v56, %v1380_v62 }
 0x18a   : > { %v1411_v3 = vadd.f32 %v1390_v47, %v1381_v59  ;;  %v1413_v7 = vadd.f32 %v1398_v54, %v1383_v63  ;;  %v1415_v9 = vmax.f32 %v1407_v1, 0.0  ;;  %v1417_v13 = vmax.f32 %v1409_v5, 0.0 }
 0x18b   : > { %v1412_v4 = vadd.f32 %v1394_v49, %v1382_v60  ;;  %v1414_v8 = vadd.f32 %v1402_v56, %v1384_v0  ;;  %v1416_v10 = vmax.f32 %v1408_v2, 0.0  ;;  %v1418_v14 = vmax.f32 %v1410_v6, 0.0 }
 0x18c   : > { %v1419_v11 = vmax.f32 %v1411_v3, 0.0  ;;  %v1421_v15 = vmax.f32 %v1413_v7, 0.0  ;;  %1423 = vst [vmem:[%s2365_s4] sm:$0xff] %v1415_v9  ;;  %1425 = vst [vmem:[%s2365_s4 + $0x10] sm:$0xff] %v1417_v13 }
 0x18d   : > { %v1420_v12 = vmax.f32 %v1412_v4, 0.0  ;;  %v1422_v16 = vmax.f32 %v1414_v8, 0.0  ;;  %1424 = vst [vmem:[%s2365_s4 + $0x8] sm:$0xff] %v1416_v10  ;;  %1426 = vst [vmem:[%s2365_s4 + $0x18] sm:$0xff] %v1418_v14 }
 0x18e   : > { %1427 = vst [vmem:[%s2365_s4 + $0x20] sm:$0xff] %v1419_v11  ;;  %1429 = vst [vmem:[%s2365_s4 + $0x30] sm:$0xff] %v1421_v15 }
 0x18f   : > { %1428 = vst [vmem:[%s2365_s4 + $0x28] sm:$0xff] %v1420_v12  ;;  %1430 = vst [vmem:[%s2365_s4 + $0x38] sm:$0xff] %v1422_v16 }
 0x190 PF: > { %s14_s19 = sadd.s32 1, %s2004_s19   ;;  %s2366_s15 = smov %s1992_s16 }
 0x191   : > { %p11_p12 = scmp.ge.s32.totalorder %s14_s19, 11   ;;  %s2367_s16 = smov %s2067_s23 }
 0x192   : > { %s2368_s17 = smov %s2000_s18  ;;  %s2369_s18 = smov %s2371_s20 }
 0x193   :  { %13 = sbr.rel (!%p11_p12) target bundleno = 3 (0x3), region = 111 }

// kernel: drnseg_forward.48
= control target key start
LH: loop header
LB: loop body
LE: loop exit
PB: predicated region body
PF: predicated region fallthrough
CT: control target
= control target key end

     0   :  { %s2143_s18 = smov 0   ;;  %s2145_s19 = smov 0   ;;  %s2496_s0 = inlined_call_operand.vmem [shape: bf16[16,4608], index: 0, kind: input, shape index: {}]   ;;  %s2497_s1 = inlined_call_operand.vmem [shape: bf16[4608,512], index: 1, kind: input, shape index: {}]   ;;  %s2498_s2 = inlined_call_operand.vmem [shape: f32[1,512], index: 2, kind: input, shape index: {}]   ;;  %s2499_s3 = inlined_call_operand.vmem [shape: f32[1,512], index: 3, kind: input, shape index: {}]   ;;  %s2500_s4 = inlined_call_operand.vmem [shape: f32[16,512], index: 4, kind: input, shape index: {}]   ;;  %s2501_s5 = inlined_call_operand.vmem [shape: f32[16,512], index: 5, kind: output, shape index: {}]  }
   0x1   :  { %s2147_s20 = smov 0   ;;  %s2149_s21 = smov 0  }
   0x2   :  { %s2151_s22 = smov 0  }
   0x3 LB: > { %s27_s23 = sadd.s32 1, %s2106_s21  ;;  %p50_p1 = scmp.ne.s32.totalorder %s2098_s19, %s2094_s18  ;;  %s2110_s22 = sphi %s2151_s22, %s15_s22   ;;  %s2106_s21 = sphi %s2149_s21, %s2505_s21   ;;  %s2102_s20 = sphi %s2147_s20, %s2504_s20   ;;  %s2098_s19 = sphi %s2145_s19, %s2503_s19   ;;  %s2094_s18 = sphi %s2143_s18, %s2502_s18  }
   0x4   : > { %p28_p0 = scmp.ge.s32.totalorder %s27_s23, 9  ;;  %p51_p2 = scmp.eq.s32.totalorder %s2110_s22, 0 }
   0x5   : > { %s43_s25 = sadd.s32 1, %s2098_s19  ;;  %p1676_p5 = scmp.ge.s32.totalorder %s2110_s22, 9 }
   0x6   : > { %s2507_s23 = smov (%p28_p0, %s27_s23), 0  ;;  %p52_p3 = por %p51_p2, %p50_p1 }
   0x7   : > { %s39_s24 = ssub.s32 %s2106_s21, %s2507_s23  ;;  %243 = sbr.rel (%p1676_p5) target bundleno = 21 (0x15), region = 28 }
   0x8   : > { %p41_p4 = scmp.eq.s32.totalorder %s39_s24, 0 }
   0xa   : > { %s2178_s26 = scalar_select %p41_p4, %s2098_s19, %s43_s25  }
   0xe   : > { %246 = sbr.rel (!%p52_p3) target bundleno = 21 (0x15), region = 32  ;;  %s248_s27 = sand.u32 (%p52_p3), 1, %s2098_s19  }
   0xf   : > { %s1823_s28 = sshll.u32 (%p52_p3), %s2106_s21, 4  ;;  %s1677_s29 = sshll.u32 (%p52_p3), %s248_s27, 5 }
  0x10   : > { %s256_s7 = scalar_lea.vmem (%p52_p3), %s2496_s0, %s1823_s28  ;;  %s250_s8 = scalar_lea.vmem (%p52_p3), [#allocation2], %s1677_s29 }
  0x11   : > { %v269_v0 = vld [vmem:[%s256_s7] sm:$0xff] (%p52_p3)  ;;  %v271_v1 = vld [vmem:[%s256_s7 + $0x8] sm:$0xff] (%p52_p3)  ;;  %v273_v2 = vld [vmem:[%s256_s7 + $0x90] sm:$0xff] (%p52_p3) }
  0x12   : > { %270 = vst [vmem:[%s250_s8] sm:$0xff] (%p52_p3), %v269_v0  ;;  %272 = vst [vmem:[%s250_s8 + $0x8] sm:$0xff] (%p52_p3), %v271_v1  ;;  %v275_v3 = vld [vmem:[%s256_s7 + $0x98] sm:$0xff] (%p52_p3) }
  0x13   : > { %274 = vst [vmem:[%s250_s8 + $0x10] sm:$0xff] (%p52_p3), %v273_v2  ;;  %276 = vst [vmem:[%s250_s8 + $0x18] sm:$0xff] (%p52_p3), %v275_v3 }
  0x15 PF: > { %p1680_p6 = scmp.ge.s32.totalorder %s2110_s22, 1  ;;  %p296_p7 = scmp.lt.s32.totalorder %s2110_s22, 10 }
  0x17   : > { %p297_p8 = pnand %p1680_p6, %p296_p7 }
  0x18   : > { %s303_s9 = sand.u32 (!%p297_p8), 1, %s2094_s18   ;;  %s1682_s10 = sshll.u32 (!%p297_p8), %s2102_s20, 6 }
  0x19   : > { %300 = sbr.rel (%p297_p8) target bundleno = 402 (0x192), region = 59  ;;  %s1681_s11 = sshll.u32 (!%p297_p8), %s303_s9, 5 }
  0x1a   : > { %p367_p9 = scmp.lt.s32.totalorder (!%p297_p8), %s1682_s10, 575  ;;  %s2195_s16 = scalar_lea.vmem (!%p297_p8), [#allocation2], %s1681_s11 }
  0x1b   : > { %p1685_p10 = scmp.ne.s32.totalorder (!%p297_p8), %s2102_s20, 0 }
  0x20   : > { %s2509_s10 = smov (!%p367_p9, %s1682_s10), 575  ;;  %414 = sbr.rel (%p1685_p10) target bundleno = 39 (0x27), region = 67 }
  0x21   : > { %s1824_s12 = sshll.u32 %s2509_s10, 4  ;;  %v2112_v4 = vmov (!%p1685_p10), 0.0  }
  0x22   : > { %s2193_s15 = scalar_lea.vmem %s2497_s1, %s1824_s12  ;;  %415 = vst [vmem:[%s2501_s5] sm:$0xff] (!%p1685_p10), %v2112_v4  ;;  %416 = vst [vmem:[%s2501_s5 + $0x8] sm:$0xff] (!%p1685_p10), %v2112_v4 }
  0x23   : > { %417 = vst [vmem:[%s2501_s5 + $0x10] sm:$0xff] (!%p1685_p10), %v2112_v4  ;;  %418 = vst [vmem:[%s2501_s5 + $0x18] sm:$0xff] (!%p1685_p10), %v2112_v4 }
  0x24   : > { %419 = vst [vmem:[%s2501_s5 + $0x20] sm:$0xff] (!%p1685_p10), %v2112_v4  ;;  %420 = vst [vmem:[%s2501_s5 + $0x28] sm:$0xff] (!%p1685_p10), %v2112_v4 }
  0x25   : > { %421 = vst [vmem:[%s2501_s5 + $0x30] sm:$0xff] (!%p1685_p10), %v2112_v4  ;;  %422 = vst [vmem:[%s2501_s5 + $0x38] sm:$0xff] (!%p1685_p10), %v2112_v4 }
  0x27 PF: > { %v1874_v5 = vld [vmem:[%s2193_s15 + $0x4] ss:$16 sps:$4 sm:$0xff]   ;;  %v1876_v6 = vld [vmem:[%s2193_s15 + $0xc] ss:$16 sps:$4 sm:$0xff]   ;;  %v1878_v7 = vld [vmem:[%s2193_s15] ss:$16 sps:$4 sm:$0xff]  }
  0x28   : > { %1223 = vmatprep.subr.bf16.mxu0 %v1874_v5  ;;  %v1879_v8 = vld [vmem:[%s2193_s15 + $0x8] ss:$16 sps:$4 sm:$0xff]   ;;  %1309 = vmatprep.subr.bf16.mxu1 %v1876_v6  ;;  %v1880_v9 = vld [vmem:[%s2193_s15 + $0x24] ss:$16 sps:$4 sm:$0xff]   ;;  %v1882_v10 = vld [vmem:[%s2193_s15 + $0x2c] ss:$16 sps:$4 sm:$0xff]  }
  0x29   : > { %1224 = vmatpush1.bf16.msra.mxu0 %v1878_v7  ;;  %1310 = vmatpush1.bf16.msra.mxu1 %v1879_v8  ;;  %v1884_v11 = vld [vmem:[%s2193_s15 + $0x20] ss:$16 sps:$4 sm:$0xff]   ;;  %v1885_v12 = vld [vmem:[%s2193_s15 + $0x28] ss:$16 sps:$4 sm:$0xff]   ;;  %v1886_v13 = vld [vmem:[%s2193_s15 + $0x44] ss:$16 sps:$4 sm:$0xff]  }
  0x2a   : > { %1225 = vmatprep.subr.bf16.mxu0 %v1880_v9  ;;  %1311 = vmatprep.subr.bf16.mxu1 %v1882_v10  ;;  %v1888_v14 = vld [vmem:[%s2193_s15 + $0x4c] ss:$16 sps:$4 sm:$0xff]   ;;  %v1890_v15 = vld [vmem:[%s2193_s15 + $0x40] ss:$16 sps:$4 sm:$0xff]   ;;  %v1891_v16 = vld [vmem:[%s2193_s15 + $0x48] ss:$16 sps:$4 sm:$0xff]  }
  0x2b   : > { %v1892_v17 = vld [vmem:[%s2193_s15 + $0x64] ss:$16 sps:$4 sm:$0xff]   ;;  %v1894_v18 = vld [vmem:[%s2193_s15 + $0x6c] ss:$16 sps:$4 sm:$0xff]   ;;  %v1896_v19 = vld [vmem:[%s2193_s15 + $0x60] ss:$16 sps:$4 sm:$0xff]  }
  0x2c   : > { %v1897_v20 = vld [vmem:[%s2193_s15 + $0x68] ss:$16 sps:$4 sm:$0xff]   ;;  %v1898_v21 = vld [vmem:[%s2193_s15 + $0x84] ss:$16 sps:$4 sm:$0xff]   ;;  %v1900_v22 = vld [vmem:[%s2193_s15 + $0x8c] ss:$16 sps:$4 sm:$0xff]  }
  0x2d   : > { %1226 = vmatpush1.bf16.msra.mxu0 %v1884_v11  ;;  %1312 = vmatpush1.bf16.msra.mxu1 %v1885_v12  ;;  %v1902_v23 = vld [vmem:[%s2193_s15 + $0x80] ss:$16 sps:$4 sm:$0xff]   ;;  %v1903_v24 = vld [vmem:[%s2193_s15 + $0x88] ss:$16 sps:$4 sm:$0xff]   ;;  %v1904_v25 = vld [vmem:[%s2193_s15 + $0xa4] ss:$16 sps:$4 sm:$0xff]  }
  0x2e   : > { %1227 = vmatprep.subr.bf16.mxu0 %v1886_v13  ;;  %1313 = vmatprep.subr.bf16.mxu1 %v1888_v14  ;;  %v1906_v26 = vld [vmem:[%s2193_s15 + $0xac] ss:$16 sps:$4 sm:$0xff]   ;;  %v1908_v27 = vld [vmem:[%s2193_s15 + $0xa0] ss:$16 sps:$4 sm:$0xff]   ;;  %v1909_v28 = vld [vmem:[%s2193_s15 + $0xa8] ss:$16 sps:$4 sm:$0xff]  }
  0x2f   : > { %v1910_v29 = vld [vmem:[%s2193_s15 + $0xc4] ss:$16 sps:$4 sm:$0xff]   ;;  %v1912_v30 = vld [vmem:[%s2193_s15 + $0xcc] ss:$16 sps:$4 sm:$0xff]   ;;  %v1914_v31 = vld [vmem:[%s2193_s15 + $0xc0] ss:$16 sps:$4 sm:$0xff]  }
  0x30   : > { %v1915_v32 = vld [vmem:[%s2193_s15 + $0xc8] ss:$16 sps:$4 sm:$0xff]   ;;  %v1916_v33 = vld [vmem:[%s2193_s15 + $0xe4] ss:$16 sps:$4 sm:$0xff]   ;;  %v1918_v34 = vld [vmem:[%s2193_s15 + $0xec] ss:$16 sps:$4 sm:$0xff]  }
  0x31   : > { %1228 = vmatpush1.bf16.msra.mxu0 %v1890_v15  ;;  %1314 = vmatpush1.bf16.msra.mxu1 %v1891_v16  ;;  %v1920_v35 = vld [vmem:[%s2193_s15 + $0xe0] ss:$16 sps:$4 sm:$0xff]   ;;  %v1921_v36 = vld [vmem:[%s2193_s15 + $0xe8] ss:$16 sps:$4 sm:$0xff]   ;;  %v1922_v37 = vld [vmem:[%s2193_s15 + $0x104] ss:$16 sps:$4 sm:$0xff]  }
  0x32   : > { %1229 = vmatprep.subr.bf16.mxu0 %v1892_v17  ;;  %1315 = vmatprep.subr.bf16.mxu1 %v1894_v18  ;;  %v1924_v38 = vld [vmem:[%s2193_s15 + $0x10c] ss:$16 sps:$4 sm:$0xff]   ;;  %v1926_v39 = vld [vmem:[%s2193_s15 + $0x100] ss:$16 sps:$4 sm:$0xff]   ;;  %v1927_v40 = vld [vmem:[%s2193_s15 + $0x108] ss:$16 sps:$4 sm:$0xff]  }
  0x33   : > { %v1928_v41 = vld [vmem:[%s2193_s15 + $0x124] ss:$16 sps:$4 sm:$0xff]   ;;  %v1930_v42 = vld [vmem:[%s2193_s15 + $0x12c] ss:$16 sps:$4 sm:$0xff]   ;;  %v1932_v43 = vld [vmem:[%s2193_s15 + $0x120] ss:$16 sps:$4 sm:$0xff]  }
  0x34   : > { %v1933_v44 = vld [vmem:[%s2193_s15 + $0x128] ss:$16 sps:$4 sm:$0xff]   ;;  %v1934_v45 = vld [vmem:[%s2193_s15 + $0x144] ss:$16 sps:$4 sm:$0xff]   ;;  %v1936_v46 = vld [vmem:[%s2193_s15 + $0x14c] ss:$16 sps:$4 sm:$0xff]  }
  0x35   : > { %1230 = vmatpush1.bf16.msra.mxu0 %v1896_v19  ;;  %1316 = vmatpush1.bf16.msra.mxu1 %v1897_v20  ;;  %v1938_v47 = vld [vmem:[%s2193_s15 + $0x140] ss:$16 sps:$4 sm:$0xff]   ;;  %v1939_v48 = vld [vmem:[%s2193_s15 + $0x148] ss:$16 sps:$4 sm:$0xff]   ;;  %v1940_v49 = vld [vmem:[%s2193_s15 + $0x164] ss:$16 sps:$4 sm:$0xff]  }
  0x36   : > { %1231 = vmatprep.subr.bf16.mxu0 %v1898_v21  ;;  %1317 = vmatprep.subr.bf16.mxu1 %v1900_v22  ;;  %v1942_v50 = vld [vmem:[%s2193_s15 + $0x16c] ss:$16 sps:$4 sm:$0xff]   ;;  %v1944_v51 = vld [vmem:[%s2193_s15 + $0x160] ss:$16 sps:$4 sm:$0xff]   ;;  %v1945_v52 = vld [vmem:[%s2193_s15 + $0x168] ss:$16 sps:$4 sm:$0xff]  }
  0x37   : > { %v1972_v53 = vld [vmem:[%s2195_s16 + $0x4] ss:$16 sps:$4 sm:$0xff]   ;;  %v1948_v55 = vld [vmem:[%s2193_s15 + $0x18c] ss:$16 sps:$4 sm:$0xff]   ;;  %v1950_v56 = vld [vmem:[%s2193_s15 + $0x180] ss:$16 sps:$4 sm:$0xff]  }
  0x38   : > { %v1946_v54 = vld [vmem:[%s2193_s15 + $0x184] ss:$16 sps:$4 sm:$0xff]   ;;  %1255 = vmatprep.mubr.bf16.mxu0 %v1972_v53  ;;  %1341 = vmatprep.mubr.bf16.mxu1 %v1972_v53  ;;  %v1951_v57 = vld [vmem:[%s2193_s15 + $0x188] ss:$16 sps:$4 sm:$0xff]   ;;  %v1954_v59 = vld [vmem:[%s2193_s15 + $0x1ac] ss:$16 sps:$4 sm:$0xff]  }
  0x39   : > { %1232 = vmatpush1.bf16.msra.mxu0 %v1902_v23  ;;  %1318 = vmatpush1.bf16.msra.mxu1 %v1903_v24  ;;  %v1952_v58 = vld [vmem:[%s2193_s15 + $0x1a4] ss:$16 sps:$4 sm:$0xff]   ;;  %v1956_v60 = vld [vmem:[%s2193_s15 + $0x1a0] ss:$16 sps:$4 sm:$0xff]   ;;  %v1957_v61 = vld [vmem:[%s2193_s15 + $0x1a8] ss:$16 sps:$4 sm:$0xff]  }
  0x3a   : > { %1233 = vmatprep.subr.bf16.mxu0 %v1904_v25  ;;  %1319 = vmatprep.subr.bf16.mxu1 %v1906_v26  ;;  %v1958_v62 = vld [vmem:[%s2193_s15 + $0x1c4] ss:$16 sps:$4 sm:$0xff]   ;;  %v1960_v63 = vld [vmem:[%s2193_s15 + $0x1cc] ss:$16 sps:$4 sm:$0xff]   ;;  %v1962_v0 = vld [vmem:[%s2193_s15 + $0x1c0] ss:$16 sps:$4 sm:$0xff]  }
  0x3b   : > { %v1963_v1 = vld [vmem:[%s2193_s15 + $0x1c8] ss:$16 sps:$4 sm:$0xff]   ;;  %v1964_v2 = vld [vmem:[%s2193_s15 + $0x1e4] ss:$16 sps:$4 sm:$0xff]   ;;  %v1966_v3 = vld [vmem:[%s2193_s15 + $0x1ec] ss:$16 sps:$4 sm:$0xff]  }
  0x3c   : > { %v1968_v4 = vld [vmem:[%s2193_s15 + $0x1e0] ss:$16 sps:$4 sm:$0xff]   ;;  %v1969_v5 = vld [vmem:[%s2193_s15 + $0x1e8] ss:$16 sps:$4 sm:$0xff]   ;;  %v1975_v6 = vld [vmem:[%s2193_s15 + $0x204] ss:$16 sps:$4 sm:$0xff]  }
  0x3d   : > { %1234 = vmatpush1.bf16.msra.mxu0 %v1908_v27  ;;  %1320 = vmatpush1.bf16.msra.mxu1 %v1909_v28  ;;  %v1978_v7 = vld [vmem:[%s2193_s15 + $0x20c] ss:$16 sps:$4 sm:$0xff]   ;;  %v1970_v8 = vld [vmem:[%s2195_s16] ss:$16 sps:$4 sm:$0xff]   ;;  %v1976_v10 = vld [vmem:[%s2193_s15 + $0x208] ss:$16 sps:$4 sm:$0xff]  }
  0x3e   : > { %1235 = vmatprep.subr.bf16.mxu0 %v1910_v29  ;;  %1321 = vmatprep.subr.bf16.mxu1 %v1912_v30  ;;  %v1973_v9 = vld [vmem:[%s2193_s15 + $0x200] ss:$16 sps:$4 sm:$0xff]   ;;  %v1981_v11 = vld [vmem:[%s2193_s15 + $0x224] ss:$16 sps:$4 sm:$0xff]   ;;  %v1984_v12 = vld [vmem:[%s2193_s15 + $0x22c] ss:$16 sps:$4 sm:$0xff]  }
  0x3f   : > { %v1979_v13 = vld [vmem:[%s2193_s15 + $0x220] ss:$16 sps:$4 sm:$0xff]   ;;  %v1982_v14 = vld [vmem:[%s2193_s15 + $0x228] ss:$16 sps:$4 sm:$0xff]   ;;  %v1987_v15 = vld [vmem:[%s2193_s15 + $0x244] ss:$16 sps:$4 sm:$0xff]  }
  0x40   : > { %v1990_v16 = vld [vmem:[%s2193_s15 + $0x24c] ss:$16 sps:$4 sm:$0xff]   ;;  %v1985_v17 = vld [vmem:[%s2193_s15 + $0x240] ss:$16 sps:$4 sm:$0xff]   ;;  %v1988_v18 = vld [vmem:[%s2193_s15 + $0x248] ss:$16 sps:$4 sm:$0xff]  }
  0x41   : > { %1236 = vmatpush1.bf16.msra.mxu0 %v1914_v31  ;;  %1322 = vmatpush1.bf16.msra.mxu1 %v1915_v32  ;;  %v1993_v19 = vld [vmem:[%s2193_s15 + $0x264] ss:$16 sps:$4 sm:$0xff]   ;;  %v1996_v20 = vld [vmem:[%s2193_s15 + $0x26c] ss:$16 sps:$4 sm:$0xff]   ;;  %v1991_v21 = vld [vmem:[%s2193_s15 + $0x260] ss:$16 sps:$4 sm:$0xff]  }
  0x42   : > { %1237 = vmatprep.subr.bf16.mxu0 %v1916_v33  ;;  %1323 = vmatprep.subr.bf16.mxu1 %v1918_v34  ;;  %v1994_v22 = vld [vmem:[%s2193_s15 + $0x268] ss:$16 sps:$4 sm:$0xff]   ;;  %v1999_v23 = vld [vmem:[%s2193_s15 + $0x284] ss:$16 sps:$4 sm:$0xff]   ;;  %v2002_v24 = vld [vmem:[%s2193_s15 + $0x28c] ss:$16 sps:$4 sm:$0xff]  }
  0x43   : > { %v1997_v25 = vld [vmem:[%s2193_s15 + $0x280] ss:$16 sps:$4 sm:$0xff]   ;;  %v2000_v26 = vld [vmem:[%s2193_s15 + $0x288] ss:$16 sps:$4 sm:$0xff]   ;;  %v2005_v27 = vld [vmem:[%s2193_s15 + $0x2a4] ss:$16 sps:$4 sm:$0xff]  }
  0x44   : > { %v2008_v28 = vld [vmem:[%s2193_s15 + $0x2ac] ss:$16 sps:$4 sm:$0xff]   ;;  %v2003_v29 = vld [vmem:[%s2193_s15 + $0x2a0] ss:$16 sps:$4 sm:$0xff]   ;;  %v2006_v30 = vld [vmem:[%s2193_s15 + $0x2a8] ss:$16 sps:$4 sm:$0xff]  }
  0x45   : > { %1238 = vmatpush1.bf16.msra.mxu0 %v1920_v35  ;;  %1324 = vmatpush1.bf16.msra.mxu1 %v1921_v36  ;;  %v2011_v31 = vld [vmem:[%s2193_s15 + $0x2c4] ss:$16 sps:$4 sm:$0xff]   ;;  %v2014_v32 = vld [vmem:[%s2193_s15 + $0x2cc] ss:$16 sps:$4 sm:$0xff]   ;;  %v2009_v34 = vld [vmem:[%s2193_s15 + $0x2c0] ss:$16 sps:$4 sm:$0xff]  }
  0x46   : > { %1239 = vmatprep.subr.bf16.mxu0 %v1922_v37  ;;  %1325 = vmatprep.subr.bf16.mxu1 %v1924_v38  ;;  %v2071_v33 = vld [vmem:[%s2195_s16 + $0xc] ss:$16 sps:$4 sm:$0xff]   ;;  %v2012_v35 = vld [vmem:[%s2193_s15 + $0x2c8] ss:$16 sps:$4 sm:$0xff]   ;;  %v2017_v36 = vld [vmem:[%s2193_s15 + $0x2e4] ss:$16 sps:$4 sm:$0xff]  }
  0x47   : > { %v2020_v37 = vld [vmem:[%s2193_s15 + $0x2ec] ss:$16 sps:$4 sm:$0xff]   ;;  %v2015_v38 = vld [vmem:[%s2193_s15 + $0x2e0] ss:$16 sps:$4 sm:$0xff]   ;;  %p1818_p11 = scmp.ne.s32.totalorder %s2102_s20, 8 }
  0x48   : > { %v2044_v53 = vld [vmem:[%s2193_s15 + $0x36c] ss:$16 sps:$4 sm:$0xff]  }
  0x49   : > { %1240 = vmatpush1.bf16.msra.mxu0 %v1926_v39  ;;  %1326 = vmatpush1.bf16.msra.mxu1 %v1927_v40  ;;  %v2018_v39 = vld [vmem:[%s2193_s15 + $0x2e8] ss:$16 sps:$4 sm:$0xff]   ;;  %v2023_v40 = vld [vmem:[%s2193_s15 + $0x304] ss:$16 sps:$4 sm:$0xff]  }
  0x4a   : > { %1241 = vmatprep.subr.bf16.mxu0 %v1928_v41  ;;  %1327 = vmatprep.subr.bf16.mxu1 %v1930_v42  ;;  %v2026_v41 = vld [vmem:[%s2193_s15 + $0x30c] ss:$16 sps:$4 sm:$0xff]   ;;  %v2021_v42 = vld [vmem:[%s2193_s15 + $0x300] ss:$16 sps:$4 sm:$0xff]  }
  0x4d   : > { %1242 = vmatpush1.bf16.msra.mxu0 %v1932_v43  ;;  %1328 = vmatpush1.bf16.msra.mxu1 %v1933_v44  ;;  %v2024_v43 = vld [vmem:[%s2193_s15 + $0x308] ss:$16 sps:$4 sm:$0xff]   ;;  %v2029_v44 = vld [vmem:[%s2193_s15 + $0x324] ss:$16 sps:$4 sm:$0xff]  }
  0x4e   : > { %1243 = vmatprep.subr.bf16.mxu0 %v1934_v45  ;;  %1329 = vmatprep.subr.bf16.mxu1 %v1936_v46  ;;  %v2032_v45 = vld [vmem:[%s2193_s15 + $0x32c] ss:$16 sps:$4 sm:$0xff]   ;;  %v2027_v46 = vld [vmem:[%s2193_s15 + $0x320] ss:$16 sps:$4 sm:$0xff]  }
  0x51   : > { %1244 = vmatpush1.bf16.msra.mxu0 %v1938_v47  ;;  %1330 = vmatpush1.bf16.msra.mxu1 %v1939_v48  ;;  %v2030_v47 = vld [vmem:[%s2193_s15 + $0x328] ss:$16 sps:$4 sm:$0xff]   ;;  %v2035_v48 = vld [vmem:[%s2193_s15 + $0x344] ss:$16 sps:$4 sm:$0xff]  }
  0x52   : > { %1245 = vmatprep.subr.bf16.mxu0 %v1940_v49  ;;  %1331 = vmatprep.subr.bf16.mxu1 %v1942_v50  ;;  %v2038_v49 = vld [vmem:[%s2193_s15 + $0x34c] ss:$16 sps:$4 sm:$0xff]   ;;  %v2033_v50 = vld [vmem:[%s2193_s15 + $0x340] ss:$16 sps:$4 sm:$0xff]  }
  0x55   : > { %1246 = vmatpush1.bf16.msra.mxu0 %v1944_v51  ;;  %1332 = vmatpush1.bf16.msra.mxu1 %v1945_v52  ;;  %v2036_v51 = vld [vmem:[%s2193_s15 + $0x348] ss:$16 sps:$4 sm:$0xff]   ;;  %v2041_v52 = vld [vmem:[%s2193_s15 + $0x364] ss:$16 sps:$4 sm:$0xff]  }
  0x56   : > { %1247 = vmatprep.subr.bf16.mxu0 %v1946_v54  ;;  %1333 = vmatprep.subr.bf16.mxu1 %v1948_v55  ;;  %v2039_v54 = vld [vmem:[%s2193_s15 + $0x360] ss:$16 sps:$4 sm:$0xff]   ;;  %v2042_v55 = vld [vmem:[%s2193_s15 + $0x368] ss:$16 sps:$4 sm:$0xff]  }
  0x59   : > { %1248 = vmatpush1.bf16.msra.mxu0 %v1950_v56  ;;  %1334 = vmatpush1.bf16.msra.mxu1 %v1951_v57  ;;  %v2047_v56 = vld [vmem:[%s2193_s15 + $0x384] ss:$16 sps:$4 sm:$0xff]   ;;  %v2050_v57 = vld [vmem:[%s2193_s15 + $0x38c] ss:$16 sps:$4 sm:$0xff]  }
  0x5a   : > { %1249 = vmatprep.subr.bf16.mxu0 %v1952_v58  ;;  %1335 = vmatprep.subr.bf16.mxu1 %v1954_v59  ;;  %v2045_v58 = vld [vmem:[%s2193_s15 + $0x380] ss:$16 sps:$4 sm:$0xff]   ;;  %v2048_v59 = vld [vmem:[%s2193_s15 + $0x388] ss:$16 sps:$4 sm:$0xff]  }
  0x5d   : > { %1250 = vmatpush1.bf16.msra.mxu0 %v1956_v60  ;;  %1336 = vmatpush1.bf16.msra.mxu1 %v1957_v61  ;;  %v2053_v60 = vld [vmem:[%s2193_s15 + $0x3a4] ss:$16 sps:$4 sm:$0xff]   ;;  %v2056_v61 = vld [vmem:[%s2193_s15 + $0x3ac] ss:$16 sps:$4 sm:$0xff]  }
  0x5e   : > { %1251 = vmatprep.subr.bf16.mxu0 %v1958_v62  ;;  %1337 = vmatprep.subr.bf16.mxu1 %v1960_v63  ;;  %v2051_v62 = vld [vmem:[%s2193_s15 + $0x3a0] ss:$16 sps:$4 sm:$0xff]   ;;  %v2054_v63 = vld [vmem:[%s2193_s15 + $0x3a8] ss:$16 sps:$4 sm:$0xff]  }
  0x61   : > { %1252 = vmatpush1.bf16.msra.mxu0 %v1962_v0  ;;  %1338 = vmatpush1.bf16.msra.mxu1 %v1963_v1  ;;  %v2059_v0 = vld [vmem:[%s2193_s15 + $0x3c4] ss:$16 sps:$4 sm:$0xff]   ;;  %v2062_v1 = vld [vmem:[%s2193_s15 + $0x3cc] ss:$16 sps:$4 sm:$0xff]  }
  0x62   : > { %1253 = vmatprep.subr.bf16.mxu0 %v1964_v2  ;;  %1339 = vmatprep.subr.bf16.mxu1 %v1966_v3  ;;  %v2057_v2 = vld [vmem:[%s2193_s15 + $0x3c0] ss:$16 sps:$4 sm:$0xff]   ;;  %v2060_v3 = vld [vmem:[%s2193_s15 + $0x3c8] ss:$16 sps:$4 sm:$0xff]  }
  0x65   : > { %1254 = vmatpush1.bf16.msra.mxu0 %v1968_v4  ;;  %1340 = vmatpush1.bf16.msra.mxu1 %v1969_v5  ;;  %v2065_v4 = vld [vmem:[%s2193_s15 + $0x3e4] ss:$16 sps:$4 sm:$0xff]   ;;  %v2068_v5 = vld [vmem:[%s2193_s15 + $0x3ec] ss:$16 sps:$4 sm:$0xff]  }
  0x66   : > { %1266 = vmatprep.subr.bf16.mxu0 %v1975_v6  ;;  %1352 = vmatprep.subr.bf16.mxu1 %v1978_v7  ;;  %v2063_v6 = vld [vmem:[%s2193_s15 + $0x3e0] ss:$16 sps:$4 sm:$0xff]   ;;  %v2066_v7 = vld [vmem:[%s2193_s15 + $0x3e8] ss:$16 sps:$4 sm:$0xff]  }
  0x68   : > { %1256 = vmatmul.mubr.bf16.vlgmr.msra.gmra.mrb[0].mxu0 %v1970_v8  ;;  %1342 = vmatmul.mubr.bf16.vlgmr.msra.gmra.mrb[0].mxu1 %v1970_v8  ;;  %v2069_v8 = vld [vmem:[%s2195_s16 + $0x8] ss:$16 sps:$4 sm:$0xff]  }
  0x69   : > { %1267 = vmatpush1.bf16.msra.mxu0 %v1973_v9  ;;  %1353 = vmatpush1.bf16.msra.mxu1 %v1976_v10  ;;  %v423_v9 = vld [vmem:[%s2501_s5] sm:$0xff]  ;;  %v425_v10 = vld [vmem:[%s2501_s5 + $0x10] sm:$0xff] }
  0x6a   : > { %1268 = vmatprep.subr.bf16.mxu0 %v1981_v11  ;;  %1354 = vmatprep.subr.bf16.mxu1 %v1984_v12  ;;  %v424_v11 = vld [vmem:[%s2501_s5 + $0x8] sm:$0xff]  ;;  %v426_v12 = vld [vmem:[%s2501_s5 + $0x18] sm:$0xff] }
  0x6b   : > { %1298 = vmatprep.mubr.bf16.mxu0 %v2071_v33  ;;  %1384 = vmatprep.mubr.bf16.mxu1 %v2071_v33  ;;  %v1425_v33 = vlaneseq (!%p1818_p11) }
  0x6d   : > { %1269 = vmatpush1.bf16.msra.mxu0 %v1979_v13  ;;  %1355 = vmatpush1.bf16.msra.mxu1 %v1982_v14 }
  0x6e   : > { %1270 = vmatprep.subr.bf16.mxu0 %v1987_v15  ;;  %1356 = vmatprep.subr.bf16.mxu1 %v1990_v16  ;;  %v427_v15 = vld [vmem:[%s2501_s5 + $0x20] sm:$0xff]  ;;  %v429_v16 = vld [vmem:[%s2501_s5 + $0x30] sm:$0xff] }
  0x71   : > { %1271 = vmatpush1.bf16.msra.mxu0 %v1985_v17  ;;  %1357 = vmatpush1.bf16.msra.mxu1 %v1988_v18 }
  0x72   : > { %1272 = vmatprep.subr.bf16.mxu0 %v1993_v19  ;;  %1358 = vmatprep.subr.bf16.mxu1 %v1996_v20 }
  0x75   : > { %1273 = vmatpush1.bf16.msra.mxu0 %v1991_v21  ;;  %1359 = vmatpush1.bf16.msra.mxu1 %v1994_v22  ;;  %v428_v21 = vld [vmem:[%s2501_s5 + $0x28] sm:$0xff]  ;;  %v430_v22 = vld [vmem:[%s2501_s5 + $0x38] sm:$0xff] }
  0x76   : > { %1274 = vmatprep.subr.bf16.mxu0 %v1999_v23  ;;  %1360 = vmatprep.subr.bf16.mxu1 %v2002_v24 }
  0x79   : > { %1275 = vmatpush1.bf16.msra.mxu0 %v1997_v25  ;;  %1361 = vmatpush1.bf16.msra.mxu1 %v2000_v26 }
  0x7a   : > { %1276 = vmatprep.subr.bf16.mxu0 %v2005_v27  ;;  %1362 = vmatprep.subr.bf16.mxu1 %v2008_v28 }
  0x7d   : > { %1277 = vmatpush1.bf16.msra.mxu0 %v2003_v29  ;;  %1363 = vmatpush1.bf16.msra.mxu1 %v2006_v30 }
  0x7e   : > { %1278 = vmatprep.subr.bf16.mxu0 %v2011_v31  ;;  %1364 = vmatprep.subr.bf16.mxu1 %v2014_v32 }
  0x81   : > { %1279 = vmatpush1.bf16.msra.mxu0 %v2009_v34  ;;  %1365 = vmatpush1.bf16.msra.mxu1 %v2012_v35  ;;  %v1426_v34 = vshrl.u32 (!%p1818_p11), %v1425_v33, 7  ;;  %v1423_v35 = vld [vmem:[%s2498_s2] sm:$0xf] (!%p1818_p11) }
  0x82   : > { %1280 = vmatprep.subr.bf16.mxu0 %v2017_v36  ;;  %1366 = vmatprep.subr.bf16.mxu1 %v2020_v37  ;;  %v1453_v36 = vld [vmem:[%s2499_s3] sm:$0xf] (!%p1818_p11) }
  0x85   : > { %1281 = vmatpush1.bf16.msra.mxu0 %v2015_v38  ;;  %1367 = vmatpush1.bf16.msra.mxu1 %v2018_v39  ;;  %v1427_v38 = vsub.s32 (!%p1818_p11), 0, %v1426_v34 }
  0x86   : > { %1282 = vmatprep.subr.bf16.mxu0 %v2023_v40  ;;  %1368 = vmatprep.subr.bf16.mxu1 %v2026_v41  ;;  %v1431_v40 = vsub.s32 (!%p1818_p11), 1, %v1426_v34  ;;  %v1435_v41 = vsub.s32 (!%p1818_p11), 2, %v1426_v34 }
  0x89   : > { %1283 = vmatpush1.bf16.msra.mxu0 %v2021_v42  ;;  %1369 = vmatpush1.bf16.msra.mxu1 %v2024_v43  ;;  %v1439_v42 = vsub.s32 (!%p1818_p11), 3, %v1426_v34 }
  0x8a   : > { %1284 = vmatprep.subr.bf16.mxu0 %v2029_v44  ;;  %1370 = vmatprep.subr.bf16.mxu1 %v2032_v45 }
  0x8d   : > { %1285 = vmatpush1.bf16.msra.mxu0 %v2027_v46  ;;  %1371 = vmatpush1.bf16.msra.mxu1 %v2030_v47  ;;  %v1428_v46 = vrot.slane (!%p1818_p11), %v1423_v35, %v1427_v38  ;;  %v1458_v47 = vrot.slane (!%p1818_p11), %v1453_v36, %v1427_v38 }
  0x8e   : > { %1286 = vmatprep.subr.bf16.mxu0 %v2035_v48  ;;  %1372 = vmatprep.subr.bf16.mxu1 %v2038_v49  ;;  %v1432_v48 = vrot.slane (!%p1818_p11), %v1423_v35, %v1431_v40  ;;  %v1462_v49 = vrot.slane (!%p1818_p11), %v1453_v36, %v1431_v40 }
  0x91   : > { %1287 = vmatpush1.bf16.msra.mxu0 %v2033_v50  ;;  %1373 = vmatpush1.bf16.msra.mxu1 %v2036_v51 }
  0x92   : > { %1288 = vmatprep.subr.bf16.mxu0 %v2041_v52  ;;  %1374 = vmatprep.subr.bf16.mxu1 %v2044_v53  ;;  %v1436_v53 = vrot.slane (!%p1818_p11), %v1423_v35, %v1435_v41 }
  0x95   : > { %1289 = vmatpush1.bf16.msra.mxu0 %v2039_v54  ;;  %1375 = vmatpush1.bf16.msra.mxu1 %v2042_v55  ;;  %v1466_v54 = vrot.slane (!%p1818_p11), %v1453_v36, %v1435_v41  ;;  %v1440_v55 = vrot.slane (!%p1818_p11), %v1423_v35, %v1439_v42 }
  0x96   : > { %1290 = vmatprep.subr.bf16.mxu0 %v2047_v56  ;;  %1376 = vmatprep.subr.bf16.mxu1 %v2050_v57  ;;  %v1470_v56 = vrot.slane (!%p1818_p11), %v1453_v36, %v1439_v42 }
  0x99   : > { %1291 = vmatpush1.bf16.msra.mxu0 %v2045_v58  ;;  %1377 = vmatpush1.bf16.msra.mxu1 %v2048_v59  ;;  %v1483_v58 = vld [vmem:[%s2500_s4] sm:$0xff] (!%p1818_p11) }
  0x9a   : > { %1292 = vmatprep.subr.bf16.mxu0 %v2053_v60  ;;  %1378 = vmatprep.subr.bf16.mxu1 %v2056_v61  ;;  %v1484_v60 = vld [vmem:[%s2500_s4 + $0x8] sm:$0xff] (!%p1818_p11) }
  0x9d   : > { %1293 = vmatpush1.bf16.msra.mxu0 %v2051_v62  ;;  %1379 = vmatpush1.bf16.msra.mxu1 %v2054_v63 }
  0x9e   : > { %1294 = vmatprep.subr.bf16.mxu0 %v2059_v0  ;;  %1380 = vmatprep.subr.bf16.mxu1 %v2062_v1  ;;  %v1485_v0 = vld [vmem:[%s2500_s4 + $0x10] sm:$0xff] (!%p1818_p11) }
  0xa1   : > { %1295 = vmatpush1.bf16.msra.mxu0 %v2057_v2  ;;  %1381 = vmatpush1.bf16.msra.mxu1 %v2060_v3  ;;  %v1487_v2 = vld [vmem:[%s2500_s4 + $0x20] sm:$0xff] (!%p1818_p11)  ;;  %v1488_v3 = vld [vmem:[%s2500_s4 + $0x28] sm:$0xff] (!%p1818_p11) }
  0xa2   : > { %1296 = vmatprep.subr.bf16.mxu0 %v2065_v4  ;;  %1382 = vmatprep.subr.bf16.mxu1 %v2068_v5 }
  0xa5   : > { %1297 = vmatpush1.bf16.msra.mxu0 %v2063_v6  ;;  %1383 = vmatpush1.bf16.msra.mxu1 %v2066_v7 }
  0xa8   : > { %1299 = vmatmul.mubr.bf16.vlgmr.msra.gmra.mrb[0].mxu0 %v2069_v8  ;;  %1385 = vmatmul.mubr.bf16.vlgmr.msra.gmra.mrb[0].mxu1 %v2069_v8  ;;  %v1486_v8 = vld [vmem:[%s2500_s4 + $0x18] sm:$0xff] (!%p1818_p11) }
 0x17b   : > { %v1300_v13 = vpop.f32.mrb[0].mxu0  ;;  %v1386_v14 = vpop.f32.mrb[0].mxu1  ;;  %1414 = sbr.rel (%p1818_p11) target bundleno = 402 (0x192), region = 71 }
 0x17c   : > { %v1395_v17 = vadd.f32 %v1300_v13, %v423_v9  ;;  %v1397_v18 = vadd.f32 %v1386_v14, %v425_v10  ;;  %v1302_v19 = vpop.f32.mrb[1].mxu0  ;;  %v1388_v20 = vpop.f32.mrb[1].mxu1 }
 0x17d   : > { %v1396_v23 = vadd.f32 %v1302_v19, %v424_v11  ;;  %v1398_v24 = vadd.f32 %v1388_v20, %v426_v12  ;;  %v1304_v25 = vpop.f32.mrb[2].mxu0  ;;  %v1390_v26 = vpop.f32.mrb[2].mxu1  ;;  %v1489_v11 = vld [vmem:[%s2500_s4 + $0x30] sm:$0xff] (!%p1818_p11)  ;;  %v1490_v12 = vld [vmem:[%s2500_s4 + $0x38] sm:$0xff] (!%p1818_p11) }
 0x17e   : > { %1403 = vst [vmem:[%s2501_s5] sm:$0xff] %v1395_v17  ;;  %1405 = vst [vmem:[%s2501_s5 + $0x10] sm:$0xff] %v1397_v18  ;;  %v1399_v27 = vadd.f32 %v1304_v25, %v427_v15  ;;  %v1401_v28 = vadd.f32 %v1390_v26, %v429_v16  ;;  %v1306_v29 = vpop.f32.mrb[3].mxu0  ;;  %v1392_v30 = vpop.f32.mrb[3].mxu1 }
 0x17f   : > { %1404 = vst [vmem:[%s2501_s5 + $0x8] sm:$0xff] %v1396_v23  ;;  %1406 = vst [vmem:[%s2501_s5 + $0x18] sm:$0xff] %v1398_v24  ;;  %v1400_v31 = vadd.f32 %v1306_v29, %v428_v21  ;;  %v1402_v32 = vadd.f32 %v1392_v30, %v430_v22 }
 0x180   : > { %1407 = vst [vmem:[%s2501_s5 + $0x20] sm:$0xff] %v1399_v27  ;;  %1409 = vst [vmem:[%s2501_s5 + $0x30] sm:$0xff] %v1401_v28 }
 0x181   : > { %1408 = vst [vmem:[%s2501_s5 + $0x28] sm:$0xff] %v1400_v31  ;;  %1410 = vst [vmem:[%s2501_s5 + $0x38] sm:$0xff] %v1402_v32 }
 0x185   : > { %v1415_v37 = vld [vmem:[%s2501_s5] sm:$0xff]  ;;  %v1417_v43 = vld [vmem:[%s2501_s5 + $0x10] sm:$0xff] }
 0x186   : > { %v1416_v39 = vld [vmem:[%s2501_s5 + $0x8] sm:$0xff]  ;;  %v1418_v50 = vld [vmem:[%s2501_s5 + $0x18] sm:$0xff]  ;;  %v1445_v57 = vmul.f32 %v1428_v46, %v1415_v37  ;;  %v1447_v63 = vmul.f32 %v1436_v53, %v1417_v43 }
 0x187   : > { %v1419_v44 = vld [vmem:[%s2501_s5 + $0x20] sm:$0xff]  ;;  %v1421_v51 = vld [vmem:[%s2501_s5 + $0x30] sm:$0xff]  ;;  %v1446_v59 = vmul.f32 %v1432_v48, %v1416_v39  ;;  %v1448_v1 = vmul.f32 %v1440_v55, %v1418_v50 }
 0x188   : > { %v1420_v45 = vld [vmem:[%s2501_s5 + $0x28] sm:$0xff]  ;;  %v1422_v52 = vld [vmem:[%s2501_s5 + $0x38] sm:$0xff]  ;;  %v1449_v61 = vmul.f32 %v1428_v46, %v1419_v44  ;;  %v1451_v4 = vmul.f32 %v1436_v53, %v1421_v51  ;;  %v1475_v6 = vadd.f32 %v1458_v47, %v1445_v57  ;;  %v1477_v13 = vadd.f32 %v1466_v54, %v1447_v63 }
 0x189   : > { %v1450_v62 = vmul.f32 %v1432_v48, %v1420_v45  ;;  %v1452_v5 = vmul.f32 %v1440_v55, %v1422_v52  ;;  %v1476_v7 = vadd.f32 %v1462_v49, %v1446_v59  ;;  %v1478_v14 = vadd.f32 %v1470_v56, %v1448_v1 }
 0x18a   : > { %v1479_v9 = vadd.f32 %v1458_v47, %v1449_v61  ;;  %v1481_v15 = vadd.f32 %v1466_v54, %v1451_v4  ;;  %v1491_v17 = vadd.f32 %v1483_v58, %v1475_v6  ;;  %v1493_v21 = vadd.f32 %v1485_v0, %v1477_v13 }
 0x18b   : > { %v1480_v10 = vadd.f32 %v1462_v49, %v1450_v62  ;;  %v1482_v16 = vadd.f32 %v1470_v56, %v1452_v5  ;;  %v1492_v18 = vadd.f32 %v1484_v60, %v1476_v7  ;;  %v1494_v22 = vadd.f32 %v1486_v8, %v1478_v14 }
 0x18c   : > { %v1495_v19 = vadd.f32 %v1487_v2, %v1479_v9  ;;  %v1497_v23 = vadd.f32 %v1489_v11, %v1481_v15  ;;  %v1499_v25 = vmax.f32 %v1491_v17, 0.0  ;;  %v1501_v29 = vmax.f32 %v1493_v21, 0.0 }
 0x18d   : > { %v1496_v20 = vadd.f32 %v1488_v3, %v1480_v10  ;;  %v1498_v24 = vadd.f32 %v1490_v12, %v1482_v16  ;;  %v1500_v26 = vmax.f32 %v1492_v18, 0.0  ;;  %v1502_v30 = vmax.f32 %v1494_v22, 0.0 }
 0x18e   : > { %v1503_v27 = vmax.f32 %v1495_v19, 0.0  ;;  %v1505_v31 = vmax.f32 %v1497_v23, 0.0  ;;  %1507 = vst [vmem:[%s2501_s5] sm:$0xff] %v1499_v25  ;;  %1509 = vst [vmem:[%s2501_s5 + $0x10] sm:$0xff] %v1501_v29 }
 0x18f   : > { %v1504_v28 = vmax.f32 %v1496_v20, 0.0  ;;  %v1506_v32 = vmax.f32 %v1498_v24, 0.0  ;;  %1508 = vst [vmem:[%s2501_s5 + $0x8] sm:$0xff] %v1500_v26  ;;  %1510 = vst [vmem:[%s2501_s5 + $0x18] sm:$0xff] %v1502_v30 }
 0x190   : > { %1511 = vst [vmem:[%s2501_s5 + $0x20] sm:$0xff] %v1503_v27  ;;  %1513 = vst [vmem:[%s2501_s5 + $0x30] sm:$0xff] %v1505_v31 }
 0x191   : > { %1512 = vst [vmem:[%s2501_s5 + $0x28] sm:$0xff] %v1504_v28  ;;  %1514 = vst [vmem:[%s2501_s5 + $0x38] sm:$0xff] %v1506_v32 }
 0x192 PF: > { %s15_s22 = sadd.s32 1, %s2110_s22   ;;  %s2502_s18 = smov %s2098_s19 }
 0x193   : > { %p12_p12 = scmp.ge.s32.totalorder %s15_s22, 11   ;;  %s2503_s19 = smov %s2178_s26 }
 0x194   : > { %s2504_s20 = smov %s2106_s21  ;;  %s2505_s21 = smov %s2507_s23 }
 0x195   :  { %14 = sbr.rel (!%p12_p12) target bundleno = 3 (0x3), region = 118 }

// kernel: drnseg_forward.53
= control target key start
LH: loop header
LB: loop body
LE: loop exit
PB: predicated region body
PF: predicated region fallthrough
CT: control target
= control target key end

     0   :  { %s687_s1 = inlined_call_operand.vmem [shape: bf16[512,128], index: 1, kind: input, shape index: {}]   ;;  %s688_s0 = inlined_call_operand.vmem [shape: bf16[16,512], index: 0, kind: input, shape index: {}]   ;;  %s689_s2 = inlined_call_operand.vmem [shape: f32[1,128], index: 2, kind: input, shape index: {}]   ;;  %s690_s3 = inlined_call_operand.vmem [shape: f32[1,128], index: 3, kind: input, shape index: {}]   ;;  %s691_s4 = inlined_call_operand.vmem [shape: f32[16,128], index: 4, kind: output, shape index: {}]  }
   0x1   :  { %v504_v0 = vld [vmem:[%s687_s1 + $0x40] sm:$0xff]   ;;  %v508_v4 = vld [vmem:[%s687_s1 + $0x48] sm:$0xff]   ;;  %v512_v8 = vld [vmem:[%s687_s1 + $0x50] sm:$0xff]  }
   0x2   :  { %v505_v1 = vld [vmem:[%s687_s1 + $0xc0] sm:$0xff]   ;;  %459 = vmatprep.subr.bf16.mxu0 %v504_v0  ;;  %v509_v5 = vld [vmem:[%s687_s1 + $0xc8] sm:$0xff]   ;;  %v513_v9 = vld [vmem:[%s687_s1 + $0xd0] sm:$0xff]  }
   0x3   :  { %v506_v2 = vld [vmem:[%s687_s1] sm:$0xff]   ;;  %481 = vmatprep.subr.bf16.mxu1 %v505_v1  ;;  %v510_v6 = vld [vmem:[%s687_s1 + $0x8] sm:$0xff]   ;;  %v514_v10 = vld [vmem:[%s687_s1 + $0x10] sm:$0xff]  }
   0x4   :  { %v507_v3 = vld [vmem:[%s687_s1 + $0x80] sm:$0xff]   ;;  %460 = vmatpush3.bf16.msra.mxu0 %v506_v2  ;;  %v511_v7 = vld [vmem:[%s687_s1 + $0x88] sm:$0xff]   ;;  %v515_v11 = vld [vmem:[%s687_s1 + $0x90] sm:$0xff]  }
   0x5   :  { %482 = vmatpush3.bf16.msra.mxu1 %v507_v3  ;;  %461 = vmatprep.subr.bf16.mxu0 %v508_v4  ;;  %v516_v12 = vld [vmem:[%s687_s1 + $0x58] sm:$0xff]   ;;  %v520_v16 = vld [vmem:[%s687_s1 + $0x60] sm:$0xff]   ;;  %v524_v20 = vld [vmem:[%s687_s1 + $0x68] sm:$0xff]  }
   0x6   :  { %483 = vmatprep.subr.bf16.mxu1 %v509_v5  ;;  %v517_v13 = vld [vmem:[%s687_s1 + $0xd8] sm:$0xff]   ;;  %v521_v17 = vld [vmem:[%s687_s1 + $0xe0] sm:$0xff]   ;;  %v525_v21 = vld [vmem:[%s687_s1 + $0xe8] sm:$0xff]  }
   0x7   :  { %v518_v14 = vld [vmem:[%s687_s1 + $0x18] sm:$0xff]   ;;  %v522_v18 = vld [vmem:[%s687_s1 + $0x20] sm:$0xff]   ;;  %v526_v22 = vld [vmem:[%s687_s1 + $0x28] sm:$0xff]  }
   0x8   :  { %462 = vmatpush3.bf16.msra.mxu0 %v510_v6  ;;  %v519_v15 = vld [vmem:[%s687_s1 + $0x98] sm:$0xff]   ;;  %v523_v19 = vld [vmem:[%s687_s1 + $0xa0] sm:$0xff]   ;;  %v527_v23 = vld [vmem:[%s687_s1 + $0xa8] sm:$0xff]  }
   0x9   :  { %484 = vmatpush3.bf16.msra.mxu1 %v511_v7  ;;  %463 = vmatprep.subr.bf16.mxu0 %v512_v8  ;;  %v528_v24 = vld [vmem:[%s687_s1 + $0x70] sm:$0xff]   ;;  %v532_v28 = vld [vmem:[%s687_s1 + $0x78] sm:$0xff]   ;;  %v457_v49 = vld [vmem:[%s689_s2] ss:$0 sm:$0xff] }
   0xa   :  { %485 = vmatprep.subr.bf16.mxu1 %v513_v9  ;;  %v529_v25 = vld [vmem:[%s687_s1 + $0xf0] sm:$0xff]   ;;  %v533_v29 = vld [vmem:[%s687_s1 + $0xf8] sm:$0xff]   ;;  %v458_v51 = vld [vmem:[%s690_s3] ss:$0 sm:$0xff] }
   0xb   :  { %v530_v26 = vld [vmem:[%s687_s1 + $0x30] sm:$0xff]   ;;  %v534_v30 = vld [vmem:[%s687_s1 + $0x38] sm:$0xff]  }
   0xc   :  { %464 = vmatpush3.bf16.msra.mxu0 %v514_v10  ;;  %v531_v27 = vld [vmem:[%s687_s1 + $0xb0] sm:$0xff]   ;;  %v535_v31 = vld [vmem:[%s687_s1 + $0xb8] sm:$0xff]  }
   0xd   :  { %486 = vmatpush3.bf16.msra.mxu1 %v515_v11  ;;  %465 = vmatprep.subr.bf16.mxu0 %v516_v12  ;;  %v536_v32 = vld [vmem:[%s688_s0] ss:$16 sps:$4 sm:$0xff]   ;;  %v538_v33 = vld [vmem:[%s688_s0 + $0x4] ss:$16 sps:$4 sm:$0xff]   ;;  %v539_v34 = vld [vmem:[%s688_s0 + $0x8] ss:$16 sps:$4 sm:$0xff]  }
   0xe   :  { %487 = vmatprep.subr.bf16.mxu1 %v517_v13  ;;  %v541_v35 = vld [vmem:[%s688_s0 + $0xc] ss:$16 sps:$4 sm:$0xff]   ;;  %338 = vmatprep.mubr.bf16.mxu0 %v538_v33 }
   0xf   :  { %379 = vmatprep.mubr.bf16.mxu1 %v541_v35 }
  0x10   :  { %466 = vmatpush3.bf16.msra.mxu0 %v518_v14 }
  0x11   :  { %488 = vmatpush3.bf16.msra.mxu1 %v519_v15  ;;  %467 = vmatprep.subr.bf16.mxu0 %v520_v16 }
  0x12   :  { %489 = vmatprep.subr.bf16.mxu1 %v521_v17 }
  0x14   :  { %468 = vmatpush3.bf16.msra.mxu0 %v522_v18 }
  0x15   :  { %490 = vmatpush3.bf16.msra.mxu1 %v523_v19  ;;  %469 = vmatprep.subr.bf16.mxu0 %v524_v20 }
  0x16   :  { %491 = vmatprep.subr.bf16.mxu1 %v525_v21 }
  0x18   :  { %470 = vmatpush3.bf16.msra.mxu0 %v526_v22 }
  0x19   :  { %492 = vmatpush3.bf16.msra.mxu1 %v527_v23  ;;  %471 = vmatprep.subr.bf16.mxu0 %v528_v24 }
  0x1a   :  { %493 = vmatprep.subr.bf16.mxu1 %v529_v25 }
  0x1c   :  { %472 = vmatpush3.bf16.msra.mxu0 %v530_v26 }
  0x1d   :  { %494 = vmatpush3.bf16.msra.mxu1 %v531_v27  ;;  %473 = vmatprep.subr.bf16.mxu0 %v532_v28 }
  0x1e   :  { %495 = vmatprep.subr.bf16.mxu1 %v533_v29 }
  0x20   :  { %474 = vmatpush3.bf16.msra.mxu0 %v534_v30 }
  0x21   :  { %496 = vmatpush3.bf16.msra.mxu1 %v535_v31 }
  0x23   :  { %339 = vmatmul.mubr.bf16.vlgmr.msra.gmra.mrb[0].mxu0 %v536_v32 }
  0x24   :  { %380 = vmatmul.mubr.bf16.vlgmr.msra.gmra.mrb[0].mxu1 %v539_v34 }
  0xf6   :  { %v475_v36 = vpop.f32.mrb[0].mxu0 }
  0xf7   :  { %v497_v37 = vpop.f32.mrb[0].mxu1  ;;  %v476_v38 = vpop.f32.mrb[1].mxu0 }
  0xf8   :  { %v477_v39 = vadd.f32 %v476_v38, %v475_v36  ;;  %v498_v40 = vpop.f32.mrb[1].mxu1  ;;  %v478_v41 = vpop.f32.mrb[2].mxu0 }
  0xf9   :  { %v499_v42 = vadd.f32 %v498_v40, %v497_v37  ;;  %v500_v43 = vpop.f32.mrb[2].mxu1  ;;  %v479_v44 = vpop.f32.mrb[3].mxu0 }
  0xfa   :  { %v480_v45 = vadd.f32 %v479_v44, %v478_v41  ;;  %v501_v46 = vpop.f32.mrb[3].mxu1 }
  0xfb   :  { %v382_v47 = vadd.f32 %v499_v42, %v477_v39  ;;  %v502_v48 = vadd.f32 %v501_v46, %v500_v43 }
  0xfd   :  { %v385_v50 = vadd.f32 %v502_v48, %v480_v45  ;;  %v404_v52 = vmul.f32 %v457_v49, %v382_v47 }
  0xff   :  { %v413_v53 = vadd.f32 %v458_v51, %v404_v52  ;;  %v405_v54 = vmul.f32 %v457_v49, %v385_v50 }
 0x101   :  { %415 = vst [vmem:[%s691_s4] sm:$0xff] %v413_v53  ;;  %v414_v55 = vadd.f32 %v458_v51, %v405_v54 }
 0x103   :  { %416 = vst [vmem:[%s691_s4 + $0x8] sm:$0xff] %v414_v55 }

// kernel: drnseg_forward.54
= control target key start
LH: loop header
LB: loop body
LE: loop exit
PB: predicated region body
PF: predicated region fallthrough
CT: control target
= control target key end

     0   :  { %s330_s1 = inlined_call_operand.vmem [shape: f32[128,128], index: 1, kind: input, shape index: {}]   ;;  %s331_s0 = inlined_call_operand.vmem [shape: f32[16,128], index: 0, kind: input, shape index: {}]   ;;  %s332_s2 = inlined_call_operand.vmem [shape: f32[1,128], index: 2, kind: input, shape index: {}]   ;;  %s333_s3 = inlined_call_operand.vmem [shape: f32[1,128], index: 3, kind: input, shape index: {}]   ;;  %s334_s4 = inlined_call_operand.vmem [shape: f32[16,128], index: 4, kind: output, shape index: {}]  }
   0x1   :  { %v27_v0 = vld [vmem:[%s330_s1] sm:$0xff]  ;;  %v28_v1 = vld [vmem:[%s330_s1 + $0x8] sm:$0xff]  ;;  %v29_v2 = vld [vmem:[%s330_s1 + $0x10] sm:$0xff] }
   0x2   :  { %v206_v3 = vpack.c.bf16 %v28_v1, %v27_v0  ;;  %v30_v4 = vld [vmem:[%s330_s1 + $0x18] sm:$0xff]  ;;  %v31_v6 = vld [vmem:[%s330_s1 + $0x20] sm:$0xff]  ;;  %v32_v7 = vld [vmem:[%s330_s1 + $0x28] sm:$0xff] }
   0x3   :  { %v210_v5 = vpack.c.bf16 %v30_v4, %v29_v2  ;;  %v214_v8 = vpack.c.bf16 %v32_v7, %v31_v6  ;;  %v25_v9 = vld [vmem:[%s331_s0] sm:$0xff]  ;;  %v33_v10 = vld [vmem:[%s330_s1 + $0x30] sm:$0xff]  ;;  %v34_v11 = vld [vmem:[%s330_s1 + $0x38] sm:$0xff] }
   0x4   :  { %207 = vmatprep.subr.bf16.mxu0 %v206_v3  ;;  %203 = vmatprep.mubr.f32.mxu0 %v25_v9  ;;  %v218_v12 = vpack.c.bf16 %v34_v11, %v33_v10  ;;  %v35_v13 = vld [vmem:[%s330_s1 + $0x40] sm:$0xff]  ;;  %v36_v14 = vld [vmem:[%s330_s1 + $0x48] sm:$0xff]  ;;  %v37_v16 = vld [vmem:[%s330_s1 + $0x50] sm:$0xff] }
   0x5   :  { %209 = vmatpush3.bf16.msra.mxu0 %v206_v3  ;;  %v222_v15 = vpack.c.bf16 %v36_v14, %v35_v13  ;;  %v38_v17 = vld [vmem:[%s330_s1 + $0x58] sm:$0xff]  ;;  %v39_v19 = vld [vmem:[%s330_s1 + $0x60] sm:$0xff]  ;;  %v40_v20 = vld [vmem:[%s330_s1 + $0x68] sm:$0xff] }
   0x6   :  { %211 = vmatprep.subr.bf16.mxu0 %v210_v5  ;;  %v226_v18 = vpack.c.bf16 %v38_v17, %v37_v16  ;;  %v230_v21 = vpack.c.bf16 %v40_v20, %v39_v19  ;;  %v41_v22 = vld [vmem:[%s330_s1 + $0x70] sm:$0xff]  ;;  %v42_v23 = vld [vmem:[%s330_s1 + $0x78] sm:$0xff]  ;;  %v26_v25 = vld [vmem:[%s331_s0 + $0x8] sm:$0xff] }
   0x7   :  { %v234_v24 = vpack.c.bf16 %v42_v23, %v41_v22  ;;  %v151_v27 = vld [vmem:[%s332_s2] ss:$0 sm:$0xff] }
   0x8   :  { %v152_v29 = vld [vmem:[%s333_s3] ss:$0 sm:$0xff] }
   0x9   :  { %213 = vmatpush3.bf16.msra.mxu0 %v210_v5 }
   0xa   :  { %215 = vmatprep.subr.bf16.mxu0 %v214_v8 }
   0xd   :  { %217 = vmatpush3.bf16.msra.mxu0 %v214_v8 }
   0xe   :  { %219 = vmatprep.subr.bf16.mxu0 %v218_v12 }
  0x11   :  { %221 = vmatpush3.bf16.msra.mxu0 %v218_v12 }
  0x12   :  { %223 = vmatprep.subr.bf16.mxu0 %v222_v15 }
  0x15   :  { %225 = vmatpush3.bf16.msra.mxu0 %v222_v15 }
  0x16   :  { %227 = vmatprep.subr.bf16.mxu0 %v226_v18 }
  0x19   :  { %229 = vmatpush3.bf16.msra.mxu0 %v226_v18 }
  0x1a   :  { %231 = vmatprep.subr.bf16.mxu0 %v230_v21 }
  0x1d   :  { %233 = vmatpush3.bf16.msra.mxu0 %v230_v21 }
  0x1e   :  { %235 = vmatprep.subr.bf16.mxu0 %v234_v24 }
  0x21   :  { %237 = vmatpush3.bf16.msra.mxu0 %v234_v24 }
  0x24   :  { %204 = vmatmul.mubr.f32.vlgmr.msra.gmra.mrb[0].mxu0 %v26_v25 }
  0xf7   :  { %v205_v26 = vpop.f32.mrb[0].mxu0 }
  0xf8   :  { %v109_v28 = vpop.f32.mrb[1].mxu0  ;;  %v135_v30 = vmul.f32 %v205_v26, %v151_v27 }
  0xf9   :  { %v134_v31 = vmul.f32 %v151_v27, %v109_v28 }
  0xfa   :  { %v144_v32 = vadd.f32 %v152_v29, %v135_v30 }
  0xfb   :  { %v143_v33 = vadd.f32 %v152_v29, %v134_v31 }
  0xfc   :  { %146 = vst [vmem:[%s334_s4 + $0x8] sm:$0xff] %v144_v32 }
  0xfd   :  { %145 = vst [vmem:[%s334_s4] sm:$0xff] %v143_v33 }

// kernel: drnseg_forward.55
= control target key start
LH: loop header
LB: loop body
LE: loop exit
PB: predicated region body
PF: predicated region fallthrough
CT: control target
= control target key end

     0   :  { %s1048_s0 = inlined_call_operand.vmem [shape: f32[256,128], index: 0, kind: input, shape index: {}]   ;;  %s1049_s1 = inlined_call_operand.vmem [shape: f32[128,128], index: 1, kind: input, shape index: {}]   ;;  %s1050_s2 = inlined_call_operand.vmem [shape: f32[1,128], index: 2, kind: input, shape index: {}]   ;;  %s1051_s3 = inlined_call_operand.vmem [shape: f32[1,128], index: 3, kind: input, shape index: {}]   ;;  %s1052_s4 = inlined_call_operand.hbm [shape: f32[256,128], index: 4, kind: output, shape index: {}]  }
   0x1   :  { %v118_v0 = vld [vmem:[%s1049_s1] sm:$0xff]  ;;  %v119_v1 = vld [vmem:[%s1049_s1 + $0x8] sm:$0xff]  ;;  %v120_v2 = vld [vmem:[%s1049_s1 + $0x10] sm:$0xff] }
   0x2   :  { %v714_v3 = vpack.c.bf16 %v119_v1, %v118_v0  ;;  %v121_v4 = vld [vmem:[%s1049_s1 + $0x18] sm:$0xff]  ;;  %v122_v6 = vld [vmem:[%s1049_s1 + $0x20] sm:$0xff]  ;;  %v123_v7 = vld [vmem:[%s1049_s1 + $0x28] sm:$0xff] }
   0x3   :  { %v718_v5 = vpack.c.bf16 %v121_v4, %v120_v2  ;;  %v722_v8 = vpack.c.bf16 %v123_v7, %v122_v6  ;;  %v86_v9 = vld [vmem:[%s1048_s0] sm:$0xff]  ;;  %v124_v11 = vld [vmem:[%s1049_s1 + $0x30] sm:$0xff]  ;;  %v125_v12 = vld [vmem:[%s1049_s1 + $0x38] sm:$0xff] }
   0x4   :  { %715 = vmatprep.subr.bf16.mxu0 %v714_v3  ;;  %746 = vmatprep.subr.bf16.mxu1 %v714_v3  ;;  %v102_v10 = vld [vmem:[%s1048_s0 + $0x80] sm:$0xff]  ;;  %v726_v13 = vpack.c.bf16 %v125_v12, %v124_v11  ;;  %v127_v15 = vld [vmem:[%s1049_s1 + $0x48] sm:$0xff]  ;;  %v128_v17 = vld [vmem:[%s1049_s1 + $0x50] sm:$0xff] }
   0x5   :  { %717 = vmatpush3.bf16.msra.mxu0 %v714_v3  ;;  %754 = vmatpush3.bf16.msra.mxu1 %v714_v3  ;;  %v126_v14 = vld [vmem:[%s1049_s1 + $0x40] sm:$0xff]  ;;  %v129_v18 = vld [vmem:[%s1049_s1 + $0x58] sm:$0xff] }
   0x6   :  { %719 = vmatprep.subr.bf16.mxu0 %v718_v5  ;;  %747 = vmatprep.subr.bf16.mxu1 %v718_v5  ;;  %v730_v16 = vpack.c.bf16 %v127_v15, %v126_v14 }
   0x7   :  { %666 = vmatprep.mubr.f32.mxu0 %v86_v9  ;;  %690 = vmatprep.mubr.f32.mxu1 %v102_v10 }
   0x9   :  { %721 = vmatpush3.bf16.msra.mxu0 %v718_v5  ;;  %755 = vmatpush3.bf16.msra.mxu1 %v718_v5 }
   0xa   :  { %723 = vmatprep.subr.bf16.mxu0 %v722_v8  ;;  %748 = vmatprep.subr.bf16.mxu1 %v722_v8 }
   0xd   :  { %725 = vmatpush3.bf16.msra.mxu0 %v722_v8  ;;  %756 = vmatpush3.bf16.msra.mxu1 %v722_v8 }
   0xe   :  { %727 = vmatprep.subr.bf16.mxu0 %v726_v13  ;;  %749 = vmatprep.subr.bf16.mxu1 %v726_v13 }
  0x11   :  { %729 = vmatpush3.bf16.msra.mxu0 %v726_v13  ;;  %757 = vmatpush3.bf16.msra.mxu1 %v726_v13 }
  0x12   :  { %9 = vsyncpa [#allocation3], 0  ;;  %731 = vmatprep.subr.bf16.mxu0 %v730_v16  ;;  %750 = vmatprep.subr.bf16.mxu1 %v730_v16  ;;  %v734_v19 = vpack.c.bf16 %v129_v18, %v128_v17  ;;  %v130_v20 = vld [vmem:[%s1049_s1 + $0x60] sm:$0xff]  ;;  %v131_v21 = vld [vmem:[%s1049_s1 + $0x68] sm:$0xff] }
  0x13   :  { %v738_v22 = vpack.c.bf16 %v131_v21, %v130_v20  ;;  %v132_v23 = vld [vmem:[%s1049_s1 + $0x70] sm:$0xff]  ;;  %v133_v24 = vld [vmem:[%s1049_s1 + $0x78] sm:$0xff]  ;;  %v87_v26 = vld [vmem:[%s1048_s0 + $0x8] sm:$0xff] }
  0x14   :  { %v742_v25 = vpack.c.bf16 %v133_v24, %v132_v23  ;;  %v103_v27 = vld [vmem:[%s1048_s0 + $0x88] sm:$0xff]  ;;  %v88_v28 = vld [vmem:[%s1048_s0 + $0x10] sm:$0xff]  ;;  %v89_v30 = vld [vmem:[%s1048_s0 + $0x18] sm:$0xff] }
  0x15   :  { %733 = vmatpush3.bf16.msra.mxu0 %v730_v16  ;;  %758 = vmatpush3.bf16.msra.mxu1 %v730_v16  ;;  %v104_v29 = vld [vmem:[%s1048_s0 + $0x90] sm:$0xff]  ;;  %v105_v31 = vld [vmem:[%s1048_s0 + $0x98] sm:$0xff]  ;;  %v90_v32 = vld [vmem:[%s1048_s0 + $0x20] sm:$0xff] }
  0x16   :  { %735 = vmatprep.subr.bf16.mxu0 %v734_v19  ;;  %751 = vmatprep.subr.bf16.mxu1 %v734_v19  ;;  %v106_v33 = vld [vmem:[%s1048_s0 + $0xa0] sm:$0xff]  ;;  %v91_v34 = vld [vmem:[%s1048_s0 + $0x28] sm:$0xff]  ;;  %v92_v36 = vld [vmem:[%s1048_s0 + $0x30] sm:$0xff] }
  0x17   :  { %v107_v35 = vld [vmem:[%s1048_s0 + $0xa8] sm:$0xff]  ;;  %v108_v37 = vld [vmem:[%s1048_s0 + $0xb0] sm:$0xff]  ;;  %v93_v38 = vld [vmem:[%s1048_s0 + $0x38] sm:$0xff] }
  0x18   :  { %v109_v39 = vld [vmem:[%s1048_s0 + $0xb8] sm:$0xff]  ;;  %v94_v40 = vld [vmem:[%s1048_s0 + $0x40] sm:$0xff]  ;;  %v95_v42 = vld [vmem:[%s1048_s0 + $0x48] sm:$0xff] }
  0x19   :  { %737 = vmatpush3.bf16.msra.mxu0 %v734_v19  ;;  %759 = vmatpush3.bf16.msra.mxu1 %v734_v19  ;;  %v110_v41 = vld [vmem:[%s1048_s0 + $0xc0] sm:$0xff]  ;;  %v111_v43 = vld [vmem:[%s1048_s0 + $0xc8] sm:$0xff]  ;;  %v96_v44 = vld [vmem:[%s1048_s0 + $0x50] sm:$0xff] }
  0x1a   :  { %739 = vmatprep.subr.bf16.mxu0 %v738_v22  ;;  %752 = vmatprep.subr.bf16.mxu1 %v738_v22  ;;  %v112_v45 = vld [vmem:[%s1048_s0 + $0xd0] sm:$0xff]  ;;  %v97_v46 = vld [vmem:[%s1048_s0 + $0x58] sm:$0xff]  ;;  %v98_v48 = vld [vmem:[%s1048_s0 + $0x60] sm:$0xff] }
  0x1b   :  { %v113_v47 = vld [vmem:[%s1048_s0 + $0xd8] sm:$0xff]  ;;  %v114_v49 = vld [vmem:[%s1048_s0 + $0xe0] sm:$0xff]  ;;  %v99_v50 = vld [vmem:[%s1048_s0 + $0x68] sm:$0xff] }
  0x1c   :  { %v115_v51 = vld [vmem:[%s1048_s0 + $0xe8] sm:$0xff]  ;;  %v100_v52 = vld [vmem:[%s1048_s0 + $0x70] sm:$0xff]  ;;  %v101_v54 = vld [vmem:[%s1048_s0 + $0x78] sm:$0xff] }
  0x1d   :  { %741 = vmatpush3.bf16.msra.mxu0 %v738_v22  ;;  %760 = vmatpush3.bf16.msra.mxu1 %v738_v22  ;;  %v116_v53 = vld [vmem:[%s1048_s0 + $0xf0] sm:$0xff]  ;;  %v117_v55 = vld [vmem:[%s1048_s0 + $0xf8] sm:$0xff]  ;;  %v965_v57 = vld [vmem:[%s1050_s2] ss:$0 sm:$0xff]  ;;  %s790_s0 = smov [#allocation2]  }
  0x1e   :  { %743 = vmatprep.subr.bf16.mxu0 %v742_v25  ;;  %753 = vmatprep.subr.bf16.mxu1 %v742_v25  ;;  %v970_v61 = vld [vmem:[%s1051_s3] ss:$0 sm:$0xff]  ;;  %s573_s2 = sshll.u32 %s790_s0, 4  ;;  %s574_s2 = int_to_ptr.vmem [resolvable:$true] %s573_s2 }
  0x1f   :  { %s766_s3 = scalar_lea.vmem %s574_s2, 4096  ;;  %p771_p1 = scmp.lt.s32.totalorder %s574_s2, %s574_s2 }
  0x20   :  { %p767_p0 = scmp.ne.s32.totalorder %s574_s2, %s766_s3  ;;  %p772_p2 = scmp.lt.s32.totalorder %s766_s3, %s766_s3 }
  0x21   :  { %745 = vmatpush3.bf16.msra.mxu0 %v742_v25  ;;  %761 = vmatpush3.bf16.msra.mxu1 %v742_v25 }
  0x22   :  { %p773_p3 = por %p772_p2, %p771_p1 }
  0x24   :  { %667 = vmatmul.mubr.f32.vlgmr.msra.gmra.mrb[0].mxu0 %v87_v26  ;;  %691 = vmatmul.mubr.f32.vlgmr.msra.gmra.mrb[0].mxu1 %v103_v27  ;;  %p774_p4 = pnand %p773_p3, %p767_p0 }
  0x25   :  { %669 = vmatprep.mubr.f32.mxu0 %v88_v28  ;;  %693 = vmatprep.mubr.f32.mxu1 %v104_v29 }
  0x28   :  { %670 = vmatmul.mubr.f32.gmra.mrb[2].mxu0 %v89_v30  ;;  %694 = vmatmul.mubr.f32.gmra.mrb[2].mxu1 %v105_v31 }
  0x29   :  { %672 = vmatprep.mubr.f32.mxu0 %v90_v32  ;;  %696 = vmatprep.mubr.f32.mxu1 %v106_v33 }
  0x2c   :  { %673 = vmatmul.mubr.f32.gmra.mrb[4].mxu0 %v91_v34  ;;  %697 = vmatmul.mubr.f32.gmra.mrb[4].mxu1 %v107_v35 }
  0x2d   :  { %675 = vmatprep.mubr.f32.mxu0 %v92_v36  ;;  %699 = vmatprep.mubr.f32.mxu1 %v108_v37 }
  0x30   :  { %676 = vmatmul.mubr.f32.gmra.mrb[6].mxu0 %v93_v38  ;;  %700 = vmatmul.mubr.f32.gmra.mrb[6].mxu1 %v109_v39 }
  0x31   :  { %678 = vmatprep.mubr.f32.mxu0 %v94_v40  ;;  %702 = vmatprep.mubr.f32.mxu1 %v110_v41 }
  0x34   :  { %679 = vmatmul.mubr.f32.gmra.mrb[8].mxu0 %v95_v42  ;;  %703 = vmatmul.mubr.f32.gmra.mrb[8].mxu1 %v111_v43 }
  0x35   :  { %681 = vmatprep.mubr.f32.mxu0 %v96_v44  ;;  %705 = vmatprep.mubr.f32.mxu1 %v112_v45 }
  0x38   :  { %682 = vmatmul.mubr.f32.gmra.mrb[10].mxu0 %v97_v46  ;;  %706 = vmatmul.mubr.f32.gmra.mrb[10].mxu1 %v113_v47 }
  0x39   :  { %684 = vmatprep.mubr.f32.mxu0 %v98_v48  ;;  %708 = vmatprep.mubr.f32.mxu1 %v114_v49 }
  0x3c   :  { %685 = vmatmul.mubr.f32.gmra.mrb[12].mxu0 %v99_v50  ;;  %709 = vmatmul.mubr.f32.gmra.mrb[12].mxu1 %v115_v51 }
  0x3d   :  { %687 = vmatprep.mubr.f32.mxu0 %v100_v52  ;;  %711 = vmatprep.mubr.f32.mxu1 %v116_v53 }
  0x40   :  { %688 = vmatmul.mubr.f32.gmra.mrb[14].mxu0 %v101_v54  ;;  %712 = vmatmul.mubr.f32.gmra.mrb[14].mxu1 %v117_v55 }
  0xf7   :  { %v668_v56 = vpop.f32.mrb[0].mxu0  ;;  %v692_v58 = vpop.f32.mrb[0].mxu1 }
  0xf8   :  { %v200_v59 = vpop.f32.mrb[1].mxu0  ;;  %v280_v60 = vpop.f32.mrb[1].mxu1  ;;  %v466_v62 = vmul.f32 %v668_v56, %v965_v57  ;;  %v482_v63 = vmul.f32 %v692_v58, %v965_v57 }
  0xf9   :  { %v465_v0 = vmul.f32 %v965_v57, %v200_v59  ;;  %v481_v1 = vmul.f32 %v965_v57, %v280_v60 }
  0xfa   :  { %v505_v4 = vadd.f32 %v970_v61, %v466_v62  ;;  %v521_v5 = vadd.f32 %v970_v61, %v482_v63 }
  0xfb   :  { %v671_v2 = vpop.f32.mrb[2].mxu0  ;;  %v695_v3 = vpop.f32.mrb[2].mxu1  ;;  %v504_v8 = vadd.f32 %v970_v61, %v465_v0  ;;  %v520_v9 = vadd.f32 %v970_v61, %v481_v1 }
  0xfc   :  { %v210_v6 = vpop.f32.mrb[3].mxu0  ;;  %v290_v7 = vpop.f32.mrb[3].mxu1  ;;  %537 = vst [vmem:[#allocation2 + $0x8] sm:$0xff] %v505_v4  ;;  %553 = vst [vmem:[#allocation2 + $0x88] sm:$0xff] %v521_v5  ;;  %v468_v10 = vmul.f32 %v671_v2, %v965_v57  ;;  %v484_v11 = vmul.f32 %v695_v3, %v965_v57 }
  0xfd   :  { %536 = vst [vmem:[#allocation2] sm:$0xff] %v504_v8  ;;  %552 = vst [vmem:[#allocation2 + $0x80] sm:$0xff] %v520_v9  ;;  %v467_v12 = vmul.f32 %v965_v57, %v210_v6  ;;  %v483_v13 = vmul.f32 %v965_v57, %v290_v7 }
  0xfe   :  { %v507_v16 = vadd.f32 %v970_v61, %v468_v10  ;;  %v523_v17 = vadd.f32 %v970_v61, %v484_v11 }
  0xff   :  { %v674_v14 = vpop.f32.mrb[4].mxu0  ;;  %v698_v15 = vpop.f32.mrb[4].mxu1  ;;  %v506_v20 = vadd.f32 %v970_v61, %v467_v12  ;;  %v522_v21 = vadd.f32 %v970_v61, %v483_v13 }
 0x100   :  { %v220_v18 = vpop.f32.mrb[5].mxu0  ;;  %v300_v19 = vpop.f32.mrb[5].mxu1  ;;  %539 = vst [vmem:[#allocation2 + $0x18] sm:$0xff] %v507_v16  ;;  %555 = vst [vmem:[#allocation2 + $0x98] sm:$0xff] %v523_v17  ;;  %v470_v22 = vmul.f32 %v674_v14, %v965_v57  ;;  %v486_v23 = vmul.f32 %v698_v15, %v965_v57 }
 0x101   :  { %538 = vst [vmem:[#allocation2 + $0x10] sm:$0xff] %v506_v20  ;;  %554 = vst [vmem:[#allocation2 + $0x90] sm:$0xff] %v522_v21  ;;  %v469_v24 = vmul.f32 %v965_v57, %v220_v18  ;;  %v485_v25 = vmul.f32 %v965_v57, %v300_v19 }
 0x102   :  { %v509_v28 = vadd.f32 %v970_v61, %v470_v22  ;;  %v525_v29 = vadd.f32 %v970_v61, %v486_v23 }
 0x103   :  { %v677_v26 = vpop.f32.mrb[6].mxu0  ;;  %v701_v27 = vpop.f32.mrb[6].mxu1  ;;  %v508_v32 = vadd.f32 %v970_v61, %v469_v24  ;;  %v524_v33 = vadd.f32 %v970_v61, %v485_v25 }
 0x104   :  { %v230_v30 = vpop.f32.mrb[7].mxu0  ;;  %v310_v31 = vpop.f32.mrb[7].mxu1  ;;  %541 = vst [vmem:[#allocation2 + $0x28] sm:$0xff] %v509_v28  ;;  %557 = vst [vmem:[#allocation2 + $0xa8] sm:$0xff] %v525_v29  ;;  %v472_v34 = vmul.f32 %v677_v26, %v965_v57  ;;  %v488_v35 = vmul.f32 %v701_v27, %v965_v57 }
 0x105   :  { %540 = vst [vmem:[#allocation2 + $0x20] sm:$0xff] %v508_v32  ;;  %556 = vst [vmem:[#allocation2 + $0xa0] sm:$0xff] %v524_v33  ;;  %v471_v36 = vmul.f32 %v965_v57, %v230_v30  ;;  %v487_v37 = vmul.f32 %v965_v57, %v310_v31 }
 0x106   :  { %v511_v40 = vadd.f32 %v970_v61, %v472_v34  ;;  %v527_v41 = vadd.f32 %v970_v61, %v488_v35 }
 0x107   :  { %v680_v38 = vpop.f32.mrb[8].mxu0  ;;  %v704_v39 = vpop.f32.mrb[8].mxu1  ;;  %v510_v44 = vadd.f32 %v970_v61, %v471_v36  ;;  %v526_v45 = vadd.f32 %v970_v61, %v487_v37 }
 0x108   :  { %v240_v42 = vpop.f32.mrb[9].mxu0  ;;  %v320_v43 = vpop.f32.mrb[9].mxu1  ;;  %543 = vst [vmem:[#allocation2 + $0x38] sm:$0xff] %v511_v40  ;;  %559 = vst [vmem:[#allocation2 + $0xb8] sm:$0xff] %v527_v41  ;;  %v474_v46 = vmul.f32 %v680_v38, %v965_v57  ;;  %v490_v47 = vmul.f32 %v704_v39, %v965_v57 }
 0x109   :  { %542 = vst [vmem:[#allocation2 + $0x30] sm:$0xff] %v510_v44  ;;  %558 = vst [vmem:[#allocation2 + $0xb0] sm:$0xff] %v526_v45  ;;  %v473_v48 = vmul.f32 %v965_v57, %v240_v42  ;;  %v489_v49 = vmul.f32 %v965_v57, %v320_v43 }
 0x10a   :  { %v513_v52 = vadd.f32 %v970_v61, %v474_v46  ;;  %v529_v53 = vadd.f32 %v970_v61, %v490_v47 }
 0x10b   :  { %v683_v50 = vpop.f32.mrb[10].mxu0  ;;  %v707_v51 = vpop.f32.mrb[10].mxu1  ;;  %v512_v56 = vadd.f32 %v970_v61, %v473_v48  ;;  %v528_v58 = vadd.f32 %v970_v61, %v489_v49 }
 0x10c   :  { %v250_v54 = vpop.f32.mrb[11].mxu0  ;;  %v330_v55 = vpop.f32.mrb[11].mxu1  ;;  %545 = vst [vmem:[#allocation2 + $0x48] sm:$0xff] %v513_v52  ;;  %561 = vst [vmem:[#allocation2 + $0xc8] sm:$0xff] %v529_v53  ;;  %v476_v59 = vmul.f32 %v683_v50, %v965_v57  ;;  %v492_v60 = vmul.f32 %v707_v51, %v965_v57 }
 0x10d   :  { %544 = vst [vmem:[#allocation2 + $0x40] sm:$0xff] %v512_v56  ;;  %560 = vst [vmem:[#allocation2 + $0xc0] sm:$0xff] %v528_v58  ;;  %v475_v62 = vmul.f32 %v965_v57, %v250_v54  ;;  %v491_v63 = vmul.f32 %v965_v57, %v330_v55 }
 0x10e   :  { %v515_v2 = vadd.f32 %v970_v61, %v476_v59  ;;  %v531_v3 = vadd.f32 %v970_v61, %v492_v60 }
 0x10f   :  { %v686_v0 = vpop.f32.mrb[12].mxu0  ;;  %v710_v1 = vpop.f32.mrb[12].mxu1  ;;  %v514_v6 = vadd.f32 %v970_v61, %v475_v62  ;;  %v530_v7 = vadd.f32 %v970_v61, %v491_v63 }
 0x110   :  { %v260_v4 = vpop.f32.mrb[13].mxu0  ;;  %v340_v5 = vpop.f32.mrb[13].mxu1  ;;  %547 = vst [vmem:[#allocation2 + $0x58] sm:$0xff] %v515_v2  ;;  %563 = vst [vmem:[#allocation2 + $0xd8] sm:$0xff] %v531_v3  ;;  %v478_v8 = vmul.f32 %v686_v0, %v965_v57  ;;  %v494_v9 = vmul.f32 %v710_v1, %v965_v57 }
 0x111   :  { %546 = vst [vmem:[#allocation2 + $0x50] sm:$0xff] %v514_v6  ;;  %562 = vst [vmem:[#allocation2 + $0xd0] sm:$0xff] %v530_v7  ;;  %v477_v10 = vmul.f32 %v965_v57, %v260_v4  ;;  %v493_v11 = vmul.f32 %v965_v57, %v340_v5 }
 0x112   :  { %v517_v14 = vadd.f32 %v970_v61, %v478_v8  ;;  %v533_v15 = vadd.f32 %v970_v61, %v494_v9 }
 0x113   :  { %v689_v12 = vpop.f32.mrb[14].mxu0  ;;  %v713_v13 = vpop.f32.mrb[14].mxu1  ;;  %v516_v18 = vadd.f32 %v970_v61, %v477_v10  ;;  %v532_v19 = vadd.f32 %v970_v61, %v493_v11 }
 0x114   :  { %v270_v16 = vpop.f32.mrb[15].mxu0  ;;  %v350_v17 = vpop.f32.mrb[15].mxu1  ;;  %549 = vst [vmem:[#allocation2 + $0x68] sm:$0xff] %v517_v14  ;;  %565 = vst [vmem:[#allocation2 + $0xe8] sm:$0xff] %v533_v15  ;;  %v480_v20 = vmul.f32 %v689_v12, %v965_v57  ;;  %v496_v21 = vmul.f32 %v713_v13, %v965_v57 }
 0x115   :  { %548 = vst [vmem:[#allocation2 + $0x60] sm:$0xff] %v516_v18  ;;  %564 = vst [vmem:[#allocation2 + $0xe0] sm:$0xff] %v532_v19  ;;  %v479_v22 = vmul.f32 %v965_v57, %v270_v16  ;;  %v495_v23 = vmul.f32 %v965_v57, %v350_v17 }
 0x116   :  { %v519_v24 = vadd.f32 %v970_v61, %v480_v20  ;;  %v535_v25 = vadd.f32 %v970_v61, %v496_v21 }
 0x117   :  { %v518_v26 = vadd.f32 %v970_v61, %v479_v22  ;;  %v534_v27 = vadd.f32 %v970_v61, %v495_v23 }
 0x118   :  { %551 = vst [vmem:[#allocation2 + $0x78] sm:$0xff] %v519_v24  ;;  %567 = vst [vmem:[#allocation2 + $0xf8] sm:$0xff] %v535_v25 }
 0x119   :  { %550 = vst [vmem:[#allocation2 + $0x70] sm:$0xff] %v518_v26  ;;  %566 = vst [vmem:[#allocation2 + $0xf0] sm:$0xff] %v534_v27 }
 0x11a   :  { %777 = shalt.err (!%p774_p4)
}
 0x11b   :  { %s778_s10 = scalar_lea.hbm %s1052_s4, 4096 }
 0x11c   :  { %p779_p5 = scmp.ne.s32.totalorder %s1052_s4, %s778_s10  ;;  %p782_p6 = scmp.lt.u32.totalorder %s778_s10, %s1052_s4 }
 0x11e   :  { %p784_p7 = pnand %p782_p6, %p779_p5 }
 0x120   :  { %787 = shalt.err (!%p784_p7)
}
 0x121   :  { %s791_s15 = smov 128   ;;  %s792_s16 = smov 8  }
 0x122   :  { %579 = dma.vmem_to_hbm [thread:$0]  %s574_s2, 4096, %s1052_s4, [#allocation3], %s791_s15, %s791_s15, %s792_s16  }
 0x123   :  { %788 = dma.done.wait [#allocation3], 4096  }
 0x124   :  { %789 = vsyncadd [#allocation3], 4294963200 }
 0x125   :  { %583 = vsyncpa [#allocation3], 1 }

</bundles_post_ra>
